<compile_context>
chip_gen: v5e
topology: v5e:2x2
jax: 0.10.0
libtpu: 0.0.40
codegen_flags: <defaults>
</compile_context>

<pallas_src>
import functools
import math

import jax
import jax.numpy as jnp
from jax.experimental import pallas as pl
from jax.experimental.pallas import tpu as pltpu

# ------------------------- model hyper-parameters (small, synthetic) --------
D_INPUT = 64      # stand-in for 768/512 backbone dim
D_MODEL = 32
NHEAD = 4
D_PROJ = 16
D_FFN = 64
ENC_LAYERS = 2
DEC_LAYERS = 2
MAX_TEXT_POS = 1024
SLAB_W = 128      # lane-dense packing width of the parameter slab

B, T_VIS, S_TXT = 2, 16, 8

ATTN_NAMES = tuple([f"enc{i}_sa" for i in range(ENC_LAYERS)]
                   + [f"dec{i}_sa" for i in range(DEC_LAYERS)]
                   + [f"dec{i}_ca" for i in range(DEC_LAYERS)])
FFN_NAMES = tuple([f"enc{i}_ffn" for i in range(ENC_LAYERS)]
                  + [f"dec{i}_ffn" for i in range(DEC_LAYERS)])
LN_NAMES = tuple(["visual_proj_ln", "text_proj_ln"]
                 + [f"enc{i}_norm{j}" for i in range(ENC_LAYERS) for j in (1, 2)]
                 + [f"dec{i}_norm{j}" for i in range(DEC_LAYERS) for j in (1, 2, 3)]
                 + ["dec_norm"])


# ============================ fused Pallas kernel ===========================
def _detr_kernel(vis_ref, txt_ref, vmask_ref, tmask_ref, slab_ref, o_ref, *,
                 index, bsz, t_len, s_len, nhead, enc_layers, dec_layers):
    """Entire DETR forward (both batch elements), fully VMEM-resident."""
    f32 = jnp.float32
    D = D_MODEL
    dh = D // nhead

    # ---- static carve-up of the single parameter slab (free ref views) ----
    def P(name, c0=None, c1=None):
        r, n, c = index[name]
        lo = 0 if c0 is None else c0
        hi = c if c1 is None else c1
        return slab_ref[r:r + n, lo:hi]

    def ln(x, name):
        mu = jnp.mean(x, axis=-1, keepdims=True)
        xc = x - mu
        var = jnp.mean(xc * xc, axis=-1, keepdims=True)
        return xc * jax.lax.rsqrt(var + 1e-5) * P(name + "_g") + P(name + "_b")

    def lin(x, name):
        return jnp.dot(x, P(name + "_w"), preferred_element_type=f32) + P(name + "_b")

    def ffn(x, name):
        h = jnp.maximum(
            jnp.dot(x, P(name + "_w1"), preferred_element_type=f32) + P(name + "_b1"),
            0.0)
        return jnp.dot(h, P(name + "_w2"), preferred_element_type=f32) + P(name + "_b2")

    def mha(xq, xk, xv, kbias, name, lq, lk, fuse_qk):
        # xq: [B*lq, D] (query AND key input when fuse_qk); xk/xv: [B*lk, D]
        # kbias: list of B additive masks [1, lk] (0 or -1e30), hoisted.
        # 1/sqrt(dh) is already folded into the Q columns of *_wqkv / *_bqkv.
        if fuse_qk:
            qk = (jnp.dot(xq, P(name + "_wqkv", 0, 2 * D), preferred_element_type=f32)
                  + P(name + "_bqkv", 0, 2 * D))
            q, k = qk[:, 0:D], qk[:, D:2 * D]
        else:
            q = (jnp.dot(xq, P(name + "_wqkv", 0, D), preferred_element_type=f32)
                 + P(name + "_bqkv", 0, D))
            k = (jnp.dot(xk, P(name + "_wqkv", D, 2 * D), preferred_element_type=f32)
                 + P(name + "_bqkv", D, 2 * D))
        v = (jnp.dot(xv, P(name + "_wqkv", 2 * D, 3 * D), preferred_element_type=f32)
             + P(name + "_bqkv", 2 * D, 3 * D))

        per_batch = []
        for b in range(bsz):                       # unrolled, bsz == 2
            qb = q[b * lq:(b + 1) * lq, :]
            kb = k[b * lk:(b + 1) * lk, :]
            vb = v[b * lk:(b + 1) * lk, :]
            heads = []
            for h in range(nhead):                 # unrolled, static 8-lane slices
                sl = slice(h * dh, (h + 1) * dh)
                s = jax.lax.dot_general(qb[:, sl], kb[:, sl],
                                        (((1,), (1,)), ((), ())),
                                        preferred_element_type=f32) + kbias[b]
                # NOTE: a fully padded key row would give a uniform
                # distribution (torch MHA gives NaN); never hit by valid input.
                s = s - jnp.max(s, axis=-1, keepdims=True)
                e = jnp.exp(s)
                pa = e * pl.reciprocal(jnp.sum(e, axis=-1, keepdims=True), approx=True)
                heads.append(jnp.dot(pa, vb[:, sl], preferred_element_type=f32))
            per_batch.append(jnp.concatenate(heads, axis=-1))       # (lq, D)
        o = jnp.concatenate(per_batch, axis=0)                      # (B*lq, D)
        # single fused output projection for all heads & both batches
        return jnp.dot(o, P(name + "_wo"), preferred_element_type=f32) + P(name + "_bo")

    # ---------------- hoisted once per invocation ----------------
    vbias_all = jnp.where(vmask_ref[...] > 0.5, -1e30, 0.0)   # (B, T)
    tbias_all = jnp.where(tmask_ref[...] > 0.5, -1e30, 0.0)   # (B, S)
    vbias = [vbias_all[b:b + 1, :] for b in range(bsz)]
    tbias = [tbias_all[b:b + 1, :] for b in range(bsz)]
    vis_pos = P("vis_pos")          # (B*T, D) pre-tiled over batch
    txt_pos = P("txt_pos")          # (B*S, D)

    # ---------------- input projections (batch-stacked) ----------------
    src = ln(lin(vis_ref[...], "visual_proj"), "visual_proj_ln")   # (B*T, D)
    tgt = ln(lin(txt_ref[...], "text_proj"), "text_proj_ln")       # (B*S, D)

    # ---------------- transformer encoder (visual tokens) ----------------
    for i in range(enc_layers):
        qk_in = src + vis_pos
        src2 = mha(qk_in, qk_in, src, vbias, f"enc{i}_sa", t_len, t_len, True)
        src = ln(src + src2, f"enc{i}_norm1")
        src = ln(src + ffn(src, f"enc{i}_ffn"), f"enc{i}_norm2")
    memory = src
    mem_k = memory + vis_pos

    # ---------------- transformer decoder (text queries) ----------------
    for i in range(dec_layers):
        q_in = tgt + txt_pos
        tgt2 = mha(q_in, q_in, tgt, tbias, f"dec{i}_sa", s_len, s_len, True)
        tgt = ln(tgt + tgt2, f"dec{i}_norm1")
        tgt2 = mha(tgt + txt_pos, mem_k, memory, vbias, f"dec{i}_ca",
                   s_len, t_len, False)
        tgt = ln(tgt + tgt2, f"dec{i}_norm2")
        tgt = ln(tgt + ffn(tgt, f"dec{i}_ffn"), f"dec{i}_norm3")
    out_last = ln(tgt, "dec_norm")

    # ---------------- similarity head ----------------
    tfeat = lin(out_last, "t_sim")                                  # (B*S, P)
    vfeat = lin(memory, "v_sim")                                    # (B*T, P)
    tn_ = tfeat * jax.lax.rsqrt(
        jnp.maximum(jnp.sum(tfeat * tfeat, -1, keepdims=True), 1e-24))
    vn_ = vfeat * jax.lax.rsqrt(
        jnp.maximum(jnp.sum(vfeat * vfeat, -1, keepdims=True), 1e-24))
    for b in range(bsz):
        sim_b = jax.lax.dot_general(tn_[b * s_len:(b + 1) * s_len, :],
                                    vn_[b * t_len:(b + 1) * t_len, :],
                                    (((1,), (1,)), ((), ())),
                                    preferred_element_type=f32)     # (S, T)
        o_ref[b * s_len:(b + 1) * s_len, :] = sim_b


# ============================ wrapper =======================================
def make_detr_forward(index, bsz, t_len, s_len):
    """Builds the jitted forward; `index` (slab layout) is baked in statically."""
    kernel = functools.partial(
        _detr_kernel, index=index, bsz=bsz, t_len=t_len, s_len=s_len,
        nhead=NHEAD, enc_layers=ENC_LAYERS, dec_layers=DEC_LAYERS)

    call = pl.pallas_call(
        kernel,
        out_shape=jax.ShapeDtypeStruct((bsz * s_len, t_len), jnp.float32),
        # no grid: one invocation, every operand is a single full-array VMEM block
        compiler_params=pltpu.CompilerParams(vmem_limit_bytes=32 * 1024 * 1024),
    )

    @jax.jit
    def fwd(slab, visual_input, visual_padding_mask, text_input, text_padding_mask):
        vis2d = visual_input.reshape(bsz * t_len, visual_input.shape[-1])
        txt2d = text_input.reshape(bsz * s_len, text_input.shape[-1])
        vmask = visual_padding_mask.astype(jnp.float32)   # (B, T), 1.0 == padded
        tmask = text_padding_mask.astype(jnp.float32)     # (B, S)
        sim = call(vis2d, txt2d, vmask, tmask, slab)
        return sim.reshape(bsz, s_len, t_len)

    return fwd


# ============================ parameter init ================================
def init_params(key):
    keys = iter(jax.random.split(key, 64))

    def tn(shape):
        return 0.02 * jax.random.truncated_normal(next(keys), -2.0, 2.0, shape,
                                                  jnp.float32)

    z = lambda *s: jnp.zeros(s, jnp.float32)
    o = lambda *s: jnp.ones(s, jnp.float32)

    p = {
        "visual_proj_w": tn((D_INPUT, D_MODEL)), "visual_proj_b": z(1, D_MODEL),
        "text_proj_w": tn((D_INPUT, D_MODEL)), "text_proj_b": z(1, D_MODEL),
        "v_sim_w": tn((D_MODEL, D_PROJ)), "v_sim_b": z(1, D_PROJ),
        "t_sim_w": tn((D_MODEL, D_PROJ)), "t_sim_b": z(1, D_PROJ),
        "text_pos_emb": tn((MAX_TEXT_POS, D_MODEL)),
    }
    for m in ATTN_NAMES:
        p[f"{m}_wqkv"] = tn((D_MODEL, 3 * D_MODEL))   # [Wq | Wk | Wv]
        p[f"{m}_bqkv"] = z(1, 3 * D_MODEL)
        p[f"{m}_wo"] = tn((D_MODEL, D_MODEL))
        p[f"{m}_bo"] = z(1, D_MODEL)
    for m in FFN_NAMES:
        p[f"{m}_w1"] = tn((D_MODEL, D_FFN)); p[f"{m}_b1"] = z(1, D_FFN)
        p[f"{m}_w2"] = tn((D_FFN, D_MODEL)); p[f"{m}_b2"] = z(1, D_MODEL)
    for m in LN_NAMES:
        p[f"{m}_g"] = o(1, D_MODEL); p[f"{m}_b"] = z(1, D_MODEL)

    # sinusoidal positional encoding buffer (PositionalEncoding.pe)
    pos = jnp.arange(MAX_TEXT_POS, dtype=jnp.float32)[:, None]
    div = jnp.exp(jnp.arange(0, D_MODEL, 2, dtype=jnp.float32)
                  * (-math.log(10000.0) / D_MODEL))
    pe = jnp.zeros((MAX_TEXT_POS, D_MODEL), jnp.float32)
    pe = pe.at[:, 0::2].set(jnp.sin(pos * div))
    pe = pe.at[:, 1::2].set(jnp.cos(pos * div))
    p["pe"] = pe
    return p


def pack_params(params, bsz, t_len, s_len, shuffle=False):
    """Pack every parameter into ONE lane-dense (rows, 128) f32 slab.

    * 1/sqrt(dh) attention scale is folded into the Q columns of wqkv/bqkv.
    * positional tables are sliced to (t_len/s_len) and pre-tiled over batch.
    Returns (slab, index) where index[name] = (row_offset, nrows, ncols).
    """
    scale = 1.0 / math.sqrt(D_MODEL // NHEAD)
    qscale = jnp.concatenate([jnp.full((D_MODEL,), scale, jnp.float32),
                              jnp.ones((2 * D_MODEL,), jnp.float32)])[None, :]

    entries = []
    add = lambda name, arr: entries.append((name, jnp.asarray(arr, jnp.float32)))

    add("visual_proj_w", params["visual_proj_w"]); add("visual_proj_b", params["visual_proj_b"])
    add("text_proj_w", params["text_proj_w"]);     add("text_proj_b", params["text_proj_b"])
    for m in ATTN_NAMES:
        add(f"{m}_wqkv", params[f"{m}_wqkv"] * qscale)   # fold softmax scale into Q
        add(f"{m}_bqkv", params[f"{m}_bqkv"] * qscale)
        add(f"{m}_wo", params[f"{m}_wo"]); add(f"{m}_bo", params[f"{m}_bo"])
    for m in FFN_NAMES:
        add(f"{m}_w1", params[f"{m}_w1"]); add(f"{m}_b1", params[f"{m}_b1"])
        add(f"{m}_w2", params[f"{m}_w2"]); add(f"{m}_b2", params[f"{m}_b2"])
    for m in LN_NAMES:
        add(f"{m}_g", params[f"{m}_g"]); add(f"{m}_b", params[f"{m}_b"])
    add("v_sim_w", params["v_sim_w"]); add("v_sim_b", params["v_sim_b"])
    add("t_sim_w", params["t_sim_w"]); add("t_sim_b", params["t_sim_b"])

    add("vis_pos", jnp.tile(params["pe"][:t_len], (bsz, 1)))
    if shuffle:
        add("txt_pos", jnp.zeros((bsz * s_len, D_MODEL), jnp.float32))
    else:
        add("txt_pos", jnp.tile(params["text_pos_emb"][:s_len], (bsz, 1)))

    rows, index, off = [], {}, 0
    for name, arr in entries:
        r, c = arr.shape
        assert c <= SLAB_W
        pad = (-off) % 8                      # sublane-align every entry
        if pad:
            rows.append(jnp.zeros((pad, SLAB_W), jnp.float32)); off += pad
        rows.append(jnp.pad(arr, ((0, 0), (0, SLAB_W - c))))
        index[name] = (off, r, c)
        off += r
    pad = (-off) % 8
    if pad:
        rows.append(jnp.zeros((pad, SLAB_W), jnp.float32))
    slab = jnp.concatenate(rows, axis=0)
    return slab, index


# ================================ main ======================================
if __name__ == "__main__":
    root = jax.random.PRNGKey(0)
    k_params, k_vis, k_txt = jax.random.split(root, 3)

    params = init_params(k_params)

    visual_input = jax.random.normal(k_vis, (B, T_VIS, D_INPUT), jnp.float32)
    text_input = jax.random.normal(k_txt, (B, S_TXT, D_INPUT), jnp.float32)

    # key padding masks: True == padded position
    visual_padding_mask = jnp.zeros((B, T_VIS), jnp.bool_).at[1, -4:].set(True)
    text_padding_mask = jnp.zeros((B, S_TXT), jnp.bool_).at[1, -2:].set(True)

    slab, index = pack_params(params, B, T_VIS, S_TXT, shuffle=False)
    fwd = make_detr_forward(index, B, T_VIS, S_TXT)

    out = fwd(slab, visual_input, visual_padding_mask, text_input,
              text_padding_mask)
    out = jax.block_until_ready(out)

    assert out.shape == (B, S_TXT, T_VIS), out.shape
    assert bool(jnp.all(jnp.isfinite(out)))
    print("KERNEL_OK")
</pallas_src>

<mosaic_0001>
module attributes {stable_mosaic.version = 11 : i64} {
  func.func @_detr_kernel(%arg0: memref<32x64xf32, #tpu.memory_space<vmem>>, %arg1: memref<16x64xf32, #tpu.memory_space<vmem>>, %arg2: memref<2x16xf32, #tpu.memory_space<vmem>>, %arg3: memref<2x8xf32, #tpu.memory_space<vmem>>, %arg4: memref<1408x128xf32, #tpu.memory_space<vmem>>, %arg5: memref<16x16xf32, #tpu.memory_space<vmem>>) attributes {dimension_semantics = [], scalar_prefetch = 0 : i64, scratch_operands = 0 : i64, tpu.core_type = #tpu.core_type<tc>} {
    %c0 = arith.constant 0 : index
    %c0_0 = arith.constant 0 : index
    %0 = vector.load %arg2[%c0, %c0_0] : memref<2x16xf32, #tpu.memory_space<vmem>>, vector<2x16xf32>
    %cst = arith.constant 5.000000e-01 : f32
    %1 = vector.broadcast %cst : f32 to vector<2x16xf32>
    %2 = arith.cmpf ogt, %0, %1 : vector<2x16xf32>
    %cst_1 = arith.constant -1.000000e+30 : f32
    %cst_2 = arith.constant 0.000000e+00 : f32
    %3 = vector.broadcast %cst_1 : f32 to vector<2x16xf32>
    %4 = vector.broadcast %cst_2 : f32 to vector<2x16xf32>
    %5 = arith.select %2, %3, %4 : vector<2x16xi1>, vector<2x16xf32>
    %c0_3 = arith.constant 0 : index
    %c0_4 = arith.constant 0 : index
    %6 = vector.load %arg3[%c0_3, %c0_4] : memref<2x8xf32, #tpu.memory_space<vmem>>, vector<2x8xf32>
    %cst_5 = arith.constant 5.000000e-01 : f32
    %7 = vector.broadcast %cst_5 : f32 to vector<2x8xf32>
    %8 = arith.cmpf ogt, %6, %7 : vector<2x8xf32>
    %cst_6 = arith.constant -1.000000e+30 : f32
    %cst_7 = arith.constant 0.000000e+00 : f32
    %9 = vector.broadcast %cst_6 : f32 to vector<2x8xf32>
    %10 = vector.broadcast %cst_7 : f32 to vector<2x8xf32>
    %11 = arith.select %8, %9, %10 : vector<2x8xi1>, vector<2x8xf32>
    %12 = vector.extract_strided_slice %5 {offsets = [0, 0], sizes = [1, 16], strides = [1, 1]} : vector<2x16xf32> to vector<1x16xf32>
    %13 = vector.extract_strided_slice %5 {offsets = [1, 0], sizes = [1, 16], strides = [1, 1]} : vector<2x16xf32> to vector<1x16xf32>
    %14 = vector.extract_strided_slice %11 {offsets = [0, 0], sizes = [1, 8], strides = [1, 1]} : vector<2x8xf32> to vector<1x8xf32>
    %15 = vector.extract_strided_slice %11 {offsets = [1, 0], sizes = [1, 8], strides = [1, 1]} : vector<2x8xf32> to vector<1x8xf32>
    %c1360 = arith.constant 1360 : index
    %c0_8 = arith.constant 0 : index
    %16 = vector.load %arg4[%c1360, %c0_8] : memref<1408x128xf32, #tpu.memory_space<vmem>>, vector<32x32xf32>
    %c1392 = arith.constant 1392 : index
    %c0_9 = arith.constant 0 : index
    %17 = vector.load %arg4[%c1392, %c0_9] : memref<1408x128xf32, #tpu.memory_space<vmem>>, vector<16x32xf32>
    %c0_10 = arith.constant 0 : index
    %c0_11 = arith.constant 0 : index
    %18 = vector.load %arg0[%c0_10, %c0_11] : memref<32x64xf32, #tpu.memory_space<vmem>>, vector<32x64xf32>
    %c0_12 = arith.constant 0 : index
    %c0_13 = arith.constant 0 : index
    %19 = vector.load %arg4[%c0_12, %c0_13] : memref<1408x128xf32, #tpu.memory_space<vmem>>, vector<64x32xf32>
    %cst_14 = arith.constant dense<0.000000e+00> : vector<32x32xf32>
    %20 = tpu.matmul %18, %19, %cst_14 {dimension_numbers = #tpu.dot_dimension_numbers<[1], [0], [0], [1], [0, 0, 1, 1], [], []>} : vector<32x64xf32>, vector<64x32xf32>, vector<32x32xf32> -> vector<32x32xf32>
    %c64 = arith.constant 64 : index
    %c0_15 = arith.constant 0 : index
    %21 = vector.load %arg4[%c64, %c0_15] : memref<1408x128xf32, #tpu.memory_space<vmem>>, vector<1x32xf32>
    %22 = vector.broadcast %21 : vector<1x32xf32> to vector<32x32xf32>
    %23 = arith.addf %20, %22 : vector<32x32xf32>
    %cst_16 = arith.constant dense<0.000000e+00> : vector<32xf32>
    %24 = vector.multi_reduction <add>, %23, %cst_16 [1] : vector<32x32xf32> to vector<32xf32>
    %25 = vector.shape_cast %24 : vector<32xf32> to vector<32x1xf32>
    %cst_17 = arith.constant 3.200000e+01 : f32
    %26 = vector.broadcast %cst_17 : f32 to vector<32x1xf32>
    %27 = arith.divf %25, %26 : vector<32x1xf32>
    %28 = vector.broadcast %27 : vector<32x1xf32> to vector<32x32xf32>
    %29 = arith.subf %23, %28 : vector<32x32xf32>
    %30 = arith.mulf %29, %29 : vector<32x32xf32>
    %cst_18 = arith.constant dense<0.000000e+00> : vector<32xf32>
    %31 = vector.multi_reduction <add>, %30, %cst_18 [1] : vector<32x32xf32> to vector<32xf32>
    %32 = vector.shape_cast %31 : vector<32xf32> to vector<32x1xf32>
    %cst_19 = arith.constant 3.200000e+01 : f32
    %33 = vector.broadcast %cst_19 : f32 to vector<32x1xf32>
    %34 = arith.divf %32, %33 : vector<32x1xf32>
    %cst_20 = arith.constant 9.99999974E-6 : f32
    %35 = vector.broadcast %cst_20 : f32 to vector<32x1xf32>
    %36 = arith.addf %34, %35 : vector<32x1xf32>
    %37 = math.rsqrt %36 : vector<32x1xf32>
    %38 = vector.broadcast %37 : vector<32x1xf32> to vector<32x32xf32>
    %39 = arith.mulf %29, %38 : vector<32x32xf32>
    %c1072 = arith.constant 1072 : index
    %c0_21 = arith.constant 0 : index
    %40 = vector.load %arg4[%c1072, %c0_21] : memref<1408x128xf32, #tpu.memory_space<vmem>>, vector<1x32xf32>
    %41 = vector.broadcast %40 : vector<1x32xf32> to vector<32x32xf32>
    %42 = arith.mulf %39, %41 : vector<32x32xf32>
    %c1080 = arith.constant 1080 : index
    %c0_22 = arith.constant 0 : index
    %43 = vector.load %arg4[%c1080, %c0_22] : memref<1408x128xf32, #tpu.memory_space<vmem>>, vector<1x32xf32>
    %44 = vector.broadcast %43 : vector<1x32xf32> to vector<32x32xf32>
    %45 = arith.addf %42, %44 : vector<32x32xf32>
    %c0_23 = arith.constant 0 : index
    %c0_24 = arith.constant 0 : index
    %46 = vector.load %arg1[%c0_23, %c0_24] : memref<16x64xf32, #tpu.memory_space<vmem>>, vector<16x64xf32>
    %c72 = arith.constant 72 : index
    %c0_25 = arith.constant 0 : index
    %47 = vector.load %arg4[%c72, %c0_25] : memref<1408x128xf32, #tpu.memory_space<vmem>>, vector<64x32xf32>
    %cst_26 = arith.constant dense<0.000000e+00> : vector<16x32xf32>
    %48 = tpu.matmul %46, %47, %cst_26 {dimension_numbers = #tpu.dot_dimension_numbers<[1], [0], [0], [1], [0, 0, 1, 1], [], []>} : vector<16x64xf32>, vector<64x32xf32>, vector<16x32xf32> -> vector<16x32xf32>
    %c136 = arith.constant 136 : index
    %c0_27 = arith.constant 0 : index
    %49 = vector.load %arg4[%c136, %c0_27] : memref<1408x128xf32, #tpu.memory_space<vmem>>, vector<1x32xf32>
    %50 = vector.broadcast %49 : vector<1x32xf32> to vector<16x32xf32>
    %51 = arith.addf %48, %50 : vector<16x32xf32>
    %cst_28 = arith.constant dense<0.000000e+00> : vector<16xf32>
    %52 = vector.multi_reduction <add>, %51, %cst_28 [1] : vector<16x32xf32> to vector<16xf32>
    %53 = vector.shape_cast %52 : vector<16xf32> to vector<16x1xf32>
    %cst_29 = arith.constant 3.200000e+01 : f32
    %54 = vector.broadcast %cst_29 : f32 to vector<16x1xf32>
    %55 = arith.divf %53, %54 : vector<16x1xf32>
    %56 = vector.broadcast %55 : vector<16x1xf32> to vector<16x32xf32>
    %57 = arith.subf %51, %56 : vector<16x32xf32>
    %58 = arith.mulf %57, %57 : vector<16x32xf32>
    %cst_30 = arith.constant dense<0.000000e+00> : vector<16xf32>
    %59 = vector.multi_reduction <add>, %58, %cst_30 [1] : vector<16x32xf32> to vector<16xf32>
    %60 = vector.shape_cast %59 : vector<16xf32> to vector<16x1xf32>
    %cst_31 = arith.constant 3.200000e+01 : f32
    %61 = vector.broadcast %cst_31 : f32 to vector<16x1xf32>
    %62 = arith.divf %60, %61 : vector<16x1xf32>
    %cst_32 = arith.constant 9.99999974E-6 : f32
    %63 = vector.broadcast %cst_32 : f32 to vector<16x1xf32>
    %64 = arith.addf %62, %63 : vector<16x1xf32>
    %65 = math.rsqrt %64 : vector<16x1xf32>
    %66 = vector.broadcast %65 : vector<16x1xf32> to vector<16x32xf32>
    %67 = arith.mulf %57, %66 : vector<16x32xf32>
    %c1088 = arith.constant 1088 : index
    %c0_33 = arith.constant 0 : index
    %68 = vector.load %arg4[%c1088, %c0_33] : memref<1408x128xf32, #tpu.memory_space<vmem>>, vector<1x32xf32>
    %69 = vector.broadcast %68 : vector<1x32xf32> to vector<16x32xf32>
    %70 = arith.mulf %67, %69 : vector<16x32xf32>
    %c1096 = arith.constant 1096 : index
    %c0_34 = arith.constant 0 : index
    %71 = vector.load %arg4[%c1096, %c0_34] : memref<1408x128xf32, #tpu.memory_space<vmem>>, vector<1x32xf32>
    %72 = vector.broadcast %71 : vector<1x32xf32> to vector<16x32xf32>
    %73 = arith.addf %70, %72 : vector<16x32xf32>
    %74 = arith.addf %45, %16 : vector<32x32xf32>
    %c144 = arith.constant 144 : index
    %c0_35 = arith.constant 0 : index
    %75 = vector.load %arg4[%c144, %c0_35] : memref<1408x128xf32, #tpu.memory_space<vmem>>, vector<32x64xf32>
    %cst_36 = arith.constant dense<0.000000e+00> : vector<32x64xf32>
    %76 = tpu.matmul %74, %75, %cst_36 {dimension_numbers = #tpu.dot_dimension_numbers<[1], [0], [0], [1], [0, 0, 1, 1], [], []>} : vector<32x32xf32>, vector<32x64xf32>, vector<32x64xf32> -> vector<32x64xf32>
    %c176 = arith.constant 176 : index
    %c0_37 = arith.constant 0 : index
    %77 = vector.load %arg4[%c176, %c0_37] : memref<1408x128xf32, #tpu.memory_space<vmem>>, vector<1x64xf32>
    %78 = vector.broadcast %77 : vector<1x64xf32> to vector<32x64xf32>
    %79 = arith.addf %76, %78 : vector<32x64xf32>
    %80 = vector.extract_strided_slice %79 {offsets = [0, 0], sizes = [32, 32], strides = [1, 1]} : vector<32x64xf32> to vector<32x32xf32>
    %81 = vector.extract_strided_slice %79 {offsets = [0, 32], sizes = [32, 32], strides = [1, 1]} : vector<32x64xf32> to vector<32x32xf32>
    %c144_38 = arith.constant 144 : index
    %c64_39 = arith.constant 64 : index
    %82 = vector.load %arg4[%c144_38, %c64_39] : memref<1408x128xf32, #tpu.memory_space<vmem>>, vector<32x32xf32>
    %cst_40 = arith.constant dense<0.000000e+00> : vector<32x32xf32>
    %83 = tpu.matmul %45, %82, %cst_40 {dimension_numbers = #tpu.dot_dimension_numbers<[1], [0], [0], [1], [0, 0, 1, 1], [], []>} : vector<32x32xf32>, vector<32x32xf32>, vector<32x32xf32> -> vector<32x32xf32>
    %c176_41 = arith.constant 176 : index
    %c64_42 = arith.constant 64 : index
    %84 = vector.load %arg4[%c176_41, %c64_42] : memref<1408x128xf32, #tpu.memory_space<vmem>>, vector<1x32xf32>
    %85 = vector.broadcast %84 : vector<1x32xf32> to vector<32x32xf32>
    %86 = arith.addf %83, %85 : vector<32x32xf32>
    %87 = vector.extract_strided_slice %80 {offsets = [0, 0], sizes = [16, 32], strides = [1, 1]} : vector<32x32xf32> to vector<16x32xf32>
    %88 = vector.extract_strided_slice %81 {offsets = [0, 0], sizes = [16, 32], strides = [1, 1]} : vector<32x32xf32> to vector<16x32xf32>
    %89 = vector.extract_strided_slice %86 {offsets = [0, 0], sizes = [16, 32], strides = [1, 1]} : vector<32x32xf32> to vector<16x32xf32>
    %90 = vector.extract_strided_slice %87 {offsets = [0, 0], sizes = [16, 8], strides = [1, 1]} : vector<16x32xf32> to vector<16x8xf32>
    %91 = vector.extract_strided_slice %88 {offsets = [0, 0], sizes = [16, 8], strides = [1, 1]} : vector<16x32xf32> to vector<16x8xf32>
    %cst_43 = arith.constant dense<0.000000e+00> : vector<16x16xf32>
    %92 = tpu.matmul %90, %91, %cst_43 {dimension_numbers = #tpu.dot_dimension_numbers<[1], [1], [0], [0], [0, 0, 1, 0], [], []>} : vector<16x8xf32>, vector<16x8xf32>, vector<16x16xf32> -> vector<16x16xf32>
    %93 = vector.broadcast %12 : vector<1x16xf32> to vector<16x16xf32>
    %94 = arith.addf %92, %93 : vector<16x16xf32>
    %cst_44 = arith.constant dense<0xFF800000> : vector<16xf32>
    %95 = vector.multi_reduction <maximumf>, %94, %cst_44 [1] : vector<16x16xf32> to vector<16xf32>
    %96 = vector.shape_cast %95 : vector<16xf32> to vector<16x1xf32>
    %97 = vector.broadcast %96 : vector<16x1xf32> to vector<16x16xf32>
    %98 = arith.subf %94, %97 : vector<16x16xf32>
    %99 = math.exp %98 : vector<16x16xf32>
    %cst_45 = arith.constant dense<0.000000e+00> : vector<16xf32>
    %100 = vector.multi_reduction <add>, %99, %cst_45 [1] : vector<16x16xf32> to vector<16xf32>
    %101 = vector.shape_cast %100 : vector<16xf32> to vector<16x1xf32>
    %102 = tpu.reciprocal %101 {approx = true} : vector<16x1xf32> -> vector<16x1xf32>
    %103 = vector.broadcast %102 : vector<16x1xf32> to vector<16x16xf32>
    %104 = arith.mulf %99, %103 : vector<16x16xf32>
    %105 = vector.extract_strided_slice %89 {offsets = [0, 0], sizes = [16, 8], strides = [1, 1]} : vector<16x32xf32> to vector<16x8xf32>
    %cst_46 = arith.constant dense<0.000000e+00> : vector<16x8xf32>
    %106 = tpu.matmul %104, %105, %cst_46 {dimension_numbers = #tpu.dot_dimension_numbers<[1], [0], [0], [1], [0, 0, 1, 1], [], []>} : vector<16x16xf32>, vector<16x8xf32>, vector<16x8xf32> -> vector<16x8xf32>
    %107 = vector.extract_strided_slice %87 {offsets = [0, 8], sizes = [16, 8], strides = [1, 1]} : vector<16x32xf32> to vector<16x8xf32>
    %108 = vector.extract_strided_slice %88 {offsets = [0, 8], sizes = [16, 8], strides = [1, 1]} : vector<16x32xf32> to vector<16x8xf32>
    %cst_47 = arith.constant dense<0.000000e+00> : vector<16x16xf32>
    %109 = tpu.matmul %107, %108, %cst_47 {dimension_numbers = #tpu.dot_dimension_numbers<[1], [1], [0], [0], [0, 0, 1, 0], [], []>} : vector<16x8xf32>, vector<16x8xf32>, vector<16x16xf32> -> vector<16x16xf32>
    %110 = vector.broadcast %12 : vector<1x16xf32> to vector<16x16xf32>
    %111 = arith.addf %109, %110 : vector<16x16xf32>
    %cst_48 = arith.constant dense<0xFF800000> : vector<16xf32>
    %112 = vector.multi_reduction <maximumf>, %111, %cst_48 [1] : vector<16x16xf32> to vector<16xf32>
    %113 = vector.shape_cast %112 : vector<16xf32> to vector<16x1xf32>
    %114 = vector.broadcast %113 : vector<16x1xf32> to vector<16x16xf32>
    %115 = arith.subf %111, %114 : vector<16x16xf32>
    %116 = math.exp %115 : vector<16x16xf32>
    %cst_49 = arith.constant dense<0.000000e+00> : vector<16xf32>
    %117 = vector.multi_reduction <add>, %116, %cst_49 [1] : vector<16x16xf32> to vector<16xf32>
    %118 = vector.shape_cast %117 : vector<16xf32> to vector<16x1xf32>
    %119 = tpu.reciprocal %118 {approx = true} : vector<16x1xf32> -> vector<16x1xf32>
    %120 = vector.broadcast %119 : vector<16x1xf32> to vector<16x16xf32>
    %121 = arith.mulf %116, %120 : vector<16x16xf32>
    %122 = vector.extract_strided_slice %89 {offsets = [0, 8], sizes = [16, 8], strides = [1, 1]} : vector<16x32xf32> to vector<16x8xf32>
    %cst_50 = arith.constant dense<0.000000e+00> : vector<16x8xf32>
    %123 = tpu.matmul %121, %122, %cst_50 {dimension_numbers = #tpu.dot_dimension_numbers<[1], [0], [0], [1], [0, 0, 1, 1], [], []>} : vector<16x16xf32>, vector<16x8xf32>, vector<16x8xf32> -> vector<16x8xf32>
    %124 = vector.extract_strided_slice %87 {offsets = [0, 16], sizes = [16, 8], strides = [1, 1]} : vector<16x32xf32> to vector<16x8xf32>
    %125 = vector.extract_strided_slice %88 {offsets = [0, 16], sizes = [16, 8], strides = [1, 1]} : vector<16x32xf32> to vector<16x8xf32>
    %cst_51 = arith.constant dense<0.000000e+00> : vector<16x16xf32>
    %126 = tpu.matmul %124, %125, %cst_51 {dimension_numbers = #tpu.dot_dimension_numbers<[1], [1], [0], [0], [0, 0, 1, 0], [], []>} : vector<16x8xf32>, vector<16x8xf32>, vector<16x16xf32> -> vector<16x16xf32>
    %127 = vector.broadcast %12 : vector<1x16xf32> to vector<16x16xf32>
    %128 = arith.addf %126, %127 : vector<16x16xf32>
    %cst_52 = arith.constant dense<0xFF800000> : vector<16xf32>
    %129 = vector.multi_reduction <maximumf>, %128, %cst_52 [1] : vector<16x16xf32> to vector<16xf32>
    %130 = vector.shape_cast %129 : vector<16xf32> to vector<16x1xf32>
    %131 = vector.broadcast %130 : vector<16x1xf32> to vector<16x16xf32>
    %132 = arith.subf %128, %131 : vector<16x16xf32>
    %133 = math.exp %132 : vector<16x16xf32>
    %cst_53 = arith.constant dense<0.000000e+00> : vector<16xf32>
    %134 = vector.multi_reduction <add>, %133, %cst_53 [1] : vector<16x16xf32> to vector<16xf32>
    %135 = vector.shape_cast %134 : vector<16xf32> to vector<16x1xf32>
    %136 = tpu.reciprocal %135 {approx = true} : vector<16x1xf32> -> vector<16x1xf32>
    %137 = vector.broadcast %136 : vector<16x1xf32> to vector<16x16xf32>
    %138 = arith.mulf %133, %137 : vector<16x16xf32>
    %139 = vector.extract_strided_slice %89 {offsets = [0, 16], sizes = [16, 8], strides = [1, 1]} : vector<16x32xf32> to vector<16x8xf32>
    %cst_54 = arith.constant dense<0.000000e+00> : vector<16x8xf32>
    %140 = tpu.matmul %138, %139, %cst_54 {dimension_numbers = #tpu.dot_dimension_numbers<[1], [0], [0], [1], [0, 0, 1, 1], [], []>} : vector<16x16xf32>, vector<16x8xf32>, vector<16x8xf32> -> vector<16x8xf32>
    %141 = vector.extract_strided_slice %87 {offsets = [0, 24], sizes = [16, 8], strides = [1, 1]} : vector<16x32xf32> to vector<16x8xf32>
    %142 = vector.extract_strided_slice %88 {offsets = [0, 24], sizes = [16, 8], strides = [1, 1]} : vector<16x32xf32> to vector<16x8xf32>
    %cst_55 = arith.constant dense<0.000000e+00> : vector<16x16xf32>
    %143 = tpu.matmul %141, %142, %cst_55 {dimension_numbers = #tpu.dot_dimension_numbers<[1], [1], [0], [0], [0, 0, 1, 0], [], []>} : vector<16x8xf32>, vector<16x8xf32>, vector<16x16xf32> -> vector<16x16xf32>
    %144 = vector.broadcast %12 : vector<1x16xf32> to vector<16x16xf32>
    %145 = arith.addf %143, %144 : vector<16x16xf32>
    %cst_56 = arith.constant dense<0xFF800000> : vector<16xf32>
    %146 = vector.multi_reduction <maximumf>, %145, %cst_56 [1] : vector<16x16xf32> to vector<16xf32>
    %147 = vector.shape_cast %146 : vector<16xf32> to vector<16x1xf32>
    %148 = vector.broadcast %147 : vector<16x1xf32> to vector<16x16xf32>
    %149 = arith.subf %145, %148 : vector<16x16xf32>
    %150 = math.exp %149 : vector<16x16xf32>
    %cst_57 = arith.constant dense<0.000000e+00> : vector<16xf32>
    %151 = vector.multi_reduction <add>, %150, %cst_57 [1] : vector<16x16xf32> to vector<16xf32>
    %152 = vector.shape_cast %151 : vector<16xf32> to vector<16x1xf32>
    %153 = tpu.reciprocal %152 {approx = true} : vector<16x1xf32> -> vector<16x1xf32>
    %154 = vector.broadcast %153 : vector<16x1xf32> to vector<16x16xf32>
    %155 = arith.mulf %150, %154 : vector<16x16xf32>
    %156 = vector.extract_strided_slice %89 {offsets = [0, 24], sizes = [16, 8], strides = [1, 1]} : vector<16x32xf32> to vector<16x8xf32>
    %cst_58 = arith.constant dense<0.000000e+00> : vector<16x8xf32>
    %157 = tpu.matmul %155, %156, %cst_58 {dimension_numbers = #tpu.dot_dimension_numbers<[1], [0], [0], [1], [0, 0, 1, 1], [], []>} : vector<16x16xf32>, vector<16x8xf32>, vector<16x8xf32> -> vector<16x8xf32>
    %158 = tpu.concatenate %106, %123, %140, %157 in 1 : vector<16x8xf32>, vector<16x8xf32>, vector<16x8xf32>, vector<16x8xf32> -> vector<16x32xf32>
    %159 = vector.extract_strided_slice %80 {offsets = [16, 0], sizes = [16, 32], strides = [1, 1]} : vector<32x32xf32> to vector<16x32xf32>
    %160 = vector.extract_strided_slice %81 {offsets = [16, 0], sizes = [16, 32], strides = [1, 1]} : vector<32x32xf32> to vector<16x32xf32>
    %161 = vector.extract_strided_slice %86 {offsets = [16, 0], sizes = [16, 32], strides = [1, 1]} : vector<32x32xf32> to vector<16x32xf32>
    %162 = vector.extract_strided_slice %159 {offsets = [0, 0], sizes = [16, 8], strides = [1, 1]} : vector<16x32xf32> to vector<16x8xf32>
    %163 = vector.extract_strided_slice %160 {offsets = [0, 0], sizes = [16, 8], strides = [1, 1]} : vector<16x32xf32> to vector<16x8xf32>
    %cst_59 = arith.constant dense<0.000000e+00> : vector<16x16xf32>
    %164 = tpu.matmul %162, %163, %cst_59 {dimension_numbers = #tpu.dot_dimension_numbers<[1], [1], [0], [0], [0, 0, 1, 0], [], []>} : vector<16x8xf32>, vector<16x8xf32>, vector<16x16xf32> -> vector<16x16xf32>
    %165 = vector.broadcast %13 : vector<1x16xf32> to vector<16x16xf32>
    %166 = arith.addf %164, %165 : vector<16x16xf32>
    %cst_60 = arith.constant dense<0xFF800000> : vector<16xf32>
    %167 = vector.multi_reduction <maximumf>, %166, %cst_60 [1] : vector<16x16xf32> to vector<16xf32>
    %168 = vector.shape_cast %167 : vector<16xf32> to vector<16x1xf32>
    %169 = vector.broadcast %168 : vector<16x1xf32> to vector<16x16xf32>
    %170 = arith.subf %166, %169 : vector<16x16xf32>
    %171 = math.exp %170 : vector<16x16xf32>
    %cst_61 = arith.constant dense<0.000000e+00> : vector<16xf32>
    %172 = vector.multi_reduction <add>, %171, %cst_61 [1] : vector<16x16xf32> to vector<16xf32>
    %173 = vector.shape_cast %172 : vector<16xf32> to vector<16x1xf32>
    %174 = tpu.reciprocal %173 {approx = true} : vector<16x1xf32> -> vector<16x1xf32>
    %175 = vector.broadcast %174 : vector<16x1xf32> to vector<16x16xf32>
    %176 = arith.mulf %171, %175 : vector<16x16xf32>
    %177 = vector.extract_strided_slice %161 {offsets = [0, 0], sizes = [16, 8], strides = [1, 1]} : vector<16x32xf32> to vector<16x8xf32>
    %cst_62 = arith.constant dense<0.000000e+00> : vector<16x8xf32>
    %178 = tpu.matmul %176, %177, %cst_62 {dimension_numbers = #tpu.dot_dimension_numbers<[1], [0], [0], [1], [0, 0, 1, 1], [], []>} : vector<16x16xf32>, vector<16x8xf32>, vector<16x8xf32> -> vector<16x8xf32>
    %179 = vector.extract_strided_slice %159 {offsets = [0, 8], sizes = [16, 8], strides = [1, 1]} : vector<16x32xf32> to vector<16x8xf32>
    %180 = vector.extract_strided_slice %160 {offsets = [0, 8], sizes = [16, 8], strides = [1, 1]} : vector<16x32xf32> to vector<16x8xf32>
    %cst_63 = arith.constant dense<0.000000e+00> : vector<16x16xf32>
    %181 = tpu.matmul %179, %180, %cst_63 {dimension_numbers = #tpu.dot_dimension_numbers<[1], [1], [0], [0], [0, 0, 1, 0], [], []>} : vector<16x8xf32>, vector<16x8xf32>, vector<16x16xf32> -> vector<16x16xf32>
    %182 = vector.broadcast %13 : vector<1x16xf32> to vector<16x16xf32>
    %183 = arith.addf %181, %182 : vector<16x16xf32>
    %cst_64 = arith.constant dense<0xFF800000> : vector<16xf32>
    %184 = vector.multi_reduction <maximumf>, %183, %cst_64 [1] : vector<16x16xf32> to vector<16xf32>
    %185 = vector.shape_cast %184 : vector<16xf32> to vector<16x1xf32>
    %186 = vector.broadcast %185 : vector<16x1xf32> to vector<16x16xf32>
    %187 = arith.subf %183, %186 : vector<16x16xf32>
    %188 = math.exp %187 : vector<16x16xf32>
    %cst_65 = arith.constant dense<0.000000e+00> : vector<16xf32>
    %189 = vector.multi_reduction <add>, %188, %cst_65 [1] : vector<16x16xf32> to vector<16xf32>
    %190 = vector.shape_cast %189 : vector<16xf32> to vector<16x1xf32>
    %191 = tpu.reciprocal %190 {approx = true} : vector<16x1xf32> -> vector<16x1xf32>
    %192 = vector.broadcast %191 : vector<16x1xf32> to vector<16x16xf32>
    %193 = arith.mulf %188, %192 : vector<16x16xf32>
    %194 = vector.extract_strided_slice %161 {offsets = [0, 8], sizes = [16, 8], strides = [1, 1]} : vector<16x32xf32> to vector<16x8xf32>
    %cst_66 = arith.constant dense<0.000000e+00> : vector<16x8xf32>
    %195 = tpu.matmul %193, %194, %cst_66 {dimension_numbers = #tpu.dot_dimension_numbers<[1], [0], [0], [1], [0, 0, 1, 1], [], []>} : vector<16x16xf32>, vector<16x8xf32>, vector<16x8xf32> -> vector<16x8xf32>
    %196 = vector.extract_strided_slice %159 {offsets = [0, 16], sizes = [16, 8], strides = [1, 1]} : vector<16x32xf32> to vector<16x8xf32>
    %197 = vector.extract_strided_slice %160 {offsets = [0, 16], sizes = [16, 8], strides = [1, 1]} : vector<16x32xf32> to vector<16x8xf32>
    %cst_67 = arith.constant dense<0.000000e+00> : vector<16x16xf32>
    %198 = tpu.matmul %196, %197, %cst_67 {dimension_numbers = #tpu.dot_dimension_numbers<[1], [1], [0], [0], [0, 0, 1, 0], [], []>} : vector<16x8xf32>, vector<16x8xf32>, vector<16x16xf32> -> vector<16x16xf32>
    %199 = vector.broadcast %13 : vector<1x16xf32> to vector<16x16xf32>
    %200 = arith.addf %198, %199 : vector<16x16xf32>
    %cst_68 = arith.constant dense<0xFF800000> : vector<16xf32>
    %201 = vector.multi_reduction <maximumf>, %200, %cst_68 [1] : vector<16x16xf32> to vector<16xf32>
    %202 = vector.shape_cast %201 : vector<16xf32> to vector<16x1xf32>
    %203 = vector.broadcast %202 : vector<16x1xf32> to vector<16x16xf32>
    %204 = arith.subf %200, %203 : vector<16x16xf32>
    %205 = math.exp %204 : vector<16x16xf32>
    %cst_69 = arith.constant dense<0.000000e+00> : vector<16xf32>
    %206 = vector.multi_reduction <add>, %205, %cst_69 [1] : vector<16x16xf32> to vector<16xf32>
    %207 = vector.shape_cast %206 : vector<16xf32> to vector<16x1xf32>
    %208 = tpu.reciprocal %207 {approx = true} : vector<16x1xf32> -> vector<16x1xf32>
    %209 = vector.broadcast %208 : vector<16x1xf32> to vector<16x16xf32>
    %210 = arith.mulf %205, %209 : vector<16x16xf32>
    %211 = vector.extract_strided_slice %161 {offsets = [0, 16], sizes = [16, 8], strides = [1, 1]} : vector<16x32xf32> to vector<16x8xf32>
    %cst_70 = arith.constant dense<0.000000e+00> : vector<16x8xf32>
    %212 = tpu.matmul %210, %211, %cst_70 {dimension_numbers = #tpu.dot_dimension_numbers<[1], [0], [0], [1], [0, 0, 1, 1], [], []>} : vector<16x16xf32>, vector<16x8xf32>, vector<16x8xf32> -> vector<16x8xf32>
    %213 = vector.extract_strided_slice %159 {offsets = [0, 24], sizes = [16, 8], strides = [1, 1]} : vector<16x32xf32> to vector<16x8xf32>
    %214 = vector.extract_strided_slice %160 {offsets = [0, 24], sizes = [16, 8], strides = [1, 1]} : vector<16x32xf32> to vector<16x8xf32>
    %cst_71 = arith.constant dense<0.000000e+00> : vector<16x16xf32>
    %215 = tpu.matmul %213, %214, %cst_71 {dimension_numbers = #tpu.dot_dimension_numbers<[1], [1], [0], [0], [0, 0, 1, 0], [], []>} : vector<16x8xf32>, vector<16x8xf32>, vector<16x16xf32> -> vector<16x16xf32>
    %216 = vector.broadcast %13 : vector<1x16xf32> to vector<16x16xf32>
    %217 = arith.addf %215, %216 : vector<16x16xf32>
    %cst_72 = arith.constant dense<0xFF800000> : vector<16xf32>
    %218 = vector.multi_reduction <maximumf>, %217, %cst_72 [1] : vector<16x16xf32> to vector<16xf32>
    %219 = vector.shape_cast %218 : vector<16xf32> to vector<16x1xf32>
    %220 = vector.broadcast %219 : vector<16x1xf32> to vector<16x16xf32>
    %221 = arith.subf %217, %220 : vector<16x16xf32>
    %222 = math.exp %221 : vector<16x16xf32>
    %cst_73 = arith.constant dense<0.000000e+00> : vector<16xf32>
    %223 = vector.multi_reduction <add>, %222, %cst_73 [1] : vector<16x16xf32> to vector<16xf32>
    %224 = vector.shape_cast %223 : vector<16xf32> to vector<16x1xf32>
    %225 = tpu.reciprocal %224 {approx = true} : vector<16x1xf32> -> vector<16x1xf32>
    %226 = vector.broadcast %225 : vector<16x1xf32> to vector<16x16xf32>
    %227 = arith.mulf %222, %226 : vector<16x16xf32>
    %228 = vector.extract_strided_slice %161 {offsets = [0, 24], sizes = [16, 8], strides = [1, 1]} : vector<16x32xf32> to vector<16x8xf32>
    %cst_74 = arith.constant dense<0.000000e+00> : vector<16x8xf32>
    %229 = tpu.matmul %227, %228, %cst_74 {dimension_numbers = #tpu.dot_dimension_numbers<[1], [0], [0], [1], [0, 0, 1, 1], [], []>} : vector<16x16xf32>, vector<16x8xf32>, vector<16x8xf32> -> vector<16x8xf32>
    %230 = tpu.concatenate %178, %195, %212, %229 in 1 : vector<16x8xf32>, vector<16x8xf32>, vector<16x8xf32>, vector<16x8xf32> -> vector<16x32xf32>
    %231 = tpu.concatenate %158, %230 in 0 : vector<16x32xf32>, vector<16x32xf32> -> vector<32x32xf32>
    %c184 = arith.constant 184 : index
    %c0_75 = arith.constant 0 : index
    %232 = vector.load %arg4[%c184, %c0_75] : memref<1408x128xf32, #tpu.memory_space<vmem>>, vector<32x32xf32>
    %cst_76 = arith.constant dense<0.000000e+00> : vector<32x32xf32>
    %233 = tpu.matmul %231, %232, %cst_76 {dimension_numbers = #tpu.dot_dimension_numbers<[1], [0], [0], [1], [0, 0, 1, 1], [], []>} : vector<32x32xf32>, vector<32x32xf32>, vector<32x32xf32> -> vector<32x32xf32>
    %c216 = arith.constant 216 : index
    %c0_77 = arith.constant 0 : index
    %234 = vector.load %arg4[%c216, %c0_77] : memref<1408x128xf32, #tpu.memory_space<vmem>>, vector<1x32xf32>
    %235 = vector.broadcast %234 : vector<1x32xf32> to vector<32x32xf32>
    %236 = arith.addf %233, %235 : vector<32x32xf32>
    %237 = arith.addf %45, %236 : vector<32x32xf32>
    %cst_78 = arith.constant dense<0.000000e+00> : vector<32xf32>
    %238 = vector.multi_reduction <add>, %237, %cst_78 [1] : vector<32x32xf32> to vector<32xf32>
    %239 = vector.shape_cast %238 : vector<32xf32> to vector<32x1xf32>
    %cst_79 = arith.constant 3.200000e+01 : f32
    %240 = vector.broadcast %cst_79 : f32 to vector<32x1xf32>
    %241 = arith.divf %239, %240 : vector<32x1xf32>
    %242 = vector.broadcast %241 : vector<32x1xf32> to vector<32x32xf32>
    %243 = arith.subf %237, %242 : vector<32x32xf32>
    %244 = arith.mulf %243, %243 : vector<32x32xf32>
    %cst_80 = arith.constant dense<0.000000e+00> : vector<32xf32>
    %245 = vector.multi_reduction <add>, %244, %cst_80 [1] : vector<32x32xf32> to vector<32xf32>
    %246 = vector.shape_cast %245 : vector<32xf32> to vector<32x1xf32>
    %cst_81 = arith.constant 3.200000e+01 : f32
    %247 = vector.broadcast %cst_81 : f32 to vector<32x1xf32>
    %248 = arith.divf %246, %247 : vector<32x1xf32>
    %cst_82 = arith.constant 9.99999974E-6 : f32
    %249 = vector.broadcast %cst_82 : f32 to vector<32x1xf32>
    %250 = arith.addf %248, %249 : vector<32x1xf32>
    %251 = math.rsqrt %250 : vector<32x1xf32>
    %252 = vector.broadcast %251 : vector<32x1xf32> to vector<32x32xf32>
    %253 = arith.mulf %243, %252 : vector<32x32xf32>
    %c1104 = arith.constant 1104 : index
    %c0_83 = arith.constant 0 : index
    %254 = vector.load %arg4[%c1104, %c0_83] : memref<1408x128xf32, #tpu.memory_space<vmem>>, vector<1x32xf32>
    %255 = vector.broadcast %254 : vector<1x32xf32> to vector<32x32xf32>
    %256 = arith.mulf %253, %255 : vector<32x32xf32>
    %c1112 = arith.constant 1112 : index
    %c0_84 = arith.constant 0 : index
    %257 = vector.load %arg4[%c1112, %c0_84] : memref<1408x128xf32, #tpu.memory_space<vmem>>, vector<1x32xf32>
    %258 = vector.broadcast %257 : vector<1x32xf32> to vector<32x32xf32>
    %259 = arith.addf %256, %258 : vector<32x32xf32>
    %c624 = arith.constant 624 : index
    %c0_85 = arith.constant 0 : index
    %260 = vector.load %arg4[%c624, %c0_85] : memref<1408x128xf32, #tpu.memory_space<vmem>>, vector<32x64xf32>
    %cst_86 = arith.constant dense<0.000000e+00> : vector<32x64xf32>
    %261 = tpu.matmul %259, %260, %cst_86 {dimension_numbers = #tpu.dot_dimension_numbers<[1], [0], [0], [1], [0, 0, 1, 1], [], []>} : vector<32x32xf32>, vector<32x64xf32>, vector<32x64xf32> -> vector<32x64xf32>
    %c656 = arith.constant 656 : index
    %c0_87 = arith.constant 0 : index
    %262 = vector.load %arg4[%c656, %c0_87] : memref<1408x128xf32, #tpu.memory_space<vmem>>, vector<1x64xf32>
    %263 = vector.broadcast %262 : vector<1x64xf32> to vector<32x64xf32>
    %264 = arith.addf %261, %263 : vector<32x64xf32>
    %cst_88 = arith.constant 0.000000e+00 : f32
    %265 = vector.broadcast %cst_88 : f32 to vector<32x64xf32>
    %266 = arith.maximumf %264, %265 : vector<32x64xf32>
    %c664 = arith.constant 664 : index
    %c0_89 = arith.constant 0 : index
    %267 = vector.load %arg4[%c664, %c0_89] : memref<1408x128xf32, #tpu.memory_space<vmem>>, vector<64x32xf32>
    %cst_90 = arith.constant dense<0.000000e+00> : vector<32x32xf32>
    %268 = tpu.matmul %266, %267, %cst_90 {dimension_numbers = #tpu.dot_dimension_numbers<[1], [0], [0], [1], [0, 0, 1, 1], [], []>} : vector<32x64xf32>, vector<64x32xf32>, vector<32x32xf32> -> vector<32x32xf32>
    %c728 = arith.constant 728 : index
    %c0_91 = arith.constant 0 : index
    %269 = vector.load %arg4[%c728, %c0_91] : memref<1408x128xf32, #tpu.memory_space<vmem>>, vector<1x32xf32>
    %270 = vector.broadcast %269 : vector<1x32xf32> to vector<32x32xf32>
    %271 = arith.addf %268, %270 : vector<32x32xf32>
    %272 = arith.addf %259, %271 : vector<32x32xf32>
    %cst_92 = arith.constant dense<0.000000e+00> : vector<32xf32>
    %273 = vector.multi_reduction <add>, %272, %cst_92 [1] : vector<32x32xf32> to vector<32xf32>
    %274 = vector.shape_cast %273 : vector<32xf32> to vector<32x1xf32>
    %cst_93 = arith.constant 3.200000e+01 : f32
    %275 = vector.broadcast %cst_93 : f32 to vector<32x1xf32>
    %276 = arith.divf %274, %275 : vector<32x1xf32>
    %277 = vector.broadcast %276 : vector<32x1xf32> to vector<32x32xf32>
    %278 = arith.subf %272, %277 : vector<32x32xf32>
    %279 = arith.mulf %278, %278 : vector<32x32xf32>
    %cst_94 = arith.constant dense<0.000000e+00> : vector<32xf32>
    %280 = vector.multi_reduction <add>, %279, %cst_94 [1] : vector<32x32xf32> to vector<32xf32>
    %281 = vector.shape_cast %280 : vector<32xf32> to vector<32x1xf32>
    %cst_95 = arith.constant 3.200000e+01 : f32
    %282 = vector.broadcast %cst_95 : f32 to vector<32x1xf32>
    %283 = arith.divf %281, %282 : vector<32x1xf32>
    %cst_96 = arith.constant 9.99999974E-6 : f32
    %284 = vector.broadcast %cst_96 : f32 to vector<32x1xf32>
    %285 = arith.addf %283, %284 : vector<32x1xf32>
    %286 = math.rsqrt %285 : vector<32x1xf32>
    %287 = vector.broadcast %286 : vector<32x1xf32> to vector<32x32xf32>
    %288 = arith.mulf %278, %287 : vector<32x32xf32>
    %c1120 = arith.constant 1120 : index
    %c0_97 = arith.constant 0 : index
    %289 = vector.load %arg4[%c1120, %c0_97] : memref<1408x128xf32, #tpu.memory_space<vmem>>, vector<1x32xf32>
    %290 = vector.broadcast %289 : vector<1x32xf32> to vector<32x32xf32>
    %291 = arith.mulf %288, %290 : vector<32x32xf32>
    %c1128 = arith.constant 1128 : index
    %c0_98 = arith.constant 0 : index
    %292 = vector.load %arg4[%c1128, %c0_98] : memref<1408x128xf32, #tpu.memory_space<vmem>>, vector<1x32xf32>
    %293 = vector.broadcast %292 : vector<1x32xf32> to vector<32x32xf32>
    %294 = arith.addf %291, %293 : vector<32x32xf32>
    %295 = arith.addf %294, %16 : vector<32x32xf32>
    %c224 = arith.constant 224 : index
    %c0_99 = arith.constant 0 : index
    %296 = vector.load %arg4[%c224, %c0_99] : memref<1408x128xf32, #tpu.memory_space<vmem>>, vector<32x64xf32>
    %cst_100 = arith.constant dense<0.000000e+00> : vector<32x64xf32>
    %297 = tpu.matmul %295, %296, %cst_100 {dimension_numbers = #tpu.dot_dimension_numbers<[1], [0], [0], [1], [0, 0, 1, 1], [], []>} : vector<32x32xf32>, vector<32x64xf32>, vector<32x64xf32> -> vector<32x64xf32>
    %c256 = arith.constant 256 : index
    %c0_101 = arith.constant 0 : index
    %298 = vector.load %arg4[%c256, %c0_101] : memref<1408x128xf32, #tpu.memory_space<vmem>>, vector<1x64xf32>
    %299 = vector.broadcast %298 : vector<1x64xf32> to vector<32x64xf32>
    %300 = arith.addf %297, %299 : vector<32x64xf32>
    %301 = vector.extract_strided_slice %300 {offsets = [0, 0], sizes = [32, 32], strides = [1, 1]} : vector<32x64xf32> to vector<32x32xf32>
    %302 = vector.extract_strided_slice %300 {offsets = [0, 32], sizes = [32, 32], strides = [1, 1]} : vector<32x64xf32> to vector<32x32xf32>
    %c224_102 = arith.constant 224 : index
    %c64_103 = arith.constant 64 : index
    %303 = vector.load %arg4[%c224_102, %c64_103] : memref<1408x128xf32, #tpu.memory_space<vmem>>, vector<32x32xf32>
    %cst_104 = arith.constant dense<0.000000e+00> : vector<32x32xf32>
    %304 = tpu.matmul %294, %303, %cst_104 {dimension_numbers = #tpu.dot_dimension_numbers<[1], [0], [0], [1], [0, 0, 1, 1], [], []>} : vector<32x32xf32>, vector<32x32xf32>, vector<32x32xf32> -> vector<32x32xf32>
    %c256_105 = arith.constant 256 : index
    %c64_106 = arith.constant 64 : index
    %305 = vector.load %arg4[%c256_105, %c64_106] : memref<1408x128xf32, #tpu.memory_space<vmem>>, vector<1x32xf32>
    %306 = vector.broadcast %305 : vector<1x32xf32> to vector<32x32xf32>
    %307 = arith.addf %304, %306 : vector<32x32xf32>
    %308 = vector.extract_strided_slice %301 {offsets = [0, 0], sizes = [16, 32], strides = [1, 1]} : vector<32x32xf32> to vector<16x32xf32>
    %309 = vector.extract_strided_slice %302 {offsets = [0, 0], sizes = [16, 32], strides = [1, 1]} : vector<32x32xf32> to vector<16x32xf32>
    %310 = vector.extract_strided_slice %307 {offsets = [0, 0], sizes = [16, 32], strides = [1, 1]} : vector<32x32xf32> to vector<16x32xf32>
    %311 = vector.extract_strided_slice %308 {offsets = [0, 0], sizes = [16, 8], strides = [1, 1]} : vector<16x32xf32> to vector<16x8xf32>
    %312 = vector.extract_strided_slice %309 {offsets = [0, 0], sizes = [16, 8], strides = [1, 1]} : vector<16x32xf32> to vector<16x8xf32>
    %cst_107 = arith.constant dense<0.000000e+00> : vector<16x16xf32>
    %313 = tpu.matmul %311, %312, %cst_107 {dimension_numbers = #tpu.dot_dimension_numbers<[1], [1], [0], [0], [0, 0, 1, 0], [], []>} : vector<16x8xf32>, vector<16x8xf32>, vector<16x16xf32> -> vector<16x16xf32>
    %314 = vector.broadcast %12 : vector<1x16xf32> to vector<16x16xf32>
    %315 = arith.addf %313, %314 : vector<16x16xf32>
    %cst_108 = arith.constant dense<0xFF800000> : vector<16xf32>
    %316 = vector.multi_reduction <maximumf>, %315, %cst_108 [1] : vector<16x16xf32> to vector<16xf32>
    %317 = vector.shape_cast %316 : vector<16xf32> to vector<16x1xf32>
    %318 = vector.broadcast %317 : vector<16x1xf32> to vector<16x16xf32>
    %319 = arith.subf %315, %318 : vector<16x16xf32>
    %320 = math.exp %319 : vector<16x16xf32>
    %cst_109 = arith.constant dense<0.000000e+00> : vector<16xf32>
    %321 = vector.multi_reduction <add>, %320, %cst_109 [1] : vector<16x16xf32> to vector<16xf32>
    %322 = vector.shape_cast %321 : vector<16xf32> to vector<16x1xf32>
    %323 = tpu.reciprocal %322 {approx = true} : vector<16x1xf32> -> vector<16x1xf32>
    %324 = vector.broadcast %323 : vector<16x1xf32> to vector<16x16xf32>
    %325 = arith.mulf %320, %324 : vector<16x16xf32>
    %326 = vector.extract_strided_slice %310 {offsets = [0, 0], sizes = [16, 8], strides = [1, 1]} : vector<16x32xf32> to vector<16x8xf32>
    %cst_110 = arith.constant dense<0.000000e+00> : vector<16x8xf32>
    %327 = tpu.matmul %325, %326, %cst_110 {dimension_numbers = #tpu.dot_dimension_numbers<[1], [0], [0], [1], [0, 0, 1, 1], [], []>} : vector<16x16xf32>, vector<16x8xf32>, vector<16x8xf32> -> vector<16x8xf32>
    %328 = vector.extract_strided_slice %308 {offsets = [0, 8], sizes = [16, 8], strides = [1, 1]} : vector<16x32xf32> to vector<16x8xf32>
    %329 = vector.extract_strided_slice %309 {offsets = [0, 8], sizes = [16, 8], strides = [1, 1]} : vector<16x32xf32> to vector<16x8xf32>
    %cst_111 = arith.constant dense<0.000000e+00> : vector<16x16xf32>
    %330 = tpu.matmul %328, %329, %cst_111 {dimension_numbers = #tpu.dot_dimension_numbers<[1], [1], [0], [0], [0, 0, 1, 0], [], []>} : vector<16x8xf32>, vector<16x8xf32>, vector<16x16xf32> -> vector<16x16xf32>
    %331 = vector.broadcast %12 : vector<1x16xf32> to vector<16x16xf32>
    %332 = arith.addf %330, %331 : vector<16x16xf32>
    %cst_112 = arith.constant dense<0xFF800000> : vector<16xf32>
    %333 = vector.multi_reduction <maximumf>, %332, %cst_112 [1] : vector<16x16xf32> to vector<16xf32>
    %334 = vector.shape_cast %333 : vector<16xf32> to vector<16x1xf32>
    %335 = vector.broadcast %334 : vector<16x1xf32> to vector<16x16xf32>
    %336 = arith.subf %332, %335 : vector<16x16xf32>
    %337 = math.exp %336 : vector<16x16xf32>
    %cst_113 = arith.constant dense<0.000000e+00> : vector<16xf32>
    %338 = vector.multi_reduction <add>, %337, %cst_113 [1] : vector<16x16xf32> to vector<16xf32>
    %339 = vector.shape_cast %338 : vector<16xf32> to vector<16x1xf32>
    %340 = tpu.reciprocal %339 {approx = true} : vector<16x1xf32> -> vector<16x1xf32>
    %341 = vector.broadcast %340 : vector<16x1xf32> to vector<16x16xf32>
    %342 = arith.mulf %337, %341 : vector<16x16xf32>
    %343 = vector.extract_strided_slice %310 {offsets = [0, 8], sizes = [16, 8], strides = [1, 1]} : vector<16x32xf32> to vector<16x8xf32>
    %cst_114 = arith.constant dense<0.000000e+00> : vector<16x8xf32>
    %344 = tpu.matmul %342, %343, %cst_114 {dimension_numbers = #tpu.dot_dimension_numbers<[1], [0], [0], [1], [0, 0, 1, 1], [], []>} : vector<16x16xf32>, vector<16x8xf32>, vector<16x8xf32> -> vector<16x8xf32>
    %345 = vector.extract_strided_slice %308 {offsets = [0, 16], sizes = [16, 8], strides = [1, 1]} : vector<16x32xf32> to vector<16x8xf32>
    %346 = vector.extract_strided_slice %309 {offsets = [0, 16], sizes = [16, 8], strides = [1, 1]} : vector<16x32xf32> to vector<16x8xf32>
    %cst_115 = arith.constant dense<0.000000e+00> : vector<16x16xf32>
    %347 = tpu.matmul %345, %346, %cst_115 {dimension_numbers = #tpu.dot_dimension_numbers<[1], [1], [0], [0], [0, 0, 1, 0], [], []>} : vector<16x8xf32>, vector<16x8xf32>, vector<16x16xf32> -> vector<16x16xf32>
    %348 = vector.broadcast %12 : vector<1x16xf32> to vector<16x16xf32>
    %349 = arith.addf %347, %348 : vector<16x16xf32>
    %cst_116 = arith.constant dense<0xFF800000> : vector<16xf32>
    %350 = vector.multi_reduction <maximumf>, %349, %cst_116 [1] : vector<16x16xf32> to vector<16xf32>
    %351 = vector.shape_cast %350 : vector<16xf32> to vector<16x1xf32>
    %352 = vector.broadcast %351 : vector<16x1xf32> to vector<16x16xf32>
    %353 = arith.subf %349, %352 : vector<16x16xf32>
    %354 = math.exp %353 : vector<16x16xf32>
    %cst_117 = arith.constant dense<0.000000e+00> : vector<16xf32>
    %355 = vector.multi_reduction <add>, %354, %cst_117 [1] : vector<16x16xf32> to vector<16xf32>
    %356 = vector.shape_cast %355 : vector<16xf32> to vector<16x1xf32>
    %357 = tpu.reciprocal %356 {approx = true} : vector<16x1xf32> -> vector<16x1xf32>
    %358 = vector.broadcast %357 : vector<16x1xf32> to vector<16x16xf32>
    %359 = arith.mulf %354, %358 : vector<16x16xf32>
    %360 = vector.extract_strided_slice %310 {offsets = [0, 16], sizes = [16, 8], strides = [1, 1]} : vector<16x32xf32> to vector<16x8xf32>
    %cst_118 = arith.constant dense<0.000000e+00> : vector<16x8xf32>
    %361 = tpu.matmul %359, %360, %cst_118 {dimension_numbers = #tpu.dot_dimension_numbers<[1], [0], [0], [1], [0, 0, 1, 1], [], []>} : vector<16x16xf32>, vector<16x8xf32>, vector<16x8xf32> -> vector<16x8xf32>
    %362 = vector.extract_strided_slice %308 {offsets = [0, 24], sizes = [16, 8], strides = [1, 1]} : vector<16x32xf32> to vector<16x8xf32>
    %363 = vector.extract_strided_slice %309 {offsets = [0, 24], sizes = [16, 8], strides = [1, 1]} : vector<16x32xf32> to vector<16x8xf32>
    %cst_119 = arith.constant dense<0.000000e+00> : vector<16x16xf32>
    %364 = tpu.matmul %362, %363, %cst_119 {dimension_numbers = #tpu.dot_dimension_numbers<[1], [1], [0], [0], [0, 0, 1, 0], [], []>} : vector<16x8xf32>, vector<16x8xf32>, vector<16x16xf32> -> vector<16x16xf32>
    %365 = vector.broadcast %12 : vector<1x16xf32> to vector<16x16xf32>
    %366 = arith.addf %364, %365 : vector<16x16xf32>
    %cst_120 = arith.constant dense<0xFF800000> : vector<16xf32>
    %367 = vector.multi_reduction <maximumf>, %366, %cst_120 [1] : vector<16x16xf32> to vector<16xf32>
    %368 = vector.shape_cast %367 : vector<16xf32> to vector<16x1xf32>
    %369 = vector.broadcast %368 : vector<16x1xf32> to vector<16x16xf32>
    %370 = arith.subf %366, %369 : vector<16x16xf32>
    %371 = math.exp %370 : vector<16x16xf32>
    %cst_121 = arith.constant dense<0.000000e+00> : vector<16xf32>
    %372 = vector.multi_reduction <add>, %371, %cst_121 [1] : vector<16x16xf32> to vector<16xf32>
    %373 = vector.shape_cast %372 : vector<16xf32> to vector<16x1xf32>
    %374 = tpu.reciprocal %373 {approx = true} : vector<16x1xf32> -> vector<16x1xf32>
    %375 = vector.broadcast %374 : vector<16x1xf32> to vector<16x16xf32>
    %376 = arith.mulf %371, %375 : vector<16x16xf32>
    %377 = vector.extract_strided_slice %310 {offsets = [0, 24], sizes = [16, 8], strides = [1, 1]} : vector<16x32xf32> to vector<16x8xf32>
    %cst_122 = arith.constant dense<0.000000e+00> : vector<16x8xf32>
    %378 = tpu.matmul %376, %377, %cst_122 {dimension_numbers = #tpu.dot_dimension_numbers<[1], [0], [0], [1], [0, 0, 1, 1], [], []>} : vector<16x16xf32>, vector<16x8xf32>, vector<16x8xf32> -> vector<16x8xf32>
    %379 = tpu.concatenate %327, %344, %361, %378 in 1 : vector<16x8xf32>, vector<16x8xf32>, vector<16x8xf32>, vector<16x8xf32> -> vector<16x32xf32>
    %380 = vector.extract_strided_slice %301 {offsets = [16, 0], sizes = [16, 32], strides = [1, 1]} : vector<32x32xf32> to vector<16x32xf32>
    %381 = vector.extract_strided_slice %302 {offsets = [16, 0], sizes = [16, 32], strides = [1, 1]} : vector<32x32xf32> to vector<16x32xf32>
    %382 = vector.extract_strided_slice %307 {offsets = [16, 0], sizes = [16, 32], strides = [1, 1]} : vector<32x32xf32> to vector<16x32xf32>
    %383 = vector.extract_strided_slice %380 {offsets = [0, 0], sizes = [16, 8], strides = [1, 1]} : vector<16x32xf32> to vector<16x8xf32>
    %384 = vector.extract_strided_slice %381 {offsets = [0, 0], sizes = [16, 8], strides = [1, 1]} : vector<16x32xf32> to vector<16x8xf32>
    %cst_123 = arith.constant dense<0.000000e+00> : vector<16x16xf32>
    %385 = tpu.matmul %383, %384, %cst_123 {dimension_numbers = #tpu.dot_dimension_numbers<[1], [1], [0], [0], [0, 0, 1, 0], [], []>} : vector<16x8xf32>, vector<16x8xf32>, vector<16x16xf32> -> vector<16x16xf32>
    %386 = vector.broadcast %13 : vector<1x16xf32> to vector<16x16xf32>
    %387 = arith.addf %385, %386 : vector<16x16xf32>
    %cst_124 = arith.constant dense<0xFF800000> : vector<16xf32>
    %388 = vector.multi_reduction <maximumf>, %387, %cst_124 [1] : vector<16x16xf32> to vector<16xf32>
    %389 = vector.shape_cast %388 : vector<16xf32> to vector<16x1xf32>
    %390 = vector.broadcast %389 : vector<16x1xf32> to vector<16x16xf32>
    %391 = arith.subf %387, %390 : vector<16x16xf32>
    %392 = math.exp %391 : vector<16x16xf32>
    %cst_125 = arith.constant dense<0.000000e+00> : vector<16xf32>
    %393 = vector.multi_reduction <add>, %392, %cst_125 [1] : vector<16x16xf32> to vector<16xf32>
    %394 = vector.shape_cast %393 : vector<16xf32> to vector<16x1xf32>
    %395 = tpu.reciprocal %394 {approx = true} : vector<16x1xf32> -> vector<16x1xf32>
    %396 = vector.broadcast %395 : vector<16x1xf32> to vector<16x16xf32>
    %397 = arith.mulf %392, %396 : vector<16x16xf32>
    %398 = vector.extract_strided_slice %382 {offsets = [0, 0], sizes = [16, 8], strides = [1, 1]} : vector<16x32xf32> to vector<16x8xf32>
    %cst_126 = arith.constant dense<0.000000e+00> : vector<16x8xf32>
    %399 = tpu.matmul %397, %398, %cst_126 {dimension_numbers = #tpu.dot_dimension_numbers<[1], [0], [0], [1], [0, 0, 1, 1], [], []>} : vector<16x16xf32>, vector<16x8xf32>, vector<16x8xf32> -> vector<16x8xf32>
    %400 = vector.extract_strided_slice %380 {offsets = [0, 8], sizes = [16, 8], strides = [1, 1]} : vector<16x32xf32> to vector<16x8xf32>
    %401 = vector.extract_strided_slice %381 {offsets = [0, 8], sizes = [16, 8], strides = [1, 1]} : vector<16x32xf32> to vector<16x8xf32>
    %cst_127 = arith.constant dense<0.000000e+00> : vector<16x16xf32>
    %402 = tpu.matmul %400, %401, %cst_127 {dimension_numbers = #tpu.dot_dimension_numbers<[1], [1], [0], [0], [0, 0, 1, 0], [], []>} : vector<16x8xf32>, vector<16x8xf32>, vector<16x16xf32> -> vector<16x16xf32>
    %403 = vector.broadcast %13 : vector<1x16xf32> to vector<16x16xf32>
    %404 = arith.addf %402, %403 : vector<16x16xf32>
    %cst_128 = arith.constant dense<0xFF800000> : vector<16xf32>
    %405 = vector.multi_reduction <maximumf>, %404, %cst_128 [1] : vector<16x16xf32> to vector<16xf32>
    %406 = vector.shape_cast %405 : vector<16xf32> to vector<16x1xf32>
    %407 = vector.broadcast %406 : vector<16x1xf32> to vector<16x16xf32>
    %408 = arith.subf %404, %407 : vector<16x16xf32>
    %409 = math.exp %408 : vector<16x16xf32>
    %cst_129 = arith.constant dense<0.000000e+00> : vector<16xf32>
    %410 = vector.multi_reduction <add>, %409, %cst_129 [1] : vector<16x16xf32> to vector<16xf32>
    %411 = vector.shape_cast %410 : vector<16xf32> to vector<16x1xf32>
    %412 = tpu.reciprocal %411 {approx = true} : vector<16x1xf32> -> vector<16x1xf32>
    %413 = vector.broadcast %412 : vector<16x1xf32> to vector<16x16xf32>
    %414 = arith.mulf %409, %413 : vector<16x16xf32>
    %415 = vector.extract_strided_slice %382 {offsets = [0, 8], sizes = [16, 8], strides = [1, 1]} : vector<16x32xf32> to vector<16x8xf32>
    %cst_130 = arith.constant dense<0.000000e+00> : vector<16x8xf32>
    %416 = tpu.matmul %414, %415, %cst_130 {dimension_numbers = #tpu.dot_dimension_numbers<[1], [0], [0], [1], [0, 0, 1, 1], [], []>} : vector<16x16xf32>, vector<16x8xf32>, vector<16x8xf32> -> vector<16x8xf32>
    %417 = vector.extract_strided_slice %380 {offsets = [0, 16], sizes = [16, 8], strides = [1, 1]} : vector<16x32xf32> to vector<16x8xf32>
    %418 = vector.extract_strided_slice %381 {offsets = [0, 16], sizes = [16, 8], strides = [1, 1]} : vector<16x32xf32> to vector<16x8xf32>
    %cst_131 = arith.constant dense<0.000000e+00> : vector<16x16xf32>
    %419 = tpu.matmul %417, %418, %cst_131 {dimension_numbers = #tpu.dot_dimension_numbers<[1], [1], [0], [0], [0, 0, 1, 0], [], []>} : vector<16x8xf32>, vector<16x8xf32>, vector<16x16xf32> -> vector<16x16xf32>
    %420 = vector.broadcast %13 : vector<1x16xf32> to vector<16x16xf32>
    %421 = arith.addf %419, %420 : vector<16x16xf32>
    %cst_132 = arith.constant dense<0xFF800000> : vector<16xf32>
    %422 = vector.multi_reduction <maximumf>, %421, %cst_132 [1] : vector<16x16xf32> to vector<16xf32>
    %423 = vector.shape_cast %422 : vector<16xf32> to vector<16x1xf32>
    %424 = vector.broadcast %423 : vector<16x1xf32> to vector<16x16xf32>
    %425 = arith.subf %421, %424 : vector<16x16xf32>
    %426 = math.exp %425 : vector<16x16xf32>
    %cst_133 = arith.constant dense<0.000000e+00> : vector<16xf32>
    %427 = vector.multi_reduction <add>, %426, %cst_133 [1] : vector<16x16xf32> to vector<16xf32>
    %428 = vector.shape_cast %427 : vector<16xf32> to vector<16x1xf32>
    %429 = tpu.reciprocal %428 {approx = true} : vector<16x1xf32> -> vector<16x1xf32>
    %430 = vector.broadcast %429 : vector<16x1xf32> to vector<16x16xf32>
    %431 = arith.mulf %426, %430 : vector<16x16xf32>
    %432 = vector.extract_strided_slice %382 {offsets = [0, 16], sizes = [16, 8], strides = [1, 1]} : vector<16x32xf32> to vector<16x8xf32>
    %cst_134 = arith.constant dense<0.000000e+00> : vector<16x8xf32>
    %433 = tpu.matmul %431, %432, %cst_134 {dimension_numbers = #tpu.dot_dimension_numbers<[1], [0], [0], [1], [0, 0, 1, 1], [], []>} : vector<16x16xf32>, vector<16x8xf32>, vector<16x8xf32> -> vector<16x8xf32>
    %434 = vector.extract_strided_slice %380 {offsets = [0, 24], sizes = [16, 8], strides = [1, 1]} : vector<16x32xf32> to vector<16x8xf32>
    %435 = vector.extract_strided_slice %381 {offsets = [0, 24], sizes = [16, 8], strides = [1, 1]} : vector<16x32xf32> to vector<16x8xf32>
    %cst_135 = arith.constant dense<0.000000e+00> : vector<16x16xf32>
    %436 = tpu.matmul %434, %435, %cst_135 {dimension_numbers = #tpu.dot_dimension_numbers<[1], [1], [0], [0], [0, 0, 1, 0], [], []>} : vector<16x8xf32>, vector<16x8xf32>, vector<16x16xf32> -> vector<16x16xf32>
    %437 = vector.broadcast %13 : vector<1x16xf32> to vector<16x16xf32>
    %438 = arith.addf %436, %437 : vector<16x16xf32>
    %cst_136 = arith.constant dense<0xFF800000> : vector<16xf32>
    %439 = vector.multi_reduction <maximumf>, %438, %cst_136 [1] : vector<16x16xf32> to vector<16xf32>
    %440 = vector.shape_cast %439 : vector<16xf32> to vector<16x1xf32>
    %441 = vector.broadcast %440 : vector<16x1xf32> to vector<16x16xf32>
    %442 = arith.subf %438, %441 : vector<16x16xf32>
    %443 = math.exp %442 : vector<16x16xf32>
    %cst_137 = arith.constant dense<0.000000e+00> : vector<16xf32>
    %444 = vector.multi_reduction <add>, %443, %cst_137 [1] : vector<16x16xf32> to vector<16xf32>
    %445 = vector.shape_cast %444 : vector<16xf32> to vector<16x1xf32>
    %446 = tpu.reciprocal %445 {approx = true} : vector<16x1xf32> -> vector<16x1xf32>
    %447 = vector.broadcast %446 : vector<16x1xf32> to vector<16x16xf32>
    %448 = arith.mulf %443, %447 : vector<16x16xf32>
    %449 = vector.extract_strided_slice %382 {offsets = [0, 24], sizes = [16, 8], strides = [1, 1]} : vector<16x32xf32> to vector<16x8xf32>
    %cst_138 = arith.constant dense<0.000000e+00> : vector<16x8xf32>
    %450 = tpu.matmul %448, %449, %cst_138 {dimension_numbers = #tpu.dot_dimension_numbers<[1], [0], [0], [1], [0, 0, 1, 1], [], []>} : vector<16x16xf32>, vector<16x8xf32>, vector<16x8xf32> -> vector<16x8xf32>
    %451 = tpu.concatenate %399, %416, %433, %450 in 1 : vector<16x8xf32>, vector<16x8xf32>, vector<16x8xf32>, vector<16x8xf32> -> vector<16x32xf32>
    %452 = tpu.concatenate %379, %451 in 0 : vector<16x32xf32>, vector<16x32xf32> -> vector<32x32xf32>
    %c264 = arith.constant 264 : index
    %c0_139 = arith.constant 0 : index
    %453 = vector.load %arg4[%c264, %c0_139] : memref<1408x128xf32, #tpu.memory_space<vmem>>, vector<32x32xf32>
    %cst_140 = arith.constant dense<0.000000e+00> : vector<32x32xf32>
    %454 = tpu.matmul %452, %453, %cst_140 {dimension_numbers = #tpu.dot_dimension_numbers<[1], [0], [0], [1], [0, 0, 1, 1], [], []>} : vector<32x32xf32>, vector<32x32xf32>, vector<32x32xf32> -> vector<32x32xf32>
    %c296 = arith.constant 296 : index
    %c0_141 = arith.constant 0 : index
    %455 = vector.load %arg4[%c296, %c0_141] : memref<1408x128xf32, #tpu.memory_space<vmem>>, vector<1x32xf32>
    %456 = vector.broadcast %455 : vector<1x32xf32> to vector<32x32xf32>
    %457 = arith.addf %454, %456 : vector<32x32xf32>
    %458 = arith.addf %294, %457 : vector<32x32xf32>
    %cst_142 = arith.constant dense<0.000000e+00> : vector<32xf32>
    %459 = vector.multi_reduction <add>, %458, %cst_142 [1] : vector<32x32xf32> to vector<32xf32>
    %460 = vector.shape_cast %459 : vector<32xf32> to vector<32x1xf32>
    %cst_143 = arith.constant 3.200000e+01 : f32
    %461 = vector.broadcast %cst_143 : f32 to vector<32x1xf32>
    %462 = arith.divf %460, %461 : vector<32x1xf32>
    %463 = vector.broadcast %462 : vector<32x1xf32> to vector<32x32xf32>
    %464 = arith.subf %458, %463 : vector<32x32xf32>
    %465 = arith.mulf %464, %464 : vector<32x32xf32>
    %cst_144 = arith.constant dense<0.000000e+00> : vector<32xf32>
    %466 = vector.multi_reduction <add>, %465, %cst_144 [1] : vector<32x32xf32> to vector<32xf32>
    %467 = vector.shape_cast %466 : vector<32xf32> to vector<32x1xf32>
    %cst_145 = arith.constant 3.200000e+01 : f32
    %468 = vector.broadcast %cst_145 : f32 to vector<32x1xf32>
    %469 = arith.divf %467, %468 : vector<32x1xf32>
    %cst_146 = arith.constant 9.99999974E-6 : f32
    %470 = vector.broadcast %cst_146 : f32 to vector<32x1xf32>
    %471 = arith.addf %469, %470 : vector<32x1xf32>
    %472 = math.rsqrt %471 : vector<32x1xf32>
    %473 = vector.broadcast %472 : vector<32x1xf32> to vector<32x32xf32>
    %474 = arith.mulf %464, %473 : vector<32x32xf32>
    %c1136 = arith.constant 1136 : index
    %c0_147 = arith.constant 0 : index
    %475 = vector.load %arg4[%c1136, %c0_147] : memref<1408x128xf32, #tpu.memory_space<vmem>>, vector<1x32xf32>
    %476 = vector.broadcast %475 : vector<1x32xf32> to vector<32x32xf32>
    %477 = arith.mulf %474, %476 : vector<32x32xf32>
    %c1144 = arith.constant 1144 : index
    %c0_148 = arith.constant 0 : index
    %478 = vector.load %arg4[%c1144, %c0_148] : memref<1408x128xf32, #tpu.memory_space<vmem>>, vector<1x32xf32>
    %479 = vector.broadcast %478 : vector<1x32xf32> to vector<32x32xf32>
    %480 = arith.addf %477, %479 : vector<32x32xf32>
    %c736 = arith.constant 736 : index
    %c0_149 = arith.constant 0 : index
    %481 = vector.load %arg4[%c736, %c0_149] : memref<1408x128xf32, #tpu.memory_space<vmem>>, vector<32x64xf32>
    %cst_150 = arith.constant dense<0.000000e+00> : vector<32x64xf32>
    %482 = tpu.matmul %480, %481, %cst_150 {dimension_numbers = #tpu.dot_dimension_numbers<[1], [0], [0], [1], [0, 0, 1, 1], [], []>} : vector<32x32xf32>, vector<32x64xf32>, vector<32x64xf32> -> vector<32x64xf32>
    %c768 = arith.constant 768 : index
    %c0_151 = arith.constant 0 : index
    %483 = vector.load %arg4[%c768, %c0_151] : memref<1408x128xf32, #tpu.memory_space<vmem>>, vector<1x64xf32>
    %484 = vector.broadcast %483 : vector<1x64xf32> to vector<32x64xf32>
    %485 = arith.addf %482, %484 : vector<32x64xf32>
    %cst_152 = arith.constant 0.000000e+00 : f32
    %486 = vector.broadcast %cst_152 : f32 to vector<32x64xf32>
    %487 = arith.maximumf %485, %486 : vector<32x64xf32>
    %c776 = arith.constant 776 : index
    %c0_153 = arith.constant 0 : index
    %488 = vector.load %arg4[%c776, %c0_153] : memref<1408x128xf32, #tpu.memory_space<vmem>>, vector<64x32xf32>
    %cst_154 = arith.constant dense<0.000000e+00> : vector<32x32xf32>
    %489 = tpu.matmul %487, %488, %cst_154 {dimension_numbers = #tpu.dot_dimension_numbers<[1], [0], [0], [1], [0, 0, 1, 1], [], []>} : vector<32x64xf32>, vector<64x32xf32>, vector<32x32xf32> -> vector<32x32xf32>
    %c840 = arith.constant 840 : index
    %c0_155 = arith.constant 0 : index
    %490 = vector.load %arg4[%c840, %c0_155] : memref<1408x128xf32, #tpu.memory_space<vmem>>, vector<1x32xf32>
    %491 = vector.broadcast %490 : vector<1x32xf32> to vector<32x32xf32>
    %492 = arith.addf %489, %491 : vector<32x32xf32>
    %493 = arith.addf %480, %492 : vector<32x32xf32>
    %cst_156 = arith.constant dense<0.000000e+00> : vector<32xf32>
    %494 = vector.multi_reduction <add>, %493, %cst_156 [1] : vector<32x32xf32> to vector<32xf32>
    %495 = vector.shape_cast %494 : vector<32xf32> to vector<32x1xf32>
    %cst_157 = arith.constant 3.200000e+01 : f32
    %496 = vector.broadcast %cst_157 : f32 to vector<32x1xf32>
    %497 = arith.divf %495, %496 : vector<32x1xf32>
    %498 = vector.broadcast %497 : vector<32x1xf32> to vector<32x32xf32>
    %499 = arith.subf %493, %498 : vector<32x32xf32>
    %500 = arith.mulf %499, %499 : vector<32x32xf32>
    %cst_158 = arith.constant dense<0.000000e+00> : vector<32xf32>
    %501 = vector.multi_reduction <add>, %500, %cst_158 [1] : vector<32x32xf32> to vector<32xf32>
    %502 = vector.shape_cast %501 : vector<32xf32> to vector<32x1xf32>
    %cst_159 = arith.constant 3.200000e+01 : f32
    %503 = vector.broadcast %cst_159 : f32 to vector<32x1xf32>
    %504 = arith.divf %502, %503 : vector<32x1xf32>
    %cst_160 = arith.constant 9.99999974E-6 : f32
    %505 = vector.broadcast %cst_160 : f32 to vector<32x1xf32>
    %506 = arith.addf %504, %505 : vector<32x1xf32>
    %507 = math.rsqrt %506 : vector<32x1xf32>
    %508 = vector.broadcast %507 : vector<32x1xf32> to vector<32x32xf32>
    %509 = arith.mulf %499, %508 : vector<32x32xf32>
    %c1152 = arith.constant 1152 : index
    %c0_161 = arith.constant 0 : index
    %510 = vector.load %arg4[%c1152, %c0_161] : memref<1408x128xf32, #tpu.memory_space<vmem>>, vector<1x32xf32>
    %511 = vector.broadcast %510 : vector<1x32xf32> to vector<32x32xf32>
    %512 = arith.mulf %509, %511 : vector<32x32xf32>
    %c1160 = arith.constant 1160 : index
    %c0_162 = arith.constant 0 : index
    %513 = vector.load %arg4[%c1160, %c0_162] : memref<1408x128xf32, #tpu.memory_space<vmem>>, vector<1x32xf32>
    %514 = vector.broadcast %513 : vector<1x32xf32> to vector<32x32xf32>
    %515 = arith.addf %512, %514 : vector<32x32xf32>
    %516 = arith.addf %515, %16 : vector<32x32xf32>
    %517 = arith.addf %73, %17 : vector<16x32xf32>
    %c304 = arith.constant 304 : index
    %c0_163 = arith.constant 0 : index
    %518 = vector.load %arg4[%c304, %c0_163] : memref<1408x128xf32, #tpu.memory_space<vmem>>, vector<32x64xf32>
    %cst_164 = arith.constant dense<0.000000e+00> : vector<16x64xf32>
    %519 = tpu.matmul %517, %518, %cst_164 {dimension_numbers = #tpu.dot_dimension_numbers<[1], [0], [0], [1], [0, 0, 1, 1], [], []>} : vector<16x32xf32>, vector<32x64xf32>, vector<16x64xf32> -> vector<16x64xf32>
    %c336 = arith.constant 336 : index
    %c0_165 = arith.constant 0 : index
    %520 = vector.load %arg4[%c336, %c0_165] : memref<1408x128xf32, #tpu.memory_space<vmem>>, vector<1x64xf32>
    %521 = vector.broadcast %520 : vector<1x64xf32> to vector<16x64xf32>
    %522 = arith.addf %519, %521 : vector<16x64xf32>
    %523 = vector.extract_strided_slice %522 {offsets = [0, 0], sizes = [16, 32], strides = [1, 1]} : vector<16x64xf32> to vector<16x32xf32>
    %524 = vector.extract_strided_slice %522 {offsets = [0, 32], sizes = [16, 32], strides = [1, 1]} : vector<16x64xf32> to vector<16x32xf32>
    %c304_166 = arith.constant 304 : index
    %c64_167 = arith.constant 64 : index
    %525 = vector.load %arg4[%c304_166, %c64_167] : memref<1408x128xf32, #tpu.memory_space<vmem>>, vector<32x32xf32>
    %cst_168 = arith.constant dense<0.000000e+00> : vector<16x32xf32>
    %526 = tpu.matmul %73, %525, %cst_168 {dimension_numbers = #tpu.dot_dimension_numbers<[1], [0], [0], [1], [0, 0, 1, 1], [], []>} : vector<16x32xf32>, vector<32x32xf32>, vector<16x32xf32> -> vector<16x32xf32>
    %c336_169 = arith.constant 336 : index
    %c64_170 = arith.constant 64 : index
    %527 = vector.load %arg4[%c336_169, %c64_170] : memref<1408x128xf32, #tpu.memory_space<vmem>>, vector<1x32xf32>
    %528 = vector.broadcast %527 : vector<1x32xf32> to vector<16x32xf32>
    %529 = arith.addf %526, %528 : vector<16x32xf32>
    %530 = vector.extract_strided_slice %523 {offsets = [0, 0], sizes = [8, 32], strides = [1, 1]} : vector<16x32xf32> to vector<8x32xf32>
    %531 = vector.extract_strided_slice %524 {offsets = [0, 0], sizes = [8, 32], strides = [1, 1]} : vector<16x32xf32> to vector<8x32xf32>
    %532 = vector.extract_strided_slice %529 {offsets = [0, 0], sizes = [8, 32], strides = [1, 1]} : vector<16x32xf32> to vector<8x32xf32>
    %533 = vector.extract_strided_slice %530 {offsets = [0, 0], sizes = [8, 8], strides = [1, 1]} : vector<8x32xf32> to vector<8x8xf32>
    %534 = vector.extract_strided_slice %531 {offsets = [0, 0], sizes = [8, 8], strides = [1, 1]} : vector<8x32xf32> to vector<8x8xf32>
    %cst_171 = arith.constant dense<0.000000e+00> : vector<8x8xf32>
    %535 = tpu.matmul %533, %534, %cst_171 {dimension_numbers = #tpu.dot_dimension_numbers<[1], [1], [0], [0], [0, 0, 1, 0], [], []>} : vector<8x8xf32>, vector<8x8xf32>, vector<8x8xf32> -> vector<8x8xf32>
    %536 = vector.broadcast %14 : vector<1x8xf32> to vector<8x8xf32>
    %537 = arith.addf %535, %536 : vector<8x8xf32>
    %cst_172 = arith.constant dense<0xFF800000> : vector<8xf32>
    %538 = vector.multi_reduction <maximumf>, %537, %cst_172 [1] : vector<8x8xf32> to vector<8xf32>
    %539 = vector.shape_cast %538 : vector<8xf32> to vector<8x1xf32>
    %540 = vector.broadcast %539 : vector<8x1xf32> to vector<8x8xf32>
    %541 = arith.subf %537, %540 : vector<8x8xf32>
    %542 = math.exp %541 : vector<8x8xf32>
    %cst_173 = arith.constant dense<0.000000e+00> : vector<8xf32>
    %543 = vector.multi_reduction <add>, %542, %cst_173 [1] : vector<8x8xf32> to vector<8xf32>
    %544 = vector.shape_cast %543 : vector<8xf32> to vector<8x1xf32>
    %545 = tpu.reciprocal %544 {approx = true} : vector<8x1xf32> -> vector<8x1xf32>
    %546 = vector.broadcast %545 : vector<8x1xf32> to vector<8x8xf32>
    %547 = arith.mulf %542, %546 : vector<8x8xf32>
    %548 = vector.extract_strided_slice %532 {offsets = [0, 0], sizes = [8, 8], strides = [1, 1]} : vector<8x32xf32> to vector<8x8xf32>
    %cst_174 = arith.constant dense<0.000000e+00> : vector<8x8xf32>
    %549 = tpu.matmul %547, %548, %cst_174 {dimension_numbers = #tpu.dot_dimension_numbers<[1], [0], [0], [1], [0, 0, 1, 1], [], []>} : vector<8x8xf32>, vector<8x8xf32>, vector<8x8xf32> -> vector<8x8xf32>
    %550 = vector.extract_strided_slice %530 {offsets = [0, 8], sizes = [8, 8], strides = [1, 1]} : vector<8x32xf32> to vector<8x8xf32>
    %551 = vector.extract_strided_slice %531 {offsets = [0, 8], sizes = [8, 8], strides = [1, 1]} : vector<8x32xf32> to vector<8x8xf32>
    %cst_175 = arith.constant dense<0.000000e+00> : vector<8x8xf32>
    %552 = tpu.matmul %550, %551, %cst_175 {dimension_numbers = #tpu.dot_dimension_numbers<[1], [1], [0], [0], [0, 0, 1, 0], [], []>} : vector<8x8xf32>, vector<8x8xf32>, vector<8x8xf32> -> vector<8x8xf32>
    %553 = vector.broadcast %14 : vector<1x8xf32> to vector<8x8xf32>
    %554 = arith.addf %552, %553 : vector<8x8xf32>
    %cst_176 = arith.constant dense<0xFF800000> : vector<8xf32>
    %555 = vector.multi_reduction <maximumf>, %554, %cst_176 [1] : vector<8x8xf32> to vector<8xf32>
    %556 = vector.shape_cast %555 : vector<8xf32> to vector<8x1xf32>
    %557 = vector.broadcast %556 : vector<8x1xf32> to vector<8x8xf32>
    %558 = arith.subf %554, %557 : vector<8x8xf32>
    %559 = math.exp %558 : vector<8x8xf32>
    %cst_177 = arith.constant dense<0.000000e+00> : vector<8xf32>
    %560 = vector.multi_reduction <add>, %559, %cst_177 [1] : vector<8x8xf32> to vector<8xf32>
    %561 = vector.shape_cast %560 : vector<8xf32> to vector<8x1xf32>
    %562 = tpu.reciprocal %561 {approx = true} : vector<8x1xf32> -> vector<8x1xf32>
    %563 = vector.broadcast %562 : vector<8x1xf32> to vector<8x8xf32>
    %564 = arith.mulf %559, %563 : vector<8x8xf32>
    %565 = vector.extract_strided_slice %532 {offsets = [0, 8], sizes = [8, 8], strides = [1, 1]} : vector<8x32xf32> to vector<8x8xf32>
    %cst_178 = arith.constant dense<0.000000e+00> : vector<8x8xf32>
    %566 = tpu.matmul %564, %565, %cst_178 {dimension_numbers = #tpu.dot_dimension_numbers<[1], [0], [0], [1], [0, 0, 1, 1], [], []>} : vector<8x8xf32>, vector<8x8xf32>, vector<8x8xf32> -> vector<8x8xf32>
    %567 = vector.extract_strided_slice %530 {offsets = [0, 16], sizes = [8, 8], strides = [1, 1]} : vector<8x32xf32> to vector<8x8xf32>
    %568 = vector.extract_strided_slice %531 {offsets = [0, 16], sizes = [8, 8], strides = [1, 1]} : vector<8x32xf32> to vector<8x8xf32>
    %cst_179 = arith.constant dense<0.000000e+00> : vector<8x8xf32>
    %569 = tpu.matmul %567, %568, %cst_179 {dimension_numbers = #tpu.dot_dimension_numbers<[1], [1], [0], [0], [0, 0, 1, 0], [], []>} : vector<8x8xf32>, vector<8x8xf32>, vector<8x8xf32> -> vector<8x8xf32>
    %570 = vector.broadcast %14 : vector<1x8xf32> to vector<8x8xf32>
    %571 = arith.addf %569, %570 : vector<8x8xf32>
    %cst_180 = arith.constant dense<0xFF800000> : vector<8xf32>
    %572 = vector.multi_reduction <maximumf>, %571, %cst_180 [1] : vector<8x8xf32> to vector<8xf32>
    %573 = vector.shape_cast %572 : vector<8xf32> to vector<8x1xf32>
    %574 = vector.broadcast %573 : vector<8x1xf32> to vector<8x8xf32>
    %575 = arith.subf %571, %574 : vector<8x8xf32>
    %576 = math.exp %575 : vector<8x8xf32>
    %cst_181 = arith.constant dense<0.000000e+00> : vector<8xf32>
    %577 = vector.multi_reduction <add>, %576, %cst_181 [1] : vector<8x8xf32> to vector<8xf32>
    %578 = vector.shape_cast %577 : vector<8xf32> to vector<8x1xf32>
    %579 = tpu.reciprocal %578 {approx = true} : vector<8x1xf32> -> vector<8x1xf32>
    %580 = vector.broadcast %579 : vector<8x1xf32> to vector<8x8xf32>
    %581 = arith.mulf %576, %580 : vector<8x8xf32>
    %582 = vector.extract_strided_slice %532 {offsets = [0, 16], sizes = [8, 8], strides = [1, 1]} : vector<8x32xf32> to vector<8x8xf32>
    %cst_182 = arith.constant dense<0.000000e+00> : vector<8x8xf32>
    %583 = tpu.matmul %581, %582, %cst_182 {dimension_numbers = #tpu.dot_dimension_numbers<[1], [0], [0], [1], [0, 0, 1, 1], [], []>} : vector<8x8xf32>, vector<8x8xf32>, vector<8x8xf32> -> vector<8x8xf32>
    %584 = vector.extract_strided_slice %530 {offsets = [0, 24], sizes = [8, 8], strides = [1, 1]} : vector<8x32xf32> to vector<8x8xf32>
    %585 = vector.extract_strided_slice %531 {offsets = [0, 24], sizes = [8, 8], strides = [1, 1]} : vector<8x32xf32> to vector<8x8xf32>
    %cst_183 = arith.constant dense<0.000000e+00> : vector<8x8xf32>
    %586 = tpu.matmul %584, %585, %cst_183 {dimension_numbers = #tpu.dot_dimension_numbers<[1], [1], [0], [0], [0, 0, 1, 0], [], []>} : vector<8x8xf32>, vector<8x8xf32>, vector<8x8xf32> -> vector<8x8xf32>
    %587 = vector.broadcast %14 : vector<1x8xf32> to vector<8x8xf32>
    %588 = arith.addf %586, %587 : vector<8x8xf32>
    %cst_184 = arith.constant dense<0xFF800000> : vector<8xf32>
    %589 = vector.multi_reduction <maximumf>, %588, %cst_184 [1] : vector<8x8xf32> to vector<8xf32>
    %590 = vector.shape_cast %589 : vector<8xf32> to vector<8x1xf32>
    %591 = vector.broadcast %590 : vector<8x1xf32> to vector<8x8xf32>
    %592 = arith.subf %588, %591 : vector<8x8xf32>
    %593 = math.exp %592 : vector<8x8xf32>
    %cst_185 = arith.constant dense<0.000000e+00> : vector<8xf32>
    %594 = vector.multi_reduction <add>, %593, %cst_185 [1] : vector<8x8xf32> to vector<8xf32>
    %595 = vector.shape_cast %594 : vector<8xf32> to vector<8x1xf32>
    %596 = tpu.reciprocal %595 {approx = true} : vector<8x1xf32> -> vector<8x1xf32>
    %597 = vector.broadcast %596 : vector<8x1xf32> to vector<8x8xf32>
    %598 = arith.mulf %593, %597 : vector<8x8xf32>
    %599 = vector.extract_strided_slice %532 {offsets = [0, 24], sizes = [8, 8], strides = [1, 1]} : vector<8x32xf32> to vector<8x8xf32>
    %cst_186 = arith.constant dense<0.000000e+00> : vector<8x8xf32>
    %600 = tpu.matmul %598, %599, %cst_186 {dimension_numbers = #tpu.dot_dimension_numbers<[1], [0], [0], [1], [0, 0, 1, 1], [], []>} : vector<8x8xf32>, vector<8x8xf32>, vector<8x8xf32> -> vector<8x8xf32>
    %601 = tpu.concatenate %549, %566, %583, %600 in 1 : vector<8x8xf32>, vector<8x8xf32>, vector<8x8xf32>, vector<8x8xf32> -> vector<8x32xf32>
    %602 = vector.extract_strided_slice %523 {offsets = [8, 0], sizes = [8, 32], strides = [1, 1]} : vector<16x32xf32> to vector<8x32xf32>
    %603 = vector.extract_strided_slice %524 {offsets = [8, 0], sizes = [8, 32], strides = [1, 1]} : vector<16x32xf32> to vector<8x32xf32>
    %604 = vector.extract_strided_slice %529 {offsets = [8, 0], sizes = [8, 32], strides = [1, 1]} : vector<16x32xf32> to vector<8x32xf32>
    %605 = vector.extract_strided_slice %602 {offsets = [0, 0], sizes = [8, 8], strides = [1, 1]} : vector<8x32xf32> to vector<8x8xf32>
    %606 = vector.extract_strided_slice %603 {offsets = [0, 0], sizes = [8, 8], strides = [1, 1]} : vector<8x32xf32> to vector<8x8xf32>
    %cst_187 = arith.constant dense<0.000000e+00> : vector<8x8xf32>
    %607 = tpu.matmul %605, %606, %cst_187 {dimension_numbers = #tpu.dot_dimension_numbers<[1], [1], [0], [0], [0, 0, 1, 0], [], []>} : vector<8x8xf32>, vector<8x8xf32>, vector<8x8xf32> -> vector<8x8xf32>
    %608 = vector.broadcast %15 : vector<1x8xf32> to vector<8x8xf32>
    %609 = arith.addf %607, %608 : vector<8x8xf32>
    %cst_188 = arith.constant dense<0xFF800000> : vector<8xf32>
    %610 = vector.multi_reduction <maximumf>, %609, %cst_188 [1] : vector<8x8xf32> to vector<8xf32>
    %611 = vector.shape_cast %610 : vector<8xf32> to vector<8x1xf32>
    %612 = vector.broadcast %611 : vector<8x1xf32> to vector<8x8xf32>
    %613 = arith.subf %609, %612 : vector<8x8xf32>
    %614 = math.exp %613 : vector<8x8xf32>
    %cst_189 = arith.constant dense<0.000000e+00> : vector<8xf32>
    %615 = vector.multi_reduction <add>, %614, %cst_189 [1] : vector<8x8xf32> to vector<8xf32>
    %616 = vector.shape_cast %615 : vector<8xf32> to vector<8x1xf32>
    %617 = tpu.reciprocal %616 {approx = true} : vector<8x1xf32> -> vector<8x1xf32>
    %618 = vector.broadcast %617 : vector<8x1xf32> to vector<8x8xf32>
    %619 = arith.mulf %614, %618 : vector<8x8xf32>
    %620 = vector.extract_strided_slice %604 {offsets = [0, 0], sizes = [8, 8], strides = [1, 1]} : vector<8x32xf32> to vector<8x8xf32>
    %cst_190 = arith.constant dense<0.000000e+00> : vector<8x8xf32>
    %621 = tpu.matmul %619, %620, %cst_190 {dimension_numbers = #tpu.dot_dimension_numbers<[1], [0], [0], [1], [0, 0, 1, 1], [], []>} : vector<8x8xf32>, vector<8x8xf32>, vector<8x8xf32> -> vector<8x8xf32>
    %622 = vector.extract_strided_slice %602 {offsets = [0, 8], sizes = [8, 8], strides = [1, 1]} : vector<8x32xf32> to vector<8x8xf32>
    %623 = vector.extract_strided_slice %603 {offsets = [0, 8], sizes = [8, 8], strides = [1, 1]} : vector<8x32xf32> to vector<8x8xf32>
    %cst_191 = arith.constant dense<0.000000e+00> : vector<8x8xf32>
    %624 = tpu.matmul %622, %623, %cst_191 {dimension_numbers = #tpu.dot_dimension_numbers<[1], [1], [0], [0], [0, 0, 1, 0], [], []>} : vector<8x8xf32>, vector<8x8xf32>, vector<8x8xf32> -> vector<8x8xf32>
    %625 = vector.broadcast %15 : vector<1x8xf32> to vector<8x8xf32>
    %626 = arith.addf %624, %625 : vector<8x8xf32>
    %cst_192 = arith.constant dense<0xFF800000> : vector<8xf32>
    %627 = vector.multi_reduction <maximumf>, %626, %cst_192 [1] : vector<8x8xf32> to vector<8xf32>
    %628 = vector.shape_cast %627 : vector<8xf32> to vector<8x1xf32>
    %629 = vector.broadcast %628 : vector<8x1xf32> to vector<8x8xf32>
    %630 = arith.subf %626, %629 : vector<8x8xf32>
    %631 = math.exp %630 : vector<8x8xf32>
    %cst_193 = arith.constant dense<0.000000e+00> : vector<8xf32>
    %632 = vector.multi_reduction <add>, %631, %cst_193 [1] : vector<8x8xf32> to vector<8xf32>
    %633 = vector.shape_cast %632 : vector<8xf32> to vector<8x1xf32>
    %634 = tpu.reciprocal %633 {approx = true} : vector<8x1xf32> -> vector<8x1xf32>
    %635 = vector.broadcast %634 : vector<8x1xf32> to vector<8x8xf32>
    %636 = arith.mulf %631, %635 : vector<8x8xf32>
    %637 = vector.extract_strided_slice %604 {offsets = [0, 8], sizes = [8, 8], strides = [1, 1]} : vector<8x32xf32> to vector<8x8xf32>
    %cst_194 = arith.constant dense<0.000000e+00> : vector<8x8xf32>
    %638 = tpu.matmul %636, %637, %cst_194 {dimension_numbers = #tpu.dot_dimension_numbers<[1], [0], [0], [1], [0, 0, 1, 1], [], []>} : vector<8x8xf32>, vector<8x8xf32>, vector<8x8xf32> -> vector<8x8xf32>
    %639 = vector.extract_strided_slice %602 {offsets = [0, 16], sizes = [8, 8], strides = [1, 1]} : vector<8x32xf32> to vector<8x8xf32>
    %640 = vector.extract_strided_slice %603 {offsets = [0, 16], sizes = [8, 8], strides = [1, 1]} : vector<8x32xf32> to vector<8x8xf32>
    %cst_195 = arith.constant dense<0.000000e+00> : vector<8x8xf32>
    %641 = tpu.matmul %639, %640, %cst_195 {dimension_numbers = #tpu.dot_dimension_numbers<[1], [1], [0], [0], [0, 0, 1, 0], [], []>} : vector<8x8xf32>, vector<8x8xf32>, vector<8x8xf32> -> vector<8x8xf32>
    %642 = vector.broadcast %15 : vector<1x8xf32> to vector<8x8xf32>
    %643 = arith.addf %641, %642 : vector<8x8xf32>
    %cst_196 = arith.constant dense<0xFF800000> : vector<8xf32>
    %644 = vector.multi_reduction <maximumf>, %643, %cst_196 [1] : vector<8x8xf32> to vector<8xf32>
    %645 = vector.shape_cast %644 : vector<8xf32> to vector<8x1xf32>
    %646 = vector.broadcast %645 : vector<8x1xf32> to vector<8x8xf32>
    %647 = arith.subf %643, %646 : vector<8x8xf32>
    %648 = math.exp %647 : vector<8x8xf32>
    %cst_197 = arith.constant dense<0.000000e+00> : vector<8xf32>
    %649 = vector.multi_reduction <add>, %648, %cst_197 [1] : vector<8x8xf32> to vector<8xf32>
    %650 = vector.shape_cast %649 : vector<8xf32> to vector<8x1xf32>
    %651 = tpu.reciprocal %650 {approx = true} : vector<8x1xf32> -> vector<8x1xf32>
    %652 = vector.broadcast %651 : vector<8x1xf32> to vector<8x8xf32>
    %653 = arith.mulf %648, %652 : vector<8x8xf32>
    %654 = vector.extract_strided_slice %604 {offsets = [0, 16], sizes = [8, 8], strides = [1, 1]} : vector<8x32xf32> to vector<8x8xf32>
    %cst_198 = arith.constant dense<0.000000e+00> : vector<8x8xf32>
    %655 = tpu.matmul %653, %654, %cst_198 {dimension_numbers = #tpu.dot_dimension_numbers<[1], [0], [0], [1], [0, 0, 1, 1], [], []>} : vector<8x8xf32>, vector<8x8xf32>, vector<8x8xf32> -> vector<8x8xf32>
    %656 = vector.extract_strided_slice %602 {offsets = [0, 24], sizes = [8, 8], strides = [1, 1]} : vector<8x32xf32> to vector<8x8xf32>
    %657 = vector.extract_strided_slice %603 {offsets = [0, 24], sizes = [8, 8], strides = [1, 1]} : vector<8x32xf32> to vector<8x8xf32>
    %cst_199 = arith.constant dense<0.000000e+00> : vector<8x8xf32>
    %658 = tpu.matmul %656, %657, %cst_199 {dimension_numbers = #tpu.dot_dimension_numbers<[1], [1], [0], [0], [0, 0, 1, 0], [], []>} : vector<8x8xf32>, vector<8x8xf32>, vector<8x8xf32> -> vector<8x8xf32>
    %659 = vector.broadcast %15 : vector<1x8xf32> to vector<8x8xf32>
    %660 = arith.addf %658, %659 : vector<8x8xf32>
    %cst_200 = arith.constant dense<0xFF800000> : vector<8xf32>
    %661 = vector.multi_reduction <maximumf>, %660, %cst_200 [1] : vector<8x8xf32> to vector<8xf32>
    %662 = vector.shape_cast %661 : vector<8xf32> to vector<8x1xf32>
    %663 = vector.broadcast %662 : vector<8x1xf32> to vector<8x8xf32>
    %664 = arith.subf %660, %663 : vector<8x8xf32>
    %665 = math.exp %664 : vector<8x8xf32>
    %cst_201 = arith.constant dense<0.000000e+00> : vector<8xf32>
    %666 = vector.multi_reduction <add>, %665, %cst_201 [1] : vector<8x8xf32> to vector<8xf32>
    %667 = vector.shape_cast %666 : vector<8xf32> to vector<8x1xf32>
    %668 = tpu.reciprocal %667 {approx = true} : vector<8x1xf32> -> vector<8x1xf32>
    %669 = vector.broadcast %668 : vector<8x1xf32> to vector<8x8xf32>
    %670 = arith.mulf %665, %669 : vector<8x8xf32>
    %671 = vector.extract_strided_slice %604 {offsets = [0, 24], sizes = [8, 8], strides = [1, 1]} : vector<8x32xf32> to vector<8x8xf32>
    %cst_202 = arith.constant dense<0.000000e+00> : vector<8x8xf32>
    %672 = tpu.matmul %670, %671, %cst_202 {dimension_numbers = #tpu.dot_dimension_numbers<[1], [0], [0], [1], [0, 0, 1, 1], [], []>} : vector<8x8xf32>, vector<8x8xf32>, vector<8x8xf32> -> vector<8x8xf32>
    %673 = tpu.concatenate %621, %638, %655, %672 in 1 : vector<8x8xf32>, vector<8x8xf32>, vector<8x8xf32>, vector<8x8xf32> -> vector<8x32xf32>
    %674 = tpu.concatenate %601, %673 in 0 : vector<8x32xf32>, vector<8x32xf32> -> vector<16x32xf32>
    %c344 = arith.constant 344 : index
    %c0_203 = arith.constant 0 : index
    %675 = vector.load %arg4[%c344, %c0_203] : memref<1408x128xf32, #tpu.memory_space<vmem>>, vector<32x32xf32>
    %cst_204 = arith.constant dense<0.000000e+00> : vector<16x32xf32>
    %676 = tpu.matmul %674, %675, %cst_204 {dimension_numbers = #tpu.dot_dimension_numbers<[1], [0], [0], [1], [0, 0, 1, 1], [], []>} : vector<16x32xf32>, vector<32x32xf32>, vector<16x32xf32> -> vector<16x32xf32>
    %c376 = arith.constant 376 : index
    %c0_205 = arith.constant 0 : index
    %677 = vector.load %arg4[%c376, %c0_205] : memref<1408x128xf32, #tpu.memory_space<vmem>>, vector<1x32xf32>
    %678 = vector.broadcast %677 : vector<1x32xf32> to vector<16x32xf32>
    %679 = arith.addf %676, %678 : vector<16x32xf32>
    %680 = arith.addf %73, %679 : vector<16x32xf32>
    %cst_206 = arith.constant dense<0.000000e+00> : vector<16xf32>
    %681 = vector.multi_reduction <add>, %680, %cst_206 [1] : vector<16x32xf32> to vector<16xf32>
    %682 = vector.shape_cast %681 : vector<16xf32> to vector<16x1xf32>
    %cst_207 = arith.constant 3.200000e+01 : f32
    %683 = vector.broadcast %cst_207 : f32 to vector<16x1xf32>
    %684 = arith.divf %682, %683 : vector<16x1xf32>
    %685 = vector.broadcast %684 : vector<16x1xf32> to vector<16x32xf32>
    %686 = arith.subf %680, %685 : vector<16x32xf32>
    %687 = arith.mulf %686, %686 : vector<16x32xf32>
    %cst_208 = arith.constant dense<0.000000e+00> : vector<16xf32>
    %688 = vector.multi_reduction <add>, %687, %cst_208 [1] : vector<16x32xf32> to vector<16xf32>
    %689 = vector.shape_cast %688 : vector<16xf32> to vector<16x1xf32>
    %cst_209 = arith.constant 3.200000e+01 : f32
    %690 = vector.broadcast %cst_209 : f32 to vector<16x1xf32>
    %691 = arith.divf %689, %690 : vector<16x1xf32>
    %cst_210 = arith.constant 9.99999974E-6 : f32
    %692 = vector.broadcast %cst_210 : f32 to vector<16x1xf32>
    %693 = arith.addf %691, %692 : vector<16x1xf32>
    %694 = math.rsqrt %693 : vector<16x1xf32>
    %695 = vector.broadcast %694 : vector<16x1xf32> to vector<16x32xf32>
    %696 = arith.mulf %686, %695 : vector<16x32xf32>
    %c1168 = arith.constant 1168 : index
    %c0_211 = arith.constant 0 : index
    %697 = vector.load %arg4[%c1168, %c0_211] : memref<1408x128xf32, #tpu.memory_space<vmem>>, vector<1x32xf32>
    %698 = vector.broadcast %697 : vector<1x32xf32> to vector<16x32xf32>
    %699 = arith.mulf %696, %698 : vector<16x32xf32>
    %c1176 = arith.constant 1176 : index
    %c0_212 = arith.constant 0 : index
    %700 = vector.load %arg4[%c1176, %c0_212] : memref<1408x128xf32, #tpu.memory_space<vmem>>, vector<1x32xf32>
    %701 = vector.broadcast %700 : vector<1x32xf32> to vector<16x32xf32>
    %702 = arith.addf %699, %701 : vector<16x32xf32>
    %703 = arith.addf %702, %17 : vector<16x32xf32>
    %c464 = arith.constant 464 : index
    %c0_213 = arith.constant 0 : index
    %704 = vector.load %arg4[%c464, %c0_213] : memref<1408x128xf32, #tpu.memory_space<vmem>>, vector<32x32xf32>
    %cst_214 = arith.constant dense<0.000000e+00> : vector<16x32xf32>
    %705 = tpu.matmul %703, %704, %cst_214 {dimension_numbers = #tpu.dot_dimension_numbers<[1], [0], [0], [1], [0, 0, 1, 1], [], []>} : vector<16x32xf32>, vector<32x32xf32>, vector<16x32xf32> -> vector<16x32xf32>
    %c496 = arith.constant 496 : index
    %c0_215 = arith.constant 0 : index
    %706 = vector.load %arg4[%c496, %c0_215] : memref<1408x128xf32, #tpu.memory_space<vmem>>, vector<1x32xf32>
    %707 = vector.broadcast %706 : vector<1x32xf32> to vector<16x32xf32>
    %708 = arith.addf %705, %707 : vector<16x32xf32>
    %c464_216 = arith.constant 464 : index
    %c32 = arith.constant 32 : index
    %709 = vector.load %arg4[%c464_216, %c32] : memref<1408x128xf32, #tpu.memory_space<vmem>>, vector<32x32xf32>
    %cst_217 = arith.constant dense<0.000000e+00> : vector<32x32xf32>
    %710 = tpu.matmul %516, %709, %cst_217 {dimension_numbers = #tpu.dot_dimension_numbers<[1], [0], [0], [1], [0, 0, 1, 1], [], []>} : vector<32x32xf32>, vector<32x32xf32>, vector<32x32xf32> -> vector<32x32xf32>
    %c496_218 = arith.constant 496 : index
    %c32_219 = arith.constant 32 : index
    %711 = vector.load %arg4[%c496_218, %c32_219] : memref<1408x128xf32, #tpu.memory_space<vmem>>, vector<1x32xf32>
    %712 = vector.broadcast %711 : vector<1x32xf32> to vector<32x32xf32>
    %713 = arith.addf %710, %712 : vector<32x32xf32>
    %c464_220 = arith.constant 464 : index
    %c64_221 = arith.constant 64 : index
    %714 = vector.load %arg4[%c464_220, %c64_221] : memref<1408x128xf32, #tpu.memory_space<vmem>>, vector<32x32xf32>
    %cst_222 = arith.constant dense<0.000000e+00> : vector<32x32xf32>
    %715 = tpu.matmul %515, %714, %cst_222 {dimension_numbers = #tpu.dot_dimension_numbers<[1], [0], [0], [1], [0, 0, 1, 1], [], []>} : vector<32x32xf32>, vector<32x32xf32>, vector<32x32xf32> -> vector<32x32xf32>
    %c496_223 = arith.constant 496 : index
    %c64_224 = arith.constant 64 : index
    %716 = vector.load %arg4[%c496_223, %c64_224] : memref<1408x128xf32, #tpu.memory_space<vmem>>, vector<1x32xf32>
    %717 = vector.broadcast %716 : vector<1x32xf32> to vector<32x32xf32>
    %718 = arith.addf %715, %717 : vector<32x32xf32>
    %719 = vector.extract_strided_slice %708 {offsets = [0, 0], sizes = [8, 32], strides = [1, 1]} : vector<16x32xf32> to vector<8x32xf32>
    %720 = vector.extract_strided_slice %713 {offsets = [0, 0], sizes = [16, 32], strides = [1, 1]} : vector<32x32xf32> to vector<16x32xf32>
    %721 = vector.extract_strided_slice %718 {offsets = [0, 0], sizes = [16, 32], strides = [1, 1]} : vector<32x32xf32> to vector<16x32xf32>
    %722 = vector.extract_strided_slice %719 {offsets = [0, 0], sizes = [8, 8], strides = [1, 1]} : vector<8x32xf32> to vector<8x8xf32>
    %723 = vector.extract_strided_slice %720 {offsets = [0, 0], sizes = [16, 8], strides = [1, 1]} : vector<16x32xf32> to vector<16x8xf32>
    %cst_225 = arith.constant dense<0.000000e+00> : vector<8x16xf32>
    %724 = tpu.matmul %722, %723, %cst_225 {dimension_numbers = #tpu.dot_dimension_numbers<[1], [1], [0], [0], [0, 0, 1, 0], [], []>} : vector<8x8xf32>, vector<16x8xf32>, vector<8x16xf32> -> vector<8x16xf32>
    %725 = vector.broadcast %12 : vector<1x16xf32> to vector<8x16xf32>
    %726 = arith.addf %724, %725 : vector<8x16xf32>
    %cst_226 = arith.constant dense<0xFF800000> : vector<8xf32>
    %727 = vector.multi_reduction <maximumf>, %726, %cst_226 [1] : vector<8x16xf32> to vector<8xf32>
    %728 = vector.shape_cast %727 : vector<8xf32> to vector<8x1xf32>
    %729 = vector.broadcast %728 : vector<8x1xf32> to vector<8x16xf32>
    %730 = arith.subf %726, %729 : vector<8x16xf32>
    %731 = math.exp %730 : vector<8x16xf32>
    %cst_227 = arith.constant dense<0.000000e+00> : vector<8xf32>
    %732 = vector.multi_reduction <add>, %731, %cst_227 [1] : vector<8x16xf32> to vector<8xf32>
    %733 = vector.shape_cast %732 : vector<8xf32> to vector<8x1xf32>
    %734 = tpu.reciprocal %733 {approx = true} : vector<8x1xf32> -> vector<8x1xf32>
    %735 = vector.broadcast %734 : vector<8x1xf32> to vector<8x16xf32>
    %736 = arith.mulf %731, %735 : vector<8x16xf32>
    %737 = vector.extract_strided_slice %721 {offsets = [0, 0], sizes = [16, 8], strides = [1, 1]} : vector<16x32xf32> to vector<16x8xf32>
    %cst_228 = arith.constant dense<0.000000e+00> : vector<8x8xf32>
    %738 = tpu.matmul %736, %737, %cst_228 {dimension_numbers = #tpu.dot_dimension_numbers<[1], [0], [0], [1], [0, 0, 1, 1], [], []>} : vector<8x16xf32>, vector<16x8xf32>, vector<8x8xf32> -> vector<8x8xf32>
    %739 = vector.extract_strided_slice %719 {offsets = [0, 8], sizes = [8, 8], strides = [1, 1]} : vector<8x32xf32> to vector<8x8xf32>
    %740 = vector.extract_strided_slice %720 {offsets = [0, 8], sizes = [16, 8], strides = [1, 1]} : vector<16x32xf32> to vector<16x8xf32>
    %cst_229 = arith.constant dense<0.000000e+00> : vector<8x16xf32>
    %741 = tpu.matmul %739, %740, %cst_229 {dimension_numbers = #tpu.dot_dimension_numbers<[1], [1], [0], [0], [0, 0, 1, 0], [], []>} : vector<8x8xf32>, vector<16x8xf32>, vector<8x16xf32> -> vector<8x16xf32>
    %742 = vector.broadcast %12 : vector<1x16xf32> to vector<8x16xf32>
    %743 = arith.addf %741, %742 : vector<8x16xf32>
    %cst_230 = arith.constant dense<0xFF800000> : vector<8xf32>
    %744 = vector.multi_reduction <maximumf>, %743, %cst_230 [1] : vector<8x16xf32> to vector<8xf32>
    %745 = vector.shape_cast %744 : vector<8xf32> to vector<8x1xf32>
    %746 = vector.broadcast %745 : vector<8x1xf32> to vector<8x16xf32>
    %747 = arith.subf %743, %746 : vector<8x16xf32>
    %748 = math.exp %747 : vector<8x16xf32>
    %cst_231 = arith.constant dense<0.000000e+00> : vector<8xf32>
    %749 = vector.multi_reduction <add>, %748, %cst_231 [1] : vector<8x16xf32> to vector<8xf32>
    %750 = vector.shape_cast %749 : vector<8xf32> to vector<8x1xf32>
    %751 = tpu.reciprocal %750 {approx = true} : vector<8x1xf32> -> vector<8x1xf32>
    %752 = vector.broadcast %751 : vector<8x1xf32> to vector<8x16xf32>
    %753 = arith.mulf %748, %752 : vector<8x16xf32>
    %754 = vector.extract_strided_slice %721 {offsets = [0, 8], sizes = [16, 8], strides = [1, 1]} : vector<16x32xf32> to vector<16x8xf32>
    %cst_232 = arith.constant dense<0.000000e+00> : vector<8x8xf32>
    %755 = tpu.matmul %753, %754, %cst_232 {dimension_numbers = #tpu.dot_dimension_numbers<[1], [0], [0], [1], [0, 0, 1, 1], [], []>} : vector<8x16xf32>, vector<16x8xf32>, vector<8x8xf32> -> vector<8x8xf32>
    %756 = vector.extract_strided_slice %719 {offsets = [0, 16], sizes = [8, 8], strides = [1, 1]} : vector<8x32xf32> to vector<8x8xf32>
    %757 = vector.extract_strided_slice %720 {offsets = [0, 16], sizes = [16, 8], strides = [1, 1]} : vector<16x32xf32> to vector<16x8xf32>
    %cst_233 = arith.constant dense<0.000000e+00> : vector<8x16xf32>
    %758 = tpu.matmul %756, %757, %cst_233 {dimension_numbers = #tpu.dot_dimension_numbers<[1], [1], [0], [0], [0, 0, 1, 0], [], []>} : vector<8x8xf32>, vector<16x8xf32>, vector<8x16xf32> -> vector<8x16xf32>
    %759 = vector.broadcast %12 : vector<1x16xf32> to vector<8x16xf32>
    %760 = arith.addf %758, %759 : vector<8x16xf32>
    %cst_234 = arith.constant dense<0xFF800000> : vector<8xf32>
    %761 = vector.multi_reduction <maximumf>, %760, %cst_234 [1] : vector<8x16xf32> to vector<8xf32>
    %762 = vector.shape_cast %761 : vector<8xf32> to vector<8x1xf32>
    %763 = vector.broadcast %762 : vector<8x1xf32> to vector<8x16xf32>
    %764 = arith.subf %760, %763 : vector<8x16xf32>
    %765 = math.exp %764 : vector<8x16xf32>
    %cst_235 = arith.constant dense<0.000000e+00> : vector<8xf32>
    %766 = vector.multi_reduction <add>, %765, %cst_235 [1] : vector<8x16xf32> to vector<8xf32>
    %767 = vector.shape_cast %766 : vector<8xf32> to vector<8x1xf32>
    %768 = tpu.reciprocal %767 {approx = true} : vector<8x1xf32> -> vector<8x1xf32>
    %769 = vector.broadcast %768 : vector<8x1xf32> to vector<8x16xf32>
    %770 = arith.mulf %765, %769 : vector<8x16xf32>
    %771 = vector.extract_strided_slice %721 {offsets = [0, 16], sizes = [16, 8], strides = [1, 1]} : vector<16x32xf32> to vector<16x8xf32>
    %cst_236 = arith.constant dense<0.000000e+00> : vector<8x8xf32>
    %772 = tpu.matmul %770, %771, %cst_236 {dimension_numbers = #tpu.dot_dimension_numbers<[1], [0], [0], [1], [0, 0, 1, 1], [], []>} : vector<8x16xf32>, vector<16x8xf32>, vector<8x8xf32> -> vector<8x8xf32>
    %773 = vector.extract_strided_slice %719 {offsets = [0, 24], sizes = [8, 8], strides = [1, 1]} : vector<8x32xf32> to vector<8x8xf32>
    %774 = vector.extract_strided_slice %720 {offsets = [0, 24], sizes = [16, 8], strides = [1, 1]} : vector<16x32xf32> to vector<16x8xf32>
    %cst_237 = arith.constant dense<0.000000e+00> : vector<8x16xf32>
    %775 = tpu.matmul %773, %774, %cst_237 {dimension_numbers = #tpu.dot_dimension_numbers<[1], [1], [0], [0], [0, 0, 1, 0], [], []>} : vector<8x8xf32>, vector<16x8xf32>, vector<8x16xf32> -> vector<8x16xf32>
    %776 = vector.broadcast %12 : vector<1x16xf32> to vector<8x16xf32>
    %777 = arith.addf %775, %776 : vector<8x16xf32>
    %cst_238 = arith.constant dense<0xFF800000> : vector<8xf32>
    %778 = vector.multi_reduction <maximumf>, %777, %cst_238 [1] : vector<8x16xf32> to vector<8xf32>
    %779 = vector.shape_cast %778 : vector<8xf32> to vector<8x1xf32>
    %780 = vector.broadcast %779 : vector<8x1xf32> to vector<8x16xf32>
    %781 = arith.subf %777, %780 : vector<8x16xf32>
    %782 = math.exp %781 : vector<8x16xf32>
    %cst_239 = arith.constant dense<0.000000e+00> : vector<8xf32>
    %783 = vector.multi_reduction <add>, %782, %cst_239 [1] : vector<8x16xf32> to vector<8xf32>
    %784 = vector.shape_cast %783 : vector<8xf32> to vector<8x1xf32>
    %785 = tpu.reciprocal %784 {approx = true} : vector<8x1xf32> -> vector<8x1xf32>
    %786 = vector.broadcast %785 : vector<8x1xf32> to vector<8x16xf32>
    %787 = arith.mulf %782, %786 : vector<8x16xf32>
    %788 = vector.extract_strided_slice %721 {offsets = [0, 24], sizes = [16, 8], strides = [1, 1]} : vector<16x32xf32> to vector<16x8xf32>
    %cst_240 = arith.constant dense<0.000000e+00> : vector<8x8xf32>
    %789 = tpu.matmul %787, %788, %cst_240 {dimension_numbers = #tpu.dot_dimension_numbers<[1], [0], [0], [1], [0, 0, 1, 1], [], []>} : vector<8x16xf32>, vector<16x8xf32>, vector<8x8xf32> -> vector<8x8xf32>
    %790 = tpu.concatenate %738, %755, %772, %789 in 1 : vector<8x8xf32>, vector<8x8xf32>, vector<8x8xf32>, vector<8x8xf32> -> vector<8x32xf32>
    %791 = vector.extract_strided_slice %708 {offsets = [8, 0], sizes = [8, 32], strides = [1, 1]} : vector<16x32xf32> to vector<8x32xf32>
    %792 = vector.extract_strided_slice %713 {offsets = [16, 0], sizes = [16, 32], strides = [1, 1]} : vector<32x32xf32> to vector<16x32xf32>
    %793 = vector.extract_strided_slice %718 {offsets = [16, 0], sizes = [16, 32], strides = [1, 1]} : vector<32x32xf32> to vector<16x32xf32>
    %794 = vector.extract_strided_slice %791 {offsets = [0, 0], sizes = [8, 8], strides = [1, 1]} : vector<8x32xf32> to vector<8x8xf32>
    %795 = vector.extract_strided_slice %792 {offsets = [0, 0], sizes = [16, 8], strides = [1, 1]} : vector<16x32xf32> to vector<16x8xf32>
    %cst_241 = arith.constant dense<0.000000e+00> : vector<8x16xf32>
    %796 = tpu.matmul %794, %795, %cst_241 {dimension_numbers = #tpu.dot_dimension_numbers<[1], [1], [0], [0], [0, 0, 1, 0], [], []>} : vector<8x8xf32>, vector<16x8xf32>, vector<8x16xf32> -> vector<8x16xf32>
    %797 = vector.broadcast %13 : vector<1x16xf32> to vector<8x16xf32>
    %798 = arith.addf %796, %797 : vector<8x16xf32>
    %cst_242 = arith.constant dense<0xFF800000> : vector<8xf32>
    %799 = vector.multi_reduction <maximumf>, %798, %cst_242 [1] : vector<8x16xf32> to vector<8xf32>
    %800 = vector.shape_cast %799 : vector<8xf32> to vector<8x1xf32>
    %801 = vector.broadcast %800 : vector<8x1xf32> to vector<8x16xf32>
    %802 = arith.subf %798, %801 : vector<8x16xf32>
    %803 = math.exp %802 : vector<8x16xf32>
    %cst_243 = arith.constant dense<0.000000e+00> : vector<8xf32>
    %804 = vector.multi_reduction <add>, %803, %cst_243 [1] : vector<8x16xf32> to vector<8xf32>
    %805 = vector.shape_cast %804 : vector<8xf32> to vector<8x1xf32>
    %806 = tpu.reciprocal %805 {approx = true} : vector<8x1xf32> -> vector<8x1xf32>
    %807 = vector.broadcast %806 : vector<8x1xf32> to vector<8x16xf32>
    %808 = arith.mulf %803, %807 : vector<8x16xf32>
    %809 = vector.extract_strided_slice %793 {offsets = [0, 0], sizes = [16, 8], strides = [1, 1]} : vector<16x32xf32> to vector<16x8xf32>
    %cst_244 = arith.constant dense<0.000000e+00> : vector<8x8xf32>
    %810 = tpu.matmul %808, %809, %cst_244 {dimension_numbers = #tpu.dot_dimension_numbers<[1], [0], [0], [1], [0, 0, 1, 1], [], []>} : vector<8x16xf32>, vector<16x8xf32>, vector<8x8xf32> -> vector<8x8xf32>
    %811 = vector.extract_strided_slice %791 {offsets = [0, 8], sizes = [8, 8], strides = [1, 1]} : vector<8x32xf32> to vector<8x8xf32>
    %812 = vector.extract_strided_slice %792 {offsets = [0, 8], sizes = [16, 8], strides = [1, 1]} : vector<16x32xf32> to vector<16x8xf32>
    %cst_245 = arith.constant dense<0.000000e+00> : vector<8x16xf32>
    %813 = tpu.matmul %811, %812, %cst_245 {dimension_numbers = #tpu.dot_dimension_numbers<[1], [1], [0], [0], [0, 0, 1, 0], [], []>} : vector<8x8xf32>, vector<16x8xf32>, vector<8x16xf32> -> vector<8x16xf32>
    %814 = vector.broadcast %13 : vector<1x16xf32> to vector<8x16xf32>
    %815 = arith.addf %813, %814 : vector<8x16xf32>
    %cst_246 = arith.constant dense<0xFF800000> : vector<8xf32>
    %816 = vector.multi_reduction <maximumf>, %815, %cst_246 [1] : vector<8x16xf32> to vector<8xf32>
    %817 = vector.shape_cast %816 : vector<8xf32> to vector<8x1xf32>
    %818 = vector.broadcast %817 : vector<8x1xf32> to vector<8x16xf32>
    %819 = arith.subf %815, %818 : vector<8x16xf32>
    %820 = math.exp %819 : vector<8x16xf32>
    %cst_247 = arith.constant dense<0.000000e+00> : vector<8xf32>
    %821 = vector.multi_reduction <add>, %820, %cst_247 [1] : vector<8x16xf32> to vector<8xf32>
    %822 = vector.shape_cast %821 : vector<8xf32> to vector<8x1xf32>
    %823 = tpu.reciprocal %822 {approx = true} : vector<8x1xf32> -> vector<8x1xf32>
    %824 = vector.broadcast %823 : vector<8x1xf32> to vector<8x16xf32>
    %825 = arith.mulf %820, %824 : vector<8x16xf32>
    %826 = vector.extract_strided_slice %793 {offsets = [0, 8], sizes = [16, 8], strides = [1, 1]} : vector<16x32xf32> to vector<16x8xf32>
    %cst_248 = arith.constant dense<0.000000e+00> : vector<8x8xf32>
    %827 = tpu.matmul %825, %826, %cst_248 {dimension_numbers = #tpu.dot_dimension_numbers<[1], [0], [0], [1], [0, 0, 1, 1], [], []>} : vector<8x16xf32>, vector<16x8xf32>, vector<8x8xf32> -> vector<8x8xf32>
    %828 = vector.extract_strided_slice %791 {offsets = [0, 16], sizes = [8, 8], strides = [1, 1]} : vector<8x32xf32> to vector<8x8xf32>
    %829 = vector.extract_strided_slice %792 {offsets = [0, 16], sizes = [16, 8], strides = [1, 1]} : vector<16x32xf32> to vector<16x8xf32>
    %cst_249 = arith.constant dense<0.000000e+00> : vector<8x16xf32>
    %830 = tpu.matmul %828, %829, %cst_249 {dimension_numbers = #tpu.dot_dimension_numbers<[1], [1], [0], [0], [0, 0, 1, 0], [], []>} : vector<8x8xf32>, vector<16x8xf32>, vector<8x16xf32> -> vector<8x16xf32>
    %831 = vector.broadcast %13 : vector<1x16xf32> to vector<8x16xf32>
    %832 = arith.addf %830, %831 : vector<8x16xf32>
    %cst_250 = arith.constant dense<0xFF800000> : vector<8xf32>
    %833 = vector.multi_reduction <maximumf>, %832, %cst_250 [1] : vector<8x16xf32> to vector<8xf32>
    %834 = vector.shape_cast %833 : vector<8xf32> to vector<8x1xf32>
    %835 = vector.broadcast %834 : vector<8x1xf32> to vector<8x16xf32>
    %836 = arith.subf %832, %835 : vector<8x16xf32>
    %837 = math.exp %836 : vector<8x16xf32>
    %cst_251 = arith.constant dense<0.000000e+00> : vector<8xf32>
    %838 = vector.multi_reduction <add>, %837, %cst_251 [1] : vector<8x16xf32> to vector<8xf32>
    %839 = vector.shape_cast %838 : vector<8xf32> to vector<8x1xf32>
    %840 = tpu.reciprocal %839 {approx = true} : vector<8x1xf32> -> vector<8x1xf32>
    %841 = vector.broadcast %840 : vector<8x1xf32> to vector<8x16xf32>
    %842 = arith.mulf %837, %841 : vector<8x16xf32>
    %843 = vector.extract_strided_slice %793 {offsets = [0, 16], sizes = [16, 8], strides = [1, 1]} : vector<16x32xf32> to vector<16x8xf32>
    %cst_252 = arith.constant dense<0.000000e+00> : vector<8x8xf32>
    %844 = tpu.matmul %842, %843, %cst_252 {dimension_numbers = #tpu.dot_dimension_numbers<[1], [0], [0], [1], [0, 0, 1, 1], [], []>} : vector<8x16xf32>, vector<16x8xf32>, vector<8x8xf32> -> vector<8x8xf32>
    %845 = vector.extract_strided_slice %791 {offsets = [0, 24], sizes = [8, 8], strides = [1, 1]} : vector<8x32xf32> to vector<8x8xf32>
    %846 = vector.extract_strided_slice %792 {offsets = [0, 24], sizes = [16, 8], strides = [1, 1]} : vector<16x32xf32> to vector<16x8xf32>
    %cst_253 = arith.constant dense<0.000000e+00> : vector<8x16xf32>
    %847 = tpu.matmul %845, %846, %cst_253 {dimension_numbers = #tpu.dot_dimension_numbers<[1], [1], [0], [0], [0, 0, 1, 0], [], []>} : vector<8x8xf32>, vector<16x8xf32>, vector<8x16xf32> -> vector<8x16xf32>
    %848 = vector.broadcast %13 : vector<1x16xf32> to vector<8x16xf32>
    %849 = arith.addf %847, %848 : vector<8x16xf32>
    %cst_254 = arith.constant dense<0xFF800000> : vector<8xf32>
    %850 = vector.multi_reduction <maximumf>, %849, %cst_254 [1] : vector<8x16xf32> to vector<8xf32>
    %851 = vector.shape_cast %850 : vector<8xf32> to vector<8x1xf32>
    %852 = vector.broadcast %851 : vector<8x1xf32> to vector<8x16xf32>
    %853 = arith.subf %849, %852 : vector<8x16xf32>
    %854 = math.exp %853 : vector<8x16xf32>
    %cst_255 = arith.constant dense<0.000000e+00> : vector<8xf32>
    %855 = vector.multi_reduction <add>, %854, %cst_255 [1] : vector<8x16xf32> to vector<8xf32>
    %856 = vector.shape_cast %855 : vector<8xf32> to vector<8x1xf32>
    %857 = tpu.reciprocal %856 {approx = true} : vector<8x1xf32> -> vector<8x1xf32>
    %858 = vector.broadcast %857 : vector<8x1xf32> to vector<8x16xf32>
    %859 = arith.mulf %854, %858 : vector<8x16xf32>
    %860 = vector.extract_strided_slice %793 {offsets = [0, 24], sizes = [16, 8], strides = [1, 1]} : vector<16x32xf32> to vector<16x8xf32>
    %cst_256 = arith.constant dense<0.000000e+00> : vector<8x8xf32>
    %861 = tpu.matmul %859, %860, %cst_256 {dimension_numbers = #tpu.dot_dimension_numbers<[1], [0], [0], [1], [0, 0, 1, 1], [], []>} : vector<8x16xf32>, vector<16x8xf32>, vector<8x8xf32> -> vector<8x8xf32>
    %862 = tpu.concatenate %810, %827, %844, %861 in 1 : vector<8x8xf32>, vector<8x8xf32>, vector<8x8xf32>, vector<8x8xf32> -> vector<8x32xf32>
    %863 = tpu.concatenate %790, %862 in 0 : vector<8x32xf32>, vector<8x32xf32> -> vector<16x32xf32>
    %c504 = arith.constant 504 : index
    %c0_257 = arith.constant 0 : index
    %864 = vector.load %arg4[%c504, %c0_257] : memref<1408x128xf32, #tpu.memory_space<vmem>>, vector<32x32xf32>
    %cst_258 = arith.constant dense<0.000000e+00> : vector<16x32xf32>
    %865 = tpu.matmul %863, %864, %cst_258 {dimension_numbers = #tpu.dot_dimension_numbers<[1], [0], [0], [1], [0, 0, 1, 1], [], []>} : vector<16x32xf32>, vector<32x32xf32>, vector<16x32xf32> -> vector<16x32xf32>
    %c536 = arith.constant 536 : index
    %c0_259 = arith.constant 0 : index
    %866 = vector.load %arg4[%c536, %c0_259] : memref<1408x128xf32, #tpu.memory_space<vmem>>, vector<1x32xf32>
    %867 = vector.broadcast %866 : vector<1x32xf32> to vector<16x32xf32>
    %868 = arith.addf %865, %867 : vector<16x32xf32>
    %869 = arith.addf %702, %868 : vector<16x32xf32>
    %cst_260 = arith.constant dense<0.000000e+00> : vector<16xf32>
    %870 = vector.multi_reduction <add>, %869, %cst_260 [1] : vector<16x32xf32> to vector<16xf32>
    %871 = vector.shape_cast %870 : vector<16xf32> to vector<16x1xf32>
    %cst_261 = arith.constant 3.200000e+01 : f32
    %872 = vector.broadcast %cst_261 : f32 to vector<16x1xf32>
    %873 = arith.divf %871, %872 : vector<16x1xf32>
    %874 = vector.broadcast %873 : vector<16x1xf32> to vector<16x32xf32>
    %875 = arith.subf %869, %874 : vector<16x32xf32>
    %876 = arith.mulf %875, %875 : vector<16x32xf32>
    %cst_262 = arith.constant dense<0.000000e+00> : vector<16xf32>
    %877 = vector.multi_reduction <add>, %876, %cst_262 [1] : vector<16x32xf32> to vector<16xf32>
    %878 = vector.shape_cast %877 : vector<16xf32> to vector<16x1xf32>
    %cst_263 = arith.constant 3.200000e+01 : f32
    %879 = vector.broadcast %cst_263 : f32 to vector<16x1xf32>
    %880 = arith.divf %878, %879 : vector<16x1xf32>
    %cst_264 = arith.constant 9.99999974E-6 : f32
    %881 = vector.broadcast %cst_264 : f32 to vector<16x1xf32>
    %882 = arith.addf %880, %881 : vector<16x1xf32>
    %883 = math.rsqrt %882 : vector<16x1xf32>
    %884 = vector.broadcast %883 : vector<16x1xf32> to vector<16x32xf32>
    %885 = arith.mulf %875, %884 : vector<16x32xf32>
    %c1184 = arith.constant 1184 : index
    %c0_265 = arith.constant 0 : index
    %886 = vector.load %arg4[%c1184, %c0_265] : memref<1408x128xf32, #tpu.memory_space<vmem>>, vector<1x32xf32>
    %887 = vector.broadcast %886 : vector<1x32xf32> to vector<16x32xf32>
    %888 = arith.mulf %885, %887 : vector<16x32xf32>
    %c1192 = arith.constant 1192 : index
    %c0_266 = arith.constant 0 : index
    %889 = vector.load %arg4[%c1192, %c0_266] : memref<1408x128xf32, #tpu.memory_space<vmem>>, vector<1x32xf32>
    %890 = vector.broadcast %889 : vector<1x32xf32> to vector<16x32xf32>
    %891 = arith.addf %888, %890 : vector<16x32xf32>
    %c848 = arith.constant 848 : index
    %c0_267 = arith.constant 0 : index
    %892 = vector.load %arg4[%c848, %c0_267] : memref<1408x128xf32, #tpu.memory_space<vmem>>, vector<32x64xf32>
    %cst_268 = arith.constant dense<0.000000e+00> : vector<16x64xf32>
    %893 = tpu.matmul %891, %892, %cst_268 {dimension_numbers = #tpu.dot_dimension_numbers<[1], [0], [0], [1], [0, 0, 1, 1], [], []>} : vector<16x32xf32>, vector<32x64xf32>, vector<16x64xf32> -> vector<16x64xf32>
    %c880 = arith.constant 880 : index
    %c0_269 = arith.constant 0 : index
    %894 = vector.load %arg4[%c880, %c0_269] : memref<1408x128xf32, #tpu.memory_space<vmem>>, vector<1x64xf32>
    %895 = vector.broadcast %894 : vector<1x64xf32> to vector<16x64xf32>
    %896 = arith.addf %893, %895 : vector<16x64xf32>
    %cst_270 = arith.constant 0.000000e+00 : f32
    %897 = vector.broadcast %cst_270 : f32 to vector<16x64xf32>
    %898 = arith.maximumf %896, %897 : vector<16x64xf32>
    %c888 = arith.constant 888 : index
    %c0_271 = arith.constant 0 : index
    %899 = vector.load %arg4[%c888, %c0_271] : memref<1408x128xf32, #tpu.memory_space<vmem>>, vector<64x32xf32>
    %cst_272 = arith.constant dense<0.000000e+00> : vector<16x32xf32>
    %900 = tpu.matmul %898, %899, %cst_272 {dimension_numbers = #tpu.dot_dimension_numbers<[1], [0], [0], [1], [0, 0, 1, 1], [], []>} : vector<16x64xf32>, vector<64x32xf32>, vector<16x32xf32> -> vector<16x32xf32>
    %c952 = arith.constant 952 : index
    %c0_273 = arith.constant 0 : index
    %901 = vector.load %arg4[%c952, %c0_273] : memref<1408x128xf32, #tpu.memory_space<vmem>>, vector<1x32xf32>
    %902 = vector.broadcast %901 : vector<1x32xf32> to vector<16x32xf32>
    %903 = arith.addf %900, %902 : vector<16x32xf32>
    %904 = arith.addf %891, %903 : vector<16x32xf32>
    %cst_274 = arith.constant dense<0.000000e+00> : vector<16xf32>
    %905 = vector.multi_reduction <add>, %904, %cst_274 [1] : vector<16x32xf32> to vector<16xf32>
    %906 = vector.shape_cast %905 : vector<16xf32> to vector<16x1xf32>
    %cst_275 = arith.constant 3.200000e+01 : f32
    %907 = vector.broadcast %cst_275 : f32 to vector<16x1xf32>
    %908 = arith.divf %906, %907 : vector<16x1xf32>
    %909 = vector.broadcast %908 : vector<16x1xf32> to vector<16x32xf32>
    %910 = arith.subf %904, %909 : vector<16x32xf32>
    %911 = arith.mulf %910, %910 : vector<16x32xf32>
    %cst_276 = arith.constant dense<0.000000e+00> : vector<16xf32>
    %912 = vector.multi_reduction <add>, %911, %cst_276 [1] : vector<16x32xf32> to vector<16xf32>
    %913 = vector.shape_cast %912 : vector<16xf32> to vector<16x1xf32>
    %cst_277 = arith.constant 3.200000e+01 : f32
    %914 = vector.broadcast %cst_277 : f32 to vector<16x1xf32>
    %915 = arith.divf %913, %914 : vector<16x1xf32>
    %cst_278 = arith.constant 9.99999974E-6 : f32
    %916 = vector.broadcast %cst_278 : f32 to vector<16x1xf32>
    %917 = arith.addf %915, %916 : vector<16x1xf32>
    %918 = math.rsqrt %917 : vector<16x1xf32>
    %919 = vector.broadcast %918 : vector<16x1xf32> to vector<16x32xf32>
    %920 = arith.mulf %910, %919 : vector<16x32xf32>
    %c1200 = arith.constant 1200 : index
    %c0_279 = arith.constant 0 : index
    %921 = vector.load %arg4[%c1200, %c0_279] : memref<1408x128xf32, #tpu.memory_space<vmem>>, vector<1x32xf32>
    %922 = vector.broadcast %921 : vector<1x32xf32> to vector<16x32xf32>
    %923 = arith.mulf %920, %922 : vector<16x32xf32>
    %c1208 = arith.constant 1208 : index
    %c0_280 = arith.constant 0 : index
    %924 = vector.load %arg4[%c1208, %c0_280] : memref<1408x128xf32, #tpu.memory_space<vmem>>, vector<1x32xf32>
    %925 = vector.broadcast %924 : vector<1x32xf32> to vector<16x32xf32>
    %926 = arith.addf %923, %925 : vector<16x32xf32>
    %927 = arith.addf %926, %17 : vector<16x32xf32>
    %c384 = arith.constant 384 : index
    %c0_281 = arith.constant 0 : index
    %928 = vector.load %arg4[%c384, %c0_281] : memref<1408x128xf32, #tpu.memory_space<vmem>>, vector<32x64xf32>
    %cst_282 = arith.constant dense<0.000000e+00> : vector<16x64xf32>
    %929 = tpu.matmul %927, %928, %cst_282 {dimension_numbers = #tpu.dot_dimension_numbers<[1], [0], [0], [1], [0, 0, 1, 1], [], []>} : vector<16x32xf32>, vector<32x64xf32>, vector<16x64xf32> -> vector<16x64xf32>
    %c416 = arith.constant 416 : index
    %c0_283 = arith.constant 0 : index
    %930 = vector.load %arg4[%c416, %c0_283] : memref<1408x128xf32, #tpu.memory_space<vmem>>, vector<1x64xf32>
    %931 = vector.broadcast %930 : vector<1x64xf32> to vector<16x64xf32>
    %932 = arith.addf %929, %931 : vector<16x64xf32>
    %933 = vector.extract_strided_slice %932 {offsets = [0, 0], sizes = [16, 32], strides = [1, 1]} : vector<16x64xf32> to vector<16x32xf32>
    %934 = vector.extract_strided_slice %932 {offsets = [0, 32], sizes = [16, 32], strides = [1, 1]} : vector<16x64xf32> to vector<16x32xf32>
    %c384_284 = arith.constant 384 : index
    %c64_285 = arith.constant 64 : index
    %935 = vector.load %arg4[%c384_284, %c64_285] : memref<1408x128xf32, #tpu.memory_space<vmem>>, vector<32x32xf32>
    %cst_286 = arith.constant dense<0.000000e+00> : vector<16x32xf32>
    %936 = tpu.matmul %926, %935, %cst_286 {dimension_numbers = #tpu.dot_dimension_numbers<[1], [0], [0], [1], [0, 0, 1, 1], [], []>} : vector<16x32xf32>, vector<32x32xf32>, vector<16x32xf32> -> vector<16x32xf32>
    %c416_287 = arith.constant 416 : index
    %c64_288 = arith.constant 64 : index
    %937 = vector.load %arg4[%c416_287, %c64_288] : memref<1408x128xf32, #tpu.memory_space<vmem>>, vector<1x32xf32>
    %938 = vector.broadcast %937 : vector<1x32xf32> to vector<16x32xf32>
    %939 = arith.addf %936, %938 : vector<16x32xf32>
    %940 = vector.extract_strided_slice %933 {offsets = [0, 0], sizes = [8, 32], strides = [1, 1]} : vector<16x32xf32> to vector<8x32xf32>
    %941 = vector.extract_strided_slice %934 {offsets = [0, 0], sizes = [8, 32], strides = [1, 1]} : vector<16x32xf32> to vector<8x32xf32>
    %942 = vector.extract_strided_slice %939 {offsets = [0, 0], sizes = [8, 32], strides = [1, 1]} : vector<16x32xf32> to vector<8x32xf32>
    %943 = vector.extract_strided_slice %940 {offsets = [0, 0], sizes = [8, 8], strides = [1, 1]} : vector<8x32xf32> to vector<8x8xf32>
    %944 = vector.extract_strided_slice %941 {offsets = [0, 0], sizes = [8, 8], strides = [1, 1]} : vector<8x32xf32> to vector<8x8xf32>
    %cst_289 = arith.constant dense<0.000000e+00> : vector<8x8xf32>
    %945 = tpu.matmul %943, %944, %cst_289 {dimension_numbers = #tpu.dot_dimension_numbers<[1], [1], [0], [0], [0, 0, 1, 0], [], []>} : vector<8x8xf32>, vector<8x8xf32>, vector<8x8xf32> -> vector<8x8xf32>
    %946 = vector.broadcast %14 : vector<1x8xf32> to vector<8x8xf32>
    %947 = arith.addf %945, %946 : vector<8x8xf32>
    %cst_290 = arith.constant dense<0xFF800000> : vector<8xf32>
    %948 = vector.multi_reduction <maximumf>, %947, %cst_290 [1] : vector<8x8xf32> to vector<8xf32>
    %949 = vector.shape_cast %948 : vector<8xf32> to vector<8x1xf32>
    %950 = vector.broadcast %949 : vector<8x1xf32> to vector<8x8xf32>
    %951 = arith.subf %947, %950 : vector<8x8xf32>
    %952 = math.exp %951 : vector<8x8xf32>
    %cst_291 = arith.constant dense<0.000000e+00> : vector<8xf32>
    %953 = vector.multi_reduction <add>, %952, %cst_291 [1] : vector<8x8xf32> to vector<8xf32>
    %954 = vector.shape_cast %953 : vector<8xf32> to vector<8x1xf32>
    %955 = tpu.reciprocal %954 {approx = true} : vector<8x1xf32> -> vector<8x1xf32>
    %956 = vector.broadcast %955 : vector<8x1xf32> to vector<8x8xf32>
    %957 = arith.mulf %952, %956 : vector<8x8xf32>
    %958 = vector.extract_strided_slice %942 {offsets = [0, 0], sizes = [8, 8], strides = [1, 1]} : vector<8x32xf32> to vector<8x8xf32>
    %cst_292 = arith.constant dense<0.000000e+00> : vector<8x8xf32>
    %959 = tpu.matmul %957, %958, %cst_292 {dimension_numbers = #tpu.dot_dimension_numbers<[1], [0], [0], [1], [0, 0, 1, 1], [], []>} : vector<8x8xf32>, vector<8x8xf32>, vector<8x8xf32> -> vector<8x8xf32>
    %960 = vector.extract_strided_slice %940 {offsets = [0, 8], sizes = [8, 8], strides = [1, 1]} : vector<8x32xf32> to vector<8x8xf32>
    %961 = vector.extract_strided_slice %941 {offsets = [0, 8], sizes = [8, 8], strides = [1, 1]} : vector<8x32xf32> to vector<8x8xf32>
    %cst_293 = arith.constant dense<0.000000e+00> : vector<8x8xf32>
    %962 = tpu.matmul %960, %961, %cst_293 {dimension_numbers = #tpu.dot_dimension_numbers<[1], [1], [0], [0], [0, 0, 1, 0], [], []>} : vector<8x8xf32>, vector<8x8xf32>, vector<8x8xf32> -> vector<8x8xf32>
    %963 = vector.broadcast %14 : vector<1x8xf32> to vector<8x8xf32>
    %964 = arith.addf %962, %963 : vector<8x8xf32>
    %cst_294 = arith.constant dense<0xFF800000> : vector<8xf32>
    %965 = vector.multi_reduction <maximumf>, %964, %cst_294 [1] : vector<8x8xf32> to vector<8xf32>
    %966 = vector.shape_cast %965 : vector<8xf32> to vector<8x1xf32>
    %967 = vector.broadcast %966 : vector<8x1xf32> to vector<8x8xf32>
    %968 = arith.subf %964, %967 : vector<8x8xf32>
    %969 = math.exp %968 : vector<8x8xf32>
    %cst_295 = arith.constant dense<0.000000e+00> : vector<8xf32>
    %970 = vector.multi_reduction <add>, %969, %cst_295 [1] : vector<8x8xf32> to vector<8xf32>
    %971 = vector.shape_cast %970 : vector<8xf32> to vector<8x1xf32>
    %972 = tpu.reciprocal %971 {approx = true} : vector<8x1xf32> -> vector<8x1xf32>
    %973 = vector.broadcast %972 : vector<8x1xf32> to vector<8x8xf32>
    %974 = arith.mulf %969, %973 : vector<8x8xf32>
    %975 = vector.extract_strided_slice %942 {offsets = [0, 8], sizes = [8, 8], strides = [1, 1]} : vector<8x32xf32> to vector<8x8xf32>
    %cst_296 = arith.constant dense<0.000000e+00> : vector<8x8xf32>
    %976 = tpu.matmul %974, %975, %cst_296 {dimension_numbers = #tpu.dot_dimension_numbers<[1], [0], [0], [1], [0, 0, 1, 1], [], []>} : vector<8x8xf32>, vector<8x8xf32>, vector<8x8xf32> -> vector<8x8xf32>
    %977 = vector.extract_strided_slice %940 {offsets = [0, 16], sizes = [8, 8], strides = [1, 1]} : vector<8x32xf32> to vector<8x8xf32>
    %978 = vector.extract_strided_slice %941 {offsets = [0, 16], sizes = [8, 8], strides = [1, 1]} : vector<8x32xf32> to vector<8x8xf32>
    %cst_297 = arith.constant dense<0.000000e+00> : vector<8x8xf32>
    %979 = tpu.matmul %977, %978, %cst_297 {dimension_numbers = #tpu.dot_dimension_numbers<[1], [1], [0], [0], [0, 0, 1, 0], [], []>} : vector<8x8xf32>, vector<8x8xf32>, vector<8x8xf32> -> vector<8x8xf32>
    %980 = vector.broadcast %14 : vector<1x8xf32> to vector<8x8xf32>
    %981 = arith.addf %979, %980 : vector<8x8xf32>
    %cst_298 = arith.constant dense<0xFF800000> : vector<8xf32>
    %982 = vector.multi_reduction <maximumf>, %981, %cst_298 [1] : vector<8x8xf32> to vector<8xf32>
    %983 = vector.shape_cast %982 : vector<8xf32> to vector<8x1xf32>
    %984 = vector.broadcast %983 : vector<8x1xf32> to vector<8x8xf32>
    %985 = arith.subf %981, %984 : vector<8x8xf32>
    %986 = math.exp %985 : vector<8x8xf32>
    %cst_299 = arith.constant dense<0.000000e+00> : vector<8xf32>
    %987 = vector.multi_reduction <add>, %986, %cst_299 [1] : vector<8x8xf32> to vector<8xf32>
    %988 = vector.shape_cast %987 : vector<8xf32> to vector<8x1xf32>
    %989 = tpu.reciprocal %988 {approx = true} : vector<8x1xf32> -> vector<8x1xf32>
    %990 = vector.broadcast %989 : vector<8x1xf32> to vector<8x8xf32>
    %991 = arith.mulf %986, %990 : vector<8x8xf32>
    %992 = vector.extract_strided_slice %942 {offsets = [0, 16], sizes = [8, 8], strides = [1, 1]} : vector<8x32xf32> to vector<8x8xf32>
    %cst_300 = arith.constant dense<0.000000e+00> : vector<8x8xf32>
    %993 = tpu.matmul %991, %992, %cst_300 {dimension_numbers = #tpu.dot_dimension_numbers<[1], [0], [0], [1], [0, 0, 1, 1], [], []>} : vector<8x8xf32>, vector<8x8xf32>, vector<8x8xf32> -> vector<8x8xf32>
    %994 = vector.extract_strided_slice %940 {offsets = [0, 24], sizes = [8, 8], strides = [1, 1]} : vector<8x32xf32> to vector<8x8xf32>
    %995 = vector.extract_strided_slice %941 {offsets = [0, 24], sizes = [8, 8], strides = [1, 1]} : vector<8x32xf32> to vector<8x8xf32>
    %cst_301 = arith.constant dense<0.000000e+00> : vector<8x8xf32>
    %996 = tpu.matmul %994, %995, %cst_301 {dimension_numbers = #tpu.dot_dimension_numbers<[1], [1], [0], [0], [0, 0, 1, 0], [], []>} : vector<8x8xf32>, vector<8x8xf32>, vector<8x8xf32> -> vector<8x8xf32>
    %997 = vector.broadcast %14 : vector<1x8xf32> to vector<8x8xf32>
    %998 = arith.addf %996, %997 : vector<8x8xf32>
    %cst_302 = arith.constant dense<0xFF800000> : vector<8xf32>
    %999 = vector.multi_reduction <maximumf>, %998, %cst_302 [1] : vector<8x8xf32> to vector<8xf32>
    %1000 = vector.shape_cast %999 : vector<8xf32> to vector<8x1xf32>
    %1001 = vector.broadcast %1000 : vector<8x1xf32> to vector<8x8xf32>
    %1002 = arith.subf %998, %1001 : vector<8x8xf32>
    %1003 = math.exp %1002 : vector<8x8xf32>
    %cst_303 = arith.constant dense<0.000000e+00> : vector<8xf32>
    %1004 = vector.multi_reduction <add>, %1003, %cst_303 [1] : vector<8x8xf32> to vector<8xf32>
    %1005 = vector.shape_cast %1004 : vector<8xf32> to vector<8x1xf32>
    %1006 = tpu.reciprocal %1005 {approx = true} : vector<8x1xf32> -> vector<8x1xf32>
    %1007 = vector.broadcast %1006 : vector<8x1xf32> to vector<8x8xf32>
    %1008 = arith.mulf %1003, %1007 : vector<8x8xf32>
    %1009 = vector.extract_strided_slice %942 {offsets = [0, 24], sizes = [8, 8], strides = [1, 1]} : vector<8x32xf32> to vector<8x8xf32>
    %cst_304 = arith.constant dense<0.000000e+00> : vector<8x8xf32>
    %1010 = tpu.matmul %1008, %1009, %cst_304 {dimension_numbers = #tpu.dot_dimension_numbers<[1], [0], [0], [1], [0, 0, 1, 1], [], []>} : vector<8x8xf32>, vector<8x8xf32>, vector<8x8xf32> -> vector<8x8xf32>
    %1011 = tpu.concatenate %959, %976, %993, %1010 in 1 : vector<8x8xf32>, vector<8x8xf32>, vector<8x8xf32>, vector<8x8xf32> -> vector<8x32xf32>
    %1012 = vector.extract_strided_slice %933 {offsets = [8, 0], sizes = [8, 32], strides = [1, 1]} : vector<16x32xf32> to vector<8x32xf32>
    %1013 = vector.extract_strided_slice %934 {offsets = [8, 0], sizes = [8, 32], strides = [1, 1]} : vector<16x32xf32> to vector<8x32xf32>
    %1014 = vector.extract_strided_slice %939 {offsets = [8, 0], sizes = [8, 32], strides = [1, 1]} : vector<16x32xf32> to vector<8x32xf32>
    %1015 = vector.extract_strided_slice %1012 {offsets = [0, 0], sizes = [8, 8], strides = [1, 1]} : vector<8x32xf32> to vector<8x8xf32>
    %1016 = vector.extract_strided_slice %1013 {offsets = [0, 0], sizes = [8, 8], strides = [1, 1]} : vector<8x32xf32> to vector<8x8xf32>
    %cst_305 = arith.constant dense<0.000000e+00> : vector<8x8xf32>
    %1017 = tpu.matmul %1015, %1016, %cst_305 {dimension_numbers = #tpu.dot_dimension_numbers<[1], [1], [0], [0], [0, 0, 1, 0], [], []>} : vector<8x8xf32>, vector<8x8xf32>, vector<8x8xf32> -> vector<8x8xf32>
    %1018 = vector.broadcast %15 : vector<1x8xf32> to vector<8x8xf32>
    %1019 = arith.addf %1017, %1018 : vector<8x8xf32>
    %cst_306 = arith.constant dense<0xFF800000> : vector<8xf32>
    %1020 = vector.multi_reduction <maximumf>, %1019, %cst_306 [1] : vector<8x8xf32> to vector<8xf32>
    %1021 = vector.shape_cast %1020 : vector<8xf32> to vector<8x1xf32>
    %1022 = vector.broadcast %1021 : vector<8x1xf32> to vector<8x8xf32>
    %1023 = arith.subf %1019, %1022 : vector<8x8xf32>
    %1024 = math.exp %1023 : vector<8x8xf32>
    %cst_307 = arith.constant dense<0.000000e+00> : vector<8xf32>
    %1025 = vector.multi_reduction <add>, %1024, %cst_307 [1] : vector<8x8xf32> to vector<8xf32>
    %1026 = vector.shape_cast %1025 : vector<8xf32> to vector<8x1xf32>
    %1027 = tpu.reciprocal %1026 {approx = true} : vector<8x1xf32> -> vector<8x1xf32>
    %1028 = vector.broadcast %1027 : vector<8x1xf32> to vector<8x8xf32>
    %1029 = arith.mulf %1024, %1028 : vector<8x8xf32>
    %1030 = vector.extract_strided_slice %1014 {offsets = [0, 0], sizes = [8, 8], strides = [1, 1]} : vector<8x32xf32> to vector<8x8xf32>
    %cst_308 = arith.constant dense<0.000000e+00> : vector<8x8xf32>
    %1031 = tpu.matmul %1029, %1030, %cst_308 {dimension_numbers = #tpu.dot_dimension_numbers<[1], [0], [0], [1], [0, 0, 1, 1], [], []>} : vector<8x8xf32>, vector<8x8xf32>, vector<8x8xf32> -> vector<8x8xf32>
    %1032 = vector.extract_strided_slice %1012 {offsets = [0, 8], sizes = [8, 8], strides = [1, 1]} : vector<8x32xf32> to vector<8x8xf32>
    %1033 = vector.extract_strided_slice %1013 {offsets = [0, 8], sizes = [8, 8], strides = [1, 1]} : vector<8x32xf32> to vector<8x8xf32>
    %cst_309 = arith.constant dense<0.000000e+00> : vector<8x8xf32>
    %1034 = tpu.matmul %1032, %1033, %cst_309 {dimension_numbers = #tpu.dot_dimension_numbers<[1], [1], [0], [0], [0, 0, 1, 0], [], []>} : vector<8x8xf32>, vector<8x8xf32>, vector<8x8xf32> -> vector<8x8xf32>
    %1035 = vector.broadcast %15 : vector<1x8xf32> to vector<8x8xf32>
    %1036 = arith.addf %1034, %1035 : vector<8x8xf32>
    %cst_310 = arith.constant dense<0xFF800000> : vector<8xf32>
    %1037 = vector.multi_reduction <maximumf>, %1036, %cst_310 [1] : vector<8x8xf32> to vector<8xf32>
    %1038 = vector.shape_cast %1037 : vector<8xf32> to vector<8x1xf32>
    %1039 = vector.broadcast %1038 : vector<8x1xf32> to vector<8x8xf32>
    %1040 = arith.subf %1036, %1039 : vector<8x8xf32>
    %1041 = math.exp %1040 : vector<8x8xf32>
    %cst_311 = arith.constant dense<0.000000e+00> : vector<8xf32>
    %1042 = vector.multi_reduction <add>, %1041, %cst_311 [1] : vector<8x8xf32> to vector<8xf32>
    %1043 = vector.shape_cast %1042 : vector<8xf32> to vector<8x1xf32>
    %1044 = tpu.reciprocal %1043 {approx = true} : vector<8x1xf32> -> vector<8x1xf32>
    %1045 = vector.broadcast %1044 : vector<8x1xf32> to vector<8x8xf32>
    %1046 = arith.mulf %1041, %1045 : vector<8x8xf32>
    %1047 = vector.extract_strided_slice %1014 {offsets = [0, 8], sizes = [8, 8], strides = [1, 1]} : vector<8x32xf32> to vector<8x8xf32>
    %cst_312 = arith.constant dense<0.000000e+00> : vector<8x8xf32>
    %1048 = tpu.matmul %1046, %1047, %cst_312 {dimension_numbers = #tpu.dot_dimension_numbers<[1], [0], [0], [1], [0, 0, 1, 1], [], []>} : vector<8x8xf32>, vector<8x8xf32>, vector<8x8xf32> -> vector<8x8xf32>
    %1049 = vector.extract_strided_slice %1012 {offsets = [0, 16], sizes = [8, 8], strides = [1, 1]} : vector<8x32xf32> to vector<8x8xf32>
    %1050 = vector.extract_strided_slice %1013 {offsets = [0, 16], sizes = [8, 8], strides = [1, 1]} : vector<8x32xf32> to vector<8x8xf32>
    %cst_313 = arith.constant dense<0.000000e+00> : vector<8x8xf32>
    %1051 = tpu.matmul %1049, %1050, %cst_313 {dimension_numbers = #tpu.dot_dimension_numbers<[1], [1], [0], [0], [0, 0, 1, 0], [], []>} : vector<8x8xf32>, vector<8x8xf32>, vector<8x8xf32> -> vector<8x8xf32>
    %1052 = vector.broadcast %15 : vector<1x8xf32> to vector<8x8xf32>
    %1053 = arith.addf %1051, %1052 : vector<8x8xf32>
    %cst_314 = arith.constant dense<0xFF800000> : vector<8xf32>
    %1054 = vector.multi_reduction <maximumf>, %1053, %cst_314 [1] : vector<8x8xf32> to vector<8xf32>
    %1055 = vector.shape_cast %1054 : vector<8xf32> to vector<8x1xf32>
    %1056 = vector.broadcast %1055 : vector<8x1xf32> to vector<8x8xf32>
    %1057 = arith.subf %1053, %1056 : vector<8x8xf32>
    %1058 = math.exp %1057 : vector<8x8xf32>
    %cst_315 = arith.constant dense<0.000000e+00> : vector<8xf32>
    %1059 = vector.multi_reduction <add>, %1058, %cst_315 [1] : vector<8x8xf32> to vector<8xf32>
    %1060 = vector.shape_cast %1059 : vector<8xf32> to vector<8x1xf32>
    %1061 = tpu.reciprocal %1060 {approx = true} : vector<8x1xf32> -> vector<8x1xf32>
    %1062 = vector.broadcast %1061 : vector<8x1xf32> to vector<8x8xf32>
    %1063 = arith.mulf %1058, %1062 : vector<8x8xf32>
    %1064 = vector.extract_strided_slice %1014 {offsets = [0, 16], sizes = [8, 8], strides = [1, 1]} : vector<8x32xf32> to vector<8x8xf32>
    %cst_316 = arith.constant dense<0.000000e+00> : vector<8x8xf32>
    %1065 = tpu.matmul %1063, %1064, %cst_316 {dimension_numbers = #tpu.dot_dimension_numbers<[1], [0], [0], [1], [0, 0, 1, 1], [], []>} : vector<8x8xf32>, vector<8x8xf32>, vector<8x8xf32> -> vector<8x8xf32>
    %1066 = vector.extract_strided_slice %1012 {offsets = [0, 24], sizes = [8, 8], strides = [1, 1]} : vector<8x32xf32> to vector<8x8xf32>
    %1067 = vector.extract_strided_slice %1013 {offsets = [0, 24], sizes = [8, 8], strides = [1, 1]} : vector<8x32xf32> to vector<8x8xf32>
    %cst_317 = arith.constant dense<0.000000e+00> : vector<8x8xf32>
    %1068 = tpu.matmul %1066, %1067, %cst_317 {dimension_numbers = #tpu.dot_dimension_numbers<[1], [1], [0], [0], [0, 0, 1, 0], [], []>} : vector<8x8xf32>, vector<8x8xf32>, vector<8x8xf32> -> vector<8x8xf32>
    %1069 = vector.broadcast %15 : vector<1x8xf32> to vector<8x8xf32>
    %1070 = arith.addf %1068, %1069 : vector<8x8xf32>
    %cst_318 = arith.constant dense<0xFF800000> : vector<8xf32>
    %1071 = vector.multi_reduction <maximumf>, %1070, %cst_318 [1] : vector<8x8xf32> to vector<8xf32>
    %1072 = vector.shape_cast %1071 : vector<8xf32> to vector<8x1xf32>
    %1073 = vector.broadcast %1072 : vector<8x1xf32> to vector<8x8xf32>
    %1074 = arith.subf %1070, %1073 : vector<8x8xf32>
    %1075 = math.exp %1074 : vector<8x8xf32>
    %cst_319 = arith.constant dense<0.000000e+00> : vector<8xf32>
    %1076 = vector.multi_reduction <add>, %1075, %cst_319 [1] : vector<8x8xf32> to vector<8xf32>
    %1077 = vector.shape_cast %1076 : vector<8xf32> to vector<8x1xf32>
    %1078 = tpu.reciprocal %1077 {approx = true} : vector<8x1xf32> -> vector<8x1xf32>
    %1079 = vector.broadcast %1078 : vector<8x1xf32> to vector<8x8xf32>
    %1080 = arith.mulf %1075, %1079 : vector<8x8xf32>
    %1081 = vector.extract_strided_slice %1014 {offsets = [0, 24], sizes = [8, 8], strides = [1, 1]} : vector<8x32xf32> to vector<8x8xf32>
    %cst_320 = arith.constant dense<0.000000e+00> : vector<8x8xf32>
    %1082 = tpu.matmul %1080, %1081, %cst_320 {dimension_numbers = #tpu.dot_dimension_numbers<[1], [0], [0], [1], [0, 0, 1, 1], [], []>} : vector<8x8xf32>, vector<8x8xf32>, vector<8x8xf32> -> vector<8x8xf32>
    %1083 = tpu.concatenate %1031, %1048, %1065, %1082 in 1 : vector<8x8xf32>, vector<8x8xf32>, vector<8x8xf32>, vector<8x8xf32> -> vector<8x32xf32>
    %1084 = tpu.concatenate %1011, %1083 in 0 : vector<8x32xf32>, vector<8x32xf32> -> vector<16x32xf32>
    %c424 = arith.constant 424 : index
    %c0_321 = arith.constant 0 : index
    %1085 = vector.load %arg4[%c424, %c0_321] : memref<1408x128xf32, #tpu.memory_space<vmem>>, vector<32x32xf32>
    %cst_322 = arith.constant dense<0.000000e+00> : vector<16x32xf32>
    %1086 = tpu.matmul %1084, %1085, %cst_322 {dimension_numbers = #tpu.dot_dimension_numbers<[1], [0], [0], [1], [0, 0, 1, 1], [], []>} : vector<16x32xf32>, vector<32x32xf32>, vector<16x32xf32> -> vector<16x32xf32>
    %c456 = arith.constant 456 : index
    %c0_323 = arith.constant 0 : index
    %1087 = vector.load %arg4[%c456, %c0_323] : memref<1408x128xf32, #tpu.memory_space<vmem>>, vector<1x32xf32>
    %1088 = vector.broadcast %1087 : vector<1x32xf32> to vector<16x32xf32>
    %1089 = arith.addf %1086, %1088 : vector<16x32xf32>
    %1090 = arith.addf %926, %1089 : vector<16x32xf32>
    %cst_324 = arith.constant dense<0.000000e+00> : vector<16xf32>
    %1091 = vector.multi_reduction <add>, %1090, %cst_324 [1] : vector<16x32xf32> to vector<16xf32>
    %1092 = vector.shape_cast %1091 : vector<16xf32> to vector<16x1xf32>
    %cst_325 = arith.constant 3.200000e+01 : f32
    %1093 = vector.broadcast %cst_325 : f32 to vector<16x1xf32>
    %1094 = arith.divf %1092, %1093 : vector<16x1xf32>
    %1095 = vector.broadcast %1094 : vector<16x1xf32> to vector<16x32xf32>
    %1096 = arith.subf %1090, %1095 : vector<16x32xf32>
    %1097 = arith.mulf %1096, %1096 : vector<16x32xf32>
    %cst_326 = arith.constant dense<0.000000e+00> : vector<16xf32>
    %1098 = vector.multi_reduction <add>, %1097, %cst_326 [1] : vector<16x32xf32> to vector<16xf32>
    %1099 = vector.shape_cast %1098 : vector<16xf32> to vector<16x1xf32>
    %cst_327 = arith.constant 3.200000e+01 : f32
    %1100 = vector.broadcast %cst_327 : f32 to vector<16x1xf32>
    %1101 = arith.divf %1099, %1100 : vector<16x1xf32>
    %cst_328 = arith.constant 9.99999974E-6 : f32
    %1102 = vector.broadcast %cst_328 : f32 to vector<16x1xf32>
    %1103 = arith.addf %1101, %1102 : vector<16x1xf32>
    %1104 = math.rsqrt %1103 : vector<16x1xf32>
    %1105 = vector.broadcast %1104 : vector<16x1xf32> to vector<16x32xf32>
    %1106 = arith.mulf %1096, %1105 : vector<16x32xf32>
    %c1216 = arith.constant 1216 : index
    %c0_329 = arith.constant 0 : index
    %1107 = vector.load %arg4[%c1216, %c0_329] : memref<1408x128xf32, #tpu.memory_space<vmem>>, vector<1x32xf32>
    %1108 = vector.broadcast %1107 : vector<1x32xf32> to vector<16x32xf32>
    %1109 = arith.mulf %1106, %1108 : vector<16x32xf32>
    %c1224 = arith.constant 1224 : index
    %c0_330 = arith.constant 0 : index
    %1110 = vector.load %arg4[%c1224, %c0_330] : memref<1408x128xf32, #tpu.memory_space<vmem>>, vector<1x32xf32>
    %1111 = vector.broadcast %1110 : vector<1x32xf32> to vector<16x32xf32>
    %1112 = arith.addf %1109, %1111 : vector<16x32xf32>
    %1113 = arith.addf %1112, %17 : vector<16x32xf32>
    %c544 = arith.constant 544 : index
    %c0_331 = arith.constant 0 : index
    %1114 = vector.load %arg4[%c544, %c0_331] : memref<1408x128xf32, #tpu.memory_space<vmem>>, vector<32x32xf32>
    %cst_332 = arith.constant dense<0.000000e+00> : vector<16x32xf32>
    %1115 = tpu.matmul %1113, %1114, %cst_332 {dimension_numbers = #tpu.dot_dimension_numbers<[1], [0], [0], [1], [0, 0, 1, 1], [], []>} : vector<16x32xf32>, vector<32x32xf32>, vector<16x32xf32> -> vector<16x32xf32>
    %c576 = arith.constant 576 : index
    %c0_333 = arith.constant 0 : index
    %1116 = vector.load %arg4[%c576, %c0_333] : memref<1408x128xf32, #tpu.memory_space<vmem>>, vector<1x32xf32>
    %1117 = vector.broadcast %1116 : vector<1x32xf32> to vector<16x32xf32>
    %1118 = arith.addf %1115, %1117 : vector<16x32xf32>
    %c544_334 = arith.constant 544 : index
    %c32_335 = arith.constant 32 : index
    %1119 = vector.load %arg4[%c544_334, %c32_335] : memref<1408x128xf32, #tpu.memory_space<vmem>>, vector<32x32xf32>
    %cst_336 = arith.constant dense<0.000000e+00> : vector<32x32xf32>
    %1120 = tpu.matmul %516, %1119, %cst_336 {dimension_numbers = #tpu.dot_dimension_numbers<[1], [0], [0], [1], [0, 0, 1, 1], [], []>} : vector<32x32xf32>, vector<32x32xf32>, vector<32x32xf32> -> vector<32x32xf32>
    %c576_337 = arith.constant 576 : index
    %c32_338 = arith.constant 32 : index
    %1121 = vector.load %arg4[%c576_337, %c32_338] : memref<1408x128xf32, #tpu.memory_space<vmem>>, vector<1x32xf32>
    %1122 = vector.broadcast %1121 : vector<1x32xf32> to vector<32x32xf32>
    %1123 = arith.addf %1120, %1122 : vector<32x32xf32>
    %c544_339 = arith.constant 544 : index
    %c64_340 = arith.constant 64 : index
    %1124 = vector.load %arg4[%c544_339, %c64_340] : memref<1408x128xf32, #tpu.memory_space<vmem>>, vector<32x32xf32>
    %cst_341 = arith.constant dense<0.000000e+00> : vector<32x32xf32>
    %1125 = tpu.matmul %515, %1124, %cst_341 {dimension_numbers = #tpu.dot_dimension_numbers<[1], [0], [0], [1], [0, 0, 1, 1], [], []>} : vector<32x32xf32>, vector<32x32xf32>, vector<32x32xf32> -> vector<32x32xf32>
    %c576_342 = arith.constant 576 : index
    %c64_343 = arith.constant 64 : index
    %1126 = vector.load %arg4[%c576_342, %c64_343] : memref<1408x128xf32, #tpu.memory_space<vmem>>, vector<1x32xf32>
    %1127 = vector.broadcast %1126 : vector<1x32xf32> to vector<32x32xf32>
    %1128 = arith.addf %1125, %1127 : vector<32x32xf32>
    %1129 = vector.extract_strided_slice %1118 {offsets = [0, 0], sizes = [8, 32], strides = [1, 1]} : vector<16x32xf32> to vector<8x32xf32>
    %1130 = vector.extract_strided_slice %1123 {offsets = [0, 0], sizes = [16, 32], strides = [1, 1]} : vector<32x32xf32> to vector<16x32xf32>
    %1131 = vector.extract_strided_slice %1128 {offsets = [0, 0], sizes = [16, 32], strides = [1, 1]} : vector<32x32xf32> to vector<16x32xf32>
    %1132 = vector.extract_strided_slice %1129 {offsets = [0, 0], sizes = [8, 8], strides = [1, 1]} : vector<8x32xf32> to vector<8x8xf32>
    %1133 = vector.extract_strided_slice %1130 {offsets = [0, 0], sizes = [16, 8], strides = [1, 1]} : vector<16x32xf32> to vector<16x8xf32>
    %cst_344 = arith.constant dense<0.000000e+00> : vector<8x16xf32>
    %1134 = tpu.matmul %1132, %1133, %cst_344 {dimension_numbers = #tpu.dot_dimension_numbers<[1], [1], [0], [0], [0, 0, 1, 0], [], []>} : vector<8x8xf32>, vector<16x8xf32>, vector<8x16xf32> -> vector<8x16xf32>
    %1135 = vector.broadcast %12 : vector<1x16xf32> to vector<8x16xf32>
    %1136 = arith.addf %1134, %1135 : vector<8x16xf32>
    %cst_345 = arith.constant dense<0xFF800000> : vector<8xf32>
    %1137 = vector.multi_reduction <maximumf>, %1136, %cst_345 [1] : vector<8x16xf32> to vector<8xf32>
    %1138 = vector.shape_cast %1137 : vector<8xf32> to vector<8x1xf32>
    %1139 = vector.broadcast %1138 : vector<8x1xf32> to vector<8x16xf32>
    %1140 = arith.subf %1136, %1139 : vector<8x16xf32>
    %1141 = math.exp %1140 : vector<8x16xf32>
    %cst_346 = arith.constant dense<0.000000e+00> : vector<8xf32>
    %1142 = vector.multi_reduction <add>, %1141, %cst_346 [1] : vector<8x16xf32> to vector<8xf32>
    %1143 = vector.shape_cast %1142 : vector<8xf32> to vector<8x1xf32>
    %1144 = tpu.reciprocal %1143 {approx = true} : vector<8x1xf32> -> vector<8x1xf32>
    %1145 = vector.broadcast %1144 : vector<8x1xf32> to vector<8x16xf32>
    %1146 = arith.mulf %1141, %1145 : vector<8x16xf32>
    %1147 = vector.extract_strided_slice %1131 {offsets = [0, 0], sizes = [16, 8], strides = [1, 1]} : vector<16x32xf32> to vector<16x8xf32>
    %cst_347 = arith.constant dense<0.000000e+00> : vector<8x8xf32>
    %1148 = tpu.matmul %1146, %1147, %cst_347 {dimension_numbers = #tpu.dot_dimension_numbers<[1], [0], [0], [1], [0, 0, 1, 1], [], []>} : vector<8x16xf32>, vector<16x8xf32>, vector<8x8xf32> -> vector<8x8xf32>
    %1149 = vector.extract_strided_slice %1129 {offsets = [0, 8], sizes = [8, 8], strides = [1, 1]} : vector<8x32xf32> to vector<8x8xf32>
    %1150 = vector.extract_strided_slice %1130 {offsets = [0, 8], sizes = [16, 8], strides = [1, 1]} : vector<16x32xf32> to vector<16x8xf32>
    %cst_348 = arith.constant dense<0.000000e+00> : vector<8x16xf32>
    %1151 = tpu.matmul %1149, %1150, %cst_348 {dimension_numbers = #tpu.dot_dimension_numbers<[1], [1], [0], [0], [0, 0, 1, 0], [], []>} : vector<8x8xf32>, vector<16x8xf32>, vector<8x16xf32> -> vector<8x16xf32>
    %1152 = vector.broadcast %12 : vector<1x16xf32> to vector<8x16xf32>
    %1153 = arith.addf %1151, %1152 : vector<8x16xf32>
    %cst_349 = arith.constant dense<0xFF800000> : vector<8xf32>
    %1154 = vector.multi_reduction <maximumf>, %1153, %cst_349 [1] : vector<8x16xf32> to vector<8xf32>
    %1155 = vector.shape_cast %1154 : vector<8xf32> to vector<8x1xf32>
    %1156 = vector.broadcast %1155 : vector<8x1xf32> to vector<8x16xf32>
    %1157 = arith.subf %1153, %1156 : vector<8x16xf32>
    %1158 = math.exp %1157 : vector<8x16xf32>
    %cst_350 = arith.constant dense<0.000000e+00> : vector<8xf32>
    %1159 = vector.multi_reduction <add>, %1158, %cst_350 [1] : vector<8x16xf32> to vector<8xf32>
    %1160 = vector.shape_cast %1159 : vector<8xf32> to vector<8x1xf32>
    %1161 = tpu.reciprocal %1160 {approx = true} : vector<8x1xf32> -> vector<8x1xf32>
    %1162 = vector.broadcast %1161 : vector<8x1xf32> to vector<8x16xf32>
    %1163 = arith.mulf %1158, %1162 : vector<8x16xf32>
    %1164 = vector.extract_strided_slice %1131 {offsets = [0, 8], sizes = [16, 8], strides = [1, 1]} : vector<16x32xf32> to vector<16x8xf32>
    %cst_351 = arith.constant dense<0.000000e+00> : vector<8x8xf32>
    %1165 = tpu.matmul %1163, %1164, %cst_351 {dimension_numbers = #tpu.dot_dimension_numbers<[1], [0], [0], [1], [0, 0, 1, 1], [], []>} : vector<8x16xf32>, vector<16x8xf32>, vector<8x8xf32> -> vector<8x8xf32>
    %1166 = vector.extract_strided_slice %1129 {offsets = [0, 16], sizes = [8, 8], strides = [1, 1]} : vector<8x32xf32> to vector<8x8xf32>
    %1167 = vector.extract_strided_slice %1130 {offsets = [0, 16], sizes = [16, 8], strides = [1, 1]} : vector<16x32xf32> to vector<16x8xf32>
    %cst_352 = arith.constant dense<0.000000e+00> : vector<8x16xf32>
    %1168 = tpu.matmul %1166, %1167, %cst_352 {dimension_numbers = #tpu.dot_dimension_numbers<[1], [1], [0], [0], [0, 0, 1, 0], [], []>} : vector<8x8xf32>, vector<16x8xf32>, vector<8x16xf32> -> vector<8x16xf32>
    %1169 = vector.broadcast %12 : vector<1x16xf32> to vector<8x16xf32>
    %1170 = arith.addf %1168, %1169 : vector<8x16xf32>
    %cst_353 = arith.constant dense<0xFF800000> : vector<8xf32>
    %1171 = vector.multi_reduction <maximumf>, %1170, %cst_353 [1] : vector<8x16xf32> to vector<8xf32>
    %1172 = vector.shape_cast %1171 : vector<8xf32> to vector<8x1xf32>
    %1173 = vector.broadcast %1172 : vector<8x1xf32> to vector<8x16xf32>
    %1174 = arith.subf %1170, %1173 : vector<8x16xf32>
    %1175 = math.exp %1174 : vector<8x16xf32>
    %cst_354 = arith.constant dense<0.000000e+00> : vector<8xf32>
    %1176 = vector.multi_reduction <add>, %1175, %cst_354 [1] : vector<8x16xf32> to vector<8xf32>
    %1177 = vector.shape_cast %1176 : vector<8xf32> to vector<8x1xf32>
    %1178 = tpu.reciprocal %1177 {approx = true} : vector<8x1xf32> -> vector<8x1xf32>
    %1179 = vector.broadcast %1178 : vector<8x1xf32> to vector<8x16xf32>
    %1180 = arith.mulf %1175, %1179 : vector<8x16xf32>
    %1181 = vector.extract_strided_slice %1131 {offsets = [0, 16], sizes = [16, 8], strides = [1, 1]} : vector<16x32xf32> to vector<16x8xf32>
    %cst_355 = arith.constant dense<0.000000e+00> : vector<8x8xf32>
    %1182 = tpu.matmul %1180, %1181, %cst_355 {dimension_numbers = #tpu.dot_dimension_numbers<[1], [0], [0], [1], [0, 0, 1, 1], [], []>} : vector<8x16xf32>, vector<16x8xf32>, vector<8x8xf32> -> vector<8x8xf32>
    %1183 = vector.extract_strided_slice %1129 {offsets = [0, 24], sizes = [8, 8], strides = [1, 1]} : vector<8x32xf32> to vector<8x8xf32>
    %1184 = vector.extract_strided_slice %1130 {offsets = [0, 24], sizes = [16, 8], strides = [1, 1]} : vector<16x32xf32> to vector<16x8xf32>
    %cst_356 = arith.constant dense<0.000000e+00> : vector<8x16xf32>
    %1185 = tpu.matmul %1183, %1184, %cst_356 {dimension_numbers = #tpu.dot_dimension_numbers<[1], [1], [0], [0], [0, 0, 1, 0], [], []>} : vector<8x8xf32>, vector<16x8xf32>, vector<8x16xf32> -> vector<8x16xf32>
    %1186 = vector.broadcast %12 : vector<1x16xf32> to vector<8x16xf32>
    %1187 = arith.addf %1185, %1186 : vector<8x16xf32>
    %cst_357 = arith.constant dense<0xFF800000> : vector<8xf32>
    %1188 = vector.multi_reduction <maximumf>, %1187, %cst_357 [1] : vector<8x16xf32> to vector<8xf32>
    %1189 = vector.shape_cast %1188 : vector<8xf32> to vector<8x1xf32>
    %1190 = vector.broadcast %1189 : vector<8x1xf32> to vector<8x16xf32>
    %1191 = arith.subf %1187, %1190 : vector<8x16xf32>
    %1192 = math.exp %1191 : vector<8x16xf32>
    %cst_358 = arith.constant dense<0.000000e+00> : vector<8xf32>
    %1193 = vector.multi_reduction <add>, %1192, %cst_358 [1] : vector<8x16xf32> to vector<8xf32>
    %1194 = vector.shape_cast %1193 : vector<8xf32> to vector<8x1xf32>
    %1195 = tpu.reciprocal %1194 {approx = true} : vector<8x1xf32> -> vector<8x1xf32>
    %1196 = vector.broadcast %1195 : vector<8x1xf32> to vector<8x16xf32>
    %1197 = arith.mulf %1192, %1196 : vector<8x16xf32>
    %1198 = vector.extract_strided_slice %1131 {offsets = [0, 24], sizes = [16, 8], strides = [1, 1]} : vector<16x32xf32> to vector<16x8xf32>
    %cst_359 = arith.constant dense<0.000000e+00> : vector<8x8xf32>
    %1199 = tpu.matmul %1197, %1198, %cst_359 {dimension_numbers = #tpu.dot_dimension_numbers<[1], [0], [0], [1], [0, 0, 1, 1], [], []>} : vector<8x16xf32>, vector<16x8xf32>, vector<8x8xf32> -> vector<8x8xf32>
    %1200 = tpu.concatenate %1148, %1165, %1182, %1199 in 1 : vector<8x8xf32>, vector<8x8xf32>, vector<8x8xf32>, vector<8x8xf32> -> vector<8x32xf32>
    %1201 = vector.extract_strided_slice %1118 {offsets = [8, 0], sizes = [8, 32], strides = [1, 1]} : vector<16x32xf32> to vector<8x32xf32>
    %1202 = vector.extract_strided_slice %1123 {offsets = [16, 0], sizes = [16, 32], strides = [1, 1]} : vector<32x32xf32> to vector<16x32xf32>
    %1203 = vector.extract_strided_slice %1128 {offsets = [16, 0], sizes = [16, 32], strides = [1, 1]} : vector<32x32xf32> to vector<16x32xf32>
    %1204 = vector.extract_strided_slice %1201 {offsets = [0, 0], sizes = [8, 8], strides = [1, 1]} : vector<8x32xf32> to vector<8x8xf32>
    %1205 = vector.extract_strided_slice %1202 {offsets = [0, 0], sizes = [16, 8], strides = [1, 1]} : vector<16x32xf32> to vector<16x8xf32>
    %cst_360 = arith.constant dense<0.000000e+00> : vector<8x16xf32>
    %1206 = tpu.matmul %1204, %1205, %cst_360 {dimension_numbers = #tpu.dot_dimension_numbers<[1], [1], [0], [0], [0, 0, 1, 0], [], []>} : vector<8x8xf32>, vector<16x8xf32>, vector<8x16xf32> -> vector<8x16xf32>
    %1207 = vector.broadcast %13 : vector<1x16xf32> to vector<8x16xf32>
    %1208 = arith.addf %1206, %1207 : vector<8x16xf32>
    %cst_361 = arith.constant dense<0xFF800000> : vector<8xf32>
    %1209 = vector.multi_reduction <maximumf>, %1208, %cst_361 [1] : vector<8x16xf32> to vector<8xf32>
    %1210 = vector.shape_cast %1209 : vector<8xf32> to vector<8x1xf32>
    %1211 = vector.broadcast %1210 : vector<8x1xf32> to vector<8x16xf32>
    %1212 = arith.subf %1208, %1211 : vector<8x16xf32>
    %1213 = math.exp %1212 : vector<8x16xf32>
    %cst_362 = arith.constant dense<0.000000e+00> : vector<8xf32>
    %1214 = vector.multi_reduction <add>, %1213, %cst_362 [1] : vector<8x16xf32> to vector<8xf32>
    %1215 = vector.shape_cast %1214 : vector<8xf32> to vector<8x1xf32>
    %1216 = tpu.reciprocal %1215 {approx = true} : vector<8x1xf32> -> vector<8x1xf32>
    %1217 = vector.broadcast %1216 : vector<8x1xf32> to vector<8x16xf32>
    %1218 = arith.mulf %1213, %1217 : vector<8x16xf32>
    %1219 = vector.extract_strided_slice %1203 {offsets = [0, 0], sizes = [16, 8], strides = [1, 1]} : vector<16x32xf32> to vector<16x8xf32>
    %cst_363 = arith.constant dense<0.000000e+00> : vector<8x8xf32>
    %1220 = tpu.matmul %1218, %1219, %cst_363 {dimension_numbers = #tpu.dot_dimension_numbers<[1], [0], [0], [1], [0, 0, 1, 1], [], []>} : vector<8x16xf32>, vector<16x8xf32>, vector<8x8xf32> -> vector<8x8xf32>
    %1221 = vector.extract_strided_slice %1201 {offsets = [0, 8], sizes = [8, 8], strides = [1, 1]} : vector<8x32xf32> to vector<8x8xf32>
    %1222 = vector.extract_strided_slice %1202 {offsets = [0, 8], sizes = [16, 8], strides = [1, 1]} : vector<16x32xf32> to vector<16x8xf32>
    %cst_364 = arith.constant dense<0.000000e+00> : vector<8x16xf32>
    %1223 = tpu.matmul %1221, %1222, %cst_364 {dimension_numbers = #tpu.dot_dimension_numbers<[1], [1], [0], [0], [0, 0, 1, 0], [], []>} : vector<8x8xf32>, vector<16x8xf32>, vector<8x16xf32> -> vector<8x16xf32>
    %1224 = vector.broadcast %13 : vector<1x16xf32> to vector<8x16xf32>
    %1225 = arith.addf %1223, %1224 : vector<8x16xf32>
    %cst_365 = arith.constant dense<0xFF800000> : vector<8xf32>
    %1226 = vector.multi_reduction <maximumf>, %1225, %cst_365 [1] : vector<8x16xf32> to vector<8xf32>
    %1227 = vector.shape_cast %1226 : vector<8xf32> to vector<8x1xf32>
    %1228 = vector.broadcast %1227 : vector<8x1xf32> to vector<8x16xf32>
    %1229 = arith.subf %1225, %1228 : vector<8x16xf32>
    %1230 = math.exp %1229 : vector<8x16xf32>
    %cst_366 = arith.constant dense<0.000000e+00> : vector<8xf32>
    %1231 = vector.multi_reduction <add>, %1230, %cst_366 [1] : vector<8x16xf32> to vector<8xf32>
    %1232 = vector.shape_cast %1231 : vector<8xf32> to vector<8x1xf32>
    %1233 = tpu.reciprocal %1232 {approx = true} : vector<8x1xf32> -> vector<8x1xf32>
    %1234 = vector.broadcast %1233 : vector<8x1xf32> to vector<8x16xf32>
    %1235 = arith.mulf %1230, %1234 : vector<8x16xf32>
    %1236 = vector.extract_strided_slice %1203 {offsets = [0, 8], sizes = [16, 8], strides = [1, 1]} : vector<16x32xf32> to vector<16x8xf32>
    %cst_367 = arith.constant dense<0.000000e+00> : vector<8x8xf32>
    %1237 = tpu.matmul %1235, %1236, %cst_367 {dimension_numbers = #tpu.dot_dimension_numbers<[1], [0], [0], [1], [0, 0, 1, 1], [], []>} : vector<8x16xf32>, vector<16x8xf32>, vector<8x8xf32> -> vector<8x8xf32>
    %1238 = vector.extract_strided_slice %1201 {offsets = [0, 16], sizes = [8, 8], strides = [1, 1]} : vector<8x32xf32> to vector<8x8xf32>
    %1239 = vector.extract_strided_slice %1202 {offsets = [0, 16], sizes = [16, 8], strides = [1, 1]} : vector<16x32xf32> to vector<16x8xf32>
    %cst_368 = arith.constant dense<0.000000e+00> : vector<8x16xf32>
    %1240 = tpu.matmul %1238, %1239, %cst_368 {dimension_numbers = #tpu.dot_dimension_numbers<[1], [1], [0], [0], [0, 0, 1, 0], [], []>} : vector<8x8xf32>, vector<16x8xf32>, vector<8x16xf32> -> vector<8x16xf32>
    %1241 = vector.broadcast %13 : vector<1x16xf32> to vector<8x16xf32>
    %1242 = arith.addf %1240, %1241 : vector<8x16xf32>
    %cst_369 = arith.constant dense<0xFF800000> : vector<8xf32>
    %1243 = vector.multi_reduction <maximumf>, %1242, %cst_369 [1] : vector<8x16xf32> to vector<8xf32>
    %1244 = vector.shape_cast %1243 : vector<8xf32> to vector<8x1xf32>
    %1245 = vector.broadcast %1244 : vector<8x1xf32> to vector<8x16xf32>
    %1246 = arith.subf %1242, %1245 : vector<8x16xf32>
    %1247 = math.exp %1246 : vector<8x16xf32>
    %cst_370 = arith.constant dense<0.000000e+00> : vector<8xf32>
    %1248 = vector.multi_reduction <add>, %1247, %cst_370 [1] : vector<8x16xf32> to vector<8xf32>
    %1249 = vector.shape_cast %1248 : vector<8xf32> to vector<8x1xf32>
    %1250 = tpu.reciprocal %1249 {approx = true} : vector<8x1xf32> -> vector<8x1xf32>
    %1251 = vector.broadcast %1250 : vector<8x1xf32> to vector<8x16xf32>
    %1252 = arith.mulf %1247, %1251 : vector<8x16xf32>
    %1253 = vector.extract_strided_slice %1203 {offsets = [0, 16], sizes = [16, 8], strides = [1, 1]} : vector<16x32xf32> to vector<16x8xf32>
    %cst_371 = arith.constant dense<0.000000e+00> : vector<8x8xf32>
    %1254 = tpu.matmul %1252, %1253, %cst_371 {dimension_numbers = #tpu.dot_dimension_numbers<[1], [0], [0], [1], [0, 0, 1, 1], [], []>} : vector<8x16xf32>, vector<16x8xf32>, vector<8x8xf32> -> vector<8x8xf32>
    %1255 = vector.extract_strided_slice %1201 {offsets = [0, 24], sizes = [8, 8], strides = [1, 1]} : vector<8x32xf32> to vector<8x8xf32>
    %1256 = vector.extract_strided_slice %1202 {offsets = [0, 24], sizes = [16, 8], strides = [1, 1]} : vector<16x32xf32> to vector<16x8xf32>
    %cst_372 = arith.constant dense<0.000000e+00> : vector<8x16xf32>
    %1257 = tpu.matmul %1255, %1256, %cst_372 {dimension_numbers = #tpu.dot_dimension_numbers<[1], [1], [0], [0], [0, 0, 1, 0], [], []>} : vector<8x8xf32>, vector<16x8xf32>, vector<8x16xf32> -> vector<8x16xf32>
    %1258 = vector.broadcast %13 : vector<1x16xf32> to vector<8x16xf32>
    %1259 = arith.addf %1257, %1258 : vector<8x16xf32>
    %cst_373 = arith.constant dense<0xFF800000> : vector<8xf32>
    %1260 = vector.multi_reduction <maximumf>, %1259, %cst_373 [1] : vector<8x16xf32> to vector<8xf32>
    %1261 = vector.shape_cast %1260 : vector<8xf32> to vector<8x1xf32>
    %1262 = vector.broadcast %1261 : vector<8x1xf32> to vector<8x16xf32>
    %1263 = arith.subf %1259, %1262 : vector<8x16xf32>
    %1264 = math.exp %1263 : vector<8x16xf32>
    %cst_374 = arith.constant dense<0.000000e+00> : vector<8xf32>
    %1265 = vector.multi_reduction <add>, %1264, %cst_374 [1] : vector<8x16xf32> to vector<8xf32>
    %1266 = vector.shape_cast %1265 : vector<8xf32> to vector<8x1xf32>
    %1267 = tpu.reciprocal %1266 {approx = true} : vector<8x1xf32> -> vector<8x1xf32>
    %1268 = vector.broadcast %1267 : vector<8x1xf32> to vector<8x16xf32>
    %1269 = arith.mulf %1264, %1268 : vector<8x16xf32>
    %1270 = vector.extract_strided_slice %1203 {offsets = [0, 24], sizes = [16, 8], strides = [1, 1]} : vector<16x32xf32> to vector<16x8xf32>
    %cst_375 = arith.constant dense<0.000000e+00> : vector<8x8xf32>
    %1271 = tpu.matmul %1269, %1270, %cst_375 {dimension_numbers = #tpu.dot_dimension_numbers<[1], [0], [0], [1], [0, 0, 1, 1], [], []>} : vector<8x16xf32>, vector<16x8xf32>, vector<8x8xf32> -> vector<8x8xf32>
    %1272 = tpu.concatenate %1220, %1237, %1254, %1271 in 1 : vector<8x8xf32>, vector<8x8xf32>, vector<8x8xf32>, vector<8x8xf32> -> vector<8x32xf32>
    %1273 = tpu.concatenate %1200, %1272 in 0 : vector<8x32xf32>, vector<8x32xf32> -> vector<16x32xf32>
    %c584 = arith.constant 584 : index
    %c0_376 = arith.constant 0 : index
    %1274 = vector.load %arg4[%c584, %c0_376] : memref<1408x128xf32, #tpu.memory_space<vmem>>, vector<32x32xf32>
    %cst_377 = arith.constant dense<0.000000e+00> : vector<16x32xf32>
    %1275 = tpu.matmul %1273, %1274, %cst_377 {dimension_numbers = #tpu.dot_dimension_numbers<[1], [0], [0], [1], [0, 0, 1, 1], [], []>} : vector<16x32xf32>, vector<32x32xf32>, vector<16x32xf32> -> vector<16x32xf32>
    %c616 = arith.constant 616 : index
    %c0_378 = arith.constant 0 : index
    %1276 = vector.load %arg4[%c616, %c0_378] : memref<1408x128xf32, #tpu.memory_space<vmem>>, vector<1x32xf32>
    %1277 = vector.broadcast %1276 : vector<1x32xf32> to vector<16x32xf32>
    %1278 = arith.addf %1275, %1277 : vector<16x32xf32>
    %1279 = arith.addf %1112, %1278 : vector<16x32xf32>
    %cst_379 = arith.constant dense<0.000000e+00> : vector<16xf32>
    %1280 = vector.multi_reduction <add>, %1279, %cst_379 [1] : vector<16x32xf32> to vector<16xf32>
    %1281 = vector.shape_cast %1280 : vector<16xf32> to vector<16x1xf32>
    %cst_380 = arith.constant 3.200000e+01 : f32
    %1282 = vector.broadcast %cst_380 : f32 to vector<16x1xf32>
    %1283 = arith.divf %1281, %1282 : vector<16x1xf32>
    %1284 = vector.broadcast %1283 : vector<16x1xf32> to vector<16x32xf32>
    %1285 = arith.subf %1279, %1284 : vector<16x32xf32>
    %1286 = arith.mulf %1285, %1285 : vector<16x32xf32>
    %cst_381 = arith.constant dense<0.000000e+00> : vector<16xf32>
    %1287 = vector.multi_reduction <add>, %1286, %cst_381 [1] : vector<16x32xf32> to vector<16xf32>
    %1288 = vector.shape_cast %1287 : vector<16xf32> to vector<16x1xf32>
    %cst_382 = arith.constant 3.200000e+01 : f32
    %1289 = vector.broadcast %cst_382 : f32 to vector<16x1xf32>
    %1290 = arith.divf %1288, %1289 : vector<16x1xf32>
    %cst_383 = arith.constant 9.99999974E-6 : f32
    %1291 = vector.broadcast %cst_383 : f32 to vector<16x1xf32>
    %1292 = arith.addf %1290, %1291 : vector<16x1xf32>
    %1293 = math.rsqrt %1292 : vector<16x1xf32>
    %1294 = vector.broadcast %1293 : vector<16x1xf32> to vector<16x32xf32>
    %1295 = arith.mulf %1285, %1294 : vector<16x32xf32>
    %c1232 = arith.constant 1232 : index
    %c0_384 = arith.constant 0 : index
    %1296 = vector.load %arg4[%c1232, %c0_384] : memref<1408x128xf32, #tpu.memory_space<vmem>>, vector<1x32xf32>
    %1297 = vector.broadcast %1296 : vector<1x32xf32> to vector<16x32xf32>
    %1298 = arith.mulf %1295, %1297 : vector<16x32xf32>
    %c1240 = arith.constant 1240 : index
    %c0_385 = arith.constant 0 : index
    %1299 = vector.load %arg4[%c1240, %c0_385] : memref<1408x128xf32, #tpu.memory_space<vmem>>, vector<1x32xf32>
    %1300 = vector.broadcast %1299 : vector<1x32xf32> to vector<16x32xf32>
    %1301 = arith.addf %1298, %1300 : vector<16x32xf32>
    %c960 = arith.constant 960 : index
    %c0_386 = arith.constant 0 : index
    %1302 = vector.load %arg4[%c960, %c0_386] : memref<1408x128xf32, #tpu.memory_space<vmem>>, vector<32x64xf32>
    %cst_387 = arith.constant dense<0.000000e+00> : vector<16x64xf32>
    %1303 = tpu.matmul %1301, %1302, %cst_387 {dimension_numbers = #tpu.dot_dimension_numbers<[1], [0], [0], [1], [0, 0, 1, 1], [], []>} : vector<16x32xf32>, vector<32x64xf32>, vector<16x64xf32> -> vector<16x64xf32>
    %c992 = arith.constant 992 : index
    %c0_388 = arith.constant 0 : index
    %1304 = vector.load %arg4[%c992, %c0_388] : memref<1408x128xf32, #tpu.memory_space<vmem>>, vector<1x64xf32>
    %1305 = vector.broadcast %1304 : vector<1x64xf32> to vector<16x64xf32>
    %1306 = arith.addf %1303, %1305 : vector<16x64xf32>
    %cst_389 = arith.constant 0.000000e+00 : f32
    %1307 = vector.broadcast %cst_389 : f32 to vector<16x64xf32>
    %1308 = arith.maximumf %1306, %1307 : vector<16x64xf32>
    %c1000 = arith.constant 1000 : index
    %c0_390 = arith.constant 0 : index
    %1309 = vector.load %arg4[%c1000, %c0_390] : memref<1408x128xf32, #tpu.memory_space<vmem>>, vector<64x32xf32>
    %cst_391 = arith.constant dense<0.000000e+00> : vector<16x32xf32>
    %1310 = tpu.matmul %1308, %1309, %cst_391 {dimension_numbers = #tpu.dot_dimension_numbers<[1], [0], [0], [1], [0, 0, 1, 1], [], []>} : vector<16x64xf32>, vector<64x32xf32>, vector<16x32xf32> -> vector<16x32xf32>
    %c1064 = arith.constant 1064 : index
    %c0_392 = arith.constant 0 : index
    %1311 = vector.load %arg4[%c1064, %c0_392] : memref<1408x128xf32, #tpu.memory_space<vmem>>, vector<1x32xf32>
    %1312 = vector.broadcast %1311 : vector<1x32xf32> to vector<16x32xf32>
    %1313 = arith.addf %1310, %1312 : vector<16x32xf32>
    %1314 = arith.addf %1301, %1313 : vector<16x32xf32>
    %cst_393 = arith.constant dense<0.000000e+00> : vector<16xf32>
    %1315 = vector.multi_reduction <add>, %1314, %cst_393 [1] : vector<16x32xf32> to vector<16xf32>
    %1316 = vector.shape_cast %1315 : vector<16xf32> to vector<16x1xf32>
    %cst_394 = arith.constant 3.200000e+01 : f32
    %1317 = vector.broadcast %cst_394 : f32 to vector<16x1xf32>
    %1318 = arith.divf %1316, %1317 : vector<16x1xf32>
    %1319 = vector.broadcast %1318 : vector<16x1xf32> to vector<16x32xf32>
    %1320 = arith.subf %1314, %1319 : vector<16x32xf32>
    %1321 = arith.mulf %1320, %1320 : vector<16x32xf32>
    %cst_395 = arith.constant dense<0.000000e+00> : vector<16xf32>
    %1322 = vector.multi_reduction <add>, %1321, %cst_395 [1] : vector<16x32xf32> to vector<16xf32>
    %1323 = vector.shape_cast %1322 : vector<16xf32> to vector<16x1xf32>
    %cst_396 = arith.constant 3.200000e+01 : f32
    %1324 = vector.broadcast %cst_396 : f32 to vector<16x1xf32>
    %1325 = arith.divf %1323, %1324 : vector<16x1xf32>
    %cst_397 = arith.constant 9.99999974E-6 : f32
    %1326 = vector.broadcast %cst_397 : f32 to vector<16x1xf32>
    %1327 = arith.addf %1325, %1326 : vector<16x1xf32>
    %1328 = math.rsqrt %1327 : vector<16x1xf32>
    %1329 = vector.broadcast %1328 : vector<16x1xf32> to vector<16x32xf32>
    %1330 = arith.mulf %1320, %1329 : vector<16x32xf32>
    %c1248 = arith.constant 1248 : index
    %c0_398 = arith.constant 0 : index
    %1331 = vector.load %arg4[%c1248, %c0_398] : memref<1408x128xf32, #tpu.memory_space<vmem>>, vector<1x32xf32>
    %1332 = vector.broadcast %1331 : vector<1x32xf32> to vector<16x32xf32>
    %1333 = arith.mulf %1330, %1332 : vector<16x32xf32>
    %c1256 = arith.constant 1256 : index
    %c0_399 = arith.constant 0 : index
    %1334 = vector.load %arg4[%c1256, %c0_399] : memref<1408x128xf32, #tpu.memory_space<vmem>>, vector<1x32xf32>
    %1335 = vector.broadcast %1334 : vector<1x32xf32> to vector<16x32xf32>
    %1336 = arith.addf %1333, %1335 : vector<16x32xf32>
    %cst_400 = arith.constant dense<0.000000e+00> : vector<16xf32>
    %1337 = vector.multi_reduction <add>, %1336, %cst_400 [1] : vector<16x32xf32> to vector<16xf32>
    %1338 = vector.shape_cast %1337 : vector<16xf32> to vector<16x1xf32>
    %cst_401 = arith.constant 3.200000e+01 : f32
    %1339 = vector.broadcast %cst_401 : f32 to vector<16x1xf32>
    %1340 = arith.divf %1338, %1339 : vector<16x1xf32>
    %1341 = vector.broadcast %1340 : vector<16x1xf32> to vector<16x32xf32>
    %1342 = arith.subf %1336, %1341 : vector<16x32xf32>
    %1343 = arith.mulf %1342, %1342 : vector<16x32xf32>
    %cst_402 = arith.constant dense<0.000000e+00> : vector<16xf32>
    %1344 = vector.multi_reduction <add>, %1343, %cst_402 [1] : vector<16x32xf32> to vector<16xf32>
    %1345 = vector.shape_cast %1344 : vector<16xf32> to vector<16x1xf32>
    %cst_403 = arith.constant 3.200000e+01 : f32
    %1346 = vector.broadcast %cst_403 : f32 to vector<16x1xf32>
    %1347 = arith.divf %1345, %1346 : vector<16x1xf32>
    %cst_404 = arith.constant 9.99999974E-6 : f32
    %1348 = vector.broadcast %cst_404 : f32 to vector<16x1xf32>
    %1349 = arith.addf %1347, %1348 : vector<16x1xf32>
    %1350 = math.rsqrt %1349 : vector<16x1xf32>
    %1351 = vector.broadcast %1350 : vector<16x1xf32> to vector<16x32xf32>
    %1352 = arith.mulf %1342, %1351 : vector<16x32xf32>
    %c1264 = arith.constant 1264 : index
    %c0_405 = arith.constant 0 : index
    %1353 = vector.load %arg4[%c1264, %c0_405] : memref<1408x128xf32, #tpu.memory_space<vmem>>, vector<1x32xf32>
    %1354 = vector.broadcast %1353 : vector<1x32xf32> to vector<16x32xf32>
    %1355 = arith.mulf %1352, %1354 : vector<16x32xf32>
    %c1272 = arith.constant 1272 : index
    %c0_406 = arith.constant 0 : index
    %1356 = vector.load %arg4[%c1272, %c0_406] : memref<1408x128xf32, #tpu.memory_space<vmem>>, vector<1x32xf32>
    %1357 = vector.broadcast %1356 : vector<1x32xf32> to vector<16x32xf32>
    %1358 = arith.addf %1355, %1357 : vector<16x32xf32>
    %c1320 = arith.constant 1320 : index
    %c0_407 = arith.constant 0 : index
    %1359 = vector.load %arg4[%c1320, %c0_407] : memref<1408x128xf32, #tpu.memory_space<vmem>>, vector<32x16xf32>
    %cst_408 = arith.constant dense<0.000000e+00> : vector<16x16xf32>
    %1360 = tpu.matmul %1358, %1359, %cst_408 {dimension_numbers = #tpu.dot_dimension_numbers<[1], [0], [0], [1], [0, 0, 1, 1], [], []>} : vector<16x32xf32>, vector<32x16xf32>, vector<16x16xf32> -> vector<16x16xf32>
    %c1352 = arith.constant 1352 : index
    %c0_409 = arith.constant 0 : index
    %1361 = vector.load %arg4[%c1352, %c0_409] : memref<1408x128xf32, #tpu.memory_space<vmem>>, vector<1x16xf32>
    %1362 = vector.broadcast %1361 : vector<1x16xf32> to vector<16x16xf32>
    %1363 = arith.addf %1360, %1362 : vector<16x16xf32>
    %c1280 = arith.constant 1280 : index
    %c0_410 = arith.constant 0 : index
    %1364 = vector.load %arg4[%c1280, %c0_410] : memref<1408x128xf32, #tpu.memory_space<vmem>>, vector<32x16xf32>
    %cst_411 = arith.constant dense<0.000000e+00> : vector<32x16xf32>
    %1365 = tpu.matmul %515, %1364, %cst_411 {dimension_numbers = #tpu.dot_dimension_numbers<[1], [0], [0], [1], [0, 0, 1, 1], [], []>} : vector<32x32xf32>, vector<32x16xf32>, vector<32x16xf32> -> vector<32x16xf32>
    %c1312 = arith.constant 1312 : index
    %c0_412 = arith.constant 0 : index
    %1366 = vector.load %arg4[%c1312, %c0_412] : memref<1408x128xf32, #tpu.memory_space<vmem>>, vector<1x16xf32>
    %1367 = vector.broadcast %1366 : vector<1x16xf32> to vector<32x16xf32>
    %1368 = arith.addf %1365, %1367 : vector<32x16xf32>
    %1369 = arith.mulf %1363, %1363 : vector<16x16xf32>
    %cst_413 = arith.constant dense<0.000000e+00> : vector<16xf32>
    %1370 = vector.multi_reduction <add>, %1369, %cst_413 [1] : vector<16x16xf32> to vector<16xf32>
    %1371 = vector.shape_cast %1370 : vector<16xf32> to vector<16x1xf32>
    %cst_414 = arith.constant 1.000000e-24 : f32
    %1372 = vector.broadcast %cst_414 : f32 to vector<16x1xf32>
    %1373 = arith.maximumf %1371, %1372 : vector<16x1xf32>
    %1374 = math.rsqrt %1373 : vector<16x1xf32>
    %1375 = vector.broadcast %1374 : vector<16x1xf32> to vector<16x16xf32>
    %1376 = arith.mulf %1363, %1375 : vector<16x16xf32>
    %1377 = arith.mulf %1368, %1368 : vector<32x16xf32>
    %cst_415 = arith.constant dense<0.000000e+00> : vector<32xf32>
    %1378 = vector.multi_reduction <add>, %1377, %cst_415 [1] : vector<32x16xf32> to vector<32xf32>
    %1379 = vector.shape_cast %1378 : vector<32xf32> to vector<32x1xf32>
    %cst_416 = arith.constant 1.000000e-24 : f32
    %1380 = vector.broadcast %cst_416 : f32 to vector<32x1xf32>
    %1381 = arith.maximumf %1379, %1380 : vector<32x1xf32>
    %1382 = math.rsqrt %1381 : vector<32x1xf32>
    %1383 = vector.broadcast %1382 : vector<32x1xf32> to vector<32x16xf32>
    %1384 = arith.mulf %1368, %1383 : vector<32x16xf32>
    %1385 = vector.extract_strided_slice %1376 {offsets = [0, 0], sizes = [8, 16], strides = [1, 1]} : vector<16x16xf32> to vector<8x16xf32>
    %1386 = vector.extract_strided_slice %1384 {offsets = [0, 0], sizes = [16, 16], strides = [1, 1]} : vector<32x16xf32> to vector<16x16xf32>
    %cst_417 = arith.constant dense<0.000000e+00> : vector<8x16xf32>
    %1387 = tpu.matmul %1385, %1386, %cst_417 {dimension_numbers = #tpu.dot_dimension_numbers<[1], [1], [0], [0], [0, 0, 1, 0], [], []>} : vector<8x16xf32>, vector<16x16xf32>, vector<8x16xf32> -> vector<8x16xf32>
    %c0_418 = arith.constant 0 : index
    %c0_419 = arith.constant 0 : index
    %1388 = vector.load %arg5[%c0_418, %c0_419] : memref<16x16xf32, #tpu.memory_space<vmem>>, vector<8x16xf32>
    tpu.vector_store %arg5[%c0_418, %c0_419], %1387 {strides = array<i32>} : memref<16x16xf32, #tpu.memory_space<vmem>>, vector<8x16xf32>,
    %1389 = vector.extract_strided_slice %1376 {offsets = [8, 0], sizes = [8, 16], strides = [1, 1]} : vector<16x16xf32> to vector<8x16xf32>
    %1390 = vector.extract_strided_slice %1384 {offsets = [16, 0], sizes = [16, 16], strides = [1, 1]} : vector<32x16xf32> to vector<16x16xf32>
    %cst_420 = arith.constant dense<0.000000e+00> : vector<8x16xf32>
    %1391 = tpu.matmul %1389, %1390, %cst_420 {dimension_numbers = #tpu.dot_dimension_numbers<[1], [1], [0], [0], [0, 0, 1, 0], [], []>} : vector<8x16xf32>, vector<16x16xf32>, vector<8x16xf32> -> vector<8x16xf32>
    %c8 = arith.constant 8 : index
    %c0_421 = arith.constant 0 : index
    %1392 = vector.load %arg5[%c8, %c0_421] : memref<16x16xf32, #tpu.memory_space<vmem>>, vector<8x16xf32>
    tpu.vector_store %arg5[%c8, %c0_421], %1391 {strides = array<i32>} : memref<16x16xf32, #tpu.memory_space<vmem>>, vector<8x16xf32>,
    return
  }
}

</mosaic_0001>

<bundles_post_ra>
// kernel: fwd.1
= control target key start
LH: loop header
LB: loop body
LE: loop exit
PB: predicated region body
PF: predicated region fallthrough
CT: control target
= control target key end

     0   :  { %10 = vsyncpa [#allocation3], 0  ;;  %s9559_s0 = inlined_call_operand.hbm [shape: f32[32,64], index: 0, kind: input, shape index: {}]   ;;  %s9560_s1 = inlined_call_operand.hbm [shape: f32[16,64], index: 1, kind: input, shape index: {}]   ;;  %s9561_s2 = inlined_call_operand.vmem [shape: f32[2,16], index: 2, kind: input, shape index: {}]   ;;  %s9562_s3 = inlined_call_operand.vmem [shape: f32[2,8], index: 3, kind: input, shape index: {}]   ;;  %s9563_s4 = inlined_call_operand.hbm [shape: f32[1408,128], index: 4, kind: input, shape index: {}]   ;;  %s9564_s5 = inlined_call_operand.hbm [shape: f32[16,16], index: 5, kind: output, shape index: {}]  }
   0x1   :  { %11 = vsyncpa [#allocation6], 0 }
   0x2   :  { %12 = vsyncpa [#allocation4], 0  ;;  %s30_s20 = sshll.u32 %s9560_s1, 4  ;;  %s7603_s21 = smov [#allocation5]   ;;  %s31_s20 = int_to_ptr.hbm [resolvable:$true] %s30_s20 }
   0x3   :  { %s32_s22 = sshll.u32 %s7603_s21, 4  ;;  %s17_s25 = sshll.u32 %s9559_s0, 4  ;;  %s33_s22 = int_to_ptr.vmem [resolvable:$true] %s32_s22  ;;  %s18_s25 = int_to_ptr.hbm [resolvable:$true] %s17_s25 }
   0x4   :  { %s7604_s26 = smov 128   ;;  %s7605_s27 = smov 8  }
   0x5   :  { %38 = dma.hbm_to_vmem [thread:$0]  %s31_s20, 256, %s33_s22, [#allocation6], %s7604_s26, %s7604_s26, %s7605_s27  }
   0x6   :  { %s7606_s28 = smov [#allocation2]   ;;  %s47_s1 = sshll.u32 %s9563_s4, 4  ;;  %s48_s1 = int_to_ptr.hbm [resolvable:$true] %s47_s1 }
   0x7   :  { %s19_s29 = sshll.u32 %s7606_s28, 4  ;;  %s7607_s0 = smov [#allocation7]   ;;  %s20_s29 = int_to_ptr.vmem [resolvable:$true] %s19_s29 }
   0x8   :  { %25 = dma.hbm_to_vmem [thread:$0]  %s18_s25, 512, %s20_s29, [#allocation3], %s7604_s26, %s7604_s26, %s7605_s27  }
   0x9   :  { %s49_s7 = sshll.u32 %s7607_s0, 4  ;;  %s50_s7 = int_to_ptr.vmem [resolvable:$true] %s49_s7 }
   0xa   :  { %55 = dma.hbm_to_vmem [thread:$0]  %s48_s1, 22528, %s50_s7, [#allocation6], %s7604_s26, %s7604_s26, %s7605_s27  }
   0xb   :  { %7597 = dma.done.wait [#allocation3], 512  }
   0xc   :  { %7598 = vsyncadd [#allocation3], 4294966784 }
   0xd   :  { %7599 = dma.done.wait [#allocation6], 22784  }
   0xe   :  { %7600 = vsyncadd [#allocation6], 4294944512  ;;  %v91_v0 = vld [vmem:[#allocation7 + $0x38] sm:$0xff]  ;;  %v90_v1 = vld [vmem:[#allocation7 + $0x30] sm:$0xff]  ;;  %vm94_vm0 = vcmask 523264   ;;  %vm136_vm1 = vcmask 261120  }
   0xf   :  { %115 = vmatpush.msra.mxu0 %v91_v0  ;;  %v89_v2 = vld [vmem:[#allocation7 + $0x28] sm:$0xff]  ;;  %v88_v3 = vld [vmem:[#allocation7 + $0x20] sm:$0xff]  ;;  %v87_v4 = vld [vmem:[#allocation7 + $0x18] sm:$0xff]  ;;  %s7608_s4 = smov 64   ;;  %v7609_v28 = vmov 32.0   ;;  %s7610_s8 = smov 96  }
  0x10   :  { %v86_v5 = vld [vmem:[#allocation7 + $0x10] sm:$0xff]  ;;  %v85_v6 = vld [vmem:[#allocation7 + $0x8] sm:$0xff]  ;;  %v84_v7 = vld [vmem:[#allocation7] sm:$0xff]  ;;  %7147 = vrcp.f32 %v7609_v28  ;;  %s7611_s9 = smov 88   ;;  %s7612_s10 = smov 80   ;;  %vm456_vm15 = vcmask 64512  }
  0x11   :  { %116 = vmatpush.msra.mxu0 %v90_v1  ;;  %v80_v8 = vld [vmem:[#allocation2] sm:$0xff]  ;;  %v81_v9 = vld [vmem:[#allocation2 + $0x8] sm:$0xff]  ;;  %v82_v10 = vld [vmem:[#allocation2 + $0x10] sm:$0xff]  ;;  %s7613_s11 = smov 120   ;;  %s7614_s12 = smov 72  }
  0x12   :  { %v83_v11 = vld [vmem:[#allocation2 + $0x18] sm:$0xff]  ;;  %v7097_v12 = vld [vmem:[#allocation7 + $0x40] ss:$0 sm:$0xff]  ;;  %v341_v24 = vld [vmem:[#allocation7 + $0x90] sm:$0xff]  ;;  %s7615_s13 = smov 104   ;;  %s7616_s14 = smov 112  }
  0x13   :  { %117 = vmatpush.msra.mxu0 %v89_v2  ;;  %v342_v25 = vld [vmem:[#allocation7 + $0x98] sm:$0xff]  ;;  %v343_v36 = vld [vmem:[#allocation7 + $0xa0] sm:$0xff]  ;;  %v344_v37 = vld [vmem:[#allocation7 + $0xa8] sm:$0xff]  ;;  %s7619_s17 = smov 24   ;;  %s6546_s23 = sshll.u32 %s9564_s5, 4  ;;  %s6547_s23 = int_to_ptr.hbm [resolvable:$true] %s6546_s23 }
  0x14   :  { %v6897_v27 = vpack.i.bf16 %v341_v24, %v342_v25  ;;  %v6892_v39 = vpack.i.bf16 %v343_v36, %v344_v37  ;;  %371 = vmatpush.msra.mxu2 %v344_v37 }
  0x15   :  { %118 = vmatpush.msra.mxu0 %v88_v3 }
  0x16   :  { %v7148_v29 = vpop.eup %7147  ;;  %372 = vmatpush.msra.mxu2 %v343_v36 }
  0x17   :  { %119 = vmatpush.msra.mxu0 %v87_v4  ;;  %v150_v30 = vmul.f32 32.0, %v7148_v29  ;;  %vm154_vm2 = vweird.f32 %v7148_v29 }
  0x18   :  { %373 = vmatpush.msra.mxu2 %v342_v25 }
  0x19   :  { %120 = vmatpush.msra.mxu0 %v86_v5  ;;  %v151_v31 = vsub.f32 1.0, %v150_v30 }
  0x1a   :  { %374 = vmatpush.msra.mxu2 %v341_v24 }
  0x1b   :  { %121 = vmatpush.msra.mxu0 %v85_v6  ;;  %v152_v32 = vmul.f32 %v7148_v29, %v151_v31 }
  0x1d   :  { %122 = vmatpush.msra.mxu0 %v84_v7  ;;  %v153_v33 = vadd.f32 %v7148_v29, %v152_v32 }
  0x1e   :  { %6560 = vmatmul.msk.f32.vlgmr.msra.gmra.mxu0 %vm94_vm0, %v80_v8 }
  0x1f   :  { %v7678_v34 = vsel %vm154_vm2, %v7148_v29, %v153_v33 }
  0x26   :  { %6561 = vmatmul.msk.f32.gmra.mxu0 %vm94_vm0, %v81_v9 }
  0x2e   :  { %6562 = vmatmul.msk.f32.gmra.mxu0 %vm94_vm0, %v82_v10 }
  0x36   :  { %6563 = vmatmul.msk.f32.gmra.mxu0 %vm94_vm0, %v83_v11 }
  0x9b   :  { %v124_v13 = vpop.f32.mrf.mxu0 }
  0x9c   :  { %v125_v14 = vadd.f32 %v7097_v12, %v124_v13 }
  0x9e   :  { %v137_v15 = vsel %vm136_vm1, %v125_v14, 0.0 }
  0x9f   :  { %138 = vadd.xlane.f32.xlu0 %v137_v15 }
  0xa3   :  { %v127_v16 = vpop.f32.mrf.mxu0 }
  0xa4   :  { %v128_v17 = vadd.f32 %v7097_v12, %v127_v16 }
  0xa6   :  { %v140_v18 = vsel %vm136_vm1, %v128_v17, 0.0 }
  0xa7   :  { %141 = vadd.xlane.f32.xlu0 %v140_v18 }
  0xab   :  { %v130_v19 = vpop.f32.mrf.mxu0 }
  0xac   :  { %v131_v20 = vadd.f32 %v7097_v12, %v130_v19 }
  0xae   :  { %v143_v21 = vsel %vm136_vm1, %v131_v20, 0.0 }
  0xaf   :  { %144 = vadd.xlane.f32.xlu2 %v143_v21  ;;  %v7099_v21 = vld [vmem:[#allocation7 + $0x438] ss:$0 sm:$0xff] }
  0xb3   :  { %v133_v22 = vpop.f32.mrf.mxu0 }
  0xb4   :  { %v134_v23 = vadd.f32 %v7097_v12, %v133_v22 }
  0xb6   :  { %v146_v26 = vsel %vm136_vm1, %v134_v23, 0.0 }
  0xb7   :  { %147 = vadd.xlane.f32.xlu2 %v146_v26 }
  0xbb   :  { %6898 = vrot.lane.b32.xlu0 %v6897_v27, %s7608_s4  ;;  %v74_v27 = vld [vmem:[#allocation7 + $0x550] sm:$0xff] }
  0xcf   :  { %6893 = vrot.lane.b32.xlu2 %v6892_v39, %s7608_s4 }
 0x112   :  { %v139_v35 = vpop.xlane.xlu0 %138 }
 0x113   :  { %v156_v38 = vmul.f32 %v7678_v34, %v139_v35 }
 0x115   :  { %v7681_v40 = vsub.f32 %v125_v14, %v156_v38 }
 0x117   :  { %v164_v41 = vmul.f32 %v7681_v40, %v7681_v40 }
 0x119   :  { %v168_v42 = vsel %vm136_vm1, %v164_v41, 0.0  ;;  %v75_v41 = vld [vmem:[#allocation7 + $0x558] sm:$0xff] }
 0x11a   :  { %169 = vadd.xlane.f32.xlu1 %v168_v42  ;;  %v142_v43 = vpop.xlane.xlu0 %141 }
 0x11b   :  { %v157_v44 = vmul.f32 %v7678_v34, %v142_v43 }
 0x11d   :  { %v7688_v45 = vsub.f32 %v128_v17, %v157_v44  ;;  %v7098_v17 = vld [vmem:[#allocation7 + $0x430] ss:$0 sm:$0xff] }
 0x11f   :  { %v165_v46 = vmul.f32 %v7688_v45, %v7688_v45 }
 0x121   :  { %v171_v47 = vsel %vm136_vm1, %v165_v46, 0.0 }
 0x122   :  { %v145_v48 = vpop.xlane.xlu2 %144  ;;  %172 = vadd.xlane.f32.xlu1 %v171_v47 }
 0x123   :  { %v158_v49 = vmul.f32 %v7678_v34, %v145_v48 }
 0x125   :  { %v7694_v50 = vsub.f32 %v131_v20, %v158_v49 }
 0x127   :  { %v166_v51 = vmul.f32 %v7694_v50, %v7694_v50 }
 0x129   :  { %v174_v52 = vsel %vm136_vm1, %v166_v51, 0.0 }
 0x12a   :  { %v148_v53 = vpop.xlane.xlu2 %147  ;;  %175 = vadd.xlane.f32.xlu0 %v174_v52 }
 0x12b   :  { %v159_v54 = vmul.f32 %v7678_v34, %v148_v53 }
 0x12d   :  { %v7700_v55 = vsub.f32 %v134_v23, %v159_v54  ;;  %v6899_v61 = vpop.permute.xlu0 %6898  ;;  %v76_v54 = vld [vmem:[#allocation7 + $0x560] sm:$0xff] }
 0x12e   :  { %v6900_v62 = vunpack.i.l.bf16 %v6899_v61  ;;  %v6901_v63 = vunpack.i.h.bf16 %v6899_v61  ;;  %v77_v61 = vld [vmem:[#allocation7 + $0x568] sm:$0xff] }
 0x12f   :  { %v167_v56 = vmul.f32 %v7700_v55, %v7700_v55 }
 0x131   :  { %v177_v57 = vsel %vm136_vm1, %v167_v56, 0.0 }
 0x132   :  { %178 = vadd.xlane.f32.xlu1 %v177_v57  ;;  %v6894_v58 = vpop.permute.xlu2 %6893 }
 0x133   :  { %v6895_v59 = vunpack.i.l.bf16 %v6894_v58  ;;  %v6896_v60 = vunpack.i.h.bf16 %v6894_v58 }
 0x135   :  { %432 = vmatpush.msrb.mxu0 %v6895_v59  ;;  %6870 = vmatpush.msra.mxu3 %v6895_v59 }
 0x137   :  { %433 = vmatpush.msrb.mxu0 %v6896_v60  ;;  %6871 = vmatpush.msra.mxu3 %v6896_v60 }
 0x139   :  { %434 = vmatpush.msrb.mxu0 %v6900_v62  ;;  %6872 = vmatpush.msra.mxu3 %v6900_v62 }
 0x13b   :  { %435 = vmatpush.msrb.mxu0 %v6901_v63  ;;  %6873 = vmatpush.msra.mxu3 %v6901_v63 }
 0x18d   :  { %v170_v0 = vpop.xlane.xlu1 %169 }
 0x18e   :  { %v180_v1 = vmul.f32 %v170_v0, %v7678_v34  ;;  %v7737_v0 = vld [vmem:[#allocation7 + $0xb0] ss:$0 sm:$0xff] }
 0x190   :  { %v184_v2 = vadd.f32 1e-05, %v180_v1 }
 0x192   :  { %7149 = vrsqrt.f32 %v184_v2  ;;  %vm194_vm4 = vweird.f32 %v184_v2 }
 0x195   :  { %v173_v3 = vpop.xlane.xlu1 %172 }
 0x196   :  { %v181_v4 = vmul.f32 %v173_v3, %v7678_v34 }
 0x198   :  { %v7150_v5 = vpop.eup %7149  ;;  %v185_v6 = vadd.f32 1e-05, %v181_v4  ;;  %v253_v4 = vld [vmem:[#allocation7 + $0x80] sm:$0xff] }
 0x199   :  { %v189_v7 = vmul.f32 %v7150_v5, %v184_v2  ;;  %vm195_vm3 = vweird.f32 %v7150_v5  ;;  %270 = vmatpush.msra.mxu1 %v253_v4 }
 0x19a   :  { %7151 = vrsqrt.f32 %v185_v6  ;;  %vm196_vm5 = vmor %vm194_vm4, %vm195_vm3  ;;  %vm204_vm7 = vweird.f32 %v185_v6  ;;  %vm488_vm3 = vcmask 130048   ;;  %vm858_vm4 = vcmask 195584  }
 0x19b   :  { %v190_v8 = vmul.f32 %v7150_v5, %v189_v7  ;;  %v250_v7 = vld [vmem:[#allocation7 + $0x68] sm:$0xff] }
 0x19d   :  { %v191_v9 = vmul.f32 0.5, %v190_v8  ;;  %v176_v10 = vpop.xlane.xlu0 %175  ;;  %v249_v8 = vld [vmem:[#allocation7 + $0x60] sm:$0xff] }
 0x19e   :  { %v182_v11 = vmul.f32 %v176_v10, %v7678_v34  ;;  %v247_v10 = vld [vmem:[#allocation7 + $0x50] sm:$0xff] }
 0x19f   :  { %v192_v12 = vsub.f32 1.5, %v191_v9  ;;  %v248_v9 = vld [vmem:[#allocation7 + $0x58] sm:$0xff] }
 0x1a0   :  { %v7152_v13 = vpop.eup %7151  ;;  %v186_v14 = vadd.f32 1e-05, %v182_v11  ;;  %v246_v11 = vld [vmem:[#allocation7 + $0x48] sm:$0xff] }
 0x1a1   :  { %v193_v15 = vmul.f32 %v7150_v5, %v192_v12  ;;  %v199_v16 = vmul.f32 %v7152_v13, %v185_v6  ;;  %vm205_vm6 = vweird.f32 %v7152_v13  ;;  %v251_v6 = vld [vmem:[#allocation7 + $0x70] sm:$0xff] }
 0x1a2   :  { %7153 = vrsqrt.f32 %v186_v14  ;;  %vm206_vm8 = vmor %vm204_vm7, %vm205_vm6  ;;  %vm214_vm9 = vweird.f32 %v186_v14  ;;  %v244_v12 = vld [vmem:[#allocation5] sm:$0xff] }
 0x1a3   :  { %v197_v18 = vsel %vm196_vm5, %v7150_v5, %v193_v15  ;;  %v200_v19 = vmul.f32 %v7152_v13, %v199_v16  ;;  %v252_v5 = vld [vmem:[#allocation7 + $0x78] sm:$0xff] }
 0x1a4   :  { %v228_v20 = vmul.f32 %v197_v18, %v7681_v40  ;;  %271 = vmatpush.msra.mxu1 %v252_v5 }
 0x1a5   :  { %v201_v22 = vmul.f32 0.5, %v200_v19  ;;  %v179_v23 = vpop.xlane.xlu1 %178 }
 0x1a6   :  { %v183_v24 = vmul.f32 %v179_v23, %v7678_v34  ;;  %v234_v25 = vmul.f32 %v7098_v17, %v228_v20  ;;  %272 = vmatpush.msra.mxu1 %v251_v6 }
 0x1a7   :  { %v202_v26 = vsub.f32 1.5, %v201_v22 }
 0x1a8   :  { %v7154_v28 = vpop.eup %7153  ;;  %v187_v29 = vadd.f32 1e-05, %v183_v24  ;;  %v7710_v30 = vadd.f32 %v7099_v21, %v234_v25  ;;  %273 = vmatpush.msra.mxu1 %v250_v7 }
 0x1a9   :  { %v203_v31 = vmul.f32 %v7152_v13, %v202_v26  ;;  %v209_v32 = vmul.f32 %v7154_v28, %v186_v14  ;;  %vm215_vm10 = vweird.f32 %v7154_v28 }
 0x1aa   :  { %7155 = vrsqrt.f32 %v187_v29  ;;  %6570 = vmatmul.msk.f32.vlgmr.msrb.gmra.mxu0 %vm136_vm1, %v7710_v30  ;;  %v337_v33 = vadd.f32 %v7710_v30, %v74_v27  ;;  %vm216_vm11 = vmor %vm214_vm9, %vm215_vm10  ;;  %vm224_vm12 = vweird.f32 %v187_v29  ;;  %274 = vmatpush.msra.mxu1 %v249_v8 }
 0x1ab   :  { %v210_v35 = vmul.f32 %v7154_v28, %v209_v32  ;;  %v207_v36 = vsel %vm206_vm8, %v7152_v13, %v203_v31  ;;  %v245_v13 = vld [vmem:[#allocation5 + $0x8] sm:$0xff] }
 0x1ac   :  { %6566 = vmatmul.msk.f32.vlgmr.msra.gmra.mxu2 %vm136_vm1, %v337_v33  ;;  %v229_v37 = vmul.f32 %v207_v36, %v7688_v45  ;;  %275 = vmatpush.msra.mxu1 %v248_v9 }
 0x1ad   :  { %v211_v38 = vmul.f32 0.5, %v210_v35 }
 0x1ae   :  { %v235_v39 = vmul.f32 %v7098_v17, %v229_v37  ;;  %276 = vmatpush.msra.mxu1 %v247_v10 }
 0x1af   :  { %v212_v40 = vsub.f32 1.5, %v211_v38 }
 0x1b0   :  { %v7156_v42 = vpop.eup %7155  ;;  %v7717_v43 = vadd.f32 %v7099_v21, %v235_v39  ;;  %277 = vmatpush.msra.mxu1 %v246_v11 }
 0x1b1   :  { %v213_v44 = vmul.f32 %v7154_v28, %v212_v40  ;;  %v219_v46 = vmul.f32 %v7156_v42, %v187_v29  ;;  %vm225_vm13 = vweird.f32 %v7156_v42  ;;  %6564 = vmatmul.msk.f32.vlgmr.msra.gmra.mxu1 %vm94_vm0, %v244_v12 }
 0x1b2   :  { %6571 = vmatmul.msk.f32.vlgmr.msra.gmra.mxu3 %vm136_vm1, %v7717_v43  ;;  %v338_v47 = vadd.f32 %v7717_v43, %v75_v41  ;;  %vm226_vm14 = vmor %vm224_vm12, %vm225_vm13 }
 0x1b3   :  { %v220_v48 = vmul.f32 %v7156_v42, %v219_v46  ;;  %v217_v49 = vsel %vm216_vm11, %v7154_v28, %v213_v44  ;;  %v68_v44 = vld [vmem:[%s9561_s2] sm:$0x3]  ;;  %s7618_s2 = smov 16  }
 0x1b4   :  { %6567 = vmatmul.msk.f32.gmra.mxu2 %vm136_vm1, %v338_v47  ;;  %v230_v45 = vmul.f32 %v217_v49, %v7694_v50  ;;  %vm69_vm2 = vcmp.gt.f32.partialorder %v68_v44, 0.5  ;;  %v7617_v49 = vmov 0.0  }
 0x1b5   :  { %v221_v51 = vmul.f32 0.5, %v220_v48 }
 0x1b6   :  { %v236_v52 = vmul.f32 %v7098_v17, %v230_v45  ;;  %v7816_v45 = vsel %vm69_vm2, -1e+30, %v7617_v49 }
 0x1b7   :  { %v222_v53 = vsub.f32 1.5, %v221_v51  ;;  %v7820_v51 = vperm.slane %v7816_v45, 0 }
 0x1b8   :  { %v7724_v56 = vadd.f32 %v7099_v21, %v236_v52 }
 0x1b9   :  { %v223_v57 = vmul.f32 %v7156_v42, %v222_v53  ;;  %6565 = vmatmul.msk.f32.gmra.mxu1 %vm94_vm0, %v245_v13 }
 0x1ba   :  { %6572 = vmatmul.msk.f32.gmra.mxu3 %vm136_vm1, %v7724_v56  ;;  %v339_v58 = vadd.f32 %v7724_v56, %v76_v54 }
 0x1bb   :  { %v227_v59 = vsel %vm226_vm14, %v7156_v42, %v223_v57 }
 0x1bc   :  { %6568 = vmatmul.msk.f32.gmra.mxu2 %vm136_vm1, %v339_v58  ;;  %v231_v50 = vmul.f32 %v227_v59, %v7700_v55 }
 0x1be   :  { %v237_v60 = vmul.f32 %v7098_v17, %v231_v50 }
 0x1c0   :  { %v7731_v62 = vadd.f32 %v7099_v21, %v237_v60 }
 0x1c2   :  { %6573 = vmatmul.msk.f32.gmra.mxu3 %vm136_vm1, %v7731_v62  ;;  %v340_v63 = vadd.f32 %v7731_v62, %v77_v61 }
 0x1c4   :  { %6569 = vmatmul.msk.f32.gmra.mxu2 %vm136_vm1, %v340_v63 }
 0x227   :  { %v437_v23 = vpop.f32.mrf.mxu0 }
 0x22e   :  { %v7806_v41 = vpop.f32.mrf.mxu1 }
 0x22f   :  { %v376_v1 = vpop.f32.mrf.mxu2 }
 0x230   :  { %v377_v2 = vadd.f32 %v7737_v0, %v376_v1 }
 0x232   :  { %452 = vrot.lane.b32.xlu0 %v377_v2, %s7610_s8 }
 0x235   :  { %v440_v25 = vpop.f32.mrf.mxu3 }
 0x236   :  { %v7813_v47 = vpop.f32.mrf.mxu1 }
 0x237   :  { %v379_v55 = vpop.f32.mrf.mxu2 }
 0x238   :  { %v7742_v3 = vadd.f32 %v7737_v0, %v379_v55 }
 0x23a   :  { %546 = vrot.lane.b32.xlu2 %v7742_v3, %s7611_s9  ;;  %454 = vrot.lane.b32.xlu1 %v7742_v3, %s7610_s8 }
 0x23b   :  { %642 = vrot.lane.b32.xlu0 %v377_v2, %s7612_s10 }
 0x23d   :  { %v7811_v46 = vpop.f32.mrf.mxu3 }
 0x23f   :  { %v382_v26 = vpop.f32.mrf.mxu2 }
 0x240   :  { %v7791_v37 = vadd.f32 %v7737_v0, %v382_v26 }
 0x242   :  { %540 = vrot.lane.b32.xlu1 %v377_v2, %s7613_s11  ;;  %544 = vrot.lane.b32.xlu2 %v377_v2, %s7611_s9 }
 0x243   :  { %542 = vrot.lane.b32.xlu0 %v7742_v3, %s7613_s11 }
 0x245   :  { %v7822_v52 = vpop.f32.mrf.mxu3 }
 0x247   :  { %v385_v36 = vpop.f32.mrf.mxu2 }
 0x248   :  { %v7794_v38 = vadd.f32 %v7737_v0, %v385_v36 }
 0x24a   :  { %740 = vrot.lane.b32.xlu1 %v7742_v3, %s7614_s12  ;;  %644 = vrot.lane.b32.xlu2 %v7742_v3, %s7612_s10 }
 0x24b   :  { %734 = vrot.lane.b32.xlu0 %v377_v2, %s7615_s13 }
 0x252   :  { %638 = vrot.lane.b32.xlu1 %v377_v2, %s7616_s14  ;;  %738 = vrot.lane.b32.xlu2 %v377_v2, %s7614_s12 }
 0x25a   :  { %736 = vrot.lane.b32.xlu1 %v7742_v3, %s7615_s13  ;;  %640 = vrot.lane.b32.xlu2 %v7742_v3, %s7616_s14 }
 0x262   :  { %405 = vrot.lane.b32.xlu2 %v7737_v0, %s7608_s4 }
 0x294   :  { %v547_v14 = vpop.permute.xlu2 %546 }
 0x295   :  { %6580 = vmatpush.xpose.msk.msrb.mxu3 %vm456_vm15, %v547_v14 }
 0x29c   :  { %v545_v15 = vpop.permute.xlu2 %544 }
 0x29d   :  { %6581 = vmatpush.xpose.msk.msrb.mxu3 %vm456_vm15, %v545_v15 }
 0x2a4   :  { %v645_v16 = vpop.permute.xlu2 %644  ;;  %v453_v17 = vpop.permute.xlu0 %452 }
 0x2ac   :  { %v455_v18 = vpop.permute.xlu1 %454  ;;  %v739_v19 = vpop.permute.xlu2 %738 }
 0x2ad   :  { %6574 = vmatpush.xpose.msk.msrb.mxu1 %vm456_vm15, %v455_v18  ;;  %v643_v20 = vpop.permute.xlu0 %642 }
 0x2b1   :  { %6575 = vmatpush.xpose.msk.msrb.mxu1 %vm456_vm15, %v453_v17 }
 0x2b4   :  { %v541_v21 = vpop.permute.xlu1 %540  ;;  %v641_v22 = vpop.permute.xlu2 %640  ;;  %6576 = vmatmul.msk.f32.vlgmr.msrb.gmra.mxu1 %vm456_vm15, %v377_v2 }
 0x2b5   :  { %6586 = vmatpush.xpose.msk.msra.mxu1 %vm456_vm15, %v645_v16  ;;  %6582 = vmatmul.msk.f32.vlgmr.msrb.gmra.mxu3 %vm456_vm15, %v541_v21  ;;  %v543_v24 = vpop.permute.xlu0 %542 }
 0x2b9   :  { %6587 = vmatpush.xpose.msk.msra.mxu1 %vm456_vm15, %v643_v20 }
 0x2bc   :  { %v741_v27 = vpop.permute.xlu1 %740  ;;  %v7776_v28 = vpop.permute.xlu2 %405  ;;  %6577 = vmatmul.msk.f32.gmra.mxu1 %vm456_vm15, %v7742_v3 }
 0x2bd   :  { %v438_v29 = vadd.f32 %v437_v23, %v7776_v28  ;;  %6583 = vmatmul.msk.f32.gmra.mxu3 %vm456_vm15, %v543_v24  ;;  %v441_v31 = vadd.f32 %v440_v25, %v7776_v28  ;;  %v735_v33 = vpop.permute.xlu0 %734 }
 0x2be   :  { %6592 = vmatpush.xpose.msk.msra.mxu3 %vm456_vm15, %v741_v27 }
 0x2bf   :  { %531 = vmatpush.msrb.mxu2 %v441_v31  ;;  %v6912_v32 = vpack.i.bf16 %v438_v29, %v441_v31 }
 0x2c1   :  { %6913 = vrot.lane.b32.xlu2 %v6912_v32, %s7615_s13  ;;  %6903 = vrot.lane.b32.xlu1 %v6912_v32, %s7613_s11 }
 0x2c2   :  { %6593 = vmatpush.xpose.msk.msra.mxu3 %vm456_vm15, %v739_v19  ;;  %532 = vmatpush.msrb.mxu2 %v438_v29 }
 0x2c3   :  { %6908 = vrot.lane.b32.xlu0 %v6912_v32, %s7616_s14 }
 0x2c4   :  { %v639_v35 = vpop.permute.xlu1 %638 }
 0x2c5   :  { %6588 = vmatmul.msk.f32.vlgmr.msra.gmra.mxu1 %vm456_vm15, %v639_v35  ;;  %6594 = vmatmul.msk.f32.vlgmr.msra.gmra.mxu3 %vm456_vm15, %v735_v33 }
 0x2c9   :  { %954 = vrot.lane.b32.xlu2 %v7791_v37, %s7611_s9  ;;  %864 = vrot.lane.b32.xlu1 %v7791_v37, %s7610_s8 }
 0x2cb   :  { %956 = vrot.lane.b32.xlu0 %v7794_v38, %s7611_s9 }
 0x2cc   :  { %v737_v39 = vpop.permute.xlu1 %736 }
 0x2cd   :  { %6589 = vmatmul.msk.f32.gmra.mxu1 %vm456_vm15, %v641_v22  ;;  %6595 = vmatmul.msk.f32.gmra.mxu3 %vm456_vm15, %v737_v39 }
 0x2d1   :  { %866 = vrot.lane.b32.xlu2 %v7794_v38, %s7610_s8 }
 0x31b   :  { %v6914_v40 = vpop.permute.xlu2 %6913 }
 0x31c   :  { %v6915_v63 = vunpack.i.l.bf16 %v6914_v40  ;;  %v6916_v2 = vunpack.i.h.bf16 %v6914_v40 }
 0x323   :  { %v955_v42 = vpop.permute.xlu2 %954 }
 0x32b   :  { %v867_v48 = vpop.permute.xlu2 %866 }
 0x32c   :  { %6598 = vmatpush.xpose.msk.msrb.mxu1 %vm456_vm15, %v867_v48 }
 0x331   :  { %v482_v53 = vpop.f32.mrf.mxu1 }
 0x332   :  { %v483_v54 = vadd.f32 %v482_v53, %v7820_v51 }
 0x333   :  { %v6904_v57 = vpop.permute.xlu1 %6903 }
 0x334   :  { %v6905_v58 = vunpack.i.l.bf16 %v6904_v57  ;;  %v489_v59 = vsel %vm488_vm3, %v483_v54, -inf  ;;  %v6906_v60 = vunpack.i.h.bf16 %v6904_v57 }
 0x335   :  { %v6909_v50 = vpop.permute.xlu0 %6908  ;;  %490 = vmax.xlane.f32.xlu0 %v489_v59 }
 0x336   :  { %v6910_v61 = vunpack.i.l.bf16 %v6909_v50  ;;  %629 = vmatpush.msra.mxu0 %v6905_v58  ;;  %v6911_v0 = vunpack.i.h.bf16 %v6909_v50 }
 0x338   :  { %725 = vmatpush.msra.mxu2 %v6910_v61  ;;  %v573_v1 = vpop.f32.mrf.mxu3  ;;  %630 = vmatpush.msra.mxu0 %v6906_v60 }
 0x339   :  { %v574_v55 = vadd.f32 %v573_v1, %v7820_v51  ;;  %v485_v3 = vpop.f32.mrf.mxu1 }
 0x33a   :  { %821 = vmatpush.msrb.mxu0 %v6915_v63  ;;  %726 = vmatpush.msra.mxu2 %v6911_v0  ;;  %v486_v4 = vadd.f32 %v485_v3, %v7820_v51 }
 0x33b   :  { %v865_v5 = vpop.permute.xlu1 %864  ;;  %v579_v6 = vsel %vm488_vm3, %v574_v55, -inf }
 0x33c   :  { %822 = vmatpush.msrb.mxu0 %v6916_v2  ;;  %6599 = vmatpush.xpose.msk.msrb.mxu1 %vm456_vm15, %v865_v5  ;;  %v492_v7 = vsel %vm488_vm3, %v486_v4, -inf }
 0x33d   :  { %580 = vmax.xlane.f32.xlu2 %v579_v6  ;;  %v957_v8 = vpop.permute.xlu0 %956  ;;  %493 = vmax.xlane.f32.xlu1 %v492_v7 }
 0x33e   :  { %6604 = vmatpush.xpose.msk.msrb.mxu3 %vm456_vm15, %v957_v8 }
 0x33f   :  { %6600 = vmatmul.msk.f32.vlgmr.msrb.gmra.mxu1 %vm456_vm15, %v7791_v37 }
 0x340   :  { %v576_v9 = vpop.f32.mrf.mxu3 }
 0x341   :  { %v577_v10 = vadd.f32 %v576_v9, %v7820_v51 }
 0x342   :  { %6605 = vmatpush.xpose.msk.msrb.mxu3 %vm456_vm15, %v955_v42  ;;  %v671_v11 = vpop.f32.mrf.mxu1 }
 0x343   :  { %v672_v12 = vadd.f32 %v671_v11, %v7820_v51  ;;  %v582_v13 = vsel %vm488_vm3, %v577_v10, -inf }
 0x344   :  { %583 = vmax.xlane.f32.xlu0 %v582_v13 }
 0x345   :  { %v677_v14 = vsel %vm488_vm3, %v672_v12, -inf }
 0x346   :  { %678 = vmax.xlane.f32.xlu2 %v677_v14 }
 0x347   :  { %6601 = vmatmul.msk.f32.gmra.mxu1 %vm456_vm15, %v7794_v38 }
 0x348   :  { %v767_v15 = vpop.f32.mrf.mxu3 }
 0x349   :  { %v7842_v16 = vadd.f32 %v767_v15, %v7820_v51 }
 0x34a   :  { %v674_v21 = vpop.f32.mrf.mxu1 }
 0x34b   :  { %v773_v17 = vsel %vm488_vm3, %v7842_v16, -inf  ;;  %v675_v22 = vadd.f32 %v674_v21, %v7820_v51 }
 0x34c   :  { %774 = vmax.xlane.f32.xlu1 %v773_v17 }
 0x34d   :  { %v680_v23 = vsel %vm488_vm3, %v675_v22, -inf }
 0x350   :  { %v770_v18 = vpop.f32.mrf.mxu3 }
 0x351   :  { %v7847_v19 = vadd.f32 %v770_v18, %v7820_v51 }
 0x353   :  { %v776_v20 = vsel %vm488_vm3, %v7847_v19, -inf }
 0x354   :  { %777 = vmax.xlane.f32.xlu1 %v776_v20 }
 0x358   :  { %952 = vrot.lane.b32.xlu0 %v7794_v38, %s7613_s11 }
 0x35e   :  { %950 = vrot.lane.b32.xlu2 %v7791_v37, %s7613_s11 }
 0x382   :  { %681 = vmax.xlane.f32.xlu0 %v680_v23 }
 0x3a8   :  { %v491_v24 = vpop.xlane.xlu0 %490 }
 0x3a9   :  { %v495_v25 = vsub.f32 %v483_v54, %v491_v24 }
 0x3ab   :  { %v497_v26 = vmul.f32 1.442695, %v495_v25 }
 0x3ad   :  { %7157 = vpow2.f32 %v497_v26 }
 0x3b0   :  { %v581_v27 = vpop.xlane.xlu2 %580  ;;  %v494_v31 = vpop.xlane.xlu1 %493 }
 0x3b1   :  { %v585_v29 = vsub.f32 %v574_v55, %v581_v27  ;;  %v496_v32 = vsub.f32 %v486_v4, %v494_v31 }
 0x3b3   :  { %v587_v33 = vmul.f32 1.442695, %v585_v29  ;;  %v7857_v35 = vpop.eup %7157  ;;  %v499_v36 = vmul.f32 1.442695, %v496_v32 }
 0x3b4   :  { %v501_v39 = vsel %vm488_vm3, %v7857_v35, 0.0 }
 0x3b5   :  { %7159 = vpow2.f32 %v587_v33  ;;  %502 = vadd.xlane.f32.xlu0 %v501_v39 }
 0x3b6   :  { %7161 = vpow2.f32 %v499_v36 }
 0x3b7   :  { %v584_v40 = vpop.xlane.xlu0 %583 }
 0x3b8   :  { %v586_v42 = vsub.f32 %v577_v10, %v584_v40 }
 0x3b9   :  { %v679_v44 = vpop.xlane.xlu2 %678 }
 0x3ba   :  { %v589_v53 = vmul.f32 1.442695, %v586_v42  ;;  %v683_v54 = vsub.f32 %v672_v12, %v679_v44 }
 0x3bb   :  { %v7861_v48 = vpop.eup %7159 }
 0x3bc   :  { %v7863_v57 = vpop.eup %7161  ;;  %v591_v58 = vsel %vm488_vm3, %v7861_v48, 0.0  ;;  %7163 = vpow2.f32 %v589_v53  ;;  %v685_v59 = vmul.f32 1.442695, %v683_v54 }
 0x3bd   :  { %592 = vadd.xlane.f32.xlu1 %v591_v58  ;;  %v504_v50 = vsel %vm488_vm3, %v7863_v57, 0.0 }
 0x3be   :  { %505 = vadd.xlane.f32.xlu0 %v504_v50  ;;  %7165 = vpow2.f32 %v685_v59 }
 0x3bf   :  { %v775_v55 = vpop.xlane.xlu1 %774 }
 0x3c0   :  { %v779_v3 = vsub.f32 %v7842_v16, %v775_v55  ;;  %v893_v55 = vpop.f32.mrf.mxu1 }
 0x3c1   :  { %v951_v60 = vpop.permute.xlu2 %950 }
 0x3c2   :  { %v7869_v61 = vpop.eup %7163  ;;  %6606 = vmatmul.msk.f32.vlgmr.msrb.gmra.mxu3 %vm456_vm15, %v951_v60  ;;  %v781_v7 = vmul.f32 1.442695, %v779_v3 }
 0x3c3   :  { %v594_v63 = vsel %vm488_vm3, %v7869_v61, 0.0 }
 0x3c4   :  { %v7166_v0 = vpop.eup %7165 }
 0x3c5   :  { %v689_v1 = vsel %vm488_vm3, %v7166_v0, 0.0 }
 0x3c6   :  { %595 = vadd.xlane.f32.xlu0 %v594_v63  ;;  %690 = vadd.xlane.f32.xlu2 %v689_v1 }
 0x3c7   :  { %v778_v8 = vpop.xlane.xlu1 %777 }
 0x3c8   :  { %v780_v9 = vsub.f32 %v7847_v19, %v778_v8  ;;  %v896_v3 = vpop.f32.mrf.mxu1 }
 0x3ca   :  { %v953_v2 = vpop.permute.xlu0 %952  ;;  %v783_v11 = vmul.f32 1.442695, %v780_v9 }
 0x3cb   :  { %6607 = vmatmul.msk.f32.gmra.mxu3 %vm456_vm15, %v953_v2 }
 0x3d6   :  { %1150 = vrot.lane.b32.xlu1 %v7794_v38, %s7614_s12 }
 0x3da   :  { %1052 = vrot.lane.b32.xlu0 %v7791_v37, %s7612_s10 }
 0x3de   :  { %1048 = vrot.lane.b32.xlu1 %v7791_v37, %s7616_s14  ;;  %1054 = vrot.lane.b32.xlu2 %v7794_v38, %s7612_s10 }
 0x3e6   :  { %1148 = vrot.lane.b32.xlu2 %v7791_v37, %s7614_s12 }
 0x3ee   :  { %1050 = vrot.lane.b32.xlu2 %v7794_v38, %s7616_s14 }
 0x3f5   :  { %v682_v4 = vpop.xlane.xlu0 %681 }
 0x3f6   :  { %v684_v5 = vsub.f32 %v675_v22, %v682_v4  ;;  %v7900_v22 = vadd.f32 %v7822_v52, %v7776_v28 }
 0x3f8   :  { %v687_v6 = vmul.f32 1.442695, %v684_v5  ;;  %v7935_v5 = vperm.slane %v7816_v45, 1 }
 0x3fa   :  { %7167 = vpow2.f32 %v687_v6  ;;  %v894_v6 = vadd.f32 %v893_v55, %v7935_v5 }
 0x3fb   :  { %7169 = vpow2.f32 %v781_v7 }
 0x3fc   :  { %7171 = vpow2.f32 %v783_v11  ;;  %v899_v8 = vsel %vm488_vm3, %v894_v6, -inf }
 0x400   :  { %v7168_v10 = vpop.eup %7167 }
 0x401   :  { %v692_v12 = vsel %vm488_vm3, %v7168_v10, 0.0  ;;  %v7170_v13 = vpop.eup %7169 }
 0x402   :  { %v785_v14 = vsel %vm488_vm3, %v7170_v13, 0.0  ;;  %v7172_v15 = vpop.eup %7171 }
 0x403   :  { %v788_v16 = vsel %vm488_vm3, %v7172_v15, 0.0 }
 0x404   :  { %693 = vadd.xlane.f32.xlu0 %v692_v12 }
 0x408   :  { %786 = vadd.xlane.f32.xlu1 %v785_v14 }
 0x410   :  { %789 = vadd.xlane.f32.xlu1 %v788_v16 }
 0x418   :  { %1144 = vrot.lane.b32.xlu0 %v7791_v37, %s7615_s13  ;;  %v7906_v37 = vadd.f32 %v7811_v46, %v7776_v28 }
 0x428   :  { %v503_v17 = vpop.xlane.xlu0 %502 }
 0x429   :  { %1146 = vrot.lane.b32.xlu1 %v7794_v38, %s7615_s13  ;;  %7173 = vrcp.f32 %v503_v17 }
 0x42f   :  { %v7174_v18 = vpop.eup %7173 }
 0x430   :  { %v593_v19 = vpop.xlane.xlu1 %592  ;;  %v509_v21 = vmul.f32 %v7174_v18, %v7857_v35 }
 0x431   :  { %7175 = vrcp.f32 %v593_v19  ;;  %v506_v20 = vpop.xlane.xlu0 %505 }
 0x432   :  { %7177 = vrcp.f32 %v506_v20  ;;  %6578 = vmatmul.msk.f32.vlgmr.msrb.gmra.mxu2 %vm488_vm3, %v509_v21  ;;  %v897_v20 = vadd.f32 %v896_v3, %v7935_v5 }
 0x433   :  { %941 = vmatpush.msrb.mxu2 %v7900_v22 }
 0x435   :  { %942 = vmatpush.msrb.mxu2 %v7906_v37 }
 0x437   :  { %v7176_v38 = vpop.eup %7175 }
 0x438   :  { %v7178_v23 = vpop.eup %7177  ;;  %v599_v24 = vmul.f32 %v7176_v38, %v7861_v48  ;;  %v902_v38 = vsel %vm488_vm3, %v897_v20, -inf }
 0x439   :  { %v596_v25 = vpop.xlane.xlu0 %595  ;;  %v510_v26 = vmul.f32 %v7178_v23, %v7863_v57  ;;  %v691_v52 = vpop.xlane.xlu2 %690 }
 0x43a   :  { %7179 = vrcp.f32 %v596_v25  ;;  %6584 = vmatmul.msk.f32.vlgmr.msra.gmra.mxu0 %vm488_vm3, %v599_v24 }
 0x43b   :  { %7181 = vrcp.f32 %v691_v52  ;;  %6579 = vmatmul.msk.f32.gmra.mxu2 %vm488_vm3, %v510_v26 }
 0x440   :  { %v7180_v27 = vpop.eup %7179 }
 0x441   :  { %v7182_v29 = vpop.eup %7181  ;;  %v600_v28 = vmul.f32 %v7180_v27, %v7869_v61  ;;  %v1055_v31 = vpop.permute.xlu2 %1054 }
 0x442   :  { %v697_v46 = vmul.f32 %v7182_v29, %v7166_v0  ;;  %6610 = vmatpush.xpose.msk.msra.mxu1 %vm456_vm15, %v1055_v31  ;;  %v1271_v31 = vld [vmem:[#allocation7 + $0xc0] sm:$0xff] }
 0x443   :  { %6585 = vmatmul.msk.f32.gmra.mxu0 %vm488_vm3, %v600_v28  ;;  %v1273_v28 = vld [vmem:[#allocation7 + $0xd0] sm:$0xff] }
 0x444   :  { %6590 = vmatmul.msk.f32.vlgmr.msra.gmra.mxu2 %vm488_vm3, %v697_v46  ;;  %v1272_v46 = vld [vmem:[#allocation7 + $0xc8] sm:$0xff] }
 0x445   :  { %v983_v4 = vpop.f32.mrf.mxu3 }
 0x446   :  { %v984_v17 = vadd.f32 %v983_v4, %v7935_v5 }
 0x448   :  { %v1151_v32 = vpop.permute.xlu1 %1150  ;;  %v989_v18 = vsel %vm488_vm3, %v984_v17, -inf }
 0x449   :  { %6616 = vmatpush.xpose.msk.msra.mxu3 %vm456_vm15, %v1151_v32  ;;  %v1149_v33 = vpop.permute.xlu2 %1148 }
 0x44c   :  { %v1053_v35 = vpop.permute.xlu0 %1052 }
 0x44d   :  { %6611 = vmatpush.xpose.msk.msra.mxu1 %vm456_vm15, %v1053_v35  ;;  %6617 = vmatpush.xpose.msk.msra.mxu3 %vm456_vm15, %v1149_v33  ;;  %v1270_v33 = vld [vmem:[#allocation7 + $0xb8] sm:$0xff] }
 0x44e   :  { %v986_v9 = vpop.f32.mrf.mxu3 }
 0x450   :  { %v1049_v36 = vpop.permute.xlu1 %1048 }
 0x451   :  { %6612 = vmatmul.msk.f32.vlgmr.msra.gmra.mxu1 %vm456_vm15, %v1049_v36  ;;  %v1051_v39 = vpop.permute.xlu2 %1050 }
 0x452   :  { %1300 = vmatpush.msrb.mxu1 %v1273_v28 }
 0x454   :  { %1301 = vmatpush.msrb.mxu1 %v1272_v46 }
 0x456   :  { %1302 = vmatpush.msrb.mxu1 %v1271_v31 }
 0x458   :  { %1303 = vmatpush.msrb.mxu1 %v1270_v33 }
 0x459   :  { %6613 = vmatmul.msk.f32.gmra.mxu1 %vm456_vm15, %v1051_v39 }
 0x477   :  { %v694_v40 = vpop.xlane.xlu0 %693 }
 0x478   :  { %7183 = vrcp.f32 %v694_v40 }
 0x47b   :  { %v787_v42 = vpop.xlane.xlu1 %786 }
 0x47c   :  { %7185 = vrcp.f32 %v787_v42 }
 0x47e   :  { %v7184_v44 = vpop.eup %7183 }
 0x47f   :  { %v698_v48 = vmul.f32 %v7184_v44, %v7168_v10  ;;  %v7940_v10 = vadd.f32 %v986_v9, %v7935_v5 }
 0x481   :  { %6591 = vmatmul.msk.f32.gmra.mxu2 %vm488_vm3, %v698_v48  ;;  %v992_v11 = vsel %vm488_vm3, %v7940_v10, -inf }
 0x482   :  { %v7186_v53 = vpop.eup %7185 }
 0x483   :  { %v793_v54 = vmul.f32 %v7186_v53, %v7170_v13  ;;  %v790_v57 = vpop.xlane.xlu1 %789 }
 0x484   :  { %7187 = vrcp.f32 %v790_v57 }
 0x485   :  { %6596 = vmatmul.msk.f32.vlgmr.msrb.gmra.mxu0 %vm488_vm3, %v793_v54 }
 0x48a   :  { %v7188_v58 = vpop.eup %7187  ;;  %v1145_v59 = vpop.permute.xlu0 %1144 }
 0x48b   :  { %6618 = vmatmul.msk.f32.vlgmr.msra.gmra.mxu3 %vm456_vm15, %v1145_v59  ;;  %v794_v50 = vmul.f32 %v7188_v58, %v7172_v15 }
 0x48d   :  { %6597 = vmatmul.msk.f32.gmra.mxu0 %vm488_vm3, %v794_v50 }
 0x49b   :  { %v1147_v60 = vpop.permute.xlu1 %1146 }
 0x49c   :  { %6619 = vmatmul.msk.f32.gmra.mxu3 %vm456_vm15, %v1147_v60 }
 0x4b5   :  { %v7927_v61 = vpop.f32.mrf.mxu2 }
 0x4b7   :  { %v632_v63 = vpop.f32.mrf.mxu0 }
 0x4b8   :  { %832 = vrot.lane.b32.xlu0 %v632_v63, %s7605_s27 }
 0x4be   :  { %v7930_v0 = vpop.f32.mrf.mxu2 }
 0x4c0   :  { %v635_v1 = vpop.f32.mrf.mxu0 }
 0x4c1   :  { %834 = vrot.lane.b32.xlu0 %v635_v1, %s7605_s27 }
 0x4c7   :  { %v728_v2 = vpop.f32.mrf.mxu2 }
 0x4c8   :  { %840 = vrot.lane.b32.xlu2 %v728_v2, %s7618_s2 }
 0x4ce   :  { %v1081_v7 = vpop.f32.mrf.mxu1 }
 0x4cf   :  { %v1082_v21 = vadd.f32 %v1081_v7, %v7935_v5 }
 0x4d1   :  { %v1087_v23 = vsel %vm488_vm3, %v1082_v21, -inf }
 0x4d6   :  { %v1084_v12 = vpop.f32.mrf.mxu1 }
 0x4d7   :  { %v7945_v13 = vadd.f32 %v1084_v12, %v7935_v5 }
 0x4d9   :  { %v1090_v45 = vsel %vm488_vm3, %v7945_v13, -inf }
 0x4eb   :  { %900 = vmax.xlane.f32.xlu0 %v899_v8 }
 0x4f3   :  { %993 = vmax.xlane.f32.xlu0 %v992_v11 }
 0x4fb   :  { %1091 = vmax.xlane.f32.xlu0 %v1090_v45 }
 0x502   :  { %v824_v14 = vpop.f32.mrf.mxu0 }
 0x503   :  { %848 = vrot.lane.b32.xlu1 %v824_v14, %s7619_s17 }
 0x504   :  { %v731_v15 = vpop.f32.mrf.mxu2 }
 0x505   :  { %842 = vrot.lane.b32.xlu2 %v731_v15, %s7618_s2 }
 0x50a   :  { %v827_v16 = vpop.f32.mrf.mxu0 }
 0x50b   :  { %850 = vrot.lane.b32.xlu1 %v827_v16, %s7619_s17 }
 0x50e   :  { %v1177_v19 = vpop.f32.mrf.mxu3 }
 0x50f   :  { %v7959_v25 = vadd.f32 %v1177_v19, %v7935_v5 }
 0x511   :  { %v1183_v52 = vsel %vm488_vm3, %v7959_v25, -inf }
 0x51f   :  { %v1180_v24 = vpop.f32.mrf.mxu3 }
 0x520   :  { %v7962_v26 = vadd.f32 %v1180_v24, %v7935_v5 }
 0x522   :  { %v1186_v27 = vsel %vm488_vm3, %v7962_v26, -inf  ;;  %v841_v44 = vpop.permute.xlu2 %840 }
 0x52a   :  { %v833_v29 = vpop.permute.xlu0 %832 }
 0x52b   :  { %v854_v48 = vsel %vm456_vm15, %v7927_v61, %v833_v29  ;;  %v6917_v61 = vpack.i.bf16 %v7906_v37, %v7900_v22 }
 0x52c   :  { %v856_v54 = vsel %vm488_vm3, %v854_v48, %v841_v44 }
 0x52e   :  { %990 = vmax.xlane.f32.xlu2 %v989_v18 }
 0x533   :  { %v835_v32 = vpop.permute.xlu0 %834 }
 0x534   :  { %v855_v59 = vsel %vm456_vm15, %v7930_v0, %v835_v32 }
 0x535   :  { %903 = vmax.xlane.f32.xlu1 %v902_v38 }
 0x536   :  { %1088 = vmax.xlane.f32.xlu2 %v1087_v23 }
 0x53d   :  { %1184 = vmax.xlane.f32.xlu1 %v1183_v52 }
 0x53e   :  { %1187 = vmax.xlane.f32.xlu2 %v1186_v27 }
 0x55e   :  { %v901_v35 = vpop.xlane.xlu0 %900 }
 0x55f   :  { %v905_v36 = vsub.f32 %v894_v6, %v901_v35  ;;  %v843_v58 = vpop.permute.xlu2 %842  ;;  %v8021_v35 = vld [vmem:[#allocation7 + $0xd8] ss:$0 sm:$0xff] }
 0x560   :  { %v857_v50 = vsel %vm488_vm3, %v855_v59, %v843_v58 }
 0x561   :  { %v907_v39 = vmul.f32 1.442695, %v905_v36 }
 0x563   :  { %7189 = vpow2.f32 %v907_v39 }
 0x566   :  { %v994_v1 = vpop.xlane.xlu0 %993 }
 0x567   :  { %v996_v3 = vsub.f32 %v7940_v10, %v994_v1 }
 0x569   :  { %v7968_v40 = vpop.eup %7189  ;;  %v999_v4 = vmul.f32 1.442695, %v996_v3 }
 0x56a   :  { %v911_v42 = vsel %vm488_vm3, %v7968_v40, 0.0 }
 0x56b   :  { %912 = vadd.xlane.f32.xlu1 %v911_v42 }
 0x56e   :  { %v1092_v19 = vpop.xlane.xlu0 %1091 }
 0x575   :  { %v849_v53 = vpop.permute.xlu1 %848 }
 0x576   :  { %v859_v57 = vsel %vm858_vm4, %v856_v54, %v849_v53 }
 0x577   :  { %6622 = vmatmul.msk.f32.vlgmr.msrb.gmra.mxu1 %vm136_vm1, %v859_v57 }
 0x57d   :  { %v851_v60 = vpop.permute.xlu1 %850 }
 0x57e   :  { %v860_v63 = vsel %vm858_vm4, %v857_v50, %v851_v60 }
 0x57f   :  { %6623 = vmatmul.msk.f32.gmra.mxu1 %vm136_vm1, %v860_v63 }
 0x584   :  { %6918 = vrot.lane.b32.xlu1 %v6917_v61, %s7613_s11 }
 0x58c   :  { %6928 = vrot.lane.b32.xlu1 %v6917_v61, %s7615_s13 }
 0x5a1   :  { %v991_v2 = vpop.xlane.xlu2 %990 }
 0x5a2   :  { %v995_v55 = vsub.f32 %v984_v17, %v991_v2 }
 0x5a4   :  { %v997_v0 = vmul.f32 1.442695, %v995_v55 }
 0x5a6   :  { %7191 = vpow2.f32 %v997_v0 }
 0x5a7   :  { %7193 = vpow2.f32 %v999_v4 }
 0x5a8   :  { %v904_v6 = vpop.xlane.xlu1 %903 }
 0x5a9   :  { %v906_v7 = vsub.f32 %v897_v20, %v904_v6  ;;  %v1089_v8 = vpop.xlane.xlu2 %1088 }
 0x5aa   :  { %v1093_v11 = vsub.f32 %v1082_v21, %v1089_v8  ;;  %v1094_v21 = vsub.f32 %v7945_v13, %v1092_v19 }
 0x5ab   :  { %v909_v9 = vmul.f32 1.442695, %v906_v7 }
 0x5ac   :  { %v7987_v12 = vpop.eup %7191  ;;  %v1095_v37 = vmul.f32 1.442695, %v1093_v11  ;;  %v1097_v23 = vmul.f32 1.442695, %v1094_v21 }
 0x5ad   :  { %7195 = vpow2.f32 %v909_v9  ;;  %v1001_v22 = vsel %vm488_vm3, %v7987_v12, 0.0  ;;  %v7991_v14 = vpop.eup %7193 }
 0x5ae   :  { %1002 = vadd.xlane.f32.xlu0 %v1001_v22  ;;  %7197 = vpow2.f32 %v1095_v37  ;;  %v1004_v17 = vsel %vm488_vm3, %v7991_v14, 0.0 }
 0x5b0   :  { %v1185_v45 = vpop.xlane.xlu1 %1184 }
 0x5b1   :  { %v1189_v15 = vsub.f32 %v7959_v25, %v1185_v45  ;;  %v1188_v24 = vpop.xlane.xlu2 %1187 }
 0x5b2   :  { %v1190_v52 = vsub.f32 %v7962_v26, %v1188_v24 }
 0x5b3   :  { %v7993_v10 = vpop.eup %7195  ;;  %v1191_v18 = vmul.f32 1.442695, %v1189_v15 }
 0x5b4   :  { %v914_v16 = vsel %vm488_vm3, %v7993_v10, 0.0  ;;  %v8000_v20 = vpop.eup %7197  ;;  %v1193_v29 = vmul.f32 1.442695, %v1190_v52 }
 0x5b5   :  { %915 = vadd.xlane.f32.xlu2 %v914_v16  ;;  %7199 = vpow2.f32 %v1191_v18  ;;  %v1099_v38 = vsel %vm488_vm3, %v8000_v20, 0.0 }
 0x5b6   :  { %1005 = vadd.xlane.f32.xlu0 %v1004_v17  ;;  %7201 = vpow2.f32 %v1097_v23 }
 0x5b7   :  { %7203 = vpow2.f32 %v1193_v29 }
 0x5bb   :  { %v8005_v25 = vpop.eup %7199 }
 0x5bc   :  { %v1195_v27 = vsel %vm488_vm3, %v8005_v25, 0.0  ;;  %v8010_v28 = vpop.eup %7201 }
 0x5bd   :  { %1100 = vadd.xlane.f32.xlu2 %v1099_v38  ;;  %v1102_v13 = vsel %vm488_vm3, %v8010_v28, 0.0  ;;  %v8015_v46 = vpop.eup %7203 }
 0x5be   :  { %v1198_v31 = vsel %vm488_vm3, %v8015_v46, 0.0 }
 0x5c5   :  { %1196 = vadd.xlane.f32.xlu2 %v1195_v27 }
 0x5ca   :  { %6923 = vrot.lane.b32.xlu0 %v6917_v61, %s7616_s14 }
 0x5cd   :  { %1103 = vadd.xlane.f32.xlu2 %v1102_v13 }
 0x5d5   :  { %1199 = vadd.xlane.f32.xlu2 %v1198_v31 }
 0x5de   :  { %v913_v26 = vpop.xlane.xlu1 %912 }
 0x5df   :  { %7205 = vrcp.f32 %v913_v26 }
 0x5e5   :  { %v7206_v32 = vpop.eup %7205 }
 0x5e6   :  { %v919_v33 = vmul.f32 %v7206_v32, %v7968_v40 }
 0x5e8   :  { %6602 = vmatmul.msk.f32.vlgmr.msrb.gmra.mxu2 %vm488_vm3, %v919_v33 }
 0x5f4   :  { %v1305_v36 = vpop.f32.mrf.mxu1 }
 0x5f5   :  { %v1306_v39 = vadd.f32 %v8021_v35, %v1305_v36 }
 0x5f6   :  { %v6919_v42 = vpop.permute.xlu1 %6918 }
 0x5f7   :  { %v6920_v44 = vunpack.i.l.bf16 %v6919_v42  ;;  %v8025_v48 = vadd.f32 %v1306_v39, %v7710_v30  ;;  %v6921_v53 = vunpack.i.h.bf16 %v6919_v42  ;;  %v1424_v39 = vld [vmem:[#allocation7 + $0x288] sm:$0xff] }
 0x5f9   :  { %1039 = vmatpush.msra.mxu0 %v6920_v44  ;;  %v1321_v54 = vsel %vm136_vm1, %v8025_v48, 0.0  ;;  %v1423_v44 = vld [vmem:[#allocation7 + $0x280] sm:$0xff] }
 0x5fa   :  { %1322 = vadd.xlane.f32.xlu0 %v1321_v54 }
 0x5fb   :  { %1040 = vmatpush.msra.mxu0 %v6921_v53  ;;  %v1421_v53 = vld [vmem:[#allocation7 + $0x270] sm:$0xff] }
 0x5fc   :  { %v1308_v40 = vpop.f32.mrf.mxu1 }
 0x5fd   :  { %v1309_v57 = vadd.f32 %v8021_v35, %v1308_v40 }
 0x5fe   :  { %v6929_v58 = vpop.permute.xlu1 %6928 }
 0x5ff   :  { %v6930_v59 = vunpack.i.l.bf16 %v6929_v58  ;;  %v1318_v50 = vadd.f32 %v1309_v57, %v7717_v43  ;;  %v6931_v60 = vunpack.i.h.bf16 %v6929_v58 }
 0x601   :  { %1231 = vmatpush.msrb.mxu0 %v6930_v59  ;;  %v1324_v63 = vsel %vm136_vm1, %v1318_v50, 0.0 }
 0x602   :  { %1325 = vadd.xlane.f32.xlu1 %v1324_v63 }
 0x603   :  { %1232 = vmatpush.msrb.mxu0 %v6931_v60 }
 0x621   :  { %v1003_v30 = vpop.xlane.xlu0 %1002 }
 0x622   :  { %7207 = vrcp.f32 %v1003_v30 }
 0x628   :  { %v7208_v61 = vpop.eup %7207  ;;  %v916_v1 = vpop.xlane.xlu2 %915 }
 0x629   :  { %v1009_v2 = vmul.f32 %v7208_v61, %v7987_v12  ;;  %7209 = vrcp.f32 %v916_v1  ;;  %v1006_v55 = vpop.xlane.xlu0 %1005 }
 0x62a   :  { %7211 = vrcp.f32 %v1006_v55 }
 0x62b   :  { %6608 = vmatmul.msk.f32.vlgmr.msra.gmra.mxu0 %vm488_vm3, %v1009_v2 }
 0x62f   :  { %v7210_v3 = vpop.eup %7209 }
 0x630   :  { %v7212_v0 = vpop.eup %7211  ;;  %v1101_v43 = vpop.xlane.xlu2 %1100  ;;  %v920_v4 = vmul.f32 %v7210_v3, %v7993_v10 }
 0x631   :  { %v1010_v6 = vmul.f32 %v7212_v0, %v7991_v14  ;;  %7213 = vrcp.f32 %v1101_v43 }
 0x632   :  { %6603 = vmatmul.msk.f32.gmra.mxu2 %vm488_vm3, %v920_v4 }
 0x633   :  { %6609 = vmatmul.msk.f32.gmra.mxu0 %vm488_vm3, %v1010_v6 }
 0x637   :  { %v7214_v9 = vpop.eup %7213 }
 0x638   :  { %v1197_v7 = vpop.xlane.xlu2 %1196  ;;  %v1107_v37 = vmul.f32 %v7214_v9, %v8000_v20 }
 0x639   :  { %7215 = vrcp.f32 %v1197_v7 }
 0x63c   :  { %v6924_v8 = vpop.permute.xlu0 %6923 }
 0x63d   :  { %v6925_v11 = vunpack.i.l.bf16 %v6924_v8  ;;  %v6926_v22 = vunpack.i.h.bf16 %v6924_v8  ;;  %v8069_v8 = vld [vmem:[#allocation7 + $0x450] ss:$0 sm:$0xff] }
 0x63f   :  { %v7216_v12 = vpop.eup %7215  ;;  %1135 = vmatpush.msra.mxu2 %v6925_v11 }
 0x640   :  { %v1203_v45 = vmul.f32 %v7216_v12, %v8005_v25  ;;  %v1104_v10 = vpop.xlane.xlu2 %1103 }
 0x641   :  { %7217 = vrcp.f32 %v1104_v10  ;;  %1136 = vmatpush.msra.mxu2 %v6926_v22  ;;  %v8071_v22 = vld [vmem:[#allocation7 + $0x458] ss:$0 sm:$0xff] }
 0x642   :  { %6614 = vmatmul.msk.f32.vlgmr.msra.gmra.mxu2 %vm488_vm3, %v1107_v37  ;;  %6620 = vmatmul.msk.f32.vlgmr.msrb.gmra.mxu0 %vm488_vm3, %v1203_v45 }
 0x643   :  { %1451 = vmatpush.msrb.mxu2 %v1424_v39 }
 0x645   :  { %1452 = vmatpush.msrb.mxu2 %v1423_v44 }
 0x647   :  { %v7218_v14 = vpop.eup %7217 }
 0x648   :  { %v1200_v15 = vpop.xlane.xlu2 %1199  ;;  %v1108_v16 = vmul.f32 %v7218_v14, %v8010_v28 }
 0x649   :  { %7219 = vrcp.f32 %v1200_v15 }
 0x64a   :  { %6615 = vmatmul.msk.f32.gmra.mxu2 %vm488_vm3, %v1108_v16 }
 0x64f   :  { %v7220_v17 = vpop.eup %7219 }
 0x650   :  { %v1204_v18 = vmul.f32 %v7220_v17, %v8015_v46 }
 0x652   :  { %6621 = vmatmul.msk.f32.gmra.mxu0 %vm488_vm3, %v1204_v18 }
 0x66b   :  { %v944_v21 = vpop.f32.mrf.mxu2 }
 0x66d   :  { %v1323_v23 = vpop.xlane.xlu0 %1322 }
 0x66e   :  { %v1333_v24 = vmul.f32 %v1323_v23, %v7678_v34 }
 0x670   :  { %v1337_v52 = vsub.f32 %v8025_v48, %v1333_v24  ;;  %v1422_v48 = vld [vmem:[#allocation7 + $0x278] sm:$0xff] }
 0x671   :  { %1453 = vmatpush.msrb.mxu2 %v1422_v48 }
 0x672   :  { %v1341_v28 = vmul.f32 %v1337_v52, %v1337_v52 }
 0x673   :  { %1454 = vmatpush.msrb.mxu2 %v1421_v53 }
 0x674   :  { %v1345_v46 = vsel %vm136_vm1, %v1341_v28, 0.0  ;;  %v1477_v28 = vld [vmem:[#allocation7 + $0x2c0] sm:$0xff] }
 0x675   :  { %v1326_v27 = vpop.xlane.xlu1 %1325 }
 0x676   :  { %v1334_v29 = vmul.f32 %v1326_v27, %v7678_v34  ;;  %v1479_v27 = vld [vmem:[#allocation7 + $0x2d0] sm:$0xff] }
 0x677   :  { %1502 = vmatpush.msrb.mxu3 %v1479_v27 }
 0x678   :  { %v8054_v13 = vsub.f32 %v1318_v50, %v1334_v29  ;;  %v1478_v29 = vld [vmem:[#allocation7 + $0x2c8] sm:$0xff] }
 0x679   :  { %1503 = vmatpush.msrb.mxu3 %v1478_v29 }
 0x67a   :  { %v1342_v31 = vmul.f32 %v8054_v13, %v8054_v13 }
 0x67b   :  { %1504 = vmatpush.msrb.mxu3 %v1477_v28 }
 0x67c   :  { %v1348_v26 = vsel %vm136_vm1, %v1342_v31, 0.0  ;;  %v1473_v31 = vld [vmem:[#allocation7 + $0x2a0] sm:$0xff] }
 0x6a8   :  { %v1042_v19 = vpop.f32.mrf.mxu0 }
 0x6a9   :  { %1242 = vrot.lane.b32.xlu2 %v1042_v19, %s7605_s27 }
 0x6b0   :  { %v1045_v20 = vpop.f32.mrf.mxu0 }
 0x6b1   :  { %1244 = vrot.lane.b32.xlu1 %v1045_v20, %s7605_s27 }
 0x6b5   :  { %v8048_v38 = vpop.f32.mrf.mxu2 }
 0x6bf   :  { %v1234_v32 = vpop.f32.mrf.mxu0 }
 0x6c5   :  { %v1138_v25 = vpop.f32.mrf.mxu2 }
 0x6c6   :  { %1250 = vrot.lane.b32.xlu0 %v1138_v25, %s7618_s2 }
 0x6cd   :  { %v1141_v33 = vpop.f32.mrf.mxu2 }
 0x6cf   :  { %v1237_v36 = vpop.f32.mrf.mxu0 }
 0x6d2   :  { %1346 = vadd.xlane.f32.xlu2 %v1345_v46  ;;  %v1474_v46 = vld [vmem:[#allocation7 + $0x2a8] sm:$0xff] }
 0x6da   :  { %1349 = vadd.xlane.f32.xlu2 %v1348_v26  ;;  %v1472_v26 = vld [vmem:[#allocation7 + $0x298] sm:$0xff] }
 0x6f2   :  { %1258 = vrot.lane.b32.xlu2 %v1234_v32, %s7619_s17 }
 0x6fa   :  { %1252 = vrot.lane.b32.xlu2 %v1141_v33, %s7618_s2 }
 0x702   :  { %1260 = vrot.lane.b32.xlu2 %v1237_v36, %s7619_s17 }
 0x703   :  { %v1243_v42 = vpop.permute.xlu2 %1242 }
 0x704   :  { %v1264_v1 = vsel %vm456_vm15, %v944_v21, %v1243_v42  ;;  %v8091_v42 = vld [vmem:[#allocation7 + $0x290] ss:$0 sm:$0xff] }
 0x723   :  { %v1245_v16 = vpop.permute.xlu1 %1244 }
 0x724   :  { %v1265_v19 = vsel %vm456_vm15, %v8048_v38, %v1245_v16  ;;  %v1476_v38 = vld [vmem:[#allocation7 + $0x2b8] sm:$0xff] }
 0x725   :  { %1505 = vmatpush.msrb.mxu3 %v1476_v38 }
 0x738   :  { %v1251_v30 = vpop.permute.xlu0 %1250 }
 0x739   :  { %v1266_v2 = vsel %vm488_vm3, %v1264_v1, %v1251_v30 }
 0x745   :  { %v1347_v54 = vpop.xlane.xlu2 %1346 }
 0x746   :  { %v1357_v40 = vmul.f32 %v1347_v54, %v7678_v34 }
 0x748   :  { %v1361_v57 = vadd.f32 1e-05, %v1357_v40 }
 0x74a   :  { %7221 = vrsqrt.f32 %v1361_v57  ;;  %vm1371_vm6 = vweird.f32 %v1361_v57 }
 0x74d   :  { %v1350_v58 = vpop.xlane.xlu2 %1349 }
 0x74e   :  { %v1358_v59 = vmul.f32 %v1350_v58, %v7678_v34 }
 0x750   :  { %v7222_v50 = vpop.eup %7221  ;;  %v1362_v60 = vadd.f32 1e-05, %v1358_v59 }
 0x751   :  { %v1366_v63 = vmul.f32 %v7222_v50, %v1361_v57  ;;  %vm1372_vm5 = vweird.f32 %v7222_v50 }
 0x752   :  { %7223 = vrsqrt.f32 %v1362_v60  ;;  %vm1373_vm7 = vmor %vm1371_vm6, %vm1372_vm5  ;;  %vm1381_vm9 = vweird.f32 %v1362_v60 }
 0x753   :  { %v1367_v61 = vmul.f32 %v7222_v50, %v1366_v63 }
 0x755   :  { %v1368_v55 = vmul.f32 0.5, %v1367_v61  ;;  %v1259_v3 = vpop.permute.xlu2 %1258 }
 0x756   :  { %v1268_v0 = vsel %vm858_vm4, %v1266_v2, %v1259_v3 }
 0x757   :  { %v1369_v43 = vsub.f32 1.5, %v1368_v55  ;;  %6624 = vmatmul.msk.f32.gmra.mxu1 %vm136_vm1, %v1268_v0  ;;  %v8104_v0 = vld [vmem:[#allocation7 + $0x2d8] ss:$0 sm:$0xff] }
 0x758   :  { %v7224_v4 = vpop.eup %7223 }
 0x759   :  { %v1370_v6 = vmul.f32 %v7222_v50, %v1369_v43  ;;  %v1376_v7 = vmul.f32 %v7224_v4, %v1362_v60  ;;  %vm1382_vm8 = vweird.f32 %v7224_v4 }
 0x75a   :  { %vm1383_vm10 = vmor %vm1381_vm9, %vm1382_vm8 }
 0x75b   :  { %v1374_v9 = vsel %vm1373_vm7, %v7222_v50, %v1370_v6  ;;  %v1377_v11 = vmul.f32 %v7224_v4, %v1376_v7 }
 0x75c   :  { %v1405_v12 = vmul.f32 %v1374_v9, %v1337_v52 }
 0x75d   :  { %v1378_v37 = vmul.f32 0.5, %v1377_v11  ;;  %v1253_v45 = vpop.permute.xlu2 %1252 }
 0x75e   :  { %v1411_v10 = vmul.f32 %v8069_v8, %v1405_v12  ;;  %v1267_v21 = vsel %vm488_vm3, %v1265_v19, %v1253_v45 }
 0x75f   :  { %v1379_v14 = vsub.f32 1.5, %v1378_v37 }
 0x760   :  { %v8075_v15 = vadd.f32 %v8071_v22, %v1411_v10 }
 0x761   :  { %v1380_v17 = vmul.f32 %v7224_v4, %v1379_v14 }
 0x762   :  { %6626 = vmatmul.msk.f32.vlgmr.msrb.gmra.mxu2 %vm136_vm1, %v8075_v15 }
 0x763   :  { %v1384_v18 = vsel %vm1383_vm10, %v7224_v4, %v1380_v17 }
 0x764   :  { %v1406_v20 = vmul.f32 %v1384_v18, %v8054_v13  ;;  %v1475_v13 = vld [vmem:[#allocation7 + $0x2b0] sm:$0xff] }
 0x765   :  { %v1261_v23 = vpop.permute.xlu2 %1260  ;;  %1506 = vmatpush.msrb.mxu3 %v1475_v13 }
 0x766   :  { %v1269_v24 = vsel %vm858_vm4, %v1267_v21, %v1261_v23  ;;  %v1412_v25 = vmul.f32 %v8069_v8, %v1406_v20 }
 0x767   :  { %6625 = vmatmul.msk.f32.gmra.mxu1 %vm136_vm1, %v1269_v24  ;;  %1507 = vmatpush.msrb.mxu3 %v1474_v46 }
 0x768   :  { %v1418_v52 = vadd.f32 %v8071_v22, %v1412_v25 }
 0x769   :  { %1508 = vmatpush.msrb.mxu3 %v1473_v31 }
 0x76a   :  { %6627 = vmatmul.msk.f32.gmra.mxu2 %vm136_vm1, %v1418_v52 }
 0x76b   :  { %1509 = vmatpush.msrb.mxu3 %v1472_v26 }
 0x7d4   :  { %v1311_v32 = vpop.f32.mrf.mxu1 }
 0x7d5   :  { %v1312_v33 = vadd.f32 %v8021_v35, %v1311_v32 }
 0x7d7   :  { %v1319_v36 = vadd.f32 %v1312_v33, %v7724_v56 }
 0x7d9   :  { %v1327_v39 = vsel %vm136_vm1, %v1319_v36, 0.0 }
 0x7da   :  { %1328 = vadd.xlane.f32.xlu0 %v1327_v39 }
 0x7e4   :  { %v1314_v44 = vpop.f32.mrf.mxu1 }
 0x7e5   :  { %v1315_v48 = vadd.f32 %v8021_v35, %v1314_v44  ;;  %v1456_v53 = vpop.f32.mrf.mxu2 }
 0x7e6   :  { %v1457_v54 = vadd.f32 %v8091_v42, %v1456_v53 }
 0x7e7   :  { %v1320_v40 = vadd.f32 %v1315_v48, %v7731_v62 }
 0x7e8   :  { %v1468_v57 = vmax.f32 %v1457_v54, 0.0 }
 0x7e9   :  { %v1330_v58 = vsel %vm136_vm1, %v1320_v40, 0.0 }
 0x7ea   :  { %1331 = vadd.xlane.f32.xlu2 %v1330_v58  ;;  %6630 = vmatmul.msk.f32.vlgmr.msrb.gmra.mxu3 %vm94_vm0, %v1468_v57 }
 0x7ed   :  { %v1459_v56 = vpop.f32.mrf.mxu2 }
 0x7ee   :  { %v1460_v59 = vadd.f32 %v8091_v42, %v1459_v56 }
 0x7f0   :  { %v1469_v50 = vmax.f32 %v1460_v59, 0.0 }
 0x7f2   :  { %6631 = vmatmul.msk.f32.gmra.mxu3 %vm94_vm0, %v1469_v50 }
 0x84d   :  { %v1329_v60 = vpop.xlane.xlu0 %1328 }
 0x84e   :  { %v1335_v35 = vmul.f32 %v1329_v60, %v7678_v34  ;;  %v8129_v60 = vld [vmem:[#allocation7 + $0xf8] sm:$0xff] }
 0x84f   :  { %1661 = vmatpush.msra.mxu0 %v8129_v60 }
 0x850   :  { %v1339_v63 = vsub.f32 %v1319_v36, %v1335_v35  ;;  %v8132_v35 = vld [vmem:[#allocation7 + $0xf0] sm:$0xff] }
 0x851   :  { %1662 = vmatpush.msra.mxu0 %v8132_v35 }
 0x852   :  { %v1343_v30 = vmul.f32 %v1339_v63, %v1339_v63 }
 0x854   :  { %v1351_v61 = vsel %vm136_vm1, %v1343_v30, 0.0 }
 0x855   :  { %1352 = vadd.xlane.f32.xlu1 %v1351_v61 }
 0x85d   :  { %v1332_v62 = vpop.xlane.xlu2 %1331 }
 0x85e   :  { %v1336_v1 = vmul.f32 %v1332_v62, %v7678_v34 }
 0x860   :  { %v1340_v2 = vsub.f32 %v1320_v40, %v1336_v1 }
 0x862   :  { %v1344_v55 = vmul.f32 %v1340_v2, %v1340_v2 }
 0x864   :  { %v1354_v3 = vsel %vm136_vm1, %v1344_v55, 0.0 }
 0x865   :  { %1355 = vadd.xlane.f32.xlu0 %v1354_v3 }
 0x86d   :  { %v1511_v43 = vpop.f32.mrf.mxu3 }
 0x86e   :  { %v1512_v4 = vadd.f32 %v8104_v0, %v1511_v43 }
 0x870   :  { %v1523_v6 = vadd.f32 %v1512_v4, %v8075_v15 }
 0x872   :  { %v1527_v7 = vsel %vm136_vm1, %v1523_v6, 0.0 }
 0x873   :  { %1528 = vadd.xlane.f32.xlu2 %v1527_v7 }
 0x875   :  { %v1514_v9 = vpop.f32.mrf.mxu3 }
 0x876   :  { %v1515_v11 = vadd.f32 %v8104_v0, %v1514_v9 }
 0x878   :  { %v1524_v12 = vadd.f32 %v1515_v11, %v1418_v52 }
 0x87a   :  { %v1530_v37 = vsel %vm136_vm1, %v1524_v12, 0.0 }
 0x87b   :  { %1531 = vadd.xlane.f32.xlu0 %v1530_v37 }
 0x8c8   :  { %v1353_v45 = vpop.xlane.xlu1 %1352 }
 0x8c9   :  { %v1359_v10 = vmul.f32 %v1353_v45, %v7678_v34 }
 0x8cb   :  { %v1363_v14 = vadd.f32 1e-05, %v1359_v10 }
 0x8cd   :  { %7225 = vrsqrt.f32 %v1363_v14  ;;  %vm1391_vm12 = vweird.f32 %v1363_v14 }
 0x8d3   :  { %v7226_v16 = vpop.eup %7225 }
 0x8d4   :  { %v1386_v17 = vmul.f32 %v7226_v16, %v1363_v14  ;;  %vm1392_vm11 = vweird.f32 %v7226_v16 }
 0x8d5   :  { %vm1393_vm13 = vmor %vm1391_vm12, %vm1392_vm11 }
 0x8d6   :  { %v1387_v18 = vmul.f32 %v7226_v16, %v1386_v17 }
 0x8d8   :  { %v1388_v19 = vmul.f32 0.5, %v1387_v18  ;;  %v1356_v15 = vpop.xlane.xlu0 %1355 }
 0x8d9   :  { %v1360_v20 = vmul.f32 %v1356_v15, %v7678_v34 }
 0x8da   :  { %v1389_v21 = vsub.f32 1.5, %v1388_v19  ;;  %v8151_v19 = vld [vmem:[#allocation7 + $0x468] ss:$0 sm:$0xff] }
 0x8db   :  { %v1364_v23 = vadd.f32 1e-05, %v1360_v20 }
 0x8dc   :  { %v1390_v24 = vmul.f32 %v7226_v16, %v1389_v21 }
 0x8dd   :  { %7227 = vrsqrt.f32 %v1364_v23  ;;  %vm1401_vm2 = vweird.f32 %v1364_v23 }
 0x8de   :  { %v1394_v25 = vsel %vm1393_vm13, %v7226_v16, %v1390_v24  ;;  %v8149_v16 = vld [vmem:[#allocation7 + $0x460] ss:$0 sm:$0xff] }
 0x8df   :  { %v1407_v52 = vmul.f32 %v1394_v25, %v1339_v63  ;;  %v8135_v63 = vld [vmem:[#allocation7 + $0xe8] sm:$0xff] }
 0x8e0   :  { %1663 = vmatpush.msra.mxu0 %v8135_v63 }
 0x8e1   :  { %v1413_v27 = vmul.f32 %v8069_v8, %v1407_v52 }
 0x8e3   :  { %v7228_v29 = vpop.eup %7227  ;;  %v8115_v28 = vadd.f32 %v8071_v22, %v1413_v27 }
 0x8e4   :  { %v1396_v38 = vmul.f32 %v7228_v29, %v1364_v23  ;;  %vm1402_vm14 = vweird.f32 %v7228_v29 }
 0x8e5   :  { %6628 = vmatmul.msk.f32.gmra.mxu2 %vm136_vm1, %v8115_v28  ;;  %vm1403_vm5 = vmor %vm1401_vm2, %vm1402_vm14 }
 0x8e6   :  { %v1397_v13 = vmul.f32 %v7228_v29, %v1396_v38  ;;  %v1529_v46 = vpop.xlane.xlu2 %1528  ;;  %v7489_v38 = vld [vmem:[#allocation7 + $0x550] sm:$0xff] }
 0x8e7   :  { %v1539_v31 = vmul.f32 %v1529_v46, %v7678_v34 }
 0x8e8   :  { %v1398_v26 = vmul.f32 0.5, %v1397_v13 }
 0x8e9   :  { %v1543_v32 = vsub.f32 %v1523_v6, %v1539_v31 }
 0x8ea   :  { %v1399_v33 = vsub.f32 1.5, %v1398_v26 }
 0x8eb   :  { %v1547_v36 = vmul.f32 %v1543_v32, %v1543_v32 }
 0x8ec   :  { %v1400_v39 = vmul.f32 %v7228_v29, %v1399_v33 }
 0x8ed   :  { %v1551_v44 = vsel %vm136_vm1, %v1547_v36, 0.0 }
 0x8ee   :  { %v1532_v48 = vpop.xlane.xlu0 %1531  ;;  %1552 = vadd.xlane.f32.xlu1 %v1551_v44  ;;  %v1404_v53 = vsel %vm1403_vm5, %v7228_v29, %v1400_v39 }
 0x8ef   :  { %v1540_v54 = vmul.f32 %v1532_v48, %v7678_v34  ;;  %v1408_v40 = vmul.f32 %v1404_v53, %v1340_v2  ;;  %v8170_v53 = vld [vmem:[#allocation7 + $0x100] ss:$0 sm:$0xff] }
 0x8f1   :  { %v1544_v57 = vsub.f32 %v1524_v12, %v1540_v54  ;;  %v1414_v58 = vmul.f32 %v8069_v8, %v1408_v40  ;;  %v6932_v8 = vpack.i.bf16 %v8132_v35, %v8129_v60 }
 0x8f3   :  { %v8124_v56 = vadd.f32 %v8071_v22, %v1414_v58  ;;  %v1548_v59 = vmul.f32 %v1544_v57, %v1544_v57  ;;  %v8140_v22 = vld [vmem:[#allocation7 + $0xe0] sm:$0xff] }
 0x8f4   :  { %v6937_v61 = vpack.i.bf16 %v8140_v22, %v8135_v63  ;;  %1664 = vmatpush.msra.mxu0 %v8140_v22 }
 0x8f5   :  { %6629 = vmatmul.msk.f32.gmra.mxu2 %vm136_vm1, %v8124_v56  ;;  %v1554_v50 = vsel %vm136_vm1, %v1548_v59, 0.0 }
 0x8f6   :  { %1555 = vadd.xlane.f32.xlu2 %v1554_v50 }
 0x961   :  { %v1553_v30 = vpop.xlane.xlu1 %1552 }
 0x962   :  { %v1563_v62 = vmul.f32 %v1553_v30, %v7678_v34 }
 0x964   :  { %v1567_v1 = vadd.f32 1e-05, %v1563_v62 }
 0x966   :  { %7229 = vrsqrt.f32 %v1567_v1  ;;  %vm1577_vm7 = vweird.f32 %v1567_v1 }
 0x968   :  { %v1462_v2 = vpop.f32.mrf.mxu2 }
 0x969   :  { %v1463_v55 = vadd.f32 %v8091_v42, %v1462_v2  ;;  %v1556_v3 = vpop.xlane.xlu2 %1555 }
 0x96a   :  { %v1564_v43 = vmul.f32 %v1556_v3, %v7678_v34 }
 0x96b   :  { %v1470_v4 = vmax.f32 %v1463_v55, 0.0 }
 0x96c   :  { %v7230_v6 = vpop.eup %7229  ;;  %v1568_v7 = vadd.f32 1e-05, %v1564_v43 }
 0x96d   :  { %v1572_v9 = vmul.f32 %v7230_v6, %v1567_v1  ;;  %6632 = vmatmul.msk.f32.gmra.mxu3 %vm94_vm0, %v1470_v4  ;;  %vm1578_vm6 = vweird.f32 %v7230_v6 }
 0x96e   :  { %7231 = vrsqrt.f32 %v1568_v7  ;;  %vm1579_vm8 = vmor %vm1577_vm7, %vm1578_vm6  ;;  %vm1587_vm10 = vweird.f32 %v1568_v7 }
 0x96f   :  { %v1573_v11 = vmul.f32 %v7230_v6, %v1572_v9 }
 0x971   :  { %v1574_v12 = vmul.f32 0.5, %v1573_v11 }
 0x973   :  { %v1575_v37 = vsub.f32 1.5, %v1574_v12 }
 0x974   :  { %v7232_v45 = vpop.eup %7231 }
 0x975   :  { %v1576_v10 = vmul.f32 %v7230_v6, %v1575_v37  ;;  %v1582_v14 = vmul.f32 %v7232_v45, %v1568_v7  ;;  %vm1588_vm9 = vweird.f32 %v7232_v45 }
 0x976   :  { %vm1589_vm11 = vmor %vm1587_vm10, %vm1588_vm9 }
 0x977   :  { %v1580_v17 = vsel %vm1579_vm8, %v7230_v6, %v1576_v10  ;;  %v1583_v18 = vmul.f32 %v7232_v45, %v1582_v14 }
 0x978   :  { %v1611_v15 = vmul.f32 %v1580_v17, %v1543_v32  ;;  %v1465_v20 = vpop.f32.mrf.mxu2  ;;  %v7490_v32 = vld [vmem:[#allocation7 + $0x558] sm:$0xff] }
 0x979   :  { %v1584_v21 = vmul.f32 0.5, %v1583_v18  ;;  %v1466_v23 = vadd.f32 %v8091_v42, %v1465_v20 }
 0x97a   :  { %v1617_v24 = vmul.f32 %v8149_v16, %v1611_v15 }
 0x97b   :  { %v1585_v25 = vsub.f32 1.5, %v1584_v21  ;;  %v1471_v52 = vmax.f32 %v1466_v23, 0.0 }
 0x97c   :  { %v8156_v27 = vadd.f32 %v8151_v19, %v1617_v24 }
 0x97d   :  { %v1586_v29 = vmul.f32 %v7232_v45, %v1585_v25  ;;  %6633 = vmatmul.msk.f32.gmra.mxu3 %vm94_vm0, %v1471_v52 }
 0x97e   :  { %v1627_v13 = vadd.f32 %v7489_v38, %v8156_v27 }
 0x97f   :  { %v1590_v46 = vsel %vm1589_vm11, %v7232_v45, %v1586_v29 }
 0x980   :  { %v1612_v31 = vmul.f32 %v1590_v46, %v1544_v57  ;;  %6634 = vmatmul.msk.f32.vlgmr.msra.gmra.mxu0 %vm136_vm1, %v1627_v13 }
 0x982   :  { %v1618_v42 = vmul.f32 %v8149_v16, %v1612_v31  ;;  %v7491_v31 = vld [vmem:[#allocation7 + $0x560] sm:$0xff] }
 0x984   :  { %v8163_v26 = vadd.f32 %v8151_v19, %v1618_v42 }
 0x986   :  { %v1628_v33 = vadd.f32 %v7490_v32, %v8163_v26 }
 0x988   :  { %6635 = vmatmul.msk.f32.gmra.mxu0 %vm136_vm1, %v1628_v33 }
 0x9f0   :  { %v1517_v36 = vpop.f32.mrf.mxu3 }
 0x9f1   :  { %v1518_v39 = vadd.f32 %v8104_v0, %v1517_v36 }
 0x9f3   :  { %v1525_v44 = vadd.f32 %v1518_v39, %v8115_v28 }
 0x9f5   :  { %v1533_v48 = vsel %vm136_vm1, %v1525_v44, 0.0 }
 0x9f6   :  { %1534 = vadd.xlane.f32.xlu2 %v1533_v48 }
 0x9fd   :  { %v1666_v54 = vpop.f32.mrf.mxu0 }
 0x9fe   :  { %v8173_v40 = vadd.f32 %v8170_v53, %v1666_v54 }
 0xa00   :  { %v1520_v57 = vpop.f32.mrf.mxu3  ;;  %1741 = vrot.lane.b32.xlu1 %v8173_v40, %s7610_s8 }
 0xa01   :  { %v1521_v58 = vadd.f32 %v8104_v0, %v1520_v57 }
 0xa03   :  { %v1526_v59 = vadd.f32 %v1521_v58, %v8124_v56 }
 0xa05   :  { %v1669_v50 = vpop.f32.mrf.mxu0  ;;  %v1536_v28 = vsel %vm136_vm1, %v1526_v59, 0.0 }
 0xa06   :  { %v8181_v30 = vadd.f32 %v8170_v53, %v1669_v50  ;;  %1537 = vadd.xlane.f32.xlu2 %v1536_v28 }
 0xa08   :  { %1743 = vrot.lane.b32.xlu0 %v8181_v30, %s7610_s8  ;;  %6933 = vrot.lane.b32.xlu1 %v6932_v8, %s7608_s4 }
 0xa10   :  { %1695 = vrot.lane.b32.xlu1 %v8170_v53, %s7608_s4 }
 0xa69   :  { %v1535_v0 = vpop.xlane.xlu2 %1534 }
 0xa6a   :  { %v1541_v56 = vmul.f32 %v1535_v0, %v7678_v34 }
 0xa6c   :  { %v1545_v62 = vsub.f32 %v1525_v44, %v1541_v56 }
 0xa6e   :  { %v1549_v1 = vmul.f32 %v1545_v62, %v1545_v62 }
 0xa70   :  { %v1557_v2 = vsel %vm136_vm1, %v1549_v1, 0.0 }
 0xa71   :  { %1558 = vadd.xlane.f32.xlu0 %v1557_v2 }
 0xa72   :  { %v1742_v60 = vpop.permute.xlu1 %1741 }
 0xa79   :  { %v1538_v55 = vpop.xlane.xlu2 %1537 }
 0xa7a   :  { %v1542_v3 = vmul.f32 %v1538_v55, %v7678_v34  ;;  %v1744_v43 = vpop.permute.xlu0 %1743  ;;  %v6934_v6 = vpop.permute.xlu1 %6933 }
 0xa7b   :  { %6642 = vmatpush.xpose.msk.msra.mxu2 %vm456_vm15, %v1744_v43  ;;  %v6935_v7 = vunpack.i.l.bf16 %v6934_v6  ;;  %v6936_v9 = vunpack.i.h.bf16 %v6934_v6 }
 0xa7c   :  { %v8195_v4 = vsub.f32 %v1526_v59, %v1542_v3 }
 0xa7d   :  { %1722 = vmatpush.msra.mxu1 %v6935_v7 }
 0xa7e   :  { %v1550_v35 = vmul.f32 %v8195_v4, %v8195_v4 }
 0xa7f   :  { %6643 = vmatpush.xpose.msk.msra.mxu2 %vm456_vm15, %v1742_v60  ;;  %1723 = vmatpush.msra.mxu1 %v6936_v9 }
 0xa80   :  { %v1560_v8 = vsel %vm136_vm1, %v1550_v35, 0.0 }
 0xa81   :  { %1561 = vadd.xlane.f32.xlu2 %v1560_v8 }
 0xa82   :  { %6644 = vmatmul.msk.f32.vlgmr.msra.gmra.mxu2 %vm456_vm15, %v8173_v40  ;;  %v8266_v55 = vpop.permute.xlu1 %1695 }
 0xa85   :  { %1833 = vrot.lane.b32.xlu0 %v8181_v30, %s7611_s9 }
 0xa8a   :  { %6645 = vmatmul.msk.f32.gmra.mxu2 %vm456_vm15, %v8181_v30 }
 0xa8d   :  { %1925 = vrot.lane.b32.xlu0 %v8173_v40, %s7616_s14 }
 0xa99   :  { %6938 = vrot.lane.b32.xlu2 %v6937_v61, %s7608_s4 }
 0xae4   :  { %v1559_v11 = vpop.xlane.xlu0 %1558 }
 0xae5   :  { %v1565_v12 = vmul.f32 %v1559_v11, %v7678_v34 }
 0xae7   :  { %v1569_v37 = vadd.f32 1e-05, %v1565_v12 }
 0xae9   :  { %7233 = vrsqrt.f32 %v1569_v37  ;;  %vm1597_vm13 = vweird.f32 %v1569_v37 }
 0xaef   :  { %v7234_v45 = vpop.eup %7233 }
 0xaf0   :  { %v1592_v10 = vmul.f32 %v7234_v45, %v1569_v37  ;;  %vm1598_vm12 = vweird.f32 %v7234_v45 }
 0xaf1   :  { %vm1599_vm14 = vmor %vm1597_vm13, %vm1598_vm12 }
 0xaf2   :  { %v1593_v14 = vmul.f32 %v7234_v45, %v1592_v10 }
 0xaf4   :  { %v1594_v17 = vmul.f32 0.5, %v1593_v14  ;;  %v1562_v18 = vpop.xlane.xlu2 %1561 }
 0xaf5   :  { %v1566_v15 = vmul.f32 %v1562_v18, %v7678_v34 }
 0xaf6   :  { %v1595_v20 = vsub.f32 1.5, %v1594_v17 }
 0xaf7   :  { %v1570_v63 = vadd.f32 1e-05, %v1566_v15  ;;  %v1834_v22 = vpop.permute.xlu0 %1833 }
 0xaf8   :  { %v1596_v61 = vmul.f32 %v7234_v45, %v1595_v20  ;;  %6648 = vmatpush.xpose.msk.msrb.mxu0 %vm456_vm15, %v1834_v22 }
 0xaf9   :  { %7235 = vrsqrt.f32 %v1570_v63  ;;  %vm1607_vm5 = vweird.f32 %v1570_v63 }
 0xafa   :  { %v1600_v21 = vsel %vm1599_vm14, %v7234_v45, %v1596_v61 }
 0xafb   :  { %v1613_v23 = vmul.f32 %v1600_v21, %v1545_v62  ;;  %v7492_v62 = vld [vmem:[#allocation7 + $0x568] sm:$0xff] }
 0xafc   :  { %v6939_v24 = vpop.permute.xlu2 %6938 }
 0xafd   :  { %v6941_v25 = vunpack.i.h.bf16 %v6939_v24  ;;  %v6940_v52 = vunpack.i.l.bf16 %v6939_v24  ;;  %v1619_v29 = vmul.f32 %v8149_v16, %v1613_v23 }
 0xaff   :  { %v7236_v38 = vpop.eup %7235  ;;  %1724 = vmatpush.msra.mxu1 %v6940_v52  ;;  %v8218_v13 = vadd.f32 %v8151_v19, %v1619_v29  ;;  %v1926_v23 = vpop.permute.xlu0 %1925 }
 0xb00   :  { %v1602_v46 = vmul.f32 %v7236_v38, %v1570_v63  ;;  %vm1608_vm2 = vweird.f32 %v7236_v38 }
 0xb01   :  { %1725 = vmatpush.msra.mxu1 %v6941_v25  ;;  %v1629_v42 = vadd.f32 %v7491_v31, %v8218_v13  ;;  %vm1609_vm6 = vmor %vm1607_vm5, %vm1608_vm2 }
 0xb02   :  { %v1603_v32 = vmul.f32 %v7236_v38, %v1602_v46  ;;  %6638 = vmatmul.msk.f32.vlgmr.msra.gmra.mxu1 %vm136_vm1, %v8156_v27 }
 0xb03   :  { %6636 = vmatmul.msk.f32.gmra.mxu0 %vm136_vm1, %v1629_v42 }
 0xb04   :  { %v1604_v33 = vmul.f32 0.5, %v1603_v32 }
 0xb05   :  { %v1770_v36 = vpop.f32.mrf.mxu2 }
 0xb06   :  { %v1605_v39 = vsub.f32 1.5, %v1604_v33  ;;  %v1771_v44 = vadd.f32 %v1770_v36, %v7820_v51 }
 0xb08   :  { %v1606_v48 = vmul.f32 %v7236_v38, %v1605_v39  ;;  %v1776_v54 = vsel %vm488_vm3, %v1771_v44, -inf }
 0xb09   :  { %1777 = vmax.xlane.f32.xlu1 %v1776_v54 }
 0xb0a   :  { %v1610_v57 = vsel %vm1609_vm6, %v7236_v38, %v1606_v48  ;;  %6639 = vmatmul.msk.f32.gmra.mxu1 %vm136_vm1, %v8163_v26 }
 0xb0b   :  { %v1614_v58 = vmul.f32 %v1610_v57, %v8195_v4 }
 0xb0d   :  { %v1773_v59 = vpop.f32.mrf.mxu2  ;;  %v1620_v50 = vmul.f32 %v8149_v16, %v1614_v58 }
 0xb0e   :  { %v1774_v28 = vadd.f32 %v1773_v59, %v7820_v51 }
 0xb0f   :  { %v8232_v0 = vadd.f32 %v8151_v19, %v1620_v50 }
 0xb10   :  { %v1779_v56 = vsel %vm488_vm3, %v1774_v28, -inf }
 0xb11   :  { %1780 = vmax.xlane.f32.xlu2 %v1779_v56  ;;  %v1630_v1 = vadd.f32 %v7492_v62, %v8232_v0 }
 0xb12   :  { %6640 = vmatmul.msk.f32.gmra.mxu1 %vm136_vm1, %v8218_v13 }
 0xb13   :  { %6637 = vmatmul.msk.f32.gmra.mxu0 %vm136_vm1, %v1630_v1 }
 0xb1a   :  { %6641 = vmatmul.msk.f32.gmra.mxu1 %vm136_vm1, %v8232_v0 }
 0xb22   :  { %1827 = vrot.lane.b32.xlu1 %v8173_v40, %s7613_s11 }
 0xb29   :  { %1831 = vrot.lane.b32.xlu2 %v8173_v40, %s7611_s9 }
 0xb2a   :  { %1829 = vrot.lane.b32.xlu1 %v8181_v30, %s7613_s11 }
 0xb31   :  { %2027 = vrot.lane.b32.xlu2 %v8181_v30, %s7614_s12 }
 0xb32   :  { %1931 = vrot.lane.b32.xlu1 %v8181_v30, %s7612_s10 }
 0xb39   :  { %2025 = vrot.lane.b32.xlu2 %v8173_v40, %s7614_s12 }
 0xb3a   :  { %1929 = vrot.lane.b32.xlu1 %v8173_v40, %s7612_s10 }
 0xb41   :  { %1927 = vrot.lane.b32.xlu2 %v8181_v30, %s7616_s14 }
 0xb42   :  { %2021 = vrot.lane.b32.xlu1 %v8173_v40, %s7615_s13 }
 0xb4a   :  { %2023 = vrot.lane.b32.xlu1 %v8181_v30, %s7615_s13 }
 0xb7c   :  { %v1778_v30 = vpop.xlane.xlu1 %1777 }
 0xb7d   :  { %v1782_v11 = vsub.f32 %v1771_v44, %v1778_v30 }
 0xb7f   :  { %v1727_v16 = vpop.f32.mrf.mxu1  ;;  %v1784_v37 = vmul.f32 1.442695, %v1782_v11 }
 0xb80   :  { %v1672_v19 = vpop.f32.mrf.mxu0  ;;  %v1728_v4 = vadd.f32 %v1727_v16, %v8266_v55 }
 0xb81   :  { %v8262_v2 = vadd.f32 %v8170_v53, %v1672_v19  ;;  %7237 = vpow2.f32 %v1784_v37 }
 0xb83   :  { %2239 = vrot.lane.b32.xlu0 %v8262_v2, %s7611_s9 }
 0xb84   :  { %v1781_v3 = vpop.xlane.xlu2 %1780 }
 0xb85   :  { %v1783_v45 = vsub.f32 %v1774_v28, %v1781_v3 }
 0xb87   :  { %v1730_v43 = vpop.f32.mrf.mxu1  ;;  %v1786_v14 = vmul.f32 1.442695, %v1783_v45  ;;  %v7238_v17 = vpop.eup %7237 }
 0xb88   :  { %v1731_v60 = vadd.f32 %v1730_v43, %v8266_v55  ;;  %v1788_v15 = vsel %vm488_vm3, %v7238_v17, 0.0 }
 0xb89   :  { %7239 = vpow2.f32 %v1786_v14 }
 0xb8a   :  { %1818 = vmatpush.msra.mxu3 %v1731_v60  ;;  %v8270_v40 = vpack.i.bf16 %v1728_v4, %v1731_v60 }
 0xb8c   :  { %v1832_v35 = vpop.permute.xlu2 %1831  ;;  %1819 = vmatpush.msra.mxu3 %v1728_v4 }
 0xb8d   :  { %6649 = vmatpush.xpose.msk.msrb.mxu0 %vm456_vm15, %v1832_v35 }
 0xb8f   :  { %v7240_v20 = vpop.eup %7239  ;;  %v8321_v48 = vpop.f32.mrf.mxu1 }
 0xb90   :  { %v1675_v8 = vpop.f32.mrf.mxu0  ;;  %v1791_v22 = vsel %vm488_vm3, %v7240_v20, 0.0 }
 0xb91   :  { %v8274_v6 = vadd.f32 %v8170_v53, %v1675_v8 }
 0xb93   :  { %2241 = vrot.lane.b32.xlu1 %v8274_v6, %s7611_s9  ;;  %2151 = vrot.lane.b32.xlu2 %v8274_v6, %s7610_s8 }
 0xb94   :  { %v1828_v7 = vpop.permute.xlu1 %1827  ;;  %v2028_v9 = vpop.permute.xlu2 %2027 }
 0xb95   :  { %6650 = vmatmul.msk.f32.vlgmr.msrb.gmra.mxu0 %vm456_vm15, %v1828_v7  ;;  %6660 = vmatpush.xpose.msk.msrb.mxu1 %vm456_vm15, %v2028_v9 }
 0xb97   :  { %v8323_v50 = vpop.f32.mrf.mxu1 }
 0xb9b   :  { %2235 = vrot.lane.b32.xlu1 %v8262_v2, %s7613_s11  ;;  %2149 = vrot.lane.b32.xlu2 %v8262_v2, %s7610_s8 }
 0xb9c   :  { %v1830_v53 = vpop.permute.xlu1 %1829  ;;  %v2026_v12 = vpop.permute.xlu2 %2025 }
 0xb9d   :  { %6651 = vmatmul.msk.f32.gmra.mxu0 %vm456_vm15, %v1830_v53  ;;  %6661 = vmatpush.xpose.msk.msrb.mxu1 %vm456_vm15, %v2026_v12 }
 0xba3   :  { %2435 = vrot.lane.b32.xlu1 %v8274_v6, %s7614_s12  ;;  %2237 = vrot.lane.b32.xlu2 %v8274_v6, %s7613_s11 }
 0xba4   :  { %v1932_v10 = vpop.permute.xlu1 %1931  ;;  %v1928_v21 = vpop.permute.xlu2 %1927 }
 0xba5   :  { %6654 = vmatpush.xpose.msk.msrb.mxu3 %vm456_vm15, %v1932_v10 }
 0xbab   :  { %2333 = vrot.lane.b32.xlu1 %v8262_v2, %s7616_s14  ;;  %2337 = vrot.lane.b32.xlu2 %v8262_v2, %s7612_s10 }
 0xbac   :  { %v1930_v18 = vpop.permute.xlu1 %1929 }
 0xbad   :  { %1789 = vadd.xlane.f32.xlu0 %v1788_v15  ;;  %6655 = vmatpush.xpose.msk.msrb.mxu3 %vm456_vm15, %v1930_v18 }
 0xbb3   :  { %2431 = vrot.lane.b32.xlu1 %v8274_v6, %s7615_s13  ;;  %2429 = vrot.lane.b32.xlu2 %v8262_v2, %s7615_s13 }
 0xbb4   :  { %v2022_v63 = vpop.permute.xlu1 %2021 }
 0xbb5   :  { %1792 = vadd.xlane.f32.xlu0 %v1791_v22  ;;  %6662 = vmatmul.msk.f32.vlgmr.msrb.gmra.mxu1 %vm456_vm15, %v2022_v63 }
 0xbbc   :  { %v2024_v61 = vpop.permute.xlu1 %2023 }
 0xbbd   :  { %6663 = vmatmul.msk.f32.gmra.mxu1 %vm456_vm15, %v2024_v61 }
 0xbc9   :  { %2339 = vrot.lane.b32.xlu0 %v8274_v6, %s7612_s10 }
 0xbd1   :  { %2433 = vrot.lane.b32.xlu0 %v8262_v2, %s7614_s12 }
 0xbd9   :  { %2335 = vrot.lane.b32.xlu0 %v8274_v6, %s7616_s14 }
 0xbed   :  { %v2152_v24 = vpop.permute.xlu2 %2151 }
 0xbf5   :  { %v2240_v52 = vpop.permute.xlu0 %2239  ;;  %v2150_v29 = vpop.permute.xlu2 %2149 }
 0xbfd   :  { %v2238_v42 = vpop.permute.xlu2 %2237 }
 0xc05   :  { %v2242_v25 = vpop.permute.xlu1 %2241  ;;  %v2338_v4 = vpop.permute.xlu2 %2337 }
 0xc06   :  { %6672 = vmatpush.xpose.msk.msra.mxu1 %vm456_vm15, %v2242_v25 }
 0xc0a   :  { %6673 = vmatpush.xpose.msk.msra.mxu1 %vm456_vm15, %v2240_v52 }
 0xc0d   :  { %v2236_v38 = vpop.permute.xlu1 %2235  ;;  %v2430_v8 = vpop.permute.xlu2 %2429 }
 0xc0e   :  { %6674 = vmatmul.msk.f32.vlgmr.msra.gmra.mxu1 %vm456_vm15, %v2236_v38 }
 0xc12   :  { %v1860_v46 = vpop.f32.mrf.mxu0 }
 0xc13   :  { %v1861_v31 = vadd.f32 %v1860_v46, %v7820_v51 }
 0xc15   :  { %v2436_v32 = vpop.permute.xlu1 %2435  ;;  %v1866_v33 = vsel %vm488_vm3, %v1861_v31, -inf }
 0xc16   :  { %1867 = vmax.xlane.f32.xlu2 %v1866_v33  ;;  %6675 = vmatmul.msk.f32.gmra.mxu1 %vm456_vm15, %v2238_v42 }
 0xc17   :  { %6684 = vmatpush.xpose.msk.msrb.mxu1 %vm456_vm15, %v2436_v32 }
 0xc1a   :  { %v1863_v36 = vpop.f32.mrf.mxu0 }
 0xc1b   :  { %v1864_v39 = vadd.f32 %v1863_v36, %v7820_v51 }
 0xc1d   :  { %v1869_v44 = vsel %vm488_vm3, %v1864_v39, -inf  ;;  %v2334_v35 = vpop.permute.xlu1 %2333 }
 0xc1e   :  { %1870 = vmax.xlane.f32.xlu0 %v1869_v44 }
 0xc20   :  { %v1790_v54 = vpop.xlane.xlu0 %1789 }
 0xc21   :  { %7241 = vrcp.f32 %v1790_v54 }
 0xc25   :  { %v2432_v7 = vpop.permute.xlu1 %2431 }
 0xc27   :  { %v7242_v57 = vpop.eup %7241 }
 0xc28   :  { %v1796_v58 = vmul.f32 %v7242_v57, %v7238_v17  ;;  %v1793_v59 = vpop.xlane.xlu0 %1792 }
 0xc29   :  { %7243 = vrcp.f32 %v1793_v59 }
 0xc2a   :  { %6646 = vmatmul.msk.f32.vlgmr.msra.gmra.mxu3 %vm488_vm3, %v1796_v58 }
 0xc2b   :  { %6666 = vmatpush.xpose.msk.msra.mxu3 %vm456_vm15, %v2152_v24 }
 0xc2f   :  { %v7244_v28 = vpop.eup %7243  ;;  %6667 = vmatpush.xpose.msk.msra.mxu3 %vm456_vm15, %v2150_v29 }
 0xc30   :  { %v1797_v56 = vmul.f32 %v7244_v28, %v7240_v20 }
 0xc32   :  { %6647 = vmatmul.msk.f32.gmra.mxu3 %vm488_vm3, %v1797_v56  ;;  %v2054_v62 = vpop.f32.mrf.mxu1 }
 0xc33   :  { %v2055_v1 = vadd.f32 %v2054_v62, %v7820_v51 }
 0xc35   :  { %v2060_v16 = vsel %vm488_vm3, %v2055_v1, -inf }
 0xc36   :  { %2061 = vmax.xlane.f32.xlu1 %v2060_v16 }
 0xc3a   :  { %6656 = vmatmul.msk.f32.vlgmr.msrb.gmra.mxu3 %vm456_vm15, %v1926_v23  ;;  %v2057_v19 = vpop.f32.mrf.mxu1 }
 0xc3b   :  { %v2058_v3 = vadd.f32 %v2057_v19, %v7820_v51  ;;  %v2340_v43 = vpop.permute.xlu0 %2339 }
 0xc3c   :  { %6678 = vmatpush.xpose.msk.msrb.mxu3 %vm456_vm15, %v2340_v43 }
 0xc3d   :  { %v2063_v60 = vsel %vm488_vm3, %v2058_v3, -inf }
 0xc3e   :  { %2064 = vmax.xlane.f32.xlu0 %v2063_v60 }
 0xc40   :  { %6679 = vmatpush.xpose.msk.msrb.mxu3 %vm456_vm15, %v2338_v4 }
 0xc42   :  { %6657 = vmatmul.msk.f32.gmra.mxu3 %vm456_vm15, %v1928_v21 }
 0xc43   :  { %v2434_v30 = vpop.permute.xlu0 %2433 }
 0xc44   :  { %6685 = vmatpush.xpose.msk.msrb.mxu1 %vm456_vm15, %v2434_v30 }
 0xc47   :  { %6686 = vmatmul.msk.f32.vlgmr.msrb.gmra.mxu1 %vm456_vm15, %v2430_v8 }
 0xc4a   :  { %6668 = vmatmul.msk.f32.vlgmr.msra.gmra.mxu3 %vm456_vm15, %v8262_v2 }
 0xc4b   :  { %v2336_v9 = vpop.permute.xlu0 %2335 }
 0xc4f   :  { %6687 = vmatmul.msk.f32.gmra.mxu1 %vm456_vm15, %v2432_v7 }
 0xc52   :  { %6669 = vmatmul.msk.f32.gmra.mxu3 %vm456_vm15, %v8274_v6 }
 0xc5a   :  { %6680 = vmatmul.msk.f32.vlgmr.msrb.gmra.mxu3 %vm456_vm15, %v2334_v35 }
 0xc62   :  { %6681 = vmatmul.msk.f32.gmra.mxu3 %vm456_vm15, %v2336_v9 }
 0xc89   :  { %v1868_v11 = vpop.xlane.xlu2 %1867 }
 0xc8a   :  { %v1872_v37 = vsub.f32 %v1861_v31, %v1868_v11 }
 0xc8b   :  { %v2268_v53 = vpop.f32.mrf.mxu1 }
 0xc8c   :  { %v8347_v12 = vadd.f32 %v2268_v53, %v7935_v5  ;;  %v1874_v45 = vmul.f32 1.442695, %v1872_v37 }
 0xc8e   :  { %v2274_v2 = vsel %vm488_vm3, %v8347_v12, -inf  ;;  %7245 = vpow2.f32 %v1874_v45 }
 0xc8f   :  { %2275 = vmax.xlane.f32.xlu2 %v2274_v2 }
 0xc91   :  { %v1871_v10 = vpop.xlane.xlu0 %1870 }
 0xc92   :  { %v1873_v14 = vsub.f32 %v1864_v39, %v1871_v10 }
 0xc93   :  { %v2271_v17 = vpop.f32.mrf.mxu1 }
 0xc94   :  { %v1876_v6 = vmul.f32 1.442695, %v1873_v14  ;;  %v2272_v18 = vadd.f32 %v2271_v17, %v7935_v5  ;;  %v8353_v20 = vpop.eup %7245  ;;  %v8421_v17 = vadd.f32 %v8323_v50, %v8266_v55 }
 0xc95   :  { %v1878_v61 = vsel %vm488_vm3, %v8353_v20, 0.0 }
 0xc96   :  { %7247 = vpow2.f32 %v1876_v6  ;;  %v2277_v15 = vsel %vm488_vm3, %v2272_v18, -inf }
 0xc97   :  { %2278 = vmax.xlane.f32.xlu1 %v2277_v15 }
 0xc9c   :  { %v8355_v63 = vpop.eup %7247 }
 0xc9d   :  { %v1881_v22 = vsel %vm488_vm3, %v8355_v63, 0.0 }
 0xc9e   :  { %1882 = vadd.xlane.f32.xlu2 %v1881_v22 }
 0xc9f   :  { %1879 = vadd.xlane.f32.xlu1 %v1878_v61 }
 0xca9   :  { %v2062_v21 = vpop.xlane.xlu1 %2061 }
 0xcaa   :  { %v2066_v23 = vsub.f32 %v2055_v1, %v2062_v21 }
 0xcac   :  { %v2068_v24 = vmul.f32 1.442695, %v2066_v23 }
 0xcad   :  { %v8361_v25 = vpop.f32.mrf.mxu3 }
 0xcae   :  { %7249 = vpow2.f32 %v2068_v24 }
 0xcb1   :  { %v2065_v46 = vpop.xlane.xlu0 %2064 }
 0xcb2   :  { %v2067_v33 = vsub.f32 %v2058_v3, %v2065_v46 }
 0xcb4   :  { %v8363_v52 = vpop.eup %7249  ;;  %v2070_v39 = vmul.f32 1.442695, %v2067_v33 }
 0xcb5   :  { %v2072_v29 = vsel %vm488_vm3, %v8363_v52, 0.0  ;;  %v8369_v38 = vpop.f32.mrf.mxu3 }
 0xcb6   :  { %2073 = vadd.xlane.f32.xlu2 %v2072_v29  ;;  %7251 = vpow2.f32 %v2070_v39 }
 0xcb8   :  { %6943 = vrot.lane.b32.xlu1 %v8270_v40, %s7613_s11 }
 0xcbc   :  { %v8383_v59 = vpop.eup %7251 }
 0xcbd   :  { %v1958_v31 = vpop.f32.mrf.mxu3  ;;  %v2075_v28 = vsel %vm488_vm3, %v8383_v59, 0.0 }
 0xcbe   :  { %v8398_v3 = vadd.f32 %v1958_v31, %v7820_v51 }
 0xcc0   :  { %v1964_v4 = vsel %vm488_vm3, %v8398_v3, -inf }
 0xcc4   :  { %v2462_v42 = vpop.f32.mrf.mxu1 }
 0xcc5   :  { %v8372_v32 = vadd.f32 %v2462_v42, %v7935_v5  ;;  %v1961_v57 = vpop.f32.mrf.mxu3 }
 0xcc6   :  { %v8391_v1 = vadd.f32 %v1961_v57, %v7820_v51 }
 0xcc7   :  { %v2468_v36 = vsel %vm488_vm3, %v8372_v32, -inf }
 0xcc8   :  { %2469 = vmax.xlane.f32.xlu0 %v2468_v36  ;;  %v1967_v19 = vsel %vm488_vm3, %v8391_v1, -inf }
 0xccc   :  { %v2465_v44 = vpop.f32.mrf.mxu1 }
 0xccd   :  { %v8377_v54 = vadd.f32 %v2465_v44, %v7935_v5  ;;  %v2178_v56 = vpop.f32.mrf.mxu3 }
 0xcce   :  { %6948 = vrot.lane.b32.xlu2 %v8270_v40, %s7615_s13  ;;  %v8388_v62 = vadd.f32 %v2178_v56, %v7935_v5 }
 0xccf   :  { %v2471_v58 = vsel %vm488_vm3, %v8377_v54, -inf }
 0xcd0   :  { %2472 = vmax.xlane.f32.xlu0 %v2471_v58  ;;  %v2184_v16 = vsel %vm488_vm3, %v8388_v62, -inf }
 0xcd5   :  { %v2181_v43 = vpop.f32.mrf.mxu3 }
 0xcd6   :  { %v8403_v60 = vadd.f32 %v2181_v43, %v7935_v5 }
 0xcd8   :  { %2076 = vadd.xlane.f32.xlu0 %v2075_v28  ;;  %v2187_v30 = vsel %vm488_vm3, %v8403_v60, -inf }
 0xcdd   :  { %v2366_v35 = vpop.f32.mrf.mxu3 }
 0xcde   :  { %v8410_v8 = vadd.f32 %v2366_v35, %v7935_v5 }
 0xce0   :  { %2185 = vmax.xlane.f32.xlu0 %v2184_v16  ;;  %v2372_v7 = vsel %vm488_vm3, %v8410_v8, -inf }
 0xce2   :  { %1968 = vmax.xlane.f32.xlu1 %v1967_v19 }
 0xce5   :  { %v2369_v10 = vpop.f32.mrf.mxu3 }
 0xce6   :  { %v8424_v6 = vadd.f32 %v2369_v10, %v7935_v5 }
 0xce8   :  { %v2375_v15 = vsel %vm488_vm3, %v8424_v6, -inf }
 0xcf7   :  { %1965 = vmax.xlane.f32.xlu2 %v1964_v4 }
 0xcfb   :  { %6953 = vrot.lane.b32.xlu1 %v8270_v40, %s7616_s14 }
 0xcff   :  { %2188 = vmax.xlane.f32.xlu2 %v2187_v30 }
 0xd02   :  { %v2276_v37 = vpop.xlane.xlu2 %2275 }
 0xd03   :  { %v2280_v2 = vsub.f32 %v8347_v12, %v2276_v37 }
 0xd05   :  { %v2282_v14 = vmul.f32 1.442695, %v2280_v2 }
 0xd07   :  { %2373 = vmax.xlane.f32.xlu2 %v2372_v7 }
 0xd0a   :  { %v2279_v9 = vpop.xlane.xlu1 %2278 }
 0xd0b   :  { %v2281_v11 = vsub.f32 %v2272_v18, %v2279_v9  ;;  %v8428_v18 = vadd.f32 %v8321_v48, %v8266_v55 }
 0xd0d   :  { %v2284_v53 = vmul.f32 1.442695, %v2281_v11  ;;  %v8432_v12 = vpack.i.bf16 %v8428_v18, %v8421_v17 }
 0xd0f   :  { %7253 = vpow2.f32 %v2284_v53 }
 0xd10   :  { %7255 = vpow2.f32 %v2282_v14 }
 0xd11   :  { %v1883_v22 = vpop.xlane.xlu2 %1882 }
 0xd12   :  { %v1880_v61 = vpop.xlane.xlu1 %1879 }
 0xd13   :  { %7257 = vrcp.f32 %v1880_v61 }
 0xd14   :  { %7259 = vrcp.f32 %v1883_v22 }
 0xd15   :  { %v8415_v40 = vpop.eup %7253 }
 0xd16   :  { %v2289_v45 = vsel %vm488_vm3, %v8415_v40, 0.0  ;;  %v8438_v50 = vpop.eup %7255 }
 0xd17   :  { %2290 = vadd.xlane.f32.xlu0 %v2289_v45  ;;  %v2286_v55 = vsel %vm488_vm3, %v8438_v50, 0.0 }
 0xd19   :  { %v7258_v23 = vpop.eup %7257 }
 0xd1a   :  { %v1886_v46 = vmul.f32 %v7258_v23, %v8353_v20  ;;  %v7260_v33 = vpop.eup %7259 }
 0xd1b   :  { %v1887_v39 = vmul.f32 %v7260_v33, %v8355_v63 }
 0xd1f   :  { %2376 = vmax.xlane.f32.xlu0 %v2375_v15  ;;  %6958 = vrot.lane.b32.xlu2 %v8432_v12, %s7613_s11 }
 0xd25   :  { %2287 = vadd.xlane.f32.xlu1 %v2286_v55  ;;  %v8472_v55 = vld [vmem:[#allocation7 + $0x88] ss:$0 sm:$0xff] }
 0xd29   :  { %v2074_v48 = vpop.xlane.xlu2 %2073 }
 0xd2a   :  { %v6944_v21 = vpop.permute.xlu1 %6943  ;;  %7261 = vrcp.f32 %v2074_v48 }
 0xd2b   :  { %v6945_v24 = vunpack.i.l.bf16 %v6944_v21  ;;  %v6946_v29 = vunpack.i.h.bf16 %v6944_v21  ;;  %v8480_v21 = vadd.f32 %v8472_v55, %v7806_v41 }
 0xd2d   :  { %1916 = vmatpush.msrb.mxu2 %v6945_v24 }
 0xd2f   :  { %1917 = vmatpush.msrb.mxu2 %v6946_v29 }
 0xd30   :  { %6652 = vmatmul.msk.f32.vlgmr.msrb.gmra.mxu2 %vm488_vm3, %v1886_v46  ;;  %v7262_v44 = vpop.eup %7261 }
 0xd31   :  { %v6949_v31 = vpop.permute.xlu2 %6948  ;;  %v2080_v58 = vmul.f32 %v7262_v44, %v8363_v52 }
 0xd32   :  { %v6950_v42 = vunpack.i.l.bf16 %v6949_v31  ;;  %v6951_v36 = vunpack.i.h.bf16 %v6949_v31  ;;  %v285_v31 = vsel %vm136_vm1, %v8480_v21, 0.0 }
 0xd34   :  { %2108 = vmatpush.msra.mxu2 %v6950_v42 }
 0xd36   :  { %2109 = vmatpush.msra.mxu2 %v6951_v36 }
 0xd38   :  { %6653 = vmatmul.msk.f32.gmra.mxu2 %vm488_vm3, %v1887_v39 }
 0xd3b   :  { %v2470_v57 = vpop.xlane.xlu0 %2469 }
 0xd40   :  { %6664 = vmatmul.msk.f32.vlgmr.msra.gmra.mxu2 %vm488_vm3, %v2080_v58 }
 0xd43   :  { %v2473_v20 = vpop.xlane.xlu0 %2472 }
 0xd44   :  { %v2475_v28 = vsub.f32 %v8377_v54, %v2473_v20 }
 0xd46   :  { %v2478_v56 = vmul.f32 1.442695, %v2475_v28 }
 0xd48   :  { %7263 = vpow2.f32 %v2478_v56 }
 0xd4b   :  { %v2077_v16 = vpop.xlane.xlu0 %2076 }
 0xd4c   :  { %7265 = vrcp.f32 %v2077_v16 }
 0xd4e   :  { %v8449_v19 = vpop.eup %7263 }
 0xd4f   :  { %v2483_v63 = vsel %vm488_vm3, %v8449_v19, 0.0 }
 0xd50   :  { %2484 = vadd.xlane.f32.xlu1 %v2483_v63 }
 0xd52   :  { %v7266_v43 = vpop.eup %7265 }
 0xd53   :  { %v2081_v4 = vmul.f32 %v7266_v43, %v8383_v59  ;;  %v2186_v2 = vpop.xlane.xlu0 %2185 }
 0xd55   :  { %6665 = vmatmul.msk.f32.gmra.mxu2 %vm488_vm3, %v2081_v4  ;;  %v1969_v52 = vpop.xlane.xlu1 %1968 }
 0xd56   :  { %v1971_v35 = vsub.f32 %v8391_v1, %v1969_v52 }
 0xd58   :  { %v1974_v37 = vmul.f32 1.442695, %v1971_v35 }
 0xd69   :  { %6968 = vrot.lane.b32.xlu1 %v8432_v12, %s7616_s14 }
 0xd6a   :  { %v1966_v54 = vpop.xlane.xlu2 %1965 }
 0xd6b   :  { %v1970_v30 = vsub.f32 %v8398_v3, %v1966_v54  ;;  %v2190_v3 = vsub.f32 %v8388_v62, %v2186_v2 }
 0xd6d   :  { %v1972_v7 = vmul.f32 1.442695, %v1970_v30  ;;  %v6954_v9 = vpop.permute.xlu1 %6953  ;;  %v2192_v15 = vmul.f32 1.442695, %v2190_v3 }
 0xd6e   :  { %v6955_v11 = vunpack.i.l.bf16 %v6954_v9  ;;  %v6956_v53 = vunpack.i.h.bf16 %v6954_v9 }
 0xd6f   :  { %7267 = vpow2.f32 %v1972_v7 }
 0xd70   :  { %2012 = vmatpush.msra.mxu0 %v6955_v11  ;;  %7269 = vpow2.f32 %v1974_v37 }
 0xd72   :  { %2013 = vmatpush.msra.mxu0 %v6956_v53  ;;  %v2189_v59 = vpop.xlane.xlu2 %2188 }
 0xd73   :  { %v2191_v45 = vsub.f32 %v8403_v60, %v2189_v59 }
 0xd74   :  { %2226 = vmatpush.msrb.mxu0 %v8421_v17  ;;  %v2474_v17 = vsub.f32 %v8372_v32, %v2470_v57 }
 0xd75   :  { %v8461_v10 = vpop.eup %7267  ;;  %v2194_v1 = vmul.f32 1.442695, %v2191_v45 }
 0xd76   :  { %2227 = vmatpush.msrb.mxu0 %v8428_v18  ;;  %v1976_v14 = vsel %vm488_vm3, %v8461_v10, 0.0  ;;  %v8467_v61 = vpop.eup %7269  ;;  %v2476_v48 = vmul.f32 1.442695, %v2474_v17 }
 0xd77   :  { %7271 = vpow2.f32 %v2194_v1  ;;  %1977 = vadd.xlane.f32.xlu0 %v1976_v14  ;;  %v1979_v62 = vsel %vm488_vm3, %v8467_v61, 0.0 }
 0xd78   :  { %7273 = vpow2.f32 %v2192_v15 }
 0xd79   :  { %7275 = vpow2.f32 %v2476_v48 }
 0xd7a   :  { %v2374_v22 = vpop.xlane.xlu2 %2373 }
 0xd7b   :  { %v2378_v28 = vsub.f32 %v8410_v8, %v2374_v22 }
 0xd7d   :  { %v8469_v60 = vpop.eup %7271  ;;  %v2380_v16 = vmul.f32 1.442695, %v2378_v28 }
 0xd7e   :  { %v2199_v18 = vsel %vm488_vm3, %v8469_v60, 0.0  ;;  %v8482_v24 = vpop.eup %7273 }
 0xd7f   :  { %1980 = vadd.xlane.f32.xlu0 %v1979_v62  ;;  %2200 = vadd.xlane.f32.xlu2 %v2199_v18  ;;  %v2196_v46 = vsel %vm488_vm3, %v8482_v24, 0.0  ;;  %v8488_v42 = vpop.eup %7275 }
 0xd80   :  { %v2480_v41 = vsel %vm488_vm3, %v8488_v42, 0.0 }
 0xd82   :  { %v6959_v23 = vpop.permute.xlu2 %6958 }
 0xd83   :  { %v6960_v32 = vunpack.i.l.bf16 %v6959_v23  ;;  %v6961_v29 = vunpack.i.h.bf16 %v6959_v23 }
 0xd85   :  { %2324 = vmatpush.msrb.mxu2 %v6960_v32 }
 0xd87   :  { %2197 = vadd.xlane.f32.xlu0 %v2196_v46  ;;  %286 = vadd.xlane.f32.xlu2 %v285_v31 }
 0xd88   :  { %2325 = vmatpush.msrb.mxu2 %v6961_v29 }
 0xd8a   :  { %v2291_v36 = vpop.xlane.xlu0 %2290 }
 0xd8f   :  { %2481 = vadd.xlane.f32.xlu0 %v2480_v41 }
 0xd92   :  { %v2377_v63 = vpop.xlane.xlu0 %2376 }
 0xd93   :  { %v2379_v43 = vsub.f32 %v8424_v6, %v2377_v63 }
 0xd95   :  { %v2382_v4 = vmul.f32 1.442695, %v2379_v43 }
 0xd98   :  { %v2288_v33 = vpop.xlane.xlu1 %2287 }
 0xd99   :  { %7277 = vrcp.f32 %v2288_v33 }
 0xd9a   :  { %7279 = vrcp.f32 %v2291_v36 }
 0xd9b   :  { %7281 = vpow2.f32 %v2380_v16 }
 0xd9c   :  { %7283 = vpow2.f32 %v2382_v4 }
 0xd9f   :  { %v7278_v39 = vpop.eup %7277 }
 0xda0   :  { %v2294_v44 = vmul.f32 %v7278_v39, %v8438_v50  ;;  %v7280_v57 = vpop.eup %7279 }
 0xda1   :  { %v2295_v58 = vmul.f32 %v7280_v57, %v8415_v40  ;;  %v7282_v52 = vpop.eup %7281  ;;  %v8532_v57 = vld [vmem:[#allocation7 + $0x138] sm:$0xff] }
 0xda2   :  { %6676 = vmatmul.msk.f32.vlgmr.msrb.gmra.mxu2 %vm488_vm3, %v2294_v44  ;;  %v2384_v40 = vsel %vm488_vm3, %v7282_v52, 0.0  ;;  %v8527_v44 = vld [vmem:[#allocation7 + $0x148] sm:$0xff] }
 0xda3   :  { %6963 = vrot.lane.b32.xlu0 %v8432_v12, %s7615_s13  ;;  %v7284_v12 = vpop.eup %7283 }
 0xda4   :  { %v2387_v8 = vsel %vm488_vm3, %v7284_v12, 0.0 }
 0xdaa   :  { %6677 = vmatmul.msk.f32.gmra.mxu2 %vm488_vm3, %v2295_v58  ;;  %v8534_v58 = vld [vmem:[#allocation7 + $0x130] sm:$0xff] }
 0xdb3   :  { %v1919_v20 = vpop.f32.mrf.mxu2 }
 0xdbb   :  { %v1922_v56 = vpop.f32.mrf.mxu2 }
 0xdc3   :  { %v2111_v50 = vpop.f32.mrf.mxu2  ;;  %v2485_v54 = vpop.xlane.xlu1 %2484 }
 0xdc4   :  { %2135 = vrot.lane.b32.xlu1 %v2111_v50, %s7619_s17 }
 0xdcc   :  { %2121 = vrot.lane.b32.xlu1 %v1922_v56, %s7605_s27  ;;  %v6977_v56 = vpack.i.bf16 %v8534_v58, %v8532_v57 }
 0xdcd   :  { %2385 = vadd.xlane.f32.xlu0 %v2384_v40 }
 0xdd5   :  { %2388 = vadd.xlane.f32.xlu0 %v2387_v8 }
 0xdd8   :  { %v2114_v46 = vpop.f32.mrf.mxu2 }
 0xddb   :  { %v6969_v35 = vpop.permute.xlu1 %6968 }
 0xddc   :  { %v6970_v53 = vunpack.i.l.bf16 %v6969_v35  ;;  %v6971_v37 = vunpack.i.h.bf16 %v6969_v35  ;;  %v8547_v35 = vld [vmem:[#allocation7 + $0x440] ss:$0 sm:$0xff] }
 0xdea   :  { %v1978_v30 = vpop.xlane.xlu0 %1977 }
 0xdeb   :  { %7285 = vrcp.f32 %v1978_v30 }
 0xdf1   :  { %v7286_v6 = vpop.eup %7285 }
 0xdf2   :  { %v1984_v7 = vmul.f32 %v7286_v6, %v8461_v10  ;;  %v1981_v9 = vpop.xlane.xlu0 %1980  ;;  %v2201_v11 = vpop.xlane.xlu2 %2200 }
 0xdf3   :  { %7287 = vrcp.f32 %v1981_v9 }
 0xdf4   :  { %6658 = vmatmul.msk.f32.vlgmr.msra.gmra.mxu0 %vm488_vm3, %v1984_v7  ;;  %v8549_v7 = vld [vmem:[#allocation7 + $0x448] ss:$0 sm:$0xff] }
 0xdf5   :  { %2420 = vmatpush.msra.mxu0 %v6970_v53  ;;  %v78_v53 = vld [vmem:[#allocation7 + $0x570] sm:$0xff] }
 0xdf7   :  { %2421 = vmatpush.msra.mxu0 %v6971_v37 }
 0xdf9   :  { %v7288_v2 = vpop.eup %7287 }
 0xdfa   :  { %v2198_v59 = vpop.xlane.xlu0 %2197  ;;  %v287_v45 = vpop.xlane.xlu2 %286  ;;  %v1985_v3 = vmul.f32 %v7288_v2, %v8467_v61 }
 0xdfb   :  { %7289 = vrcp.f32 %v2198_v59  ;;  %v291_v1 = vmul.f32 %v287_v45, %v7678_v34 }
 0xdfc   :  { %6659 = vmatmul.msk.f32.gmra.mxu0 %vm488_vm3, %v1985_v3  ;;  %7291 = vrcp.f32 %v2201_v11 }
 0xdfd   :  { %v8510_v10 = vsub.f32 %v8480_v21, %v291_v1  ;;  %v2558_v1 = vld [vmem:[#allocation7 + $0x120] sm:$0xff] }
 0xdfe   :  { %2585 = vmatpush.msra.mxu3 %v2558_v1 }
 0xdff   :  { %v295_v14 = vmul.f32 %v8510_v10, %v8510_v10 }
 0xe01   :  { %v7290_v15 = vpop.eup %7289  ;;  %v297_v22 = vsel %vm136_vm1, %v295_v14, 0.0  ;;  %v2557_v14 = vld [vmem:[#allocation7 + $0x118] sm:$0xff] }
 0xe02   :  { %v2204_v17 = vmul.f32 %v7290_v15, %v8482_v24  ;;  %298 = vadd.xlane.f32.xlu2 %v297_v22  ;;  %v7292_v61 = vpop.eup %7291  ;;  %v2482_v18 = vpop.xlane.xlu0 %2481  ;;  %2586 = vmatpush.msra.mxu3 %v2557_v14 }
 0xe03   :  { %v2205_v62 = vmul.f32 %v7292_v61, %v8469_v60  ;;  %7293 = vrcp.f32 %v2482_v18 }
 0xe04   :  { %6670 = vmatmul.msk.f32.vlgmr.msrb.gmra.mxu0 %vm488_vm3, %v2204_v17  ;;  %7295 = vrcp.f32 %v2485_v54  ;;  %v2555_v17 = vld [vmem:[#allocation7 + $0x108] sm:$0xff] }
 0xe09   :  { %v7294_v21 = vpop.eup %7293 }
 0xe0a   :  { %v2488_v29 = vmul.f32 %v7294_v21, %v8488_v42  ;;  %v7296_v24 = vpop.eup %7295 }
 0xe0b   :  { %v2489_v60 = vmul.f32 %v7296_v24, %v8449_v19  ;;  %v8530_v19 = vld [vmem:[#allocation7 + $0x140] sm:$0xff] }
 0xe0c   :  { %6671 = vmatmul.msk.f32.gmra.mxu0 %vm488_vm3, %v2205_v62  ;;  %v6972_v28 = vpack.i.bf16 %v8530_v19, %v8527_v44 }
 0xe15   :  { %v6964_v48 = vpop.permute.xlu0 %6963 }
 0xe16   :  { %v6965_v23 = vunpack.i.l.bf16 %v6964_v48  ;;  %v6966_v32 = vunpack.i.h.bf16 %v6964_v48 }
 0xe18   :  { %2516 = vmatpush.msra.mxu2 %v6965_v23 }
 0xe1a   :  { %2119 = vrot.lane.b32.xlu2 %v1919_v20, %s7605_s27  ;;  %2517 = vmatpush.msra.mxu2 %v6966_v32 }
 0xe1b   :  { %6688 = vmatmul.msk.f32.vlgmr.msra.gmra.mxu2 %vm488_vm3, %v2488_v29 }
 0xe1c   :  { %2942 = vmatpush.msrb.mxu2 %v8527_v44 }
 0xe1e   :  { %2943 = vmatpush.msrb.mxu2 %v8530_v19 }
 0xe20   :  { %2944 = vmatpush.msrb.mxu2 %v8532_v57  ;;  %v71_v57 = vld [vmem:[%s9562_s3] sm:$0x3]  ;;  %s7620_s3 = smov [#allocation8]  }
 0xe21   :  { %vm72_vm10 = vcmp.gt.f32.partialorder %v71_v57, 0.5  ;;  %s6544_s20 = sshll.u32 %s7620_s3, 4  ;;  %s6545_s20 = int_to_ptr.vmem [resolvable:$true] %s6544_s20 }
 0xe22   :  { %2137 = vrot.lane.b32.xlu2 %v2114_v46, %s7619_s17  ;;  %2945 = vmatpush.msrb.mxu2 %v8534_v58 }
 0xe23   :  { %6689 = vmatmul.msk.f32.gmra.mxu2 %vm488_vm3, %v2489_v60 }
 0xe25   :  { %v2327_v50 = vpop.f32.mrf.mxu2 }
 0xe2d   :  { %v2330_v59 = vpop.f32.mrf.mxu2 }
 0xe36   :  { %v2136_v18 = vpop.permute.xlu1 %2135 }
 0xe3e   :  { %v2122_v48 = vpop.permute.xlu1 %2121 }
 0xe3f   :  { %v2142_v46 = vsel %vm456_vm15, %v8369_v38, %v2122_v48 }
 0xe40   :  { %v2386_v31 = vpop.xlane.xlu0 %2385 }
 0xe41   :  { %7297 = vrcp.f32 %v2386_v31 }
 0xe47   :  { %v7298_v41 = vpop.eup %7297 }
 0xe48   :  { %v2392_v33 = vmul.f32 %v7298_v41, %v7282_v52  ;;  %v2389_v36 = vpop.xlane.xlu0 %2388 }
 0xe49   :  { %7299 = vrcp.f32 %v2389_v36  ;;  %v8573_v36 = vld [vmem:[#allocation7 + $0x150] ss:$0 sm:$0xff] }
 0xe4a   :  { %6682 = vmatmul.msk.f32.vlgmr.msra.gmra.mxu0 %vm488_vm3, %v2392_v33 }
 0xe4f   :  { %v7300_v42 = vpop.eup %7299 }
 0xe50   :  { %v2393_v39 = vmul.f32 %v7300_v42, %v7284_v12 }
 0xe52   :  { %6683 = vmatmul.msk.f32.gmra.mxu0 %vm488_vm3, %v2393_v39 }
 0xe71   :  { %v2015_v20 = vpop.f32.mrf.mxu0 }
 0xe72   :  { %2127 = vrot.lane.b32.xlu1 %v2015_v20, %s7618_s2 }
 0xe75   :  { %v299_v16 = vpop.xlane.xlu2 %298 }
 0xe76   :  { %v303_v63 = vmul.f32 %v299_v16, %v7678_v34 }
 0xe78   :  { %v305_v43 = vadd.f32 1e-05, %v303_v63 }
 0xe79   :  { %v2018_v4 = vpop.f32.mrf.mxu0 }
 0xe7a   :  { %7301 = vrsqrt.f32 %v305_v43  ;;  %2129 = vrot.lane.b32.xlu0 %v2018_v4, %s7618_s2  ;;  %2527 = vrot.lane.b32.xlu1 %v2327_v50, %s7605_s27  ;;  %vm313_vm8 = vweird.f32 %v305_v43 }
 0xe7d   :  { %v2120_v21 = vpop.permute.xlu2 %2119 }
 0xe7e   :  { %v2141_v23 = vsel %vm456_vm15, %v8361_v25, %v2120_v21 }
 0xe80   :  { %v7302_v52 = vpop.eup %7301 }
 0xe81   :  { %v308_v40 = vmul.f32 %v7302_v52, %v305_v43  ;;  %vm314_vm7 = vweird.f32 %v7302_v52  ;;  %v2229_v15 = vpop.f32.mrf.mxu0 }
 0xe82   :  { %vm315_vm9 = vmor %vm313_vm8, %vm314_vm7 }
 0xe83   :  { %v309_v12 = vmul.f32 %v7302_v52, %v308_v40 }
 0xe85   :  { %v310_v8 = vmul.f32 0.5, %v309_v12  ;;  %v2138_v31 = vpop.permute.xlu2 %2137 }
 0xe87   :  { %v311_v54 = vsub.f32 1.5, %v310_v8 }
 0xe89   :  { %v312_v30 = vmul.f32 %v7302_v52, %v311_v54  ;;  %v2232_v22 = vpop.f32.mrf.mxu0  ;;  %v7113_v54 = vld [vmem:[#allocation7 + $0x128] ss:$0 sm:$0xff] }
 0xe8b   :  { %v316_v6 = vsel %vm315_vm9, %v7302_v52, %v312_v30 }
 0xe8c   :  { %v327_v9 = vmul.f32 %v316_v6, %v8510_v10  ;;  %v2556_v10 = vld [vmem:[#allocation7 + $0x110] sm:$0xff] }
 0xe8d   :  { %2587 = vmatpush.msra.mxu3 %v2556_v10 }
 0xe8e   :  { %v331_v11 = vmul.f32 %v8547_v35, %v327_v9 }
 0xe8f   :  { %2588 = vmatpush.msra.mxu3 %v2555_v17 }
 0xe90   :  { %v8554_v37 = vadd.f32 %v8549_v7, %v331_v11 }
 0xe92   :  { %v2916_v2 = vadd.f32 %v8554_v37, %v78_v53 }
 0xe94   :  { %6702 = vmatmul.msk.f32.vlgmr.msrb.gmra.mxu2 %vm136_vm1, %v2916_v2  ;;  %v283_v2 = vadd.f32 %v8472_v55, %v7813_v47 }
 0xe9e   :  { %v2519_v45 = vpop.f32.mrf.mxu2 }
 0xe9f   :  { %2543 = vrot.lane.b32.xlu1 %v2519_v45, %s7619_s17 }
 0xea6   :  { %v2522_v3 = vpop.f32.mrf.mxu2 }
 0xea7   :  { %2545 = vrot.lane.b32.xlu0 %v2522_v3, %s7619_s17  ;;  %v288_v3 = vsel %vm136_vm1, %v283_v2, 0.0 }
 0xec7   :  { %v2423_v61 = vpop.f32.mrf.mxu0 }
 0xec8   :  { %2535 = vrot.lane.b32.xlu2 %v2423_v61, %s7618_s2 }
 0xecf   :  { %v2426_v62 = vpop.f32.mrf.mxu0 }
 0xed0   :  { %2529 = vrot.lane.b32.xlu2 %v2330_v59, %s7605_s27  ;;  %2537 = vrot.lane.b32.xlu1 %v2426_v62, %s7618_s2 }
 0xee4   :  { %v2128_v32 = vpop.permute.xlu1 %2127 }
 0xee5   :  { %v2143_v29 = vsel %vm488_vm3, %v2141_v23, %v2128_v32 }
 0xee6   :  { %v2145_v24 = vsel %vm858_vm4, %v2143_v29, %v2136_v18 }
 0xee7   :  { %6690 = vmatmul.msk.f32.vlgmr.msra.gmra.mxu3 %vm136_vm1, %v2145_v24 }
 0xeec   :  { %v2130_v60 = vpop.permute.xlu0 %2129  ;;  %v2528_v39 = vpop.permute.xlu1 %2527 }
 0xeed   :  { %v2144_v41 = vsel %vm488_vm3, %v2142_v46, %v2130_v60  ;;  %v2549_v38 = vsel %vm456_vm15, %v2229_v15, %v2528_v39 }
 0xeee   :  { %v2146_v33 = vsel %vm858_vm4, %v2144_v41, %v2138_v31 }
 0xeef   :  { %6691 = vmatmul.msk.f32.gmra.mxu3 %vm136_vm1, %v2146_v33 }
 0xf11   :  { %v2544_v16 = vpop.permute.xlu1 %2543 }
 0xf17   :  { %v2947_v25 = vpop.f32.mrf.mxu2 }
 0xf18   :  { %v8576_v42 = vadd.f32 %v8573_v36, %v2947_v25 }
 0xf19   :  { %v2546_v40 = vpop.permute.xlu0 %2545 }
 0xf1a   :  { %3004 = vrot.lane.b32.xlu1 %v8576_v42, %s7610_s8 }
 0xf22   :  { %v2536_v20 = vpop.permute.xlu2 %2535 }
 0xf23   :  { %v2551_v63 = vsel %vm488_vm3, %v2549_v38, %v2536_v20 }
 0xf24   :  { %v2553_v43 = vsel %vm858_vm4, %v2551_v63, %v2544_v16  ;;  %v8645_v63 = vsel %vm72_vm10, -1e+30, %v7617_v49 }
 0xf25   :  { %6692 = vmatmul.msk.f32.gmra.mxu3 %vm136_vm1, %v2553_v43  ;;  %v8652_v19 = vperm.slane %v8645_v63, 0 }
 0xf2a   :  { %v2530_v50 = vpop.permute.xlu2 %2529 }
 0xf2b   :  { %v2550_v4 = vsel %vm456_vm15, %v2232_v22, %v2530_v50 }
 0xf42   :  { %v2538_v52 = vpop.permute.xlu1 %2537 }
 0xf43   :  { %v2552_v12 = vsel %vm488_vm3, %v2550_v4, %v2538_v52  ;;  %v2709_v4 = vld [vmem:[#allocation7 + $0x2f8] sm:$0xff]  ;;  %v2708_v52 = vld [vmem:[#allocation7 + $0x2f0] sm:$0xff] }
 0xf44   :  { %v2554_v8 = vsel %vm858_vm4, %v2552_v12, %v2546_v40  ;;  %2736 = vmatpush.msrb.mxu0 %v2709_v4  ;;  %v2707_v40 = vld [vmem:[#allocation7 + $0x2e8] sm:$0xff]  ;;  %v2706_v12 = vld [vmem:[#allocation7 + $0x2e0] sm:$0xff]  ;;  %v2758_v4 = vld [vmem:[#allocation7 + $0x310] sm:$0xff] }
 0xf45   :  { %6693 = vmatmul.msk.f32.gmra.mxu3 %vm136_vm1, %v2554_v8 }
 0xf46   :  { %2737 = vmatpush.msrb.mxu0 %v2708_v52  ;;  %v2757_v52 = vld [vmem:[#allocation7 + $0x308] sm:$0xff] }
 0xf48   :  { %2738 = vmatpush.msrb.mxu0 %v2707_v40 }
 0xf4a   :  { %2739 = vmatpush.msrb.mxu0 %v2706_v12 }
 0xf6a   :  { %v2590_v30 = vpop.f32.mrf.mxu3 }
 0xf6b   :  { %v2591_v6 = vadd.f32 %v7113_v54, %v2590_v30 }
 0xf6d   :  { %v2602_v9 = vadd.f32 %v2591_v6, %v8156_v27 }
 0xf6f   :  { %v2606_v11 = vsel %vm136_vm1, %v2602_v9, 0.0 }
 0xf70   :  { %2607 = vadd.xlane.f32.xlu2 %v2606_v11 }
 0xf72   :  { %v2593_v53 = vpop.f32.mrf.mxu3 }
 0xf73   :  { %v2594_v59 = vadd.f32 %v7113_v54, %v2593_v53 }
 0xf75   :  { %v2603_v45 = vadd.f32 %v2594_v59, %v8163_v26 }
 0xf77   :  { %v2609_v1 = vsel %vm136_vm1, %v2603_v45, 0.0 }
 0xf78   :  { %289 = vadd.xlane.f32.xlu2 %v288_v3  ;;  %2610 = vadd.xlane.f32.xlu0 %v2609_v1 }
 0xf8c   :  { %v3005_v14 = vpop.permute.xlu1 %3004 }
 0xf8d   :  { %6706 = vmatpush.xpose.msk.msrb.mxu3 %vm456_vm15, %v3005_v14 }
 0xf90   :  { %6707 = vmatmul.msk.f32.vlgmr.msrb.gmra.mxu3 %vm456_vm15, %v8576_v42 }
 0xfa8   :  { %v2596_v27 = vpop.f32.mrf.mxu3 }
 0xfa9   :  { %v2597_v10 = vadd.f32 %v7113_v54, %v2596_v27 }
 0xfab   :  { %v2604_v15 = vadd.f32 %v2597_v10, %v8218_v13 }
 0xfad   :  { %v2612_v47 = vsel %vm136_vm1, %v2604_v15, 0.0 }
 0xfae   :  { %2613 = vadd.xlane.f32.xlu1 %v2612_v47 }
 0xfc8   :  { %v2599_v26 = vpop.f32.mrf.mxu3 }
 0xfc9   :  { %v2600_v55 = vadd.f32 %v7113_v54, %v2599_v26 }
 0xfcb   :  { %v2605_v22 = vadd.f32 %v2600_v55, %v8232_v0  ;;  %v8669_v55 = vld [vmem:[#allocation7 + $0x470] ss:$0 sm:$0xff] }
 0xfcd   :  { %v2615_v17 = vsel %vm136_vm1, %v2605_v22, 0.0 }
 0xfce   :  { %2616 = vadd.xlane.f32.xlu0 %v2615_v17 }
 0xfe3   :  { %v2608_v61 = vpop.xlane.xlu2 %2607 }
 0xfe4   :  { %v2618_v62 = vmul.f32 %v2608_v61, %v7678_v34 }
 0xfe6   :  { %v8603_v18 = vsub.f32 %v2602_v9, %v2618_v62  ;;  %v8671_v62 = vld [vmem:[#allocation7 + $0x478] ss:$0 sm:$0xff] }
 0xfe8   :  { %v2626_v48 = vmul.f32 %v8603_v18, %v8603_v18 }
 0xfea   :  { %v2630_v13 = vsel %vm136_vm1, %v2626_v48, 0.0 }
 0xfeb   :  { %2631 = vadd.xlane.f32.xlu2 %v2630_v13  ;;  %v290_v21 = vpop.xlane.xlu2 %289  ;;  %v2611_v23 = vpop.xlane.xlu0 %2610 }
 0xfec   :  { %v292_v32 = vmul.f32 %v290_v21, %v7678_v34  ;;  %v2619_v0 = vmul.f32 %v2611_v23, %v7678_v34 }
 0xfee   :  { %v8610_v29 = vsub.f32 %v283_v2, %v292_v32  ;;  %v8612_v24 = vsub.f32 %v2603_v45, %v2619_v0 }
 0xff0   :  { %v296_v46 = vmul.f32 %v8610_v29, %v8610_v29  ;;  %v2627_v60 = vmul.f32 %v8612_v24, %v8612_v24 }
 0xff2   :  { %v300_v31 = vsel %vm136_vm1, %v296_v46, 0.0  ;;  %v2633_v41 = vsel %vm136_vm1, %v2627_v60, 0.0 }
 0xff3   :  { %301 = vadd.xlane.f32.xlu2 %v300_v31  ;;  %2634 = vadd.xlane.f32.xlu1 %v2633_v41 }
0x100b   :  { %6978 = vrot.lane.b32.xlu2 %v6977_v56, %s7608_s4 }
0x1013   :  { %2970 = vrot.lane.b32.xlu2 %v8573_v36, %s7608_s4  ;;  %v3027_v43 = vpop.f32.mrf.mxu3 }
0x1014   :  { %v8656_v50 = vadd.f32 %v3027_v43, %v8652_v19  ;;  %v2761_v43 = vld [vmem:[#allocation7 + $0x328] sm:$0xff] }
0x1016   :  { %v3030_v49 = vsel %vm456_vm15, %v8656_v50, -inf }
0x101b   :  { %3132 = vrot.lane.b32.xlu2 %v8576_v42, %s7612_s10 }
0x1021   :  { %v2614_v33 = vpop.xlane.xlu1 %2613 }
0x1022   :  { %v2620_v25 = vmul.f32 %v2614_v33, %v7678_v34 }
0x1024   :  { %v8629_v39 = vsub.f32 %v2604_v15, %v2620_v25 }
0x1026   :  { %v2628_v38 = vmul.f32 %v8629_v39, %v8629_v39 }
0x1028   :  { %v2636_v20 = vsel %vm136_vm1, %v2628_v38, 0.0 }
0x1029   :  { %2637 = vadd.xlane.f32.xlu0 %v2636_v20 }
0x103d   :  { %6973 = vrot.lane.b32.xlu0 %v6972_v28, %s7608_s4 }
0x1041   :  { %v2617_v58 = vpop.xlane.xlu0 %2616 }
0x1042   :  { %v2621_v56 = vmul.f32 %v2617_v58, %v7678_v34  ;;  %v79_v58 = vld [vmem:[#allocation7 + $0x578] sm:$0xff] }
0x1044   :  { %v8642_v16 = vsub.f32 %v2605_v22, %v2621_v56 }
0x1045   :  { %3066 = vrot.lane.b32.xlu0 %v8576_v42, %s7611_s9 }
0x1046   :  { %v2629_v44 = vmul.f32 %v8642_v16, %v8642_v16 }
0x1048   :  { %v2639_v28 = vsel %vm136_vm1, %v2629_v44, 0.0 }
0x1049   :  { %2640 = vadd.xlane.f32.xlu1 %v2639_v28 }
0x104d   :  { %3064 = vrot.lane.b32.xlu0 %v8576_v42, %s7613_s11 }
0x1051   :  { %3031 = vmax.xlane.f32.xlu1 %v3030_v49  ;;  %v2759_v49 = vld [vmem:[#allocation7 + $0x318] sm:$0xff] }
0x1055   :  { %3195 = vrot.lane.b32.xlu0 %v8576_v42, %s7615_s13 }
0x105d   :  { %3130 = vrot.lane.b32.xlu0 %v8576_v42, %s7616_s14 }
0x105e   :  { %v2632_v8 = vpop.xlane.xlu2 %2631 }
0x105f   :  { %v2642_v54 = vmul.f32 %v2632_v8, %v7678_v34 }
0x1061   :  { %v2646_v30 = vadd.f32 1e-05, %v2642_v54 }
0x1063   :  { %7303 = vrsqrt.f32 %v2646_v30  ;;  %vm2656_vm12 = vweird.f32 %v2646_v30 }
0x1066   :  { %v302_v6 = vpop.xlane.xlu2 %301  ;;  %v2635_v9 = vpop.xlane.xlu1 %2634 }
0x1067   :  { %v304_v11 = vmul.f32 %v302_v6, %v7678_v34  ;;  %v2643_v53 = vmul.f32 %v2635_v9, %v7678_v34 }
0x1069   :  { %v7304_v2 = vpop.eup %7303  ;;  %v306_v59 = vadd.f32 1e-05, %v304_v11  ;;  %v2647_v45 = vadd.f32 1e-05, %v2643_v53 }
0x106a   :  { %v2651_v3 = vmul.f32 %v7304_v2, %v2646_v30  ;;  %vm2657_vm11 = vweird.f32 %v7304_v2 }
0x106b   :  { %7305 = vrsqrt.f32 %v306_v59  ;;  %vm2658_vm13 = vmor %vm2656_vm12, %vm2657_vm11  ;;  %vm323_vm5 = vweird.f32 %v306_v59  ;;  %vm2666_vm7 = vweird.f32 %v2647_v45 }
0x106c   :  { %v2652_v1 = vmul.f32 %v7304_v2, %v2651_v3  ;;  %7307 = vrsqrt.f32 %v2647_v45 }
0x106e   :  { %v2653_v14 = vmul.f32 0.5, %v2652_v1  ;;  %v6979_v3 = vpop.permute.xlu2 %6978 }
0x106f   :  { %v6980_v1 = vunpack.i.l.bf16 %v6979_v3 }
0x1070   :  { %v2654_v27 = vsub.f32 1.5, %v2653_v14 }
0x1071   :  { %v7306_v10 = vpop.eup %7305 }
0x1072   :  { %v7308_v15 = vpop.eup %7307  ;;  %v2655_v47 = vmul.f32 %v7304_v2, %v2654_v27  ;;  %v318_v26 = vmul.f32 %v7306_v10, %v306_v59  ;;  %vm324_vm14 = vweird.f32 %v7306_v10 }
0x1073   :  { %v2661_v22 = vmul.f32 %v7308_v15, %v2647_v45  ;;  %vm2667_vm2 = vweird.f32 %v7308_v15  ;;  %vm325_vm6 = vmor %vm323_vm5, %vm324_vm14 }
0x1074   :  { %v2659_v17 = vsel %vm2658_vm13, %v7304_v2, %v2655_v47  ;;  %v319_v61 = vmul.f32 %v7306_v10, %v318_v26  ;;  %vm2668_vm8 = vmor %vm2666_vm7, %vm2667_vm2 }
0x1075   :  { %v2690_v48 = vmul.f32 %v2659_v17, %v8603_v18  ;;  %v2662_v13 = vmul.f32 %v7308_v15, %v2661_v22 }
0x1076   :  { %v320_v21 = vmul.f32 0.5, %v319_v61 }
0x1077   :  { %v2696_v23 = vmul.f32 %v8669_v55, %v2690_v48  ;;  %v2663_v32 = vmul.f32 0.5, %v2662_v13 }
0x1078   :  { %v321_v0 = vsub.f32 1.5, %v320_v21 }
0x1079   :  { %v8676_v46 = vadd.f32 %v8671_v62, %v2696_v23  ;;  %v2664_v60 = vsub.f32 1.5, %v2663_v32 }
0x107a   :  { %v322_v31 = vmul.f32 %v7306_v10, %v321_v0 }
0x107b   :  { %v2665_v41 = vmul.f32 %v7308_v15, %v2664_v60  ;;  %6694 = vmatmul.msk.f32.vlgmr.msrb.gmra.mxu0 %vm136_vm1, %v8676_v46 }
0x107c   :  { %v326_v18 = vsel %vm325_vm6, %v7306_v10, %v322_v31  ;;  %v6981_v10 = vunpack.i.h.bf16 %v6979_v3 }
0x107d   :  { %v328_v33 = vmul.f32 %v326_v18, %v8610_v29  ;;  %v2669_v25 = vsel %vm2668_vm8, %v7308_v15, %v2665_v41  ;;  %v2764_v29 = vld [vmem:[#allocation7 + $0x340] sm:$0xff] }
0x107e   :  { %v2691_v38 = vmul.f32 %v2669_v25, %v8612_v24  ;;  %2787 = vmatpush.msra.mxu1 %v2764_v29  ;;  %v2763_v24 = vld [vmem:[#allocation7 + $0x338] sm:$0xff] }
0x107f   :  { %v332_v20 = vmul.f32 %v8547_v35, %v328_v33  ;;  %v2762_v35 = vld [vmem:[#allocation7 + $0x330] sm:$0xff] }
0x1080   :  { %v2697_v57 = vmul.f32 %v8669_v55, %v2691_v38  ;;  %2788 = vmatpush.msra.mxu1 %v2763_v24 }
0x1081   :  { %v8685_v56 = vadd.f32 %v8549_v7, %v332_v20  ;;  %v2760_v7 = vld [vmem:[#allocation7 + $0x320] sm:$0xff] }
0x1082   :  { %v8688_v44 = vadd.f32 %v8671_v62, %v2697_v57  ;;  %2789 = vmatpush.msra.mxu1 %v2762_v35  ;;  %v7116_v20 = vld [vmem:[#allocation7 + $0x300] ss:$0 sm:$0xff] }
0x1083   :  { %v2917_v28 = vadd.f32 %v8685_v56, %v79_v58 }
0x1084   :  { %6695 = vmatmul.msk.f32.gmra.mxu0 %vm136_vm1, %v8688_v44  ;;  %2790 = vmatpush.msra.mxu1 %v2761_v43 }
0x1085   :  { %6703 = vmatmul.msk.f32.gmra.mxu2 %vm136_vm1, %v2917_v28 }
0x1086   :  { %2791 = vmatpush.msra.mxu1 %v2760_v7 }
0x1088   :  { %2792 = vmatpush.msra.mxu1 %v2759_v49 }
0x108a   :  { %2793 = vmatpush.msra.mxu1 %v2758_v4 }
0x108c   :  { %2794 = vmatpush.msra.mxu1 %v2757_v52 }
0x109c   :  { %v2638_v40 = vpop.xlane.xlu0 %2637 }
0x109d   :  { %v2644_v12 = vmul.f32 %v2638_v40, %v7678_v34 }
0x109f   :  { %v2648_v8 = vadd.f32 1e-05, %v2644_v12 }
0x10a1   :  { %7309 = vrsqrt.f32 %v2648_v8  ;;  %vm2676_vm10 = vweird.f32 %v2648_v8 }
0x10a7   :  { %v7310_v54 = vpop.eup %7309 }
0x10a8   :  { %v2671_v30 = vmul.f32 %v7310_v54, %v2648_v8  ;;  %vm2677_vm9 = vweird.f32 %v7310_v54 }
0x10a9   :  { %vm2678_vm11 = vmor %vm2676_vm10, %vm2677_vm9 }
0x10aa   :  { %v2672_v6 = vmul.f32 %v7310_v54, %v2671_v30 }
0x10ac   :  { %v2673_v9 = vmul.f32 0.5, %v2672_v6 }
0x10ae   :  { %v2674_v11 = vsub.f32 1.5, %v2673_v9 }
0x10af   :  { %v6974_v53 = vpop.permute.xlu0 %6973 }
0x10b0   :  { %v2675_v2 = vmul.f32 %v7310_v54, %v2674_v11  ;;  %v6976_v59 = vunpack.i.h.bf16 %v6974_v53  ;;  %v6975_v45 = vunpack.i.l.bf16 %v6974_v53 }
0x10b2   :  { %v2679_v14 = vsel %vm2678_vm11, %v7310_v54, %v2675_v2  ;;  %2991 = vmatpush.msra.mxu2 %v6975_v45 }
0x10b3   :  { %v2692_v27 = vmul.f32 %v2679_v14, %v8629_v39 }
0x10b4   :  { %2992 = vmatpush.msra.mxu2 %v6976_v59 }
0x10b5   :  { %v2698_v15 = vmul.f32 %v8669_v55, %v2692_v27 }
0x10b6   :  { %2993 = vmatpush.msra.mxu2 %v6980_v1 }
0x10b7   :  { %v3067_v47 = vpop.permute.xlu0 %3066  ;;  %v8698_v26 = vadd.f32 %v8671_v62, %v2698_v15 }
0x10b8   :  { %2994 = vmatpush.msra.mxu2 %v6981_v10  ;;  %6709 = vmatpush.xpose.msk.msrb.mxu1 %vm456_vm15, %v3067_v47 }
0x10b9   :  { %6696 = vmatmul.msk.f32.gmra.mxu0 %vm136_vm1, %v8698_v26  ;;  %6704 = vmatmul.msk.f32.vlgmr.msra.gmra.mxu2 %vm136_vm1, %v8554_v37 }
0x10bc   :  { %v2641_v22 = vpop.xlane.xlu1 %2640 }
0x10bd   :  { %v2645_v39 = vmul.f32 %v2641_v22, %v7678_v34 }
0x10bf   :  { %v2649_v17 = vadd.f32 1e-05, %v2645_v39  ;;  %v3065_v52 = vpop.permute.xlu0 %3064 }
0x10c1   :  { %7311 = vrsqrt.f32 %v2649_v17  ;;  %6705 = vmatmul.msk.f32.gmra.mxu2 %vm136_vm1, %v8685_v56  ;;  %vm2686_vm13 = vweird.f32 %v2649_v17 }
0x10c4   :  { %v3032_v61 = vpop.xlane.xlu1 %3031 }
0x10c5   :  { %v3033_v48 = vsub.f32 %v8656_v50, %v3032_v61 }
0x10c7   :  { %v7312_v13 = vpop.eup %7311  ;;  %v3034_v21 = vmul.f32 1.442695, %v3033_v48  ;;  %v3196_v54 = vpop.permute.xlu0 %3195 }
0x10c8   :  { %v2681_v23 = vmul.f32 %v7312_v13, %v2649_v17  ;;  %vm2687_vm12 = vweird.f32 %v7312_v13 }
0x10c9   :  { %7313 = vpow2.f32 %v3034_v21  ;;  %vm2688_vm14 = vmor %vm2686_vm13, %vm2687_vm12 }
0x10ca   :  { %v2682_v32 = vmul.f32 %v7312_v13, %v2681_v23 }
0x10cc   :  { %v2683_v0 = vmul.f32 0.5, %v2682_v32 }
0x10ce   :  { %v2684_v60 = vsub.f32 1.5, %v2683_v0 }
0x10cf   :  { %v7314_v31 = vpop.eup %7313  ;;  %v3131_v6 = vpop.permute.xlu0 %3130 }
0x10d0   :  { %v2685_v41 = vmul.f32 %v7312_v13, %v2684_v60  ;;  %v3036_v18 = vsel %vm456_vm15, %v7314_v31, 0.0 }
0x10d1   :  { %3037 = vadd.xlane.f32.xlu1 %v3036_v18 }
0x10d2   :  { %v2689_v33 = vsel %vm2688_vm14, %v7312_v13, %v2685_v41 }
0x10d3   :  { %v2693_v25 = vmul.f32 %v2689_v33, %v8642_v16 }
0x10d5   :  { %v2699_v50 = vmul.f32 %v8669_v55, %v2693_v25 }
0x10d7   :  { %v8713_v38 = vadd.f32 %v8671_v62, %v2699_v50  ;;  %v8721_v62 = vpop.permute.xlu2 %2970 }
0x10d9   :  { %6697 = vmatmul.msk.f32.gmra.mxu0 %vm136_vm1, %v8713_v38 }
0x10df   :  { %v3133_v4 = vpop.permute.xlu2 %3132 }
0x10ea   :  { %3197 = vrot.lane.b32.xlu1 %v8576_v42, %s7614_s12 }
0x10f8   :  { %v2741_v57 = vpop.f32.mrf.mxu0 }
0x10f9   :  { %v2742_v58 = vadd.f32 %v7116_v20, %v2741_v57 }
0x10fb   :  { %v2753_v28 = vmax.f32 %v2742_v58, 0.0 }
0x10fd   :  { %6698 = vmatmul.msk.f32.vlgmr.msra.gmra.mxu1 %vm94_vm0, %v2753_v28 }
0x1101   :  { %v2744_v29 = vpop.f32.mrf.mxu0 }
0x1102   :  { %v2745_v24 = vadd.f32 %v7116_v20, %v2744_v29 }
0x1104   :  { %v2754_v16 = vmax.f32 %v2745_v24, 0.0 }
0x1106   :  { %6699 = vmatmul.msk.f32.gmra.mxu1 %vm94_vm0, %v2754_v16 }
0x1108   :  { %v2950_v55 = vpop.f32.mrf.mxu2 }
0x1109   :  { %v8728_v12 = vadd.f32 %v8573_v36, %v2950_v55 }
0x1136   :  { %v2747_v35 = vpop.f32.mrf.mxu0 }
0x1137   :  { %v2748_v43 = vadd.f32 %v7116_v20, %v2747_v35 }
0x1139   :  { %v2755_v7 = vmax.f32 %v2748_v43, 0.0 }
0x113b   :  { %6700 = vmatmul.msk.f32.gmra.mxu1 %vm94_vm0, %v2755_v7 }
0x113c   :  { %v2996_v42 = vpop.f32.mrf.mxu2 }
0x113d   :  { %v2997_v49 = vadd.f32 %v2996_v42, %v8721_v62 }
0x113f   :  { %3104 = vrot.lane.b32.xlu2 %v2997_v49, %s7613_s11  ;;  %3059 = vmatpush.msra.mxu0 %v2997_v49 }
0x1141   :  { %6712 = vmatpush.xpose.msk.msrb.mxu0 %vm456_vm15, %v3133_v4 }
0x1144   :  { %v3038_v40 = vpop.xlane.xlu1 %3037  ;;  %v2999_v47 = vpop.f32.mrf.mxu2 }
0x1145   :  { %7315 = vrcp.f32 %v3038_v40  ;;  %v8770_v29 = vadd.f32 %v2999_v47, %v8721_v62 }
0x1147   :  { %3470 = vrot.lane.b32.xlu2 %v8728_v12, %s7614_s12 }
0x114b   :  { %v7316_v8 = vpop.eup %7315 }
0x114c   :  { %v3040_v30 = vmul.f32 %v7316_v8, %v7314_v31  ;;  %v8783_v8 = vperm.slane %v8645_v63, 1 }
0x114e   :  { %6708 = vmatmul.msk.f32.vlgmr.msra.gmra.mxu0 %vm456_vm15, %v3040_v30 }
0x1156   :  { %v2750_v9 = vpop.f32.mrf.mxu0  ;;  %6713 = vmatmul.msk.f32.vlgmr.msrb.gmra.mxu0 %vm456_vm15, %v3131_v6 }
0x1157   :  { %v2751_v11 = vadd.f32 %v7116_v20, %v2750_v9 }
0x1159   :  { %v2756_v53 = vmax.f32 %v2751_v11, 0.0 }
0x115b   :  { %6701 = vmatmul.msk.f32.gmra.mxu1 %vm94_vm0, %v2756_v53 }
0x115c   :  { %v3198_v2 = vpop.permute.xlu1 %3197 }
0x115d   :  { %6715 = vmatpush.xpose.msk.msrb.mxu2 %vm456_vm15, %v3198_v2 }
0x1160   :  { %6716 = vmatmul.msk.f32.vlgmr.msrb.gmra.mxu2 %vm456_vm15, %v3196_v54 }
0x1163   :  { %6710 = vmatmul.msk.f32.vlgmr.msrb.gmra.mxu1 %vm456_vm15, %v3065_v52 }
0x117a   :  { %v8738_v59 = vpop.f32.mrf.mxu1 }
0x1183   :  { %v8740_v45 = vpop.f32.mrf.mxu1 }
0x1199   :  { %v3105_v36 = vpop.permute.xlu2 %3104 }
0x119a   :  { %3125 = vmatpush.msra.mxu3 %v3105_v36 }
0x11a1   :  { %v3471_v21 = vpop.permute.xlu2 %3470 }
0x11b8   :  { %v8744_v1 = vpop.f32.mrf.mxu1 }
0x11cb   :  { %v8742_v3 = vpop.f32.mrf.mxu0 }
0x11d3   :  { %v3155_v14 = vpop.f32.mrf.mxu0 }
0x11d4   :  { %v3156_v27 = vadd.f32 %v3155_v14, %v8652_v19 }
0x11d6   :  { %v3158_v10 = vsel %vm456_vm15, %v3156_v27, -inf }
0x11d7   :  { %3159 = vmax.xlane.f32.xlu0 %v3158_v10 }
0x11d8   :  { %v8748_v15 = vpop.f32.mrf.mxu1 }
0x11e0   :  { %v3089_v22 = vpop.f32.mrf.mxu1 }
0x11e1   :  { %v3090_v39 = vadd.f32 %v3089_v22, %v8652_v19 }
0x11e3   :  { %v3220_v17 = vpop.f32.mrf.mxu2  ;;  %v3092_v61 = vsel %vm456_vm15, %v3090_v39, -inf }
0x11e4   :  { %v3221_v48 = vadd.f32 %v3220_v17, %v8652_v19  ;;  %3093 = vmax.xlane.f32.xlu2 %v3092_v61 }
0x11e6   :  { %v3223_v13 = vsel %vm456_vm15, %v3221_v48, -inf }
0x11e7   :  { %3224 = vmax.xlane.f32.xlu1 %v3223_v13 }
0x11eb   :  { %3339 = vrot.lane.b32.xlu0 %v8728_v12, %s7611_s9 }
0x11f3   :  { %3234 = vrot.lane.b32.xlu0 %v2997_v49, %s7615_s13 }
0x11fb   :  { %3277 = vrot.lane.b32.xlu0 %v8728_v12, %s7610_s8 }
0x11fc   :  { %3468 = vrot.lane.b32.xlu2 %v8728_v12, %s7615_s13 }
0x1203   :  { %3169 = vrot.lane.b32.xlu0 %v2997_v49, %s7616_s14 }
0x124a   :  { %v3160_v23 = vpop.xlane.xlu0 %3159 }
0x124b   :  { %v3161_v16 = vsub.f32 %v3156_v27, %v3160_v23 }
0x124d   :  { %v3162_v55 = vmul.f32 1.442695, %v3161_v16 }
0x1257   :  { %v3094_v32 = vpop.xlane.xlu2 %3093 }
0x1258   :  { %v3095_v0 = vsub.f32 %v3090_v39, %v3094_v32 }
0x125a   :  { %v3096_v60 = vmul.f32 1.442695, %v3095_v0  ;;  %v3225_v31 = vpop.xlane.xlu1 %3224 }
0x125b   :  { %v3226_v41 = vsub.f32 %v3221_v48, %v3225_v31 }
0x125c   :  { %7317 = vpow2.f32 %v3096_v60 }
0x125d   :  { %v3227_v18 = vmul.f32 1.442695, %v3226_v41  ;;  %v3340_v33 = vpop.permute.xlu0 %3339  ;;  %v3551_v41 = vld [vmem:[#allocation7 + $0x170] sm:$0xff] }
0x125e   :  { %6721 = vmatpush.xpose.msk.msra.mxu2 %vm456_vm15, %v3340_v33  ;;  %v3549_v33 = vld [vmem:[#allocation7 + $0x160] sm:$0xff] }
0x125f   :  { %7319 = vpow2.f32 %v3227_v18  ;;  %v3469_v62 = vpop.permute.xlu2 %3468  ;;  %v3550_v18 = vld [vmem:[#allocation7 + $0x168] sm:$0xff] }
0x1260   :  { %7321 = vpow2.f32 %v3162_v55 }
0x1262   :  { %6727 = vmatpush.xpose.msk.msrb.mxu2 %vm456_vm15, %v3471_v21  ;;  %v7318_v25 = vpop.eup %7317 }
0x1263   :  { %v3098_v50 = vsel %vm456_vm15, %v7318_v25, 0.0 }
0x1264   :  { %3099 = vadd.xlane.f32.xlu2 %v3098_v50 }
0x1265   :  { %v7320_v20 = vpop.eup %7319  ;;  %v3235_v57 = vpop.permute.xlu0 %3234 }
0x1266   :  { %3255 = vmatpush.msrb.mxu3 %v3235_v57  ;;  %v3229_v58 = vsel %vm456_vm15, %v7320_v20, 0.0  ;;  %v7322_v35 = vpop.eup %7321 }
0x1267   :  { %3230 = vadd.xlane.f32.xlu1 %v3229_v58  ;;  %v3164_v43 = vsel %vm456_vm15, %v7322_v35, 0.0 }
0x126d   :  { %v3278_v28 = vpop.permute.xlu0 %3277 }
0x126e   :  { %6718 = vmatpush.xpose.msk.msra.mxu0 %vm456_vm15, %v3278_v28 }
0x1271   :  { %6719 = vmatmul.msk.f32.vlgmr.msra.gmra.mxu0 %vm456_vm15, %v8728_v12 }
0x1275   :  { %v3170_v24 = vpop.permute.xlu0 %3169 }
0x1276   :  { %3190 = vmatpush.msra.mxu1 %v3170_v24 }
0x1278   :  { %3332 = vmatpush.msrb.mxu1 %v8770_v29 }
0x127c   :  { %3403 = vrot.lane.b32.xlu2 %v8728_v12, %s7616_s14 }
0x1280   :  { %3337 = vrot.lane.b32.xlu1 %v8728_v12, %s7613_s11 }
0x12aa   :  { %3165 = vadd.xlane.f32.xlu1 %v3164_v43 }
0x12c3   :  { %3405 = vrot.lane.b32.xlu1 %v8728_v12, %s7612_s10 }
0x12d7   :  { %v3100_v7 = vpop.xlane.xlu2 %3099 }
0x12d8   :  { %7323 = vrcp.f32 %v3100_v7 }
0x12da   :  { %v3231_v42 = vpop.xlane.xlu1 %3230 }
0x12db   :  { %7325 = vrcp.f32 %v3231_v42 }
0x12de   :  { %v7324_v49 = vpop.eup %7323 }
0x12df   :  { %v3102_v4 = vmul.f32 %v7324_v49, %v7318_v25  ;;  %v3404_v63 = vpop.permute.xlu2 %3403  ;;  %v3548_v25 = vld [vmem:[#allocation7 + $0x158] sm:$0xff] }
0x12e1   :  { %6711 = vmatmul.msk.f32.vlgmr.msra.gmra.mxu3 %vm456_vm15, %v3102_v4  ;;  %v7326_v52 = vpop.eup %7325 }
0x12e2   :  { %v3233_v40 = vmul.f32 %v7326_v52, %v7320_v20 }
0x12e9   :  { %6717 = vmatmul.msk.f32.vlgmr.msrb.gmra.mxu3 %vm456_vm15, %v3233_v40 }
0x12ee   :  { %v3300_v54 = vpop.f32.mrf.mxu0 }
0x12ef   :  { %v3301_v30 = vadd.f32 %v3300_v54, %v8783_v8  ;;  %v8813_v54 = vld [vmem:[#allocation7 + $0x348] ss:$0 sm:$0xff] }
0x12f1   :  { %v3303_v12 = vsel %vm456_vm15, %v3301_v30, -inf }
0x12f2   :  { %3304 = vmax.xlane.f32.xlu2 %v3303_v12  ;;  %v3338_v6 = vpop.permute.xlu1 %3337  ;;  %v2797_v12 = vadd.f32 %v8813_v54, %v8738_v59 }
0x12f3   :  { %6722 = vmatmul.msk.f32.vlgmr.msra.gmra.mxu2 %vm456_vm15, %v3338_v6 }
0x12fb   :  { %6728 = vmatmul.msk.f32.vlgmr.msrb.gmra.mxu2 %vm456_vm15, %v3469_v62 }
0x131d   :  { %v3166_v9 = vpop.xlane.xlu1 %3165 }
0x131e   :  { %7327 = vrcp.f32 %v3166_v9  ;;  %v2808_v9 = vadd.f32 %v2797_v12, %v8676_v46 }
0x1324   :  { %v7328_v11 = vpop.eup %7327 }
0x1325   :  { %v3168_v53 = vmul.f32 %v7328_v11, %v7322_v35 }
0x1327   :  { %6714 = vmatmul.msk.f32.vlgmr.msra.gmra.mxu1 %vm456_vm15, %v3168_v53  ;;  %v2812_v53 = vsel %vm136_vm1, %v2808_v9, 0.0 }
0x1335   :  { %v3406_v2 = vpop.permute.xlu1 %3405 }
0x1336   :  { %6724 = vmatpush.xpose.msk.msrb.mxu0 %vm456_vm15, %v3406_v2 }
0x1339   :  { %6725 = vmatmul.msk.f32.vlgmr.msrb.gmra.mxu0 %vm456_vm15, %v3404_v63 }
0x133a   :  { %3572 = vmatpush.msra.mxu0 %v3551_v41 }
0x133c   :  { %3573 = vmatpush.msra.mxu0 %v3550_v18 }
0x133e   :  { %3574 = vmatpush.msra.mxu0 %v3549_v33 }
0x1340   :  { %3575 = vmatpush.msra.mxu0 %v3548_v25  ;;  %v3642_v25 = vld [vmem:[#allocation7 + $0x1e8] sm:$0xff] }
0x1364   :  { %v3127_v36 = vpop.f32.mrf.mxu3 }
0x1365   :  { %3261 = vrot.lane.b32.xlu0 %v3127_v36, %s7605_s27  ;;  %v3305_v21 = vpop.xlane.xlu2 %3304 }
0x1366   :  { %v3306_v32 = vsub.f32 %v3301_v30, %v3305_v21 }
0x1368   :  { %v3307_v0 = vmul.f32 1.442695, %v3306_v32 }
0x136a   :  { %7329 = vpow2.f32 %v3307_v0 }
0x136c   :  { %v3257_v14 = vpop.f32.mrf.mxu3 }
0x136d   :  { %3269 = vrot.lane.b32.xlu0 %v3257_v14, %s7619_s17  ;;  %v2800_v14 = vadd.f32 %v8813_v54, %v8740_v45 }
0x136f   :  { %v2809_v59 = vadd.f32 %v2800_v14, %v8688_v44 }
0x1370   :  { %v7330_v60 = vpop.eup %7329 }
0x1371   :  { %v3309_v31 = vsel %vm456_vm15, %v7330_v60, 0.0  ;;  %v2815_v46 = vsel %vm136_vm1, %v2809_v59, 0.0 }
0x1376   :  { %v3362_v27 = vpop.f32.mrf.mxu2 }
0x1377   :  { %v3363_v10 = vadd.f32 %v3362_v27, %v8783_v8 }
0x1379   :  { %v3365_v47 = vsel %vm456_vm15, %v3363_v10, -inf }
0x137a   :  { %3366 = vmax.xlane.f32.xlu1 %v3365_v47 }
0x137e   :  { %v3493_v22 = vpop.f32.mrf.mxu2 }
0x137f   :  { %v3494_v39 = vadd.f32 %v3493_v22, %v8783_v8 }
0x1381   :  { %v3496_v17 = vsel %vm456_vm15, %v3494_v39, -inf }
0x1397   :  { %3497 = vmax.xlane.f32.xlu0 %v3496_v17 }
0x13a4   :  { %v3192_v61 = vpop.f32.mrf.mxu1 }
0x13a5   :  { %3265 = vrot.lane.b32.xlu2 %v3192_v61, %s7618_s2 }
0x13b6   :  { %v3428_v48 = vpop.f32.mrf.mxu0 }
0x13b7   :  { %v3429_v13 = vadd.f32 %v3428_v48, %v8783_v8 }
0x13b9   :  { %v3431_v23 = vsel %vm456_vm15, %v3429_v13, -inf }
0x13ba   :  { %3432 = vmax.xlane.f32.xlu1 %v3431_v23 }
0x13ce   :  { %3310 = vadd.xlane.f32.xlu2 %v3309_v31 }
0x13d7   :  { %v3262_v58 = vpop.permute.xlu0 %3261 }
0x13d8   :  { %v3272_v16 = vsel %vm456_vm15, %v8742_v3, %v3262_v58 }
0x13df   :  { %v3270_v35 = vpop.permute.xlu0 %3269 }
0x13ed   :  { %v3367_v50 = vpop.xlane.xlu1 %3366 }
0x13ee   :  { %v3368_v20 = vsub.f32 %v3363_v10, %v3367_v50  ;;  %v8827_v10 = vld [vmem:[#allocation7 + $0x178] ss:$0 sm:$0xff]  ;;  %v3641_v50 = vld [vmem:[#allocation7 + $0x1e0] sm:$0xff] }
0x13f0   :  { %v3369_v57 = vmul.f32 1.442695, %v3368_v20  ;;  %v3640_v20 = vld [vmem:[#allocation7 + $0x1d8] sm:$0xff] }
0x13f2   :  { %7331 = vpow2.f32 %v3369_v57  ;;  %v3639_v57 = vld [vmem:[#allocation7 + $0x1d0] sm:$0xff] }
0x13f8   :  { %v7332_v28 = vpop.eup %7331 }
0x13f9   :  { %v3371_v24 = vsel %vm456_vm15, %v7332_v28, 0.0 }
0x13fa   :  { %3372 = vadd.xlane.f32.xlu1 %v3371_v24 }
0x13ff   :  { %v3266_v55 = vpop.permute.xlu2 %3265 }
0x1400   :  { %v3273_v43 = vsel %vm488_vm3, %v3272_v16, %v3266_v55  ;;  %v8846_v55 = vpack.i.bf16 %v3641_v50, %v3642_v25 }
0x1401   :  { %v3274_v62 = vsel %vm858_vm4, %v3273_v43, %v3270_v35  ;;  %v8851_v43 = vpack.i.bf16 %v3639_v57, %v3640_v20 }
0x1402   :  { %6730 = vmatmul.msk.f32.vlgmr.msra.gmra.mxu0 %vm136_vm1, %v3274_v62 }
0x140a   :  { %v3498_v7 = vpop.xlane.xlu0 %3497 }
0x140b   :  { %v3499_v42 = vsub.f32 %v3494_v39, %v3498_v7 }
0x140d   :  { %v3500_v49 = vmul.f32 1.442695, %v3499_v42 }
0x140f   :  { %7333 = vpow2.f32 %v3500_v49 }
0x1413   :  { %3377 = vrot.lane.b32.xlu1 %v8770_v29, %s7613_s11 }
0x1415   :  { %v7334_v4 = vpop.eup %7333 }
0x1416   :  { %v3502_v52 = vsel %vm456_vm15, %v7334_v4, 0.0 }
0x1417   :  { %3503 = vadd.xlane.f32.xlu0 %v3502_v52 }
0x142b   :  { %3507 = vrot.lane.b32.xlu0 %v8770_v29, %s7615_s13 }
0x142d   :  { %v3433_v3 = vpop.xlane.xlu1 %3432 }
0x142e   :  { %v3434_v40 = vsub.f32 %v3429_v13, %v3433_v3 }
0x1430   :  { %v3435_v30 = vmul.f32 1.442695, %v3434_v40 }
0x1432   :  { %7335 = vpow2.f32 %v3435_v30 }
0x1438   :  { %v7336_v6 = vpop.eup %7335 }
0x1439   :  { %v3437_v11 = vsel %vm456_vm15, %v7336_v6, 0.0 }
0x143a   :  { %3438 = vadd.xlane.f32.xlu2 %v3437_v11 }
0x143d   :  { %2813 = vadd.xlane.f32.xlu1 %v2812_v53 }
0x1441   :  { %v3311_v2 = vpop.xlane.xlu2 %3310 }
0x1442   :  { %7337 = vrcp.f32 %v3311_v2  ;;  %v2806_v2 = vadd.f32 %v8813_v54, %v8748_v15 }
0x1448   :  { %v7338_v63 = vpop.eup %7337 }
0x1449   :  { %v3313_v36 = vmul.f32 %v7338_v63, %v7330_v60 }
0x144b   :  { %6720 = vmatmul.msk.f32.vlgmr.msrb.gmra.mxu1 %vm456_vm15, %v3313_v36  ;;  %v8870_v36 = vadd.f32 %v2806_v2, %v8713_v38 }
0x1452   :  { %3442 = vrot.lane.b32.xlu2 %v8770_v29, %s7616_s14 }
0x1455   :  { %2816 = vadd.xlane.f32.xlu0 %v2815_v46 }
0x146d   :  { %v3373_v27 = vpop.xlane.xlu1 %3372 }
0x146e   :  { %7339 = vrcp.f32 %v3373_v27 }
0x1474   :  { %v7340_v39 = vpop.eup %7339 }
0x1475   :  { %v3375_v61 = vmul.f32 %v7340_v39, %v7332_v28 }
0x147f   :  { %v3577_v47 = vpop.f32.mrf.mxu0 }
0x1480   :  { %v3578_v22 = vadd.f32 %v8827_v10, %v3577_v47 }
0x1482   :  { %v3583_v17 = vadd.f32 %v3578_v22, %v8554_v37 }
0x1484   :  { %v3585_v45 = vsel %vm136_vm1, %v3583_v17, 0.0 }
0x1485   :  { %3586 = vadd.xlane.f32.xlu2 %v3585_v45  ;;  %v3378_v44 = vpop.permute.xlu1 %3377  ;;  %v8875_v45 = vld [vmem:[#allocation7 + $0x1f0] ss:$0 sm:$0xff] }
0x1486   :  { %3398 = vmatpush.msra.mxu3 %v3378_v44 }
0x1487   :  { %6723 = vmatmul.msk.f32.vlgmr.msra.gmra.mxu3 %vm456_vm15, %v3375_v61 }
0x148a   :  { %v3504_v29 = vpop.xlane.xlu0 %3503 }
0x148b   :  { %7341 = vrcp.f32 %v3504_v29  ;;  %v8879_v29 = vld [vmem:[#allocation7 + $0x480] ss:$0 sm:$0xff] }
0x1491   :  { %v7342_v48 = vpop.eup %7341 }
0x1492   :  { %v3506_v13 = vmul.f32 %v7342_v48, %v7334_v4 }
0x149d   :  { %v3508_v21 = vpop.permute.xlu0 %3507 }
0x149e   :  { %3528 = vmatpush.msrb.mxu3 %v3508_v21 }
0x149f   :  { %6729 = vmatmul.msk.f32.vlgmr.msrb.gmra.mxu3 %vm456_vm15, %v3506_v13 }
0x14ad   :  { %v3439_v23 = vpop.xlane.xlu2 %3438 }
0x14ae   :  { %7343 = vrcp.f32 %v3439_v23  ;;  %v8882_v23 = vld [vmem:[#allocation7 + $0x488] ss:$0 sm:$0xff] }
0x14b0   :  { %v2814_v32 = vpop.xlane.xlu1 %2813 }
0x14b1   :  { %v2824_v37 = vmul.f32 %v2814_v32, %v7678_v34 }
0x14b3   :  { %v8835_v0 = vsub.f32 %v2808_v9, %v2824_v37 }
0x14b4   :  { %v7344_v60 = vpop.eup %7343 }
0x14b5   :  { %v3441_v31 = vmul.f32 %v7344_v60, %v7336_v6  ;;  %v3443_v41 = vpop.permute.xlu2 %3442  ;;  %v2832_v18 = vmul.f32 %v8835_v0, %v8835_v0 }
0x14b6   :  { %3463 = vmatpush.msra.mxu1 %v3443_v41 }
0x14b7   :  { %6726 = vmatmul.msk.f32.vlgmr.msra.gmra.mxu1 %vm456_vm15, %v3441_v31  ;;  %v2836_v33 = vsel %vm136_vm1, %v2832_v18, 0.0  ;;  %v2803_v31 = vadd.f32 %v8813_v54, %v8744_v1 }
0x14b8   :  { %2837 = vadd.xlane.f32.xlu1 %v2836_v33  ;;  %3663 = vmatpush.msrb.mxu1 %v3642_v25 }
0x14ba   :  { %3664 = vmatpush.msrb.mxu1 %v3641_v50 }
0x14bc   :  { %3665 = vmatpush.msrb.mxu1 %v3640_v20 }
0x14be   :  { %3666 = vmatpush.msrb.mxu1 %v3639_v57  ;;  %v7493_v57 = vld [vmem:[#allocation7 + $0x550] sm:$0xff] }
0x14c8   :  { %v2817_v58 = vpop.xlane.xlu0 %2816  ;;  %v8863_v30 = vpop.f32.mrf.mxu1 }
0x14c9   :  { %v2825_v28 = vmul.f32 %v2817_v58, %v7678_v34 }
0x14cb   :  { %v8842_v24 = vsub.f32 %v2809_v59, %v2825_v28  ;;  %v2821_v59 = vsel %vm136_vm1, %v8870_v36, 0.0  ;;  %v2810_v28 = vadd.f32 %v2803_v31, %v8698_v26 }
0x14cd   :  { %v2833_v16 = vmul.f32 %v8842_v24, %v8842_v24 }
0x14cf   :  { %v2839_v35 = vsel %vm136_vm1, %v2833_v16, 0.0  ;;  %v2818_v16 = vsel %vm136_vm1, %v2810_v28, 0.0 }
0x14d0   :  { %2840 = vadd.xlane.f32.xlu0 %v2839_v35  ;;  %v7494_v35 = vld [vmem:[#allocation7 + $0x558] sm:$0xff] }
0x14d1   :  { %6983 = vrot.lane.b32.xlu1 %v8846_v55, %s7610_s8 }
0x14e4   :  { %6988 = vrot.lane.b32.xlu0 %v8851_v43, %s7610_s8 }
0x14f8   :  { %v3587_v62 = vpop.xlane.xlu2 %3586 }
0x14f9   :  { %v3591_v7 = vmul.f32 %v3587_v62, %v7678_v34 }
0x14fb   :  { %v8856_v42 = vsub.f32 %v3583_v17, %v3591_v7 }
0x14fd   :  { %v3595_v49 = vmul.f32 %v8856_v42, %v8856_v42 }
0x14ff   :  { %v3597_v4 = vsel %vm136_vm1, %v3595_v49, 0.0 }
0x1500   :  { %3598 = vadd.xlane.f32.xlu2 %v3597_v4 }
0x150a   :  { %v3400_v52 = vpop.f32.mrf.mxu3 }
0x1518   :  { %3534 = vrot.lane.b32.xlu2 %v3400_v52, %s7605_s27 }
0x1522   :  { %v3530_v3 = vpop.f32.mrf.mxu3 }
0x1523   :  { %3542 = vrot.lane.b32.xlu1 %v3530_v3, %s7619_s17 }
0x152b   :  { %v2838_v40 = vpop.xlane.xlu1 %2837  ;;  %3691 = vrot.lane.b32.xlu1 %v8875_v45, %s7610_s8 }
0x152c   :  { %v2848_v12 = vmul.f32 %v2838_v40, %v7678_v34 }
0x152e   :  { %v2852_v6 = vadd.f32 1e-05, %v2848_v12 }
0x1530   :  { %7345 = vrsqrt.f32 %v2852_v6  ;;  %vm2862_vm5 = vweird.f32 %v2852_v6 }
0x1534   :  { %v3465_v9 = vpop.f32.mrf.mxu1 }
0x1535   :  { %3538 = vrot.lane.b32.xlu0 %v3465_v9, %s7618_s2 }
0x1536   :  { %v7346_v11 = vpop.eup %7345 }
0x1537   :  { %v2857_v53 = vmul.f32 %v7346_v11, %v2852_v6  ;;  %vm2863_vm2 = vweird.f32 %v7346_v11  ;;  %v8908_v6 = vld [vmem:[#allocation7 + $0x490] ss:$0 sm:$0xff] }
0x1538   :  { %vm2864_vm6 = vmor %vm2862_vm5, %vm2863_vm2 }
0x1539   :  { %v2858_v63 = vmul.f32 %v7346_v11, %v2857_v53 }
0x153b   :  { %v2859_v14 = vmul.f32 0.5, %v2858_v63 }
0x153d   :  { %v2860_v46 = vsub.f32 1.5, %v2859_v14  ;;  %v7495_v14 = vld [vmem:[#allocation7 + $0x570] sm:$0xff] }
0x153f   :  { %v2861_v38 = vmul.f32 %v7346_v11, %v2860_v46 }
0x1541   :  { %2822 = vadd.xlane.f32.xlu2 %v2821_v59  ;;  %v2865_v15 = vsel %vm2864_vm6, %v7346_v11, %v2861_v38  ;;  %v8910_v11 = vld [vmem:[#allocation7 + $0x498] ss:$0 sm:$0xff] }
0x1542   :  { %v2896_v48 = vmul.f32 %v2865_v15, %v8835_v0 }
0x1543   :  { %v2841_v27 = vpop.xlane.xlu0 %2840  ;;  %v6984_v47 = vpop.permute.xlu1 %6983 }
0x1544   :  { %v2849_v22 = vmul.f32 %v2841_v27, %v7678_v34  ;;  %v6986_v39 = vunpack.i.h.bf16 %v6984_v47  ;;  %v6985_v17 = vunpack.i.l.bf16 %v6984_v47  ;;  %v2902_v32 = vmul.f32 %v8879_v29, %v2896_v48 }
0x1546   :  { %v2853_v61 = vadd.f32 1e-05, %v2849_v22  ;;  %3718 = vmatpush.msra.mxu2 %v6985_v17  ;;  %v8888_v41 = vadd.f32 %v8882_v23, %v2902_v32 }
0x1548   :  { %7347 = vrsqrt.f32 %v2853_v61  ;;  %3719 = vmatpush.msra.mxu2 %v6986_v39  ;;  %vm2872_vm8 = vweird.f32 %v2853_v61  ;;  %v8892_v58 = vadd.f32 %v7493_v57, %v8888_v41 }
0x154e   :  { %v7348_v44 = vpop.eup %7347 }
0x154f   :  { %v2867_v13 = vmul.f32 %v7348_v44, %v2853_v61  ;;  %vm2873_vm7 = vweird.f32 %v7348_v44 }
0x1550   :  { %vm2874_vm9 = vmor %vm2872_vm8, %vm2873_vm7 }
0x1551   :  { %v2868_v21 = vmul.f32 %v7348_v44, %v2867_v13 }
0x1553   :  { %v2869_v37 = vmul.f32 0.5, %v2868_v21 }
0x1555   :  { %v2870_v60 = vsub.f32 1.5, %v2869_v37 }
0x1556   :  { %v6989_v18 = vpop.permute.xlu0 %6988 }
0x1557   :  { %v2871_v33 = vmul.f32 %v7348_v44, %v2870_v60  ;;  %v6991_v25 = vunpack.i.h.bf16 %v6989_v18  ;;  %v6990_v0 = vunpack.i.l.bf16 %v6989_v18 }
0x1559   :  { %v2875_v50 = vsel %vm2874_vm9, %v7348_v44, %v2871_v33  ;;  %3720 = vmatpush.msra.mxu2 %v6990_v0 }
0x155a   :  { %v2897_v20 = vmul.f32 %v2875_v50, %v8842_v24 }
0x155b   :  { %3721 = vmatpush.msra.mxu2 %v6991_v25 }
0x155c   :  { %v2903_v1 = vmul.f32 %v8879_v29, %v2897_v20  ;;  %6734 = vmatmul.msk.f32.vlgmr.msra.gmra.mxu2 %vm136_vm1, %v8892_v58 }
0x155e   :  { %v8899_v54 = vadd.f32 %v8882_v23, %v2903_v1 }
0x155f   :  { %2819 = vadd.xlane.f32.xlu0 %v2818_v16 }
0x1560   :  { %v8903_v24 = vadd.f32 %v7494_v35, %v8899_v54 }
0x1564   :  { %6735 = vmatmul.msk.f32.gmra.mxu2 %vm136_vm1, %v8903_v24 }
0x1573   :  { %v3599_v26 = vpop.xlane.xlu2 %3598 }
0x1574   :  { %v3603_v62 = vmul.f32 %v3599_v26, %v7678_v34 }
0x1576   :  { %v3605_v7 = vadd.f32 1e-05, %v3603_v62 }
0x1578   :  { %7349 = vrsqrt.f32 %v3605_v7  ;;  %vm3613_vm11 = vweird.f32 %v3605_v7 }
0x157b   :  { %v3535_v46 = vpop.permute.xlu2 %3534 }
0x157c   :  { %v3545_v27 = vsel %vm456_vm15, %v8863_v30, %v3535_v46 }
0x157e   :  { %v7350_v49 = vpop.eup %7349 }
0x157f   :  { %v3608_v4 = vmul.f32 %v7350_v49, %v3605_v7  ;;  %vm3614_vm10 = vweird.f32 %v7350_v49 }
0x1580   :  { %vm3615_vm12 = vmor %vm3613_vm11, %vm3614_vm10 }
0x1581   :  { %v3609_v52 = vmul.f32 %v7350_v49, %v3608_v4 }
0x1583   :  { %v3610_v3 = vmul.f32 0.5, %v3609_v52 }
0x1585   :  { %v3611_v40 = vsub.f32 1.5, %v3610_v3 }
0x1587   :  { %v3612_v12 = vmul.f32 %v7350_v49, %v3611_v40 }
0x1589   :  { %v3616_v9 = vsel %vm3615_vm12, %v7350_v49, %v3612_v12 }
0x158a   :  { %v3627_v53 = vmul.f32 %v3616_v9, %v8856_v42 }
0x158c   :  { %v3631_v2 = vmul.f32 %v8908_v6, %v3627_v53 }
0x158e   :  { %v8915_v63 = vadd.f32 %v8910_v11, %v3631_v2 }
0x1590   :  { %v3637_v59 = vadd.f32 %v7495_v14, %v8915_v63 }
0x1592   :  { %6732 = vmatmul.msk.f32.vlgmr.msrb.gmra.mxu1 %vm136_vm1, %v3637_v59 }
0x1595   :  { %v3543_v22 = vpop.permute.xlu1 %3542 }
0x159d   :  { %v8933_v60 = vpop.permute.xlu1 %3691 }
0x15a7   :  { %v3539_v47 = vpop.permute.xlu0 %3538 }
0x15a8   :  { %v3546_v39 = vsel %vm488_vm3, %v3545_v27, %v3539_v47 }
0x15a9   :  { %v3547_v42 = vsel %vm858_vm4, %v3546_v39, %v3543_v22 }
0x15aa   :  { %6731 = vmatmul.msk.f32.gmra.mxu0 %vm136_vm1, %v3547_v42 }
0x15b4   :  { %v2823_v17 = vpop.xlane.xlu2 %2822 }
0x15b5   :  { %v2827_v61 = vmul.f32 %v2823_v17, %v7678_v34  ;;  %v7496_v17 = vld [vmem:[#allocation7 + $0x560] sm:$0xff] }
0x15b7   :  { %v8926_v38 = vsub.f32 %v8870_v36, %v2827_v61 }
0x15b9   :  { %v2835_v15 = vmul.f32 %v8926_v38, %v8926_v38 }
0x15bb   :  { %v2845_v44 = vsel %vm136_vm1, %v2835_v15, 0.0 }
0x15bc   :  { %2846 = vadd.xlane.f32.xlu0 %v2845_v44 }
0x15d2   :  { %v2820_v30 = vpop.xlane.xlu0 %2819 }
0x15d3   :  { %v2826_v48 = vmul.f32 %v2820_v30, %v7678_v34  ;;  %v7497_v30 = vld [vmem:[#allocation7 + $0x568] sm:$0xff] }
0x15d5   :  { %v2830_v13 = vsub.f32 %v2810_v28, %v2826_v48 }
0x15d7   :  { %v2834_v21 = vmul.f32 %v2830_v13, %v2830_v13 }
0x15d9   :  { %v2842_v32 = vsel %vm136_vm1, %v2834_v21, 0.0 }
0x15da   :  { %2843 = vadd.xlane.f32.xlu1 %v2842_v32 }
0x15df   :  { %v3723_v37 = vpop.f32.mrf.mxu2 }
0x15e0   :  { %v3724_v18 = vadd.f32 %v3723_v37, %v8933_v60 }
0x15e7   :  { %v3726_v31 = vpop.f32.mrf.mxu2 }
0x15e8   :  { %v3727_v36 = vadd.f32 %v3726_v31, %v8933_v60 }
0x15ea   :  { %4004 = vrot.lane.b32.xlu2 %v3727_v36, %s7615_s13  ;;  %6742 = vmatpush.xpose.msk.msrb.mxu0 %vm456_vm15, %v3727_v36 }
0x15ee   :  { %6743 = vmatpush.xpose.msk.msrb.mxu0 %vm456_vm15, %v3724_v18 }
0x15f2   :  { %3856 = vrot.lane.b32.xlu2 %v3724_v18, %s7613_s11 }
0x15f3   :  { %3858 = vrot.lane.b32.xlu1 %v3727_v36, %s7613_s11 }
0x15fb   :  { %3932 = vrot.lane.b32.xlu1 %v3727_v36, %s7616_s14 }
0x160f   :  { %v3668_v33 = vpop.f32.mrf.mxu1 }
0x1610   :  { %v3669_v25 = vadd.f32 %v8875_v45, %v3668_v33 }
0x1612   :  { %4000 = vrot.lane.b32.xlu2 %v3669_v25, %s7615_s13  ;;  %6744 = vmatmul.msk.f32.vlgmr.msrb.gmra.mxu0 %vm456_vm15, %v3669_v25 }
0x161a   :  { %3930 = vrot.lane.b32.xlu2 %v3724_v18, %s7616_s14 }
0x1622   :  { %6993 = vrot.lane.b32.xlu2 %v8846_v55, %s7608_s4 }
0x1627   :  { %v3580_v0 = vpop.f32.mrf.mxu0 }
0x1628   :  { %v3581_v50 = vadd.f32 %v8827_v10, %v3580_v0 }
0x162a   :  { %v8949_v20 = vadd.f32 %v3581_v50, %v8685_v56 }
0x162c   :  { %v3588_v57 = vsel %vm136_vm1, %v8949_v20, 0.0 }
0x162d   :  { %3589 = vadd.xlane.f32.xlu0 %v3588_v57 }
0x162f   :  { %v2847_v28 = vpop.xlane.xlu0 %2846 }
0x1630   :  { %v2851_v1 = vmul.f32 %v2847_v28, %v7678_v34 }
0x1632   :  { %v2855_v16 = vadd.f32 1e-05, %v2851_v1 }
0x1634   :  { %7351 = vrsqrt.f32 %v2855_v16  ;;  %vm2892_vm2 = vweird.f32 %v2855_v16 }
0x163a   :  { %v7352_v56 = vpop.eup %7351 }
0x163b   :  { %v2887_v62 = vmul.f32 %v7352_v56, %v2855_v16  ;;  %vm2893_vm13 = vweird.f32 %v7352_v56 }
0x163c   :  { %vm2894_vm5 = vmor %vm2892_vm2, %vm2893_vm13 }
0x163d   :  { %v2888_v49 = vmul.f32 %v7352_v56, %v2887_v62 }
0x163f   :  { %v2889_v4 = vmul.f32 0.5, %v2888_v49 }
0x1641   :  { %4002 = vrot.lane.b32.xlu0 %v3724_v18, %s7615_s13  ;;  %v2890_v40 = vsub.f32 1.5, %v2889_v4 }
0x1643   :  { %v2891_v55 = vmul.f32 %v7352_v56, %v2890_v40 }
0x1644   :  { %v4005_v35 = vpop.permute.xlu2 %4004 }
0x1645   :  { %6754 = vmatpush.xpose.msk.msrb.mxu2 %vm456_vm15, %v4005_v35  ;;  %v2895_v14 = vsel %vm2894_vm5, %v7352_v56, %v2891_v55 }
0x1646   :  { %v2899_v22 = vmul.f32 %v2895_v14, %v8926_v38  ;;  %v9023_v14 = vld [vmem:[#allocation7 + $0x578] sm:$0xff] }
0x1648   :  { %v2905_v42 = vmul.f32 %v8879_v29, %v2899_v22 }
0x1649   :  { %3854 = vrot.lane.b32.xlu0 %v3669_v25, %s7613_s11 }
0x164a   :  { %v8977_v44 = vadd.f32 %v8882_v23, %v2905_v42 }
0x164c   :  { %v3857_v46 = vpop.permute.xlu2 %3856  ;;  %v8981_v48 = vadd.f32 %v7497_v30, %v8977_v44 }
0x164d   :  { %v2844_v10 = vpop.xlane.xlu1 %2843 }
0x164e   :  { %v2850_v26 = vmul.f32 %v2844_v10, %v7678_v34 }
0x1650   :  { %v2854_v7 = vadd.f32 1e-05, %v2850_v26 }
0x1651   :  { %3928 = vrot.lane.b32.xlu0 %v3669_v25, %s7616_s14 }
0x1652   :  { %7353 = vrsqrt.f32 %v2854_v7  ;;  %vm2882_vm6 = vweird.f32 %v2854_v7 }
0x1658   :  { %v7354_v52 = vpop.eup %7353 }
0x1659   :  { %v2877_v3 = vmul.f32 %v7354_v52, %v2854_v7  ;;  %6998 = vrot.lane.b32.xlu0 %v8851_v43, %s7608_s4  ;;  %vm2883_vm14 = vweird.f32 %v7354_v52 }
0x165a   :  { %vm2884_vm7 = vmor %vm2882_vm6, %vm2883_vm14 }
0x165b   :  { %v2878_v12 = vmul.f32 %v7354_v52, %v2877_v3 }
0x165d   :  { %v2879_v9 = vmul.f32 0.5, %v2878_v12 }
0x165f   :  { %v2880_v53 = vsub.f32 1.5, %v2879_v9 }
0x1661   :  { %v2881_v2 = vmul.f32 %v7354_v52, %v2880_v53 }
0x1663   :  { %v2885_v59 = vsel %vm2884_vm7, %v7354_v52, %v2881_v2 }
0x1664   :  { %v2898_v27 = vmul.f32 %v2885_v59, %v2830_v13 }
0x1665   :  { %v3859_v47 = vpop.permute.xlu1 %3858 }
0x1666   :  { %v2904_v43 = vmul.f32 %v8879_v29, %v2898_v27  ;;  %6746 = vmatpush.xpose.msk.msra.mxu0 %vm456_vm15, %v3859_v47 }
0x1668   :  { %v8967_v39 = vadd.f32 %v8882_v23, %v2904_v43 }
0x166a   :  { %6747 = vmatpush.xpose.msk.msra.mxu0 %vm456_vm15, %v3857_v46  ;;  %v8972_v61 = vadd.f32 %v7496_v17, %v8967_v39 }
0x166c   :  { %6736 = vmatmul.msk.f32.gmra.mxu2 %vm136_vm1, %v8972_v61  ;;  %v4001_v15 = vpop.permute.xlu2 %4000 }
0x166d   :  { %v3933_v38 = vpop.permute.xlu1 %3932 }
0x166e   :  { %6750 = vmatpush.xpose.msk.msrb.mxu0 %vm456_vm15, %v3933_v38 }
0x1674   :  { %6737 = vmatmul.msk.f32.gmra.mxu2 %vm136_vm1, %v8981_v48  ;;  %v3931_v29 = vpop.permute.xlu2 %3930 }
0x1675   :  { %6751 = vmatpush.xpose.msk.msrb.mxu0 %vm456_vm15, %v3931_v29 }
0x167c   :  { %v6994_v36 = vpop.permute.xlu2 %6993 }
0x167d   :  { %v6996_v33 = vunpack.i.h.bf16 %v6994_v36  ;;  %v6995_v25 = vunpack.i.l.bf16 %v6994_v36 }
0x167f   :  { %3774 = vmatpush.msra.mxu3 %v6995_v25 }
0x1681   :  { %3775 = vmatpush.msra.mxu3 %v6996_v33 }
0x168f   :  { %v3817_v13 = vpop.f32.mrf.mxu0 }
0x1690   :  { %v8987_v21 = vadd.f32 %v3817_v13, %v7820_v51 }
0x1692   :  { %v3820_v23 = vsel %vm488_vm3, %v8987_v21, -inf }
0x1693   :  { %3821 = vmax.xlane.f32.xlu2 %v3820_v23 }
0x16a0   :  { %v3590_v32 = vpop.xlane.xlu0 %3589 }
0x16a1   :  { %v3592_v37 = vmul.f32 %v3590_v32, %v7678_v34 }
0x16a3   :  { %v3594_v31 = vsub.f32 %v8949_v20, %v3592_v37 }
0x16a5   :  { %v3596_v18 = vmul.f32 %v3594_v31, %v3594_v31 }
0x16a7   :  { %v3600_v0 = vsel %vm136_vm1, %v3596_v18, 0.0 }
0x16a8   :  { %3601 = vadd.xlane.f32.xlu1 %v3600_v0 }
0x16ab   :  { %3747 = vrot.lane.b32.xlu2 %v8875_v45, %s7608_s4 }
0x16b3   :  { %v4003_v50 = vpop.permute.xlu0 %4002 }
0x16b4   :  { %6755 = vmatpush.xpose.msk.msrb.mxu2 %vm456_vm15, %v4003_v50 }
0x16b7   :  { %6756 = vmatmul.msk.f32.vlgmr.msrb.gmra.mxu2 %vm456_vm15, %v4001_v15 }
0x16bb   :  { %v3855_v57 = vpop.permute.xlu0 %3854 }
0x16bc   :  { %6748 = vmatmul.msk.f32.vlgmr.msra.gmra.mxu0 %vm456_vm15, %v3855_v57 }
0x16c3   :  { %v3929_v20 = vpop.permute.xlu0 %3928 }
0x16c4   :  { %6752 = vmatmul.msk.f32.vlgmr.msrb.gmra.mxu0 %vm456_vm15, %v3929_v20 }
0x16cb   :  { %v6999_v28 = vpop.permute.xlu0 %6998 }
0x16cc   :  { %v7000_v1 = vunpack.i.l.bf16 %v6999_v28  ;;  %v7001_v16 = vunpack.i.h.bf16 %v6999_v28 }
0x16ce   :  { %3776 = vmatpush.msra.mxu3 %v7000_v1 }
0x16d0   :  { %3777 = vmatpush.msra.mxu3 %v7001_v16 }
0x16d1   :  { %6738 = vmatmul.msk.f32.vlgmr.msra.gmra.mxu3 %vm136_vm1, %v8888_v41 }
0x16d9   :  { %6739 = vmatmul.msk.f32.gmra.mxu3 %vm136_vm1, %v8899_v54 }
0x16e1   :  { %6740 = vmatmul.msk.f32.gmra.mxu3 %vm136_vm1, %v8967_v39 }
0x16e9   :  { %6741 = vmatmul.msk.f32.gmra.mxu3 %vm136_vm1, %v8977_v44 }
0x16ef   :  { %v3729_v35 = vpop.f32.mrf.mxu2 }
0x16f0   :  { %v3730_v26 = vadd.f32 %v3729_v35, %v8933_v60 }
0x16f7   :  { %v3732_v56 = vpop.f32.mrf.mxu2 }
0x16f8   :  { %v9009_v10 = vadd.f32 %v3732_v56, %v8933_v60 }
0x16fa   :  { %6758 = vmatpush.xpose.msk.msra.mxu0 %vm456_vm15, %v9009_v10  ;;  %4154 = vrot.lane.b32.xlu2 %v9009_v10, %s7613_s11 }
0x16fe   :  { %6759 = vmatpush.xpose.msk.msra.mxu0 %vm456_vm15, %v3730_v26 }
0x1702   :  { %4152 = vrot.lane.b32.xlu2 %v3730_v26, %s7613_s11 }
0x1706   :  { %v3822_v46 = vpop.xlane.xlu2 %3821 }
0x1707   :  { %v3823_v33 = vsub.f32 %v8987_v21, %v3822_v46 }
0x170e   :  { %v9028_v27 = vpop.permute.xlu2 %3747 }
0x171b   :  { %v3602_v62 = vpop.xlane.xlu1 %3601 }
0x171c   :  { %v3604_v7 = vmul.f32 %v3602_v62, %v7678_v34 }
0x171e   :  { %v3606_v49 = vadd.f32 1e-05, %v3604_v7 }
0x1720   :  { %7355 = vrsqrt.f32 %v3606_v49  ;;  %vm3623_vm9 = vweird.f32 %v3606_v49 }
0x1726   :  { %v7356_v4 = vpop.eup %7355 }
0x1727   :  { %v3618_v52 = vmul.f32 %v7356_v4, %v3606_v49  ;;  %vm3624_vm8 = vweird.f32 %v7356_v4 }
0x1728   :  { %vm3625_vm10 = vmor %vm3623_vm9, %vm3624_vm8 }
0x1729   :  { %v3619_v3 = vmul.f32 %v7356_v4, %v3618_v52 }
0x172b   :  { %v3620_v40 = vmul.f32 0.5, %v3619_v3 }
0x172d   :  { %v3621_v12 = vsub.f32 1.5, %v3620_v40 }
0x172f   :  { %v3622_v9 = vmul.f32 %v7356_v4, %v3621_v12 }
0x1731   :  { %v3626_v55 = vsel %vm3625_vm10, %v7356_v4, %v3622_v9 }
0x1732   :  { %v3628_v60 = vmul.f32 %v3626_v55, %v3594_v31 }
0x1734   :  { %v3632_v53 = vmul.f32 %v8908_v6, %v3628_v60 }
0x1736   :  { %v9021_v2 = vadd.f32 %v8910_v11, %v3632_v53 }
0x1738   :  { %v3638_v59 = vadd.f32 %v9023_v14, %v9021_v2 }
0x1739   :  { %v3883_v15 = vpop.f32.mrf.mxu0 }
0x173a   :  { %6733 = vmatmul.msk.f32.gmra.mxu1 %vm136_vm1, %v3638_v59  ;;  %v3884_v38 = vadd.f32 %v3883_v15, %v7820_v51  ;;  %v4029_v29 = vpop.f32.mrf.mxu2 }
0x173b   :  { %v4030_v13 = vadd.f32 %v4029_v29, %v7820_v51 }
0x173c   :  { %v3886_v30 = vsel %vm488_vm3, %v3884_v38, -inf }
0x173d   :  { %v4032_v23 = vsel %vm488_vm3, %v4030_v13, -inf }
0x1741   :  { %v3957_v32 = vpop.f32.mrf.mxu0 }
0x1742   :  { %v3958_v37 = vadd.f32 %v3957_v32, %v7820_v51 }
0x1744   :  { %v3960_v31 = vsel %vm488_vm3, %v3958_v37, -inf }
0x1754   :  { %v3779_v47 = vpop.f32.mrf.mxu3  ;;  %v4155_v22 = vpop.permute.xlu2 %4154 }
0x1755   :  { %6762 = vmatpush.xpose.msk.msra.mxu2 %vm456_vm15, %v4155_v22  ;;  %v3780_v6 = vadd.f32 %v3779_v47, %v9028_v27 }
0x175c   :  { %v3782_v43 = vpop.f32.mrf.mxu3  ;;  %v4153_v42 = vpop.permute.xlu2 %4152 }
0x175d   :  { %v3783_v11 = vadd.f32 %v3782_v43, %v9028_v27  ;;  %6763 = vmatpush.xpose.msk.msra.mxu2 %vm456_vm15, %v4153_v42 }
0x175f   :  { %3848 = vmatpush.msra.mxu1 %v3783_v11  ;;  %v7007_v17 = vpack.i.bf16 %v3780_v6, %v3783_v11 }
0x1761   :  { %7008 = vrot.lane.b32.xlu0 %v7007_v17, %s7615_s13  ;;  %7003 = vrot.lane.b32.xlu1 %v7007_v17, %s7613_s11 }
0x1762   :  { %3849 = vmatpush.msra.mxu1 %v3780_v6 }
0x1769   :  { %7013 = vrot.lane.b32.xlu1 %v7007_v17, %s7616_s14 }
0x178b   :  { %3887 = vmax.xlane.f32.xlu0 %v3886_v30 }
0x1793   :  { %4033 = vmax.xlane.f32.xlu1 %v4032_v23 }
0x179b   :  { %3961 = vmax.xlane.f32.xlu1 %v3960_v31 }
0x17b4   :  { %4300 = vrot.lane.b32.xlu1 %v9009_v10, %s7615_s13 }
0x17b7   :  { %v3671_v36 = vpop.f32.mrf.mxu1 }
0x17b8   :  { %v3672_v18 = vadd.f32 %v8875_v45, %v3671_v36  ;;  %v3824_v45 = vmul.f32 1.442695, %v3823_v33 }
0x17ba   :  { %6760 = vmatmul.msk.f32.vlgmr.msra.gmra.mxu0 %vm456_vm15, %v3672_v18  ;;  %4150 = vrot.lane.b32.xlu2 %v3672_v18, %s7613_s11  ;;  %7357 = vpow2.f32 %v3824_v45 }
0x17bb   :  { %4296 = vrot.lane.b32.xlu0 %v3672_v18, %s7615_s13 }
0x17c0   :  { %v7358_v1 = vpop.eup %7357 }
0x17c1   :  { %v3826_v16 = vsel %vm488_vm3, %v7358_v1, 0.0 }
0x17c2   :  { %4298 = vrot.lane.b32.xlu2 %v3730_v26, %s7615_s13 }
0x17ca   :  { %4226 = vrot.lane.b32.xlu2 %v3730_v26, %s7616_s14 }
0x17d3   :  { %v7009_v25 = vpop.permute.xlu0 %7008  ;;  %v7004_v0 = vpop.permute.xlu1 %7003 }
0x17d4   :  { %v7010_v50 = vunpack.i.l.bf16 %v7009_v25  ;;  %v7005_v57 = vunpack.i.l.bf16 %v7004_v0  ;;  %v7011_v20 = vunpack.i.h.bf16 %v7009_v25  ;;  %v7006_v28 = vunpack.i.h.bf16 %v7004_v0 }
0x17d6   :  { %3922 = vmatpush.msrb.mxu1 %v7005_v57  ;;  %4066 = vmatpush.msrb.mxu3 %v7010_v50 }
0x17d8   :  { %3923 = vmatpush.msrb.mxu1 %v7006_v28  ;;  %4067 = vmatpush.msrb.mxu3 %v7011_v20 }
0x17db   :  { %v7014_v35 = vpop.permute.xlu1 %7013 }
0x17dc   :  { %v7015_v11 = vunpack.i.l.bf16 %v7014_v35  ;;  %v7016_v17 = vunpack.i.h.bf16 %v7014_v35 }
0x17e5   :  { %3827 = vadd.xlane.f32.xlu0 %v3826_v16 }
0x17fe   :  { %v3888_v56 = vpop.xlane.xlu0 %3887 }
0x17ff   :  { %v3889_v26 = vsub.f32 %v3884_v38, %v3888_v56 }
0x1801   :  { %v3890_v21 = vmul.f32 1.442695, %v3889_v26 }
0x1803   :  { %7359 = vpow2.f32 %v3890_v21 }
0x1806   :  { %v4034_v62 = vpop.xlane.xlu1 %4033 }
0x1807   :  { %v4035_v7 = vsub.f32 %v4030_v13, %v4034_v62 }
0x1809   :  { %v7360_v49 = vpop.eup %7359  ;;  %v4036_v4 = vmul.f32 1.442695, %v4035_v7 }
0x180a   :  { %v3892_v52 = vsel %vm488_vm3, %v7360_v49, 0.0 }
0x180b   :  { %7361 = vpow2.f32 %v4036_v4  ;;  %3893 = vadd.xlane.f32.xlu1 %v3892_v52 }
0x180e   :  { %v3962_v3 = vpop.xlane.xlu1 %3961 }
0x180f   :  { %v3963_v40 = vsub.f32 %v3958_v37, %v3962_v3 }
0x1811   :  { %v7362_v12 = vpop.eup %7361  ;;  %v3964_v9 = vmul.f32 1.442695, %v3963_v40 }
0x1812   :  { %v4038_v55 = vsel %vm488_vm3, %v7362_v12, 0.0 }
0x1813   :  { %7363 = vpow2.f32 %v3964_v9  ;;  %4039 = vadd.xlane.f32.xlu0 %v4038_v55 }
0x1814   :  { %v4151_v60 = vpop.permute.xlu2 %4150 }
0x1815   :  { %6764 = vmatmul.msk.f32.vlgmr.msra.gmra.mxu2 %vm456_vm15, %v4151_v60 }
0x1819   :  { %v7364_v53 = vpop.eup %7363 }
0x181a   :  { %v3966_v59 = vsel %vm488_vm3, %v7364_v53, 0.0 }
0x181b   :  { %3967 = vadd.xlane.f32.xlu0 %v3966_v59  ;;  %v4385_v59 = vld [vmem:[#allocation7 + $0x208] sm:$0xff] }
0x181c   :  { %v4299_v47 = vpop.permute.xlu2 %4298 }
0x1824   :  { %4228 = vrot.lane.b32.xlu1 %v9009_v10, %s7616_s14  ;;  %v3785_v10 = vpop.f32.mrf.mxu3  ;;  %v4227_v57 = vpop.permute.xlu2 %4226 }
0x1825   :  { %v3786_v32 = vadd.f32 %v3785_v10, %v9028_v27 }
0x1826   :  { %v4301_v46 = vpop.permute.xlu1 %4300 }
0x1827   :  { %6770 = vmatpush.xpose.msk.msrb.mxu2 %vm456_vm15, %v4301_v46  ;;  %v4384_v46 = vld [vmem:[#allocation7 + $0x200] sm:$0xff] }
0x182b   :  { %6771 = vmatpush.xpose.msk.msrb.mxu2 %vm456_vm15, %v4299_v47  ;;  %v4383_v47 = vld [vmem:[#allocation7 + $0x1f8] sm:$0xff] }
0x182c   :  { %v3788_v38 = vpop.f32.mrf.mxu3 }
0x182d   :  { %v4297_v22 = vpop.permute.xlu0 %4296  ;;  %v3789_v23 = vadd.f32 %v3788_v38, %v9028_v27 }
0x182e   :  { %6772 = vmatmul.msk.f32.vlgmr.msrb.gmra.mxu2 %vm456_vm15, %v4297_v22 }
0x182f   :  { %4224 = vrot.lane.b32.xlu0 %v3672_v18, %s7616_s14  ;;  %v7017_v60 = vpack.i.bf16 %v3786_v32, %v3789_v23 }
0x1837   :  { %v4113_v35 = vpop.f32.mrf.mxu0 }
0x1838   :  { %v4114_v3 = vadd.f32 %v4113_v35, %v7935_v5 }
0x1858   :  { %v3828_v43 = vpop.xlane.xlu0 %3827 }
0x1859   :  { %7365 = vrcp.f32 %v3828_v43 }
0x185f   :  { %v7366_v42 = vpop.eup %7365 }
0x1860   :  { %v3830_v6 = vmul.f32 %v7366_v42, %v7358_v1 }
0x1862   :  { %6745 = vmatmul.msk.f32.vlgmr.msra.gmra.mxu1 %vm488_vm3, %v3830_v6 }
0x1863   :  { %3994 = vmatpush.msra.mxu1 %v7015_v11 }
0x1865   :  { %3995 = vmatpush.msra.mxu1 %v7016_v17 }
0x187e   :  { %v3894_v15 = vpop.xlane.xlu1 %3893 }
0x187f   :  { %7367 = vrcp.f32 %v3894_v15 }
0x1885   :  { %v7368_v30 = vpop.eup %7367 }
0x1886   :  { %v3896_v29 = vmul.f32 %v7368_v30, %v7360_v49  ;;  %v4040_v13 = vpop.xlane.xlu0 %4039 }
0x1887   :  { %7369 = vrcp.f32 %v4040_v13 }
0x1888   :  { %6749 = vmatmul.msk.f32.vlgmr.msrb.gmra.mxu1 %vm488_vm3, %v3896_v29 }
0x1889   :  { %4144 = vmatpush.msrb.mxu1 %v3789_v23 }
0x188b   :  { %4145 = vmatpush.msrb.mxu1 %v3786_v32 }
0x188d   :  { %v7370_v37 = vpop.eup %7369 }
0x188e   :  { %v4042_v31 = vmul.f32 %v7370_v37, %v7362_v12  ;;  %v3968_v36 = vpop.xlane.xlu0 %3967  ;;  %v4116_v12 = vsel %vm488_vm3, %v4114_v3, -inf }
0x188f   :  { %7371 = vrcp.f32 %v3968_v36 }
0x1890   :  { %6757 = vmatmul.msk.f32.vlgmr.msrb.gmra.mxu3 %vm488_vm3, %v4042_v31 }
0x1895   :  { %v7372_v18 = vpop.eup %7371 }
0x1896   :  { %v3970_v33 = vmul.f32 %v7372_v18, %v7364_v53  ;;  %v4229_v25 = vpop.permute.xlu1 %4228  ;;  %v4386_v53 = vld [vmem:[#allocation7 + $0x210] sm:$0xff] }
0x1897   :  { %6766 = vmatpush.xpose.msk.msrb.mxu0 %vm456_vm15, %v4229_v25 }
0x1898   :  { %6753 = vmatmul.msk.f32.vlgmr.msra.gmra.mxu1 %vm488_vm3, %v3970_v33  ;;  %v4179_v0 = vpop.f32.mrf.mxu2 }
0x1899   :  { %v4180_v50 = vadd.f32 %v4179_v0, %v7935_v5 }
0x189b   :  { %6767 = vmatpush.xpose.msk.msrb.mxu0 %vm456_vm15, %v4227_v57  ;;  %v4182_v27 = vsel %vm488_vm3, %v4180_v50, -inf }
0x189c   :  { %4183 = vmax.xlane.f32.xlu1 %v4182_v27 }
0x189f   :  { %4407 = vmatpush.msra.mxu0 %v4386_v53 }
0x18a1   :  { %v4225_v20 = vpop.permute.xlu0 %4224  ;;  %4408 = vmatpush.msra.mxu0 %v4385_v59 }
0x18a2   :  { %6768 = vmatmul.msk.f32.vlgmr.msrb.gmra.mxu0 %vm456_vm15, %v4225_v20 }
0x18a3   :  { %4409 = vmatpush.msra.mxu0 %v4384_v46 }
0x18a5   :  { %4410 = vmatpush.msra.mxu0 %v4383_v47 }
0x18b1   :  { %v4325_v49 = vpop.f32.mrf.mxu2 }
0x18b2   :  { %v4326_v4 = vadd.f32 %v4325_v49, %v7935_v5 }
0x18b4   :  { %v4328_v40 = vsel %vm488_vm3, %v4326_v4, -inf }
0x18df   :  { %v3851_v28 = vpop.f32.mrf.mxu1 }
0x1905   :  { %v3925_v45 = vpop.f32.mrf.mxu1 }
0x1906   :  { %4073 = vrot.lane.b32.xlu1 %v3925_v45, %s7605_s27 }
0x190f   :  { %v4184_v62 = vpop.xlane.xlu1 %4183 }
0x1910   :  { %v4185_v7 = vsub.f32 %v4180_v50, %v4184_v62 }
0x1912   :  { %v4186_v52 = vmul.f32 1.442695, %v4185_v7 }
0x1913   :  { %v4069_v1 = vpop.f32.mrf.mxu3 }
0x1914   :  { %4081 = vrot.lane.b32.xlu0 %v4069_v1, %s7619_s17  ;;  %7373 = vpow2.f32 %v4186_v52  ;;  %v9095_v1 = vld [vmem:[#allocation7 + $0x218] ss:$0 sm:$0xff] }
0x1915   :  { %v3997_v16 = vpop.f32.mrf.mxu1 }
0x1916   :  { %4077 = vrot.lane.b32.xlu2 %v3997_v16, %s7618_s2 }
0x191a   :  { %v7374_v9 = vpop.eup %7373 }
0x191b   :  { %v4188_v55 = vsel %vm488_vm3, %v7374_v9, 0.0 }
0x191f   :  { %v4253_v56 = vpop.f32.mrf.mxu0 }
0x1920   :  { %v4254_v26 = vadd.f32 %v4253_v56, %v7935_v5 }
0x1922   :  { %v4256_v21 = vsel %vm488_vm3, %v4254_v26, -inf }
0x1930   :  { %4257 = vmax.xlane.f32.xlu1 %v4256_v21 }
0x193e   :  { %4329 = vmax.xlane.f32.xlu0 %v4328_v40 }
0x193f   :  { %4117 = vmax.xlane.f32.xlu2 %v4116_v12 }
0x1947   :  { %4189 = vadd.xlane.f32.xlu2 %v4188_v55 }
0x1949   :  { %7018 = vrot.lane.b32.xlu1 %v7017_v60, %s7613_s11 }
0x1970   :  { %v4078_v42 = vpop.permute.xlu2 %4077 }
0x1978   :  { %v4074_v22 = vpop.permute.xlu1 %4073 }
0x1979   :  { %v4084_v43 = vsel %vm456_vm15, %v3851_v28, %v4074_v22 }
0x197a   :  { %v4085_v11 = vsel %vm488_vm3, %v4084_v43, %v4078_v42 }
0x1986   :  { %v4082_v6 = vpop.permute.xlu0 %4081 }
0x1987   :  { %v4086_v17 = vsel %vm858_vm4, %v4085_v11, %v4082_v6 }
0x1988   :  { %6774 = vmatmul.msk.f32.vlgmr.msra.gmra.mxu0 %vm136_vm1, %v4086_v17 }
0x19a3   :  { %v4258_v15 = vpop.xlane.xlu1 %4257 }
0x19a4   :  { %v4259_v23 = vsub.f32 %v4254_v26, %v4258_v15  ;;  %v4475_v15 = vld [vmem:[#allocation7 + $0x368] sm:$0xff] }
0x19a6   :  { %v4260_v37 = vmul.f32 1.442695, %v4259_v23 }
0x19b1   :  { %v4330_v10 = vpop.xlane.xlu0 %4329 }
0x19b2   :  { %v4331_v38 = vsub.f32 %v4326_v4, %v4330_v10  ;;  %v4118_v30 = vpop.xlane.xlu2 %4117 }
0x19b3   :  { %v4119_v29 = vsub.f32 %v4114_v3, %v4118_v30  ;;  %v4473_v30 = vld [vmem:[#allocation7 + $0x358] sm:$0xff] }
0x19b4   :  { %v4332_v13 = vmul.f32 1.442695, %v4331_v38  ;;  %v4474_v38 = vld [vmem:[#allocation7 + $0x360] sm:$0xff] }
0x19b5   :  { %v4120_v32 = vmul.f32 1.442695, %v4119_v29  ;;  %v4472_v29 = vld [vmem:[#allocation7 + $0x350] sm:$0xff] }
0x19b6   :  { %7375 = vpow2.f32 %v4332_v13 }
0x19b7   :  { %7377 = vpow2.f32 %v4120_v32 }
0x19ba   :  { %v4190_v31 = vpop.xlane.xlu2 %4189 }
0x19bb   :  { %7379 = vrcp.f32 %v4190_v31  ;;  %v7019_v36 = vpop.permute.xlu1 %7018 }
0x19bc   :  { %v7376_v18 = vpop.eup %7375  ;;  %v7020_v33 = vunpack.i.l.bf16 %v7019_v36  ;;  %7381 = vpow2.f32 %v4260_v37  ;;  %v7021_v50 = vunpack.i.h.bf16 %v7019_v36 }
0x19bd   :  { %v7378_v25 = vpop.eup %7377  ;;  %v4334_v0 = vsel %vm488_vm3, %v7376_v18, 0.0 }
0x19be   :  { %4335 = vadd.xlane.f32.xlu2 %v4334_v0  ;;  %4218 = vmatpush.msra.mxu3 %v7020_v33  ;;  %v4122_v57 = vsel %vm488_vm3, %v7378_v25, 0.0  ;;  %v9109_v0 = vld [vmem:[#allocation7 + $0x4a0] ss:$0 sm:$0xff] }
0x19bf   :  { %4123 = vadd.xlane.f32.xlu0 %v4122_v57  ;;  %v9111_v57 = vld [vmem:[#allocation7 + $0x4a8] ss:$0 sm:$0xff] }
0x19c0   :  { %4219 = vmatpush.msra.mxu3 %v7021_v50 }
0x19c1   :  { %v7380_v27 = vpop.eup %7379 }
0x19c2   :  { %v4192_v20 = vmul.f32 %v7380_v27, %v7374_v9  ;;  %v7382_v28 = vpop.eup %7381 }
0x19c3   :  { %v4262_v45 = vsel %vm488_vm3, %v7382_v28, 0.0 }
0x19c4   :  { %6765 = vmatmul.msk.f32.vlgmr.msra.gmra.mxu3 %vm488_vm3, %v4192_v20 }
0x19c7   :  { %4263 = vadd.xlane.f32.xlu0 %v4262_v45  ;;  %v4516_v45 = vld [vmem:[#allocation7 + $0x3b0] sm:$0xff] }
0x19c8   :  { %4533 = vmatpush.msra.mxu2 %v4516_v45 }
0x19d6   :  { %7023 = vrot.lane.b32.xlu2 %v7017_v60, %s7615_s13 }
0x19db   :  { %7028 = vrot.lane.b32.xlu0 %v7017_v60, %s7616_s14 }
0x1a05   :  { %v4412_v16 = vpop.f32.mrf.mxu0 }
0x1a06   :  { %v4413_v35 = vadd.f32 %v9095_v1, %v4412_v16  ;;  %v4515_v16 = vld [vmem:[#allocation7 + $0x3a8] sm:$0xff] }
0x1a07   :  { %4534 = vmatpush.msra.mxu2 %v4515_v16 }
0x1a08   :  { %v4418_v56 = vadd.f32 %v4413_v35, %v8915_v63  ;;  %v4514_v35 = vld [vmem:[#allocation7 + $0x3a0] sm:$0xff] }
0x1a09   :  { %4535 = vmatpush.msra.mxu2 %v4514_v35  ;;  %v9139_v35 = vld [vmem:[#allocation7 + $0x198] sm:$0xff] }
0x1a0a   :  { %v4420_v26 = vsel %vm136_vm1, %v4418_v56, 0.0 }
0x1a0b   :  { %4421 = vadd.xlane.f32.xlu1 %v4420_v26  ;;  %v4512_v26 = vld [vmem:[#allocation7 + $0x390] sm:$0xff] }
0x1a31   :  { %v4336_v21 = vpop.xlane.xlu2 %4335 }
0x1a32   :  { %v4124_v62 = vpop.xlane.xlu0 %4123 }
0x1a33   :  { %7383 = vrcp.f32 %v4124_v62 }
0x1a34   :  { %7385 = vrcp.f32 %v4336_v21 }
0x1a39   :  { %v7384_v7 = vpop.eup %7383  ;;  %v7024_v49 = vpop.permute.xlu2 %7023 }
0x1a3a   :  { %v7386_v4 = vpop.eup %7385  ;;  %v4126_v52 = vmul.f32 %v7384_v7, %v7378_v25  ;;  %v7025_v3 = vunpack.i.l.bf16 %v7024_v49  ;;  %v7026_v40 = vunpack.i.h.bf16 %v7024_v49  ;;  %v4264_v63 = vpop.xlane.xlu0 %4263 }
0x1a3b   :  { %v4338_v12 = vmul.f32 %v7386_v4, %v7376_v18  ;;  %7387 = vrcp.f32 %v4264_v63  ;;  %v9120_v63 = vld [vmem:[#allocation7 + $0x370] ss:$0 sm:$0xff] }
0x1a3c   :  { %6761 = vmatmul.msk.f32.vlgmr.msrb.gmra.mxu1 %vm488_vm3, %v4126_v52  ;;  %4362 = vmatpush.msrb.mxu3 %v7025_v3  ;;  %v4511_v3 = vld [vmem:[#allocation7 + $0x388] sm:$0xff] }
0x1a3e   :  { %4363 = vmatpush.msrb.mxu3 %v7026_v40  ;;  %v4510_v40 = vld [vmem:[#allocation7 + $0x380] sm:$0xff] }
0x1a3f   :  { %6773 = vmatmul.msk.f32.vlgmr.msrb.gmra.mxu3 %vm488_vm3, %v4338_v12  ;;  %v4509_v12 = vld [vmem:[#allocation7 + $0x378] sm:$0xff] }
0x1a40   :  { %4628 = vmatpush.msra.mxu3 %v9139_v35 }
0x1a41   :  { %v7388_v60 = vpop.eup %7387 }
0x1a42   :  { %v4266_v46 = vmul.f32 %v7388_v60, %v7382_v28 }
0x1a47   :  { %v4221_v9 = vpop.f32.mrf.mxu3 }
0x1a48   :  { %4369 = vrot.lane.b32.xlu2 %v4221_v9, %s7605_s27 }
0x1a4d   :  { %v7029_v55 = vpop.permute.xlu0 %7028 }
0x1a4e   :  { %v7030_v53 = vunpack.i.l.bf16 %v7029_v55  ;;  %v7031_v59 = vunpack.i.h.bf16 %v7029_v55 }
0x1a50   :  { %4290 = vmatpush.msra.mxu1 %v7030_v53 }
0x1a52   :  { %4291 = vmatpush.msra.mxu1 %v7031_v59 }
0x1a53   :  { %6769 = vmatmul.msk.f32.vlgmr.msra.gmra.mxu1 %vm488_vm3, %v4266_v46 }
0x1a54   :  { %4496 = vmatpush.msrb.mxu1 %v4475_v15 }
0x1a56   :  { %4497 = vmatpush.msrb.mxu1 %v4474_v38 }
0x1a58   :  { %4498 = vmatpush.msrb.mxu1 %v4473_v30 }
0x1a5a   :  { %4499 = vmatpush.msrb.mxu1 %v4472_v29 }
0x1a7e   :  { %v4422_v47 = vpop.xlane.xlu1 %4421 }
0x1a7f   :  { %v4426_v22 = vmul.f32 %v4422_v47, %v7678_v34 }
0x1a81   :  { %v4428_v43 = vsub.f32 %v4418_v56, %v4426_v22  ;;  %v4513_v56 = vld [vmem:[#allocation7 + $0x398] sm:$0xff] }
0x1a82   :  { %4536 = vmatpush.msra.mxu2 %v4513_v56  ;;  %v9127_v22 = vld [vmem:[#allocation7 + $0x3b8] ss:$0 sm:$0xff]  ;;  %v9142_v56 = vld [vmem:[#allocation7 + $0x190] sm:$0xff] }
0x1a83   :  { %v4430_v42 = vmul.f32 %v4428_v43, %v4428_v43  ;;  %4629 = vmatpush.msra.mxu3 %v9142_v56 }
0x1a84   :  { %4537 = vmatpush.msra.mxu2 %v4512_v26  ;;  %v4605_v26 = vld [vmem:[#allocation7 + $0x188] sm:$0xff] }
0x1a85   :  { %v4432_v6 = vsel %vm136_vm1, %v4430_v42, 0.0  ;;  %4630 = vmatpush.msra.mxu3 %v4605_v26 }
0x1a86   :  { %4433 = vadd.xlane.f32.xlu0 %v4432_v6  ;;  %4538 = vmatpush.msra.mxu2 %v4511_v3 }
0x1a88   :  { %4539 = vmatpush.msra.mxu2 %v4510_v40 }
0x1a8a   :  { %4540 = vmatpush.msra.mxu2 %v4509_v12 }
0x1aa2   :  { %v4370_v21 = vpop.permute.xlu2 %4369 }
0x1ab9   :  { %v4147_v11 = vpop.f32.mrf.mxu1 }
0x1aba   :  { %v4380_v7 = vsel %vm456_vm15, %v4147_v11, %v4370_v21  ;;  %v4604_v21 = vld [vmem:[#allocation7 + $0x180] sm:$0xff] }
0x1abb   :  { %4631 = vmatpush.msra.mxu3 %v4604_v21 }
0x1ac2   :  { %v4365_v10 = vpop.f32.mrf.mxu3 }
0x1ad0   :  { %v4293_v17 = vpop.f32.mrf.mxu1 }
0x1ad1   :  { %4373 = vrot.lane.b32.xlu2 %v4293_v17, %s7618_s2 }
0x1ad9   :  { %4377 = vrot.lane.b32.xlu2 %v4365_v10, %s7619_s17 }
0x1af9   :  { %v4434_v13 = vpop.xlane.xlu0 %4433 }
0x1afa   :  { %v4438_v23 = vmul.f32 %v4434_v13, %v7678_v34 }
0x1afc   :  { %v4440_v32 = vadd.f32 1e-05, %v4438_v23 }
0x1afe   :  { %7389 = vrsqrt.f32 %v4440_v32  ;;  %vm4448_vm12 = vweird.f32 %v4440_v32 }
0x1b04   :  { %v7390_v37 = vpop.eup %7389 }
0x1b05   :  { %v4443_v31 = vmul.f32 %v7390_v37, %v4440_v32  ;;  %vm4449_vm11 = vweird.f32 %v7390_v37 }
0x1b06   :  { %vm4450_vm13 = vmor %vm4448_vm12, %vm4449_vm11 }
0x1b07   :  { %v4444_v36 = vmul.f32 %v7390_v37, %v4443_v31 }
0x1b09   :  { %v4445_v18 = vmul.f32 0.5, %v4444_v36 }
0x1b0b   :  { %v4446_v33 = vsub.f32 1.5, %v4445_v18 }
0x1b0d   :  { %v4447_v25 = vmul.f32 %v7390_v37, %v4446_v33 }
0x1b0f   :  { %v4451_v50 = vsel %vm4450_vm13, %v7390_v37, %v4447_v25 }
0x1b10   :  { %v4462_v27 = vmul.f32 %v4451_v50, %v4428_v43 }
0x1b12   :  { %v4466_v20 = vmul.f32 %v9109_v0, %v4462_v27 }
0x1b14   :  { %v4470_v28 = vadd.f32 %v9111_v57, %v4466_v20 }
0x1b16   :  { %6776 = vmatmul.msk.f32.vlgmr.msrb.gmra.mxu1 %vm136_vm1, %v4470_v28 }
0x1b2b   :  { %v4374_v62 = vpop.permute.xlu2 %4373 }
0x1b2c   :  { %v4381_v49 = vsel %vm488_vm3, %v4380_v7, %v4374_v62  ;;  %v7032_v62 = vpack.i.bf16 %v9142_v56, %v9139_v35  ;;  %v7037_v7 = vpack.i.bf16 %v4604_v21, %v4605_v26 }
0x1b33   :  { %v4378_v4 = vpop.permute.xlu2 %4377 }
0x1b34   :  { %v4382_v52 = vsel %vm858_vm4, %v4381_v49, %v4378_v4 }
0x1b35   :  { %6775 = vmatmul.msk.f32.gmra.mxu0 %vm136_vm1, %v4382_v52 }
0x1b93   :  { %v4501_v9 = vpop.f32.mrf.mxu1 }
0x1b94   :  { %v4502_v55 = vadd.f32 %v9120_v63, %v4501_v9 }
0x1b96   :  { %v4507_v60 = vmax.f32 %v4502_v55, 0.0  ;;  %v9149_v55 = vld [vmem:[#allocation7 + $0x4b0] ss:$0 sm:$0xff] }
0x1b98   :  { %6778 = vmatmul.msk.f32.vlgmr.msra.gmra.mxu2 %vm94_vm0, %v4507_v60 }
0x1bb2   :  { %v4415_v53 = vpop.f32.mrf.mxu0 }
0x1bb3   :  { %v4416_v59 = vadd.f32 %v9095_v1, %v4415_v53  ;;  %v9151_v53 = vld [vmem:[#allocation7 + $0x1a0] ss:$0 sm:$0xff] }
0x1bb5   :  { %v4419_v46 = vadd.f32 %v4416_v59, %v9021_v2  ;;  %v9153_v59 = vld [vmem:[#allocation7 + $0x4b8] ss:$0 sm:$0xff] }
0x1bb7   :  { %v4423_v47 = vsel %vm136_vm1, %v4419_v46, 0.0 }
0x1bb8   :  { %4424 = vadd.xlane.f32.xlu2 %v4423_v47 }
0x1bd0   :  { %7038 = vrot.lane.b32.xlu2 %v7037_v7, %s7608_s4 }
0x1bd8   :  { %4656 = vrot.lane.b32.xlu2 %v9151_v53, %s7608_s4 }
0x1c1b   :  { %v4542_v43 = vpop.f32.mrf.mxu2 }
0x1c1c   :  { %v4543_v42 = vadd.f32 %v9127_v22, %v4542_v43 }
0x1c1e   :  { %v4548_v6 = vadd.f32 %v4543_v42, %v4470_v28  ;;  %v9161_v42 = vld [vmem:[#allocation7 + $0x570] sm:$0xff] }
0x1c20   :  { %v4550_v11 = vsel %vm136_vm1, %v4548_v6, 0.0 }
0x1c21   :  { %4551 = vadd.xlane.f32.xlu0 %v4550_v11 }
0x1c2b   :  { %v4425_v17 = vpop.xlane.xlu2 %4424 }
0x1c2c   :  { %v4427_v10 = vmul.f32 %v4425_v17, %v7678_v34 }
0x1c2e   :  { %v4429_v15 = vsub.f32 %v4419_v46, %v4427_v10 }
0x1c30   :  { %v4431_v38 = vmul.f32 %v4429_v15, %v4429_v15 }
0x1c32   :  { %v4435_v1 = vsel %vm136_vm1, %v4431_v38, 0.0 }
0x1c33   :  { %4436 = vadd.xlane.f32.xlu1 %v4435_v1 }
0x1c94   :  { %v4552_v2 = vpop.xlane.xlu0 %4551 }
0x1c95   :  { %v4556_v30 = vmul.f32 %v4552_v2, %v7678_v34 }
0x1c97   :  { %v4558_v29 = vsub.f32 %v4548_v6, %v4556_v30 }
0x1c99   :  { %v4560_v13 = vmul.f32 %v4558_v29, %v4558_v29 }
0x1c9b   :  { %v4562_v23 = vsel %vm136_vm1, %v4560_v13, 0.0 }
0x1c9c   :  { %4563 = vadd.xlane.f32.xlu1 %v4562_v23 }
0x1ca6   :  { %v4437_v32 = vpop.xlane.xlu1 %4436 }
0x1ca7   :  { %v4439_v37 = vmul.f32 %v4437_v32, %v7678_v34 }
0x1ca9   :  { %v4441_v31 = vadd.f32 1e-05, %v4439_v37 }
0x1cab   :  { %7391 = vrsqrt.f32 %v4441_v31  ;;  %vm4458_vm2 = vweird.f32 %v4441_v31 }
0x1cb1   :  { %v7392_v36 = vpop.eup %7391 }
0x1cb2   :  { %v4453_v18 = vmul.f32 %v7392_v36, %v4441_v31  ;;  %vm4459_vm14 = vweird.f32 %v7392_v36 }
0x1cb3   :  { %vm4460_vm5 = vmor %vm4458_vm2, %vm4459_vm14 }
0x1cb4   :  { %v4454_v33 = vmul.f32 %v7392_v36, %v4453_v18 }
0x1cb6   :  { %v4455_v25 = vmul.f32 0.5, %v4454_v33 }
0x1cb8   :  { %v4456_v50 = vsub.f32 1.5, %v4455_v25 }
0x1cba   :  { %v4457_v27 = vmul.f32 %v7392_v36, %v4456_v50 }
0x1cbc   :  { %v4461_v20 = vsel %vm4460_vm5, %v7392_v36, %v4457_v27 }
0x1cbd   :  { %v4463_v28 = vmul.f32 %v4461_v20, %v4429_v15 }
0x1cbf   :  { %v4467_v45 = vmul.f32 %v9109_v0, %v4463_v28 }
0x1cc1   :  { %v4471_v16 = vadd.f32 %v9111_v57, %v4467_v45 }
0x1cc3   :  { %6777 = vmatmul.msk.f32.gmra.mxu1 %vm136_vm1, %v4471_v16 }
0x1d0f   :  { %v4564_v0 = vpop.xlane.xlu1 %4563 }
0x1d10   :  { %v4568_v57 = vmul.f32 %v4564_v0, %v7678_v34 }
0x1d12   :  { %v4570_v49 = vadd.f32 1e-05, %v4568_v57 }
0x1d14   :  { %7393 = vrsqrt.f32 %v4570_v49  ;;  %vm4578_vm7 = vweird.f32 %v4570_v49 }
0x1d1a   :  { %v7394_v4 = vpop.eup %7393 }
0x1d1b   :  { %v4573_v52 = vmul.f32 %v7394_v4, %v4570_v49  ;;  %vm4579_vm6 = vweird.f32 %v7394_v4 }
0x1d1c   :  { %vm4580_vm8 = vmor %vm4578_vm7, %vm4579_vm6 }
0x1d1d   :  { %v4574_v3 = vmul.f32 %v7394_v4, %v4573_v52 }
0x1d1f   :  { %v4575_v40 = vmul.f32 0.5, %v4574_v3 }
0x1d21   :  { %v4576_v12 = vsub.f32 1.5, %v4575_v40 }
0x1d23   :  { %v4577_v9 = vmul.f32 %v7394_v4, %v4576_v12 }
0x1d25   :  { %v4581_v60 = vsel %vm4580_vm8, %v7394_v4, %v4577_v9 }
0x1d26   :  { %v4592_v46 = vmul.f32 %v4581_v60, %v4558_v29  ;;  %v7039_v29 = vpop.permute.xlu2 %7038 }
0x1d27   :  { %v7040_v49 = vunpack.i.l.bf16 %v7039_v29  ;;  %v7041_v3 = vunpack.i.h.bf16 %v7039_v29 }
0x1d28   :  { %v4596_v47 = vmul.f32 %v9149_v55, %v4592_v46 }
0x1d2a   :  { %v9159_v43 = vadd.f32 %v9153_v59, %v4596_v47 }
0x1d2c   :  { %v4602_v6 = vadd.f32 %v9161_v42, %v9159_v43 }
0x1d2e   :  { %6780 = vmatmul.msk.f32.vlgmr.msra.gmra.mxu3 %vm136_vm1, %v4602_v6  ;;  %v9176_v13 = vpop.permute.xlu2 %4656 }
0x1d40   :  { %v4504_v11 = vpop.f32.mrf.mxu1 }
0x1d41   :  { %v4505_v17 = vadd.f32 %v9120_v63, %v4504_v11 }
0x1d43   :  { %v4508_v10 = vmax.f32 %v4505_v17, 0.0 }
0x1d45   :  { %6779 = vmatmul.msk.f32.gmra.mxu2 %vm94_vm0, %v4508_v10 }
0x1db1   :  { %v4633_v15 = vpop.f32.mrf.mxu3 }
0x1db2   :  { %v4634_v38 = vadd.f32 %v9151_v53, %v4633_v15 }
0x1db4   :  { %4751 = vrot.lane.b32.xlu2 %v4634_v38, %s7611_s9  ;;  %4689 = vrot.lane.b32.xlu1 %v4634_v38, %s7610_s8 }
0x1dbc   :  { %4749 = vrot.lane.b32.xlu2 %v4634_v38, %s7613_s11 }
0x1dc4   :  { %4817 = vrot.lane.b32.xlu2 %v4634_v38, %s7612_s10 }
0x1dc8   :  { %v4545_v1 = vpop.f32.mrf.mxu2 }
0x1dc9   :  { %v4546_v2 = vadd.f32 %v9127_v22, %v4545_v1 }
0x1dcb   :  { %v4549_v30 = vadd.f32 %v4546_v2, %v4471_v16 }
0x1dcc   :  { %4815 = vrot.lane.b32.xlu2 %v4634_v38, %s7616_s14 }
0x1dcd   :  { %v4553_v63 = vsel %vm136_vm1, %v4549_v30, 0.0 }
0x1dce   :  { %4554 = vadd.xlane.f32.xlu0 %v4553_v63 }
0x1e0e   :  { %v4752_v32 = vpop.permute.xlu2 %4751 }
0x1e16   :  { %v4750_v37 = vpop.permute.xlu2 %4749 }
0x1e1e   :  { %v4818_v10 = vpop.permute.xlu2 %4817 }
0x1e26   :  { %v4690_v23 = vpop.permute.xlu1 %4689 }
0x1e27   :  { %6784 = vmatpush.xpose.msk.msra.mxu1 %vm456_vm15, %v4690_v23  ;;  %v4816_v23 = vpop.permute.xlu2 %4815 }
0x1e2a   :  { %6785 = vmatmul.msk.f32.vlgmr.msra.gmra.mxu1 %vm456_vm15, %v4634_v38 }
0x1e2b   :  { %6787 = vmatpush.xpose.msk.msrb.mxu1 %vm456_vm15, %v4752_v32 }
0x1e32   :  { %6788 = vmatmul.msk.f32.vlgmr.msrb.gmra.mxu1 %vm456_vm15, %v4750_v37 }
0x1e41   :  { %v4555_v22 = vpop.xlane.xlu0 %4554 }
0x1e42   :  { %v4557_v31 = vmul.f32 %v4555_v22, %v7678_v34 }
0x1e44   :  { %v4559_v36 = vsub.f32 %v4549_v30, %v4557_v31 }
0x1e46   :  { %v4561_v18 = vmul.f32 %v4559_v36, %v4559_v36 }
0x1e48   :  { %v4565_v33 = vsel %vm136_vm1, %v4561_v18, 0.0 }
0x1e49   :  { %4566 = vadd.xlane.f32.xlu0 %v4565_v33 }
0x1e5d   :  { %7033 = vrot.lane.b32.xlu0 %v7032_v62, %s7608_s4 }
0x1e65   :  { %4880 = vrot.lane.b32.xlu0 %v4634_v38, %s7615_s13 }
0x1ea7   :  { %v4712_v25 = vpop.f32.mrf.mxu1 }
0x1ea8   :  { %v4713_v50 = vadd.f32 %v4712_v25, %v8652_v19 }
0x1eaa   :  { %v4715_v27 = vsel %vm456_vm15, %v4713_v50, -inf }
0x1eab   :  { %4716 = vmax.xlane.f32.xlu1 %v4715_v27 }
0x1eaf   :  { %v4774_v1 = vpop.f32.mrf.mxu1 }
0x1eb0   :  { %v4775_v2 = vadd.f32 %v4774_v1, %v8652_v19 }
0x1eb2   :  { %v4777_v30 = vsel %vm456_vm15, %v4775_v2, -inf }
0x1ebc   :  { %v4567_v20 = vpop.xlane.xlu0 %4566 }
0x1ebd   :  { %v4569_v28 = vmul.f32 %v4567_v20, %v7678_v34 }
0x1ebf   :  { %v4571_v45 = vadd.f32 1e-05, %v4569_v28 }
0x1ec1   :  { %7395 = vrsqrt.f32 %v4571_v45  ;;  %vm4588_vm10 = vweird.f32 %v4571_v45 }
0x1ec4   :  { %4882 = vrot.lane.b32.xlu1 %v4634_v38, %s7614_s12 }
0x1ec7   :  { %v7396_v16 = vpop.eup %7395 }
0x1ec8   :  { %v4583_v35 = vmul.f32 %v7396_v16, %v4571_v45  ;;  %vm4589_vm9 = vweird.f32 %v7396_v16 }
0x1ec9   :  { %vm4590_vm11 = vmor %vm4588_vm10, %vm4589_vm9 }
0x1eca   :  { %v4584_v56 = vmul.f32 %v7396_v16, %v4583_v35 }
0x1ecc   :  { %v4585_v26 = vmul.f32 0.5, %v4584_v56 }
0x1ece   :  { %v4586_v21 = vsub.f32 1.5, %v4585_v26 }
0x1ecf   :  { %v7034_v62 = vpop.permute.xlu0 %7033 }
0x1ed0   :  { %v4587_v7 = vmul.f32 %v7396_v16, %v4586_v21  ;;  %v7036_v0 = vunpack.i.h.bf16 %v7034_v62  ;;  %v7035_v57 = vunpack.i.l.bf16 %v7034_v62 }
0x1ed2   :  { %v4591_v4 = vsel %vm4590_vm11, %v7396_v16, %v4587_v7  ;;  %4677 = vmatpush.msrb.mxu0 %v7035_v57 }
0x1ed3   :  { %v4593_v52 = vmul.f32 %v4591_v4, %v4559_v36 }
0x1ed4   :  { %4678 = vmatpush.msrb.mxu0 %v7036_v0 }
0x1ed5   :  { %v4597_v40 = vmul.f32 %v9149_v55, %v4593_v52 }
0x1ed6   :  { %4679 = vmatpush.msrb.mxu0 %v7040_v49 }
0x1ed7   :  { %v9192_v12 = vadd.f32 %v9153_v59, %v4597_v40  ;;  %v4881_v11 = vpop.permute.xlu0 %4880 }
0x1ed8   :  { %4680 = vmatpush.msrb.mxu0 %v7041_v3 }
0x1ed9   :  { %6782 = vmatmul.msk.f32.vlgmr.msrb.gmra.mxu0 %vm136_vm1, %v9159_v43  ;;  %v4603_v9 = vadd.f32 %v9023_v14, %v9192_v12 }
0x1edb   :  { %6781 = vmatmul.msk.f32.gmra.mxu3 %vm136_vm1, %v4603_v9 }
0x1ee1   :  { %6783 = vmatmul.msk.f32.gmra.mxu0 %vm136_vm1, %v9192_v12 }
0x1f1e   :  { %v4717_v60 = vpop.xlane.xlu1 %4716 }
0x1f1f   :  { %v4718_v46 = vsub.f32 %v4713_v50, %v4717_v60 }
0x1f21   :  { %v4719_v47 = vmul.f32 1.442695, %v4718_v46 }
0x1f23   :  { %7397 = vpow2.f32 %v4719_v47 }
0x1f29   :  { %v7398_v55 = vpop.eup %7397 }
0x1f2a   :  { %v4721_v59 = vsel %vm456_vm15, %v7398_v55, 0.0 }
0x1f2b   :  { %4722 = vadd.xlane.f32.xlu0 %v4721_v59 }
0x1f36   :  { %v4883_v6 = vpop.permute.xlu1 %4882 }
0x1f37   :  { %6793 = vmatpush.xpose.msk.msra.mxu1 %vm456_vm15, %v4883_v6 }
0x1f3a   :  { %6794 = vmatmul.msk.f32.vlgmr.msra.gmra.mxu1 %vm456_vm15, %v4881_v11 }
0x1f56   :  { %v4682_v14 = vpop.f32.mrf.mxu0 }
0x1f57   :  { %v9205_v17 = vadd.f32 %v4682_v14, %v9176_v13 }
0x1f59   :  { %4744 = vmatpush.msrb.mxu3 %v9205_v17 }
0x1f5b   :  { %6790 = vmatpush.xpose.msk.msra.mxu3 %vm456_vm15, %v4818_v10 }
0x1f5e   :  { %v4636_v15 = vpop.f32.mrf.mxu3  ;;  %v4685_v47 = vpop.f32.mrf.mxu0 }
0x1f5f   :  { %v4637_v38 = vadd.f32 %v9151_v53, %v4636_v15  ;;  %v9246_v59 = vadd.f32 %v4685_v47, %v9176_v13 }
0x1f61   :  { %4961 = vrot.lane.b32.xlu2 %v4637_v38, %s7610_s8  ;;  %5021 = vrot.lane.b32.xlu1 %v4637_v38, %s7613_s11  ;;  %v7042_v11 = vpack.i.bf16 %v9246_v59, %v9205_v17 }
0x1f62   :  { %5154 = vrot.lane.b32.xlu0 %v4637_v38, %s7614_s12 }
0x1f69   :  { %5023 = vrot.lane.b32.xlu2 %v4637_v38, %s7611_s9  ;;  %5087 = vrot.lane.b32.xlu1 %v4637_v38, %s7616_s14 }
0x1f71   :  { %5089 = vrot.lane.b32.xlu2 %v4637_v38, %s7612_s10 }
0x1f79   :  { %5152 = vrot.lane.b32.xlu2 %v4637_v38, %s7615_s13 }
0x1f8c   :  { %4778 = vmax.xlane.f32.xlu0 %v4777_v30 }
0x1f9e   :  { %v4723_v53 = vpop.xlane.xlu0 %4722 }
0x1f9f   :  { %7399 = vrcp.f32 %v4723_v53 }
0x1fa5   :  { %v7400_v63 = vpop.eup %7399 }
0x1fa6   :  { %v4725_v29 = vmul.f32 %v7400_v63, %v7398_v55 }
0x1fa8   :  { %6786 = vmatmul.msk.f32.vlgmr.msrb.gmra.mxu3 %vm456_vm15, %v4725_v29 }
0x1fb0   :  { %6791 = vmatmul.msk.f32.vlgmr.msra.gmra.mxu3 %vm456_vm15, %v4816_v23 }
0x1fb7   :  { %v4905_v32 = vpop.f32.mrf.mxu1 }
0x1fb8   :  { %v4906_v37 = vadd.f32 %v4905_v32, %v8652_v19 }
0x1fba   :  { %v4908_v22 = vsel %vm456_vm15, %v4906_v37, -inf }
0x1fbb   :  { %4909 = vmax.xlane.f32.xlu1 %v4908_v22  ;;  %v4962_v31 = vpop.permute.xlu2 %4961 }
0x1fbc   :  { %6796 = vmatpush.xpose.msk.msrb.mxu3 %vm456_vm15, %v4962_v31 }
0x1fbf   :  { %6797 = vmatmul.msk.f32.vlgmr.msrb.gmra.mxu3 %vm456_vm15, %v4637_v38 }
0x1fc3   :  { %v5024_v36 = vpop.permute.xlu2 %5023 }
0x1fc4   :  { %6799 = vmatpush.xpose.msk.msrb.mxu1 %vm456_vm15, %v5024_v36 }
0x1fcb   :  { %v5090_v18 = vpop.permute.xlu2 %5089 }
0x1fcc   :  { %6802 = vmatpush.xpose.msk.msra.mxu3 %vm456_vm15, %v5090_v18 }
0x1fd3   :  { %v5022_v33 = vpop.permute.xlu1 %5021  ;;  %v5153_v50 = vpop.permute.xlu2 %5152 }
0x1fd4   :  { %v5155_v25 = vpop.permute.xlu0 %5154  ;;  %6800 = vmatmul.msk.f32.vlgmr.msrb.gmra.mxu1 %vm456_vm15, %v5022_v33 }
0x1fd5   :  { %6805 = vmatpush.xpose.msk.msra.mxu1 %vm456_vm15, %v5155_v25 }
0x1fdb   :  { %v5088_v27 = vpop.permute.xlu1 %5087 }
0x1fdc   :  { %6803 = vmatmul.msk.f32.vlgmr.msra.gmra.mxu3 %vm456_vm15, %v5088_v27  ;;  %6806 = vmatmul.msk.f32.vlgmr.msra.gmra.mxu1 %vm456_vm15, %v5153_v50 }
0x1fff   :  { %v4779_v20 = vpop.xlane.xlu0 %4778 }
0x2000   :  { %v4780_v28 = vsub.f32 %v4775_v2, %v4779_v20 }
0x2002   :  { %v4781_v45 = vmul.f32 1.442695, %v4780_v28 }
0x2004   :  { %7401 = vpow2.f32 %v4781_v45 }
0x200a   :  { %v9231_v16 = vpop.eup %7401 }
0x200b   :  { %v4783_v35 = vsel %vm456_vm15, %v9231_v16, 0.0 }
0x200c   :  { %4784 = vadd.xlane.f32.xlu1 %v4783_v35 }
0x202b   :  { %v9235_v56 = vpop.f32.mrf.mxu3 }
0x202e   :  { %v4910_v49 = vpop.xlane.xlu1 %4909 }
0x202f   :  { %v4911_v3 = vsub.f32 %v4906_v37, %v4910_v49 }
0x2031   :  { %v4912_v9 = vmul.f32 1.442695, %v4911_v3 }
0x2033   :  { %v4840_v26 = vpop.f32.mrf.mxu3  ;;  %7403 = vpow2.f32 %v4912_v9 }
0x2034   :  { %v4841_v21 = vadd.f32 %v4840_v26, %v8652_v19 }
0x2036   :  { %v4843_v62 = vsel %vm456_vm15, %v4841_v21, -inf }
0x2037   :  { %4844 = vmax.xlane.f32.xlu2 %v4843_v62 }
0x2039   :  { %v7404_v55 = vpop.eup %7403 }
0x203a   :  { %v4914_v6 = vsel %vm456_vm15, %v7404_v55, 0.0 }
0x2042   :  { %v4984_v7 = vpop.f32.mrf.mxu3 }
0x2043   :  { %v4985_v0 = vadd.f32 %v4984_v7, %v8783_v8 }
0x2045   :  { %v4987_v57 = vsel %vm456_vm15, %v4985_v0, -inf }
0x2046   :  { %4988 = vmax.xlane.f32.xlu1 %v4987_v57 }
0x2051   :  { %v5046_v4 = vpop.f32.mrf.mxu1 }
0x2052   :  { %v5047_v52 = vadd.f32 %v5046_v4, %v8783_v8 }
0x2054   :  { %v5049_v40 = vsel %vm456_vm15, %v5047_v52, -inf }
0x2055   :  { %5050 = vmax.xlane.f32.xlu0 %v5049_v40 }
0x2059   :  { %v5177_v60 = vpop.f32.mrf.mxu1 }
0x205a   :  { %v5178_v19 = vadd.f32 %v5177_v60, %v8783_v8 }
0x205c   :  { %v5180_v46 = vsel %vm456_vm15, %v5178_v19, -inf }
0x205d   :  { %5181 = vmax.xlane.f32.xlu2 %v5180_v46 }
0x205f   :  { %v5112_v14 = vpop.f32.mrf.mxu3 }
0x2060   :  { %v5113_v10 = vadd.f32 %v5112_v14, %v8783_v8 }
0x2062   :  { %v5115_v13 = vsel %vm456_vm15, %v5113_v10, -inf }
0x2065   :  { %4915 = vadd.xlane.f32.xlu2 %v4914_v6 }
0x2069   :  { %7043 = vrot.lane.b32.xlu0 %v7042_v11, %s7613_s11 }
0x207d   :  { %4919 = vrot.lane.b32.xlu2 %v9205_v17, %s7615_s13 }
0x207f   :  { %v4785_v15 = vpop.xlane.xlu1 %4784 }
0x2085   :  { %5191 = vrot.lane.b32.xlu2 %v9246_v59, %s7615_s13 }
0x2093   :  { %5116 = vmax.xlane.f32.xlu0 %v5115_v13 }
0x20a7   :  { %4854 = vrot.lane.b32.xlu0 %v9205_v17, %s7616_s14 }
0x20aa   :  { %v4845_v38 = vpop.xlane.xlu2 %4844 }
0x20ab   :  { %v4846_v30 = vsub.f32 %v4841_v21, %v4845_v38 }
0x20ad   :  { %v4847_v63 = vmul.f32 1.442695, %v4846_v30 }
0x20b9   :  { %v4989_v29 = vpop.xlane.xlu1 %4988 }
0x20ba   :  { %v4990_v8 = vsub.f32 %v4985_v0, %v4989_v29 }
0x20bc   :  { %v4991_v17 = vmul.f32 1.442695, %v4990_v8 }
0x20c8   :  { %v5051_v1 = vpop.xlane.xlu0 %5050 }
0x20c9   :  { %v5052_v2 = vsub.f32 %v5047_v52, %v5051_v1 }
0x20cb   :  { %v5053_v53 = vmul.f32 1.442695, %v5052_v2 }
0x20cd   :  { %7405 = vpow2.f32 %v5053_v53 }
0x20ce   :  { %7407 = vpow2.f32 %v4847_v63 }
0x20cf   :  { %7409 = vrcp.f32 %v4785_v15 }
0x20d0   :  { %v5182_v23 = vpop.xlane.xlu2 %5181 }
0x20d1   :  { %v5183_v32 = vsub.f32 %v5178_v19, %v5182_v23 }
0x20d3   :  { %v7406_v37 = vpop.eup %7405  ;;  %v5184_v22 = vmul.f32 1.442695, %v5183_v32  ;;  %v5235_v32 = vld [vmem:[#allocation7 + $0x1c0] sm:$0xff] }
0x20d4   :  { %v5055_v31 = vsel %vm456_vm15, %v7406_v37, 0.0  ;;  %v7408_v18 = vpop.eup %7407  ;;  %5256 = vmatpush.msrb.mxu3 %v5235_v32 }
0x20d5   :  { %7411 = vpow2.f32 %v5184_v22  ;;  %5056 = vadd.xlane.f32.xlu1 %v5055_v31  ;;  %v7410_v33 = vpop.eup %7409  ;;  %v4849_v20 = vsel %vm456_vm15, %v7408_v18, 0.0  ;;  %v5233_v22 = vld [vmem:[#allocation7 + $0x1b0] sm:$0xff]  ;;  %v5232_v31 = vld [vmem:[#allocation7 + $0x1a8] sm:$0xff] }
0x20d6   :  { %7413 = vpow2.f32 %v4991_v17  ;;  %v4787_v45 = vmul.f32 %v7410_v33, %v9231_v16 }
0x20d8   :  { %v4916_v36 = vpop.xlane.xlu2 %4915 }
0x20d9   :  { %7415 = vrcp.f32 %v4916_v36 }
0x20db   :  { %v7412_v25 = vpop.eup %7411  ;;  %v7044_v50 = vpop.permute.xlu0 %7043 }
0x20dc   :  { %v7045_v27 = vunpack.i.l.bf16 %v7044_v50  ;;  %v5186_v28 = vsel %vm456_vm15, %v7412_v25, 0.0  ;;  %v7046_v35 = vunpack.i.h.bf16 %v7044_v50  ;;  %v7414_v21 = vpop.eup %7413 }
0x20dd   :  { %4850 = vadd.xlane.f32.xlu1 %v4849_v20  ;;  %5187 = vadd.xlane.f32.xlu0 %v5186_v28  ;;  %v4993_v7 = vsel %vm456_vm15, %v7414_v21, 0.0 }
0x20de   :  { %4810 = vmatpush.msrb.mxu2 %v7045_v27 }
0x20df   :  { %6789 = vmatmul.msk.f32.vlgmr.msrb.gmra.mxu2 %vm456_vm15, %v4787_v45  ;;  %v7416_v62 = vpop.eup %7415 }
0x20e0   :  { %v4920_v26 = vpop.permute.xlu2 %4919  ;;  %v4918_v0 = vmul.f32 %v7416_v62, %v7404_v55  ;;  %v5326_v62 = vld [vmem:[#allocation7 + $0x238] sm:$0xff] }
0x20e1   :  { %4940 = vmatpush.msra.mxu2 %v4920_v26 }
0x20e3   :  { %5082 = vmatpush.msrb.mxu2 %v7046_v35 }
0x20e5   :  { %4994 = vadd.xlane.f32.xlu1 %v4993_v7  ;;  %v5324_v7 = vld [vmem:[#allocation7 + $0x228] sm:$0xff] }
0x20e7   :  { %6795 = vmatmul.msk.f32.vlgmr.msra.gmra.mxu2 %vm456_vm15, %v4918_v0  ;;  %v5323_v0 = vld [vmem:[#allocation7 + $0x220] sm:$0xff] }
0x20e8   :  { %v5192_v57 = vpop.permute.xlu2 %5191 }
0x20e9   :  { %5212 = vmatpush.msra.mxu2 %v5192_v57  ;;  %v7132_v57 = vld [vmem:[#allocation7 + $0x1c8] ss:$0 sm:$0xff] }
0x2106   :  { %v5117_v16 = vpop.xlane.xlu0 %5116 }
0x2107   :  { %v5118_v49 = vsub.f32 %v5113_v10, %v5117_v16 }
0x2109   :  { %v5119_v4 = vmul.f32 1.442695, %v5118_v49 }
0x210b   :  { %7417 = vpow2.f32 %v5119_v4 }
0x2111   :  { %v7418_v52 = vpop.eup %7417 }
0x2112   :  { %v5121_v3 = vsel %vm456_vm15, %v7418_v52, 0.0 }
0x2113   :  { %5122 = vadd.xlane.f32.xlu1 %v5121_v3 }
0x2119   :  { %v4855_v40 = vpop.permute.xlu0 %4854 }
0x211a   :  { %4875 = vmatpush.msra.mxu0 %v4855_v40  ;;  %v9297_v40 = vpack.i.bf16 %v5323_v0, %v5324_v7 }
0x211c   :  { %5016 = vmatpush.msrb.mxu0 %v9246_v59 }
0x212c   :  { %5126 = vrot.lane.b32.xlu1 %v9246_v59, %s7616_s14 }
0x2148   :  { %v5057_v9 = vpop.xlane.xlu1 %5056 }
0x2149   :  { %7419 = vrcp.f32 %v5057_v9 }
0x214f   :  { %v7420_v60 = vpop.eup %7419 }
0x2150   :  { %v5059_v19 = vmul.f32 %v7420_v60, %v7406_v37  ;;  %v4851_v46 = vpop.xlane.xlu1 %4850  ;;  %v5188_v47 = vpop.xlane.xlu0 %5187  ;;  %v5234_v37 = vld [vmem:[#allocation7 + $0x1b8] sm:$0xff] }
0x2151   :  { %7421 = vrcp.f32 %v4851_v46  ;;  %5257 = vmatpush.msrb.mxu3 %v5234_v37 }
0x2152   :  { %7423 = vrcp.f32 %v5188_v47  ;;  %6801 = vmatmul.msk.f32.vlgmr.msrb.gmra.mxu2 %vm456_vm15, %v5059_v19 }
0x2153   :  { %5258 = vmatpush.msrb.mxu3 %v5233_v22  ;;  %v7134_v22 = vld [vmem:[#allocation7 + $0x4c0] ss:$0 sm:$0xff] }
0x2155   :  { %5259 = vmatpush.msrb.mxu3 %v5232_v31 }
0x2157   :  { %v7422_v55 = vpop.eup %7421 }
0x2158   :  { %v7424_v6 = vpop.eup %7423  ;;  %v4853_v11 = vmul.f32 %v7422_v55, %v7408_v18  ;;  %v4995_v14 = vpop.xlane.xlu1 %4994 }
0x2159   :  { %v5190_v10 = vmul.f32 %v7424_v6, %v7412_v25  ;;  %7425 = vrcp.f32 %v4995_v14 }
0x215a   :  { %6792 = vmatmul.msk.f32.vlgmr.msra.gmra.mxu0 %vm456_vm15, %v4853_v11 }
0x215b   :  { %6807 = vmatmul.msk.f32.vlgmr.msra.gmra.mxu2 %vm456_vm15, %v5190_v10 }
0x215f   :  { %v7426_v59 = vpop.eup %7425 }
0x2160   :  { %v4997_v13 = vmul.f32 %v7426_v59, %v7414_v21 }
0x2162   :  { %v4812_v15 = vpop.f32.mrf.mxu2  ;;  %6798 = vmatmul.msk.f32.vlgmr.msrb.gmra.mxu0 %vm456_vm15, %v4997_v13 }
0x2163   :  { %4946 = vrot.lane.b32.xlu2 %v4812_v15, %s7605_s27 }
0x216a   :  { %v4942_v53 = vpop.f32.mrf.mxu2 }
0x2186   :  { %v5123_v38 = vpop.xlane.xlu1 %5122 }
0x2187   :  { %7427 = vrcp.f32 %v5123_v38 }
0x218d   :  { %v7428_v1 = vpop.eup %7427 }
0x218e   :  { %v5125_v2 = vmul.f32 %v7428_v1, %v7418_v52 }
0x219e   :  { %v5127_v30 = vpop.permute.xlu1 %5126 }
0x219f   :  { %5147 = vmatpush.msra.mxu0 %v5127_v30 }
0x21a0   :  { %6804 = vmatmul.msk.f32.vlgmr.msra.gmra.mxu0 %vm456_vm15, %v5125_v2 }
0x21a1   :  { %5347 = vmatpush.msrb.mxu0 %v5326_v62 }
0x21bd   :  { %v4947_v36 = vpop.permute.xlu2 %4946 }
0x21be   :  { %v4957_v33 = vsel %vm456_vm15, %v9235_v56, %v4947_v36  ;;  %v5325_v56 = vld [vmem:[#allocation7 + $0x230] sm:$0xff] }
0x21bf   :  { %5348 = vmatpush.msrb.mxu0 %v5325_v56  ;;  %v9293_v3 = vpack.i.bf16 %v5325_v56, %v5326_v62 }
0x21c1   :  { %5349 = vmatpush.msrb.mxu0 %v5324_v7 }
0x21c3   :  { %5350 = vmatpush.msrb.mxu0 %v5323_v0 }
0x21d5   :  { %v5084_v63 = vpop.f32.mrf.mxu2 }
0x21d6   :  { %5218 = vrot.lane.b32.xlu1 %v5084_v63, %s7605_s27 }
0x21d7   :  { %v4877_v29 = vpop.f32.mrf.mxu0 }
0x21d8   :  { %4950 = vrot.lane.b32.xlu2 %v4877_v29, %s7618_s2 }
0x21de   :  { %v5214_v23 = vpop.f32.mrf.mxu2 }
0x21df   :  { %5226 = vrot.lane.b32.xlu1 %v5214_v23, %s7619_s17  ;;  %v5018_v8 = vpop.f32.mrf.mxu0 }
0x21e0   :  { %4954 = vrot.lane.b32.xlu2 %v4942_v53, %s7619_s17 }
0x221d   :  { %v5149_v17 = vpop.f32.mrf.mxu0 }
0x221e   :  { %5222 = vrot.lane.b32.xlu2 %v5149_v17, %s7618_s2  ;;  %v7135_v17 = vld [vmem:[#allocation7 + $0x4c8] ss:$0 sm:$0xff] }
0x2232   :  { %v4951_v18 = vpop.permute.xlu2 %4950 }
0x2233   :  { %v4958_v25 = vsel %vm488_vm3, %v4957_v33, %v4951_v18 }
0x223a   :  { %v4955_v50 = vpop.permute.xlu2 %4954 }
0x223b   :  { %v4959_v27 = vsel %vm858_vm4, %v4958_v25, %v4955_v50 }
0x223c   :  { %6808 = vmatmul.msk.f32.vlgmr.msrb.gmra.mxu3 %vm136_vm1, %v4959_v27 }
0x2248   :  { %v5219_v20 = vpop.permute.xlu1 %5218 }
0x2249   :  { %v5229_v28 = vsel %vm456_vm15, %v5018_v8, %v5219_v20 }
0x2251   :  { %v5227_v35 = vpop.permute.xlu1 %5226 }
0x2278   :  { %v5223_v45 = vpop.permute.xlu2 %5222 }
0x2279   :  { %v5230_v26 = vsel %vm488_vm3, %v5229_v28, %v5223_v45 }
0x227a   :  { %v5231_v21 = vsel %vm858_vm4, %v5230_v26, %v5227_v35 }
0x227b   :  { %6809 = vmatmul.msk.f32.gmra.mxu3 %vm136_vm1, %v5231_v21 }
0x22bf   :  { %v5261_v16 = vpop.f32.mrf.mxu3 }
0x22c0   :  { %v5262_v49 = vadd.f32 %v7132_v57, %v5261_v16 }
0x22c2   :  { %v5267_v4 = vadd.f32 %v5262_v49, %v9159_v43 }
0x22c4   :  { %v5269_v52 = vsel %vm136_vm1, %v5267_v4, 0.0 }
0x22c5   :  { %5270 = vadd.xlane.f32.xlu0 %v5269_v52 }
0x22d9   :  { %7048 = vrot.lane.b32.xlu0 %v9293_v3, %s7610_s8 }
0x22e1   :  { %7053 = vrot.lane.b32.xlu0 %v9297_v40, %s7610_s8 }
0x22fe   :  { %v5264_v9 = vpop.f32.mrf.mxu3 }
0x22ff   :  { %v5265_v60 = vadd.f32 %v7132_v57, %v5264_v9 }
0x2301   :  { %v5268_v19 = vadd.f32 %v5265_v60, %v9192_v12  ;;  %v9307_v12 = vld [vmem:[#allocation7 + $0x240] ss:$0 sm:$0xff] }
0x2303   :  { %v5272_v46 = vsel %vm136_vm1, %v5268_v19, 0.0 }
0x2304   :  { %5273 = vadd.xlane.f32.xlu2 %v5272_v46 }
0x231c   :  { %5375 = vrot.lane.b32.xlu2 %v9307_v12, %s7610_s8 }
0x2338   :  { %v5271_v43 = vpop.xlane.xlu0 %5270 }
0x2339   :  { %v5275_v47 = vmul.f32 %v5271_v43, %v7678_v34  ;;  %v7500_v43 = vld [vmem:[#allocation7 + $0x578] sm:$0xff] }
0x233b   :  { %v5277_v55 = vsub.f32 %v5267_v4, %v5275_v47 }
0x233d   :  { %v5279_v6 = vmul.f32 %v5277_v55, %v5277_v55 }
0x233f   :  { %v5281_v11 = vsel %vm136_vm1, %v5279_v6, 0.0 }
0x2340   :  { %5282 = vadd.xlane.f32.xlu1 %v5281_v11 }
0x234b   :  { %v7049_v14 = vpop.permute.xlu0 %7048 }
0x234c   :  { %v7051_v10 = vunpack.i.h.bf16 %v7049_v14  ;;  %v7050_v59 = vunpack.i.l.bf16 %v7049_v14 }
0x234e   :  { %5390 = vmatpush.msrb.mxu1 %v7050_v59 }
0x2350   :  { %5391 = vmatpush.msrb.mxu1 %v7051_v10 }
0x2353   :  { %v7054_v13 = vpop.permute.xlu0 %7053 }
0x2354   :  { %v7056_v15 = vunpack.i.h.bf16 %v7054_v13  ;;  %v7055_v38 = vunpack.i.l.bf16 %v7054_v13 }
0x2356   :  { %5392 = vmatpush.msrb.mxu1 %v7055_v38 }
0x2358   :  { %5393 = vmatpush.msrb.mxu1 %v7056_v15 }
0x2359   :  { %6812 = vmatmul.msk.f32.vlgmr.msrb.gmra.mxu1 %vm136_vm1, %v8892_v58 }
0x2361   :  { %6813 = vmatmul.msk.f32.gmra.mxu1 %vm136_vm1, %v8903_v24 }
0x2369   :  { %6814 = vmatmul.msk.f32.gmra.mxu1 %vm136_vm1, %v8972_v61 }
0x2371   :  { %6815 = vmatmul.msk.f32.gmra.mxu1 %vm136_vm1, %v8981_v48 }
0x2377   :  { %v5274_v1 = vpop.xlane.xlu2 %5273 }
0x2378   :  { %v5276_v2 = vmul.f32 %v5274_v1, %v7678_v34 }
0x237a   :  { %v5278_v30 = vsub.f32 %v5268_v19, %v5276_v2 }
0x237c   :  { %v5280_v53 = vmul.f32 %v5278_v30, %v5278_v30 }
0x237e   :  { %v5284_v58 = vsel %vm136_vm1, %v5280_v53, 0.0 }
0x237f   :  { %5285 = vadd.xlane.f32.xlu0 %v5284_v58  ;;  %v5376_v50 = vpop.permute.xlu2 %5375 }
0x23b3   :  { %v5283_v63 = vpop.xlane.xlu1 %5282 }
0x23b4   :  { %v5287_v29 = vmul.f32 %v5283_v63, %v7678_v34 }
0x23b6   :  { %v5289_v23 = vadd.f32 1e-05, %v5287_v29 }
0x23b8   :  { %7429 = vrsqrt.f32 %v5289_v23  ;;  %vm5297_vm13 = vweird.f32 %v5289_v23 }
0x23be   :  { %v7430_v24 = vpop.eup %7429 }
0x23bf   :  { %v5292_v32 = vmul.f32 %v7430_v24, %v5289_v23  ;;  %vm5298_vm12 = vweird.f32 %v7430_v24 }
0x23c0   :  { %vm5299_vm14 = vmor %vm5297_vm13, %vm5298_vm12 }
0x23c1   :  { %v5293_v37 = vmul.f32 %v7430_v24, %v5292_v32 }
0x23c3   :  { %v5294_v61 = vmul.f32 0.5, %v5293_v37 }
0x23c5   :  { %v5295_v8 = vsub.f32 1.5, %v5294_v61 }
0x23c7   :  { %v5296_v48 = vmul.f32 %v7430_v24, %v5295_v8 }
0x23c9   :  { %v5300_v31 = vsel %vm5299_vm14, %v7430_v24, %v5296_v48 }
0x23ca   :  { %v5311_v36 = vmul.f32 %v5300_v31, %v5277_v55 }
0x23cc   :  { %v5315_v18 = vmul.f32 %v7134_v22, %v5311_v36 }
0x23ce   :  { %v9320_v33 = vadd.f32 %v7135_v17, %v5315_v18 }
0x23d0   :  { %v5321_v25 = vadd.f32 %v9161_v42, %v9320_v33 }
0x23d2   :  { %6810 = vmatmul.msk.f32.vlgmr.msrb.gmra.mxu0 %vm136_vm1, %v5321_v25 }
0x23d6   :  { %v5395_v27 = vpop.f32.mrf.mxu1 }
0x23d7   :  { %v5396_v20 = vadd.f32 %v5395_v27, %v5376_v50 }
0x23d9   :  { %5516 = vrot.lane.b32.xlu2 %v5396_v20, %s7613_s11 }
0x23de   :  { %v5398_v28 = vpop.f32.mrf.mxu1 }
0x23df   :  { %v5399_v45 = vadd.f32 %v5398_v28, %v5376_v50 }
0x23e1   :  { %5664 = vrot.lane.b32.xlu0 %v5399_v45, %s7615_s13  ;;  %5518 = vrot.lane.b32.xlu1 %v5399_v45, %s7613_s11 }
0x23e2   :  { %6820 = vmatpush.xpose.msk.msra.mxu3 %vm456_vm15, %v5399_v45  ;;  %5590 = vrot.lane.b32.xlu2 %v5396_v20, %s7616_s14 }
0x23e6   :  { %6821 = vmatpush.xpose.msk.msra.mxu3 %vm456_vm15, %v5396_v20  ;;  %v5401_v42 = vpop.f32.mrf.mxu1 }
0x23e7   :  { %v9331_v35 = vadd.f32 %v5401_v42, %v5376_v50 }
0x23e9   :  { %5812 = vrot.lane.b32.xlu0 %v9331_v35, %s7613_s11  ;;  %5592 = vrot.lane.b32.xlu1 %v5399_v45, %s7616_s14 }
0x23ee   :  { %v5404_v26 = vpop.f32.mrf.mxu1 }
0x23ef   :  { %v5405_v21 = vadd.f32 %v5404_v26, %v5376_v50 }
0x23f1   :  { %5960 = vrot.lane.b32.xlu0 %v5405_v21, %s7615_s13  ;;  %5662 = vrot.lane.b32.xlu1 %v5396_v20, %s7615_s13 }
0x23f2   :  { %5814 = vrot.lane.b32.xlu2 %v5405_v21, %s7613_s11  ;;  %v5286_v62 = vpop.xlane.xlu0 %5285 }
0x23f3   :  { %v5288_v56 = vmul.f32 %v5286_v62, %v7678_v34 }
0x23f5   :  { %v5290_v7 = vadd.f32 1e-05, %v5288_v56 }
0x23f7   :  { %7431 = vrsqrt.f32 %v5290_v7  ;;  %vm5307_vm5 = vweird.f32 %v5290_v7 }
0x23f9   :  { %5886 = vrot.lane.b32.xlu1 %v9331_v35, %s7616_s14 }
0x23fd   :  { %v7432_v0 = vpop.eup %7431 }
0x23fe   :  { %v5302_v57 = vmul.f32 %v7432_v0, %v5290_v7  ;;  %vm5308_vm2 = vweird.f32 %v7432_v0 }
0x23ff   :  { %vm5309_vm6 = vmor %vm5307_vm5, %vm5308_vm2 }
0x2400   :  { %v5303_v16 = vmul.f32 %v7432_v0, %v5302_v57 }
0x2402   :  { %v5304_v49 = vmul.f32 0.5, %v5303_v16 }
0x2404   :  { %v5305_v4 = vsub.f32 1.5, %v5304_v49 }
0x2406   :  { %v5306_v52 = vmul.f32 %v7432_v0, %v5305_v4 }
0x2408   :  { %v5310_v9 = vsel %vm5309_vm6, %v7432_v0, %v5306_v52 }
0x2409   :  { %v5312_v60 = vmul.f32 %v5310_v9, %v5278_v30 }
0x240b   :  { %v5316_v19 = vmul.f32 %v7134_v22, %v5312_v60 }
0x240d   :  { %v9342_v46 = vadd.f32 %v7135_v17, %v5316_v19 }
0x240f   :  { %v5322_v47 = vadd.f32 %v7500_v43, %v9342_v46 }
0x2411   :  { %6811 = vmatmul.msk.f32.gmra.mxu0 %vm136_vm1, %v5322_v47 }
0x2433   :  { %v5517_v11 = vpop.permute.xlu2 %5516 }
0x243c   :  { %v5591_v13 = vpop.permute.xlu2 %5590 }
0x244c   :  { %v5815_v38 = vpop.permute.xlu2 %5814 }
0x244f   :  { %v5352_v55 = vpop.f32.mrf.mxu0 }
0x2450   :  { %v5353_v6 = vadd.f32 %v9307_v12, %v5352_v55 }
0x2452   :  { %5660 = vrot.lane.b32.xlu1 %v5353_v6, %s7615_s13  ;;  %5514 = vrot.lane.b32.xlu2 %v5353_v6, %s7613_s11 }
0x2453   :  { %6822 = vmatmul.msk.f32.vlgmr.msra.gmra.mxu3 %vm456_vm15, %v5353_v6  ;;  %v5665_v14 = vpop.permute.xlu0 %5664  ;;  %v5519_v10 = vpop.permute.xlu1 %5518 }
0x2454   :  { %6824 = vmatpush.xpose.msk.msrb.mxu3 %vm456_vm15, %v5519_v10  ;;  %6832 = vmatpush.xpose.msk.msra.mxu1 %vm456_vm15, %v5665_v14 }
0x2458   :  { %6825 = vmatpush.xpose.msk.msrb.mxu3 %vm456_vm15, %v5517_v11 }
0x245a   :  { %5588 = vrot.lane.b32.xlu2 %v5353_v6, %s7616_s14 }
0x245b   :  { %v5593_v59 = vpop.permute.xlu1 %5592  ;;  %v5813_v1 = vpop.permute.xlu0 %5812 }
0x245c   :  { %6828 = vmatpush.xpose.msk.msra.mxu3 %vm456_vm15, %v5593_v59 }
0x2460   :  { %6829 = vmatpush.xpose.msk.msra.mxu3 %vm456_vm15, %v5591_v13 }
0x2462   :  { %5888 = vrot.lane.b32.xlu2 %v5405_v21, %s7616_s14 }
0x2463   :  { %v5663_v15 = vpop.permute.xlu1 %5662  ;;  %v5961_v29 = vpop.permute.xlu0 %5960 }
0x2464   :  { %6833 = vmatpush.xpose.msk.msra.mxu1 %vm456_vm15, %v5663_v15 }
0x2468   :  { %6840 = vmatpush.xpose.msk.msrb.mxu1 %vm456_vm15, %v5815_v38 }
0x246a   :  { %5958 = vrot.lane.b32.xlu2 %v9331_v35, %s7615_s13 }
0x246b   :  { %v5887_v58 = vpop.permute.xlu1 %5886 }
0x246c   :  { %6841 = vmatpush.xpose.msk.msrb.mxu1 %vm456_vm15, %v5813_v1 }
0x2472   :  { %7058 = vrot.lane.b32.xlu2 %v9293_v3, %s7608_s4 }
0x248e   :  { %v5355_v2 = vpop.f32.mrf.mxu0 }
0x248f   :  { %v5356_v30 = vadd.f32 %v9307_v12, %v5355_v2 }
0x2491   :  { %5884 = vrot.lane.b32.xlu0 %v5356_v30, %s7616_s14  ;;  %5810 = vrot.lane.b32.xlu1 %v5356_v30, %s7613_s11 }
0x2499   :  { %7063 = vrot.lane.b32.xlu0 %v9297_v40, %s7608_s4  ;;  %5956 = vrot.lane.b32.xlu1 %v5356_v30, %s7615_s13 }
0x24ac   :  { %v5515_v53 = vpop.permute.xlu2 %5514 }
0x24ad   :  { %6826 = vmatmul.msk.f32.vlgmr.msrb.gmra.mxu3 %vm456_vm15, %v5515_v53 }
0x24ae   :  { %6836 = vmatpush.xpose.msk.msrb.mxu3 %vm456_vm15, %v5405_v21 }
0x24b2   :  { %6837 = vmatpush.xpose.msk.msrb.mxu3 %vm456_vm15, %v9331_v35 }
0x24b4   :  { %v5589_v3 = vpop.permute.xlu2 %5588 }
0x24b5   :  { %6830 = vmatmul.msk.f32.vlgmr.msra.gmra.mxu3 %vm456_vm15, %v5589_v3 }
0x24bc   :  { %v5889_v63 = vpop.permute.xlu2 %5888 }
0x24bd   :  { %6838 = vmatmul.msk.f32.vlgmr.msrb.gmra.mxu3 %vm456_vm15, %v5356_v30 }
0x24be   :  { %6844 = vmatpush.xpose.msk.msra.mxu3 %vm456_vm15, %v5889_v63 }
0x24c2   :  { %6845 = vmatpush.xpose.msk.msra.mxu3 %vm456_vm15, %v5887_v58 }
0x24c4   :  { %v5661_v40 = vpop.permute.xlu1 %5660  ;;  %v5959_v23 = vpop.permute.xlu2 %5958 }
0x24c5   :  { %6834 = vmatmul.msk.f32.vlgmr.msra.gmra.mxu1 %vm456_vm15, %v5661_v40 }
0x24c6   :  { %6848 = vmatpush.xpose.msk.msra.mxu1 %vm456_vm15, %v5961_v29 }
0x24ca   :  { %6849 = vmatpush.xpose.msk.msra.mxu1 %vm456_vm15, %v5959_v23 }
0x24cc   :  { %v7059_v61 = vpop.permute.xlu2 %7058 }
0x24cd   :  { %v7061_v8 = vunpack.i.h.bf16 %v7059_v61  ;;  %v7060_v48 = vunpack.i.l.bf16 %v7059_v61 }
0x24cf   :  { %5434 = vmatpush.msrb.mxu2 %v7060_v48 }
0x24d1   :  { %5435 = vmatpush.msrb.mxu2 %v7061_v8 }
0x24d6   :  { %v5477_v24 = vpop.f32.mrf.mxu3 }
0x24d7   :  { %v5478_v32 = vadd.f32 %v5477_v24, %v7820_v51 }
0x24d9   :  { %v5480_v37 = vsel %vm488_vm3, %v5478_v32, -inf }
0x24da   :  { %5481 = vmax.xlane.f32.xlu1 %v5480_v37 }
0x24f3   :  { %5419 = vrot.lane.b32.xlu1 %v9307_v12, %s7608_s4 }
0x2503   :  { %v5885_v22 = vpop.permute.xlu0 %5884  ;;  %v5811_v31 = vpop.permute.xlu1 %5810 }
0x2504   :  { %6842 = vmatmul.msk.f32.vlgmr.msrb.gmra.mxu1 %vm456_vm15, %v5811_v31  ;;  %6846 = vmatmul.msk.f32.vlgmr.msra.gmra.mxu3 %vm456_vm15, %v5885_v22 }
0x250b   :  { %v7064_v17 = vpop.permute.xlu0 %7063  ;;  %v5957_v36 = vpop.permute.xlu1 %5956 }
0x250c   :  { %v7065_v18 = vunpack.i.l.bf16 %v7064_v17  ;;  %6850 = vmatmul.msk.f32.vlgmr.msra.gmra.mxu1 %vm456_vm15, %v5957_v36  ;;  %v7066_v25 = vunpack.i.h.bf16 %v7064_v17 }
0x250e   :  { %5436 = vmatpush.msrb.mxu2 %v7065_v18 }
0x2510   :  { %5437 = vmatpush.msrb.mxu2 %v7066_v25 }
0x2511   :  { %6816 = vmatmul.msk.f32.vlgmr.msrb.gmra.mxu2 %vm136_vm1, %v8888_v41 }
0x2519   :  { %6817 = vmatmul.msk.f32.gmra.mxu2 %vm136_vm1, %v8899_v54 }
0x2521   :  { %6818 = vmatmul.msk.f32.gmra.mxu2 %vm136_vm1, %v8967_v39 }
0x2529   :  { %6819 = vmatmul.msk.f32.gmra.mxu2 %vm136_vm1, %v8977_v44 }
0x2530   :  { %v5543_v12 = vpop.f32.mrf.mxu3 }
0x2531   :  { %v5544_v52 = vadd.f32 %v5543_v12, %v7820_v51 }
0x2533   :  { %v5546_v19 = vsel %vm488_vm3, %v5544_v52, -inf }
0x2538   :  { %v5617_v50 = vpop.f32.mrf.mxu3 }
0x2539   :  { %v5618_v27 = vadd.f32 %v5617_v50, %v7820_v51 }
0x253b   :  { %v5620_v20 = vsel %vm488_vm3, %v5618_v27, -inf }
0x253c   :  { %5621 = vmax.xlane.f32.xlu1 %v5620_v20 }
0x2540   :  { %v5773_v55 = vpop.f32.mrf.mxu3 }
0x2541   :  { %v5774_v10 = vadd.f32 %v5773_v55, %v7935_v5 }
0x2542   :  { %v5689_v49 = vpop.f32.mrf.mxu1 }
0x2543   :  { %v5690_v9 = vadd.f32 %v5689_v49, %v7820_v51  ;;  %v5776_v15 = vsel %vm488_vm3, %v5774_v10, -inf }
0x2545   :  { %v5692_v47 = vsel %vm488_vm3, %v5690_v9, -inf }
0x254d   :  { %v5482_v28 = vpop.xlane.xlu1 %5481 }
0x254e   :  { %v5483_v60 = vsub.f32 %v5478_v32, %v5482_v28 }
0x2550   :  { %v5484_v6 = vmul.f32 1.442695, %v5483_v60 }
0x2565   :  { %v5420_v42 = vpop.permute.xlu1 %5419 }
0x2581   :  { %v5839_v43 = vpop.f32.mrf.mxu1 }
0x2582   :  { %v5840_v14 = vadd.f32 %v5839_v43, %v7935_v5 }
0x2584   :  { %v5842_v51 = vsel %vm488_vm3, %v5840_v14, -inf }
0x2587   :  { %v5913_v38 = vpop.f32.mrf.mxu3 }
0x2588   :  { %v5914_v30 = vadd.f32 %v5913_v38, %v7935_v5 }
0x2589   :  { %v5985_v3 = vpop.f32.mrf.mxu1 }
0x258a   :  { %v5916_v58 = vsel %vm488_vm3, %v5914_v30, -inf  ;;  %v5986_v63 = vadd.f32 %v5985_v3, %v7935_v5 }
0x258c   :  { %v5988_v40 = vsel %vm488_vm3, %v5986_v63, -inf }
0x2594   :  { %v5439_v45 = vpop.f32.mrf.mxu2 }
0x2595   :  { %v5440_v26 = vadd.f32 %v5439_v45, %v5420_v42 }
0x259c   :  { %v5442_v35 = vpop.f32.mrf.mxu2 }
0x259d   :  { %v5443_v21 = vadd.f32 %v5442_v35, %v5420_v42 }
0x259f   :  { %5508 = vmatpush.msra.mxu0 %v5443_v21  ;;  %v7072_v62 = vpack.i.bf16 %v5440_v26, %v5443_v21 }
0x25a1   :  { %7073 = vrot.lane.b32.xlu2 %v7072_v62, %s7615_s13  ;;  %7068 = vrot.lane.b32.xlu0 %v7072_v62, %s7613_s11 }
0x25a2   :  { %5509 = vmatpush.msra.mxu0 %v5440_v26 }
0x25a4   :  { %v5445_v4 = vpop.f32.mrf.mxu2 }
0x25a5   :  { %v9412_v13 = vadd.f32 %v5445_v4, %v5420_v42 }
0x25ac   :  { %v5448_v11 = vpop.f32.mrf.mxu2 }
0x25ad   :  { %v9410_v59 = vadd.f32 %v5448_v11, %v5420_v42 }
0x25af   :  { %v5622_v56 = vpop.xlane.xlu1 %5621  ;;  %v9418_v1 = vpack.i.bf16 %v9412_v13, %v9410_v59 }
0x25b0   :  { %v5623_v7 = vsub.f32 %v5618_v27, %v5622_v56 }
0x25b2   :  { %v5624_v0 = vmul.f32 1.442695, %v5623_v7 }
0x25b4   :  { %7433 = vpow2.f32 %v5624_v0 }
0x25b5   :  { %7435 = vpow2.f32 %v5484_v6 }
0x25ba   :  { %v9400_v57 = vpop.eup %7433 }
0x25bb   :  { %v5626_v16 = vsel %vm488_vm3, %v9400_v57, 0.0  ;;  %v7436_v2 = vpop.eup %7435 }
0x25bc   :  { %5627 = vadd.xlane.f32.xlu1 %v5626_v16  ;;  %v5486_v53 = vsel %vm488_vm3, %v7436_v2, 0.0 }
0x25ca   :  { %5547 = vmax.xlane.f32.xlu2 %v5546_v19 }
0x25cb   :  { %5693 = vmax.xlane.f32.xlu0 %v5692_v47 }
0x25d2   :  { %5843 = vmax.xlane.f32.xlu2 %v5842_v51 }
0x25d3   :  { %5777 = vmax.xlane.f32.xlu0 %v5776_v15 }
0x25d5   :  { %7083 = vrot.lane.b32.xlu1 %v9418_v1, %s7613_s11 }
0x25da   :  { %5487 = vadd.xlane.f32.xlu2 %v5486_v53 }
0x25db   :  { %5917 = vmax.xlane.f32.xlu0 %v5916_v58 }
0x25e2   :  { %5989 = vmax.xlane.f32.xlu2 %v5988_v40 }
0x25fa   :  { %7078 = vrot.lane.b32.xlu2 %v7072_v62, %s7616_s14 }
0x25fb   :  { %v7074_v29 = vpop.permute.xlu2 %7073 }
0x25fc   :  { %v7075_v23 = vunpack.i.l.bf16 %v7074_v29  ;;  %v7076_v24 = vunpack.i.h.bf16 %v7074_v29 }
0x25fe   :  { %5726 = vmatpush.msra.mxu2 %v7075_v23 }
0x2600   :  { %5727 = vmatpush.msra.mxu2 %v7076_v24 }
0x2613   :  { %v7069_v32 = vpop.permute.xlu0 %7068 }
0x2614   :  { %v7070_v37 = vunpack.i.l.bf16 %v7069_v32  ;;  %v7071_v61 = vunpack.i.h.bf16 %v7069_v32 }
0x2616   :  { %5582 = vmatpush.msrb.mxu0 %v7070_v37 }
0x2618   :  { %5583 = vmatpush.msrb.mxu0 %v7071_v61 }
0x262f   :  { %v5628_v31 = vpop.xlane.xlu1 %5627 }
0x263d   :  { %v5548_v8 = vpop.xlane.xlu2 %5547 }
0x263e   :  { %v5549_v48 = vsub.f32 %v5544_v52, %v5548_v8  ;;  %v5694_v22 = vpop.xlane.xlu0 %5693 }
0x263f   :  { %v5695_v5 = vsub.f32 %v5690_v9, %v5694_v22 }
0x2640   :  { %v5550_v17 = vmul.f32 1.442695, %v5549_v48 }
0x2641   :  { %v5696_v36 = vmul.f32 1.442695, %v5695_v5 }
0x2642   :  { %7437 = vpow2.f32 %v5550_v17 }
0x2643   :  { %7439 = vpow2.f32 %v5696_v36 }
0x2645   :  { %v5844_v18 = vpop.xlane.xlu2 %5843 }
0x2646   :  { %v5845_v25 = vsub.f32 %v5840_v14, %v5844_v18  ;;  %v5778_v12 = vpop.xlane.xlu0 %5777 }
0x2647   :  { %v5779_v50 = vsub.f32 %v5774_v10, %v5778_v12  ;;  %v7084_v27 = vpop.permute.xlu1 %7083 }
0x2648   :  { %v7438_v20 = vpop.eup %7437  ;;  %v5846_v28 = vmul.f32 1.442695, %v5845_v25  ;;  %v7085_v45 = vunpack.i.l.bf16 %v7084_v27  ;;  %v7086_v21 = vunpack.i.h.bf16 %v7084_v27 }
0x2649   :  { %v7440_v42 = vpop.eup %7439  ;;  %v5780_v35 = vmul.f32 1.442695, %v5779_v50  ;;  %v5552_v26 = vsel %vm488_vm3, %v7438_v20, 0.0 }
0x264a   :  { %7441 = vpow2.f32 %v5846_v28  ;;  %5553 = vadd.xlane.f32.xlu0 %v5552_v26  ;;  %5878 = vmatpush.msrb.mxu2 %v7085_v45  ;;  %v5698_v62 = vsel %vm488_vm3, %v7440_v42, 0.0  ;;  %v6046_v26 = vld [vmem:[#allocation7 + $0x260] sm:$0xff] }
0x264b   :  { %7443 = vpow2.f32 %v5780_v35  ;;  %5699 = vadd.xlane.f32.xlu2 %v5698_v62  ;;  %6067 = vmatpush.msrb.mxu3 %v6046_v26  ;;  %v6044_v62 = vld [vmem:[#allocation7 + $0x250] sm:$0xff] }
0x264c   :  { %5879 = vmatpush.msrb.mxu2 %v7086_v21  ;;  %v6045_v21 = vld [vmem:[#allocation7 + $0x258] sm:$0xff] }
0x264d   :  { %v5488_v56 = vpop.xlane.xlu2 %5487  ;;  %6068 = vmatpush.msrb.mxu3 %v6045_v21 }
0x264e   :  { %7445 = vrcp.f32 %v5488_v56  ;;  %v5918_v7 = vpop.xlane.xlu0 %5917  ;;  %v6043_v56 = vld [vmem:[#allocation7 + $0x248] sm:$0xff] }
0x264f   :  { %v5919_v0 = vsub.f32 %v5914_v30, %v5918_v7  ;;  %6069 = vmatpush.msrb.mxu3 %v6044_v62  ;;  %v6352_v7 = vld [vmem:[#allocation7 + $0x518] sm:$0xff]  ;;  %v6172_v62 = vld [vmem:[#allocation7 + $0x400] sm:$0xff] }
0x2650   :  { %v7442_v16 = vpop.eup %7441 }
0x2651   :  { %v7444_v49 = vpop.eup %7443  ;;  %v5920_v4 = vmul.f32 1.442695, %v5919_v0  ;;  %v5848_v52 = vsel %vm488_vm3, %v7442_v16, 0.0  ;;  %6070 = vmatpush.msrb.mxu3 %v6043_v56  ;;  %v6351_v0 = vld [vmem:[#allocation7 + $0x510] sm:$0xff] }
0x2652   :  { %5849 = vadd.xlane.f32.xlu0 %v5848_v52  ;;  %v5782_v9 = vsel %vm488_vm3, %v7444_v49, 0.0 }
0x2653   :  { %7447 = vpow2.f32 %v5920_v4  ;;  %5783 = vadd.xlane.f32.xlu2 %v5782_v9  ;;  %6367 = vmatpush.msra.mxu3 %v6352_v7  ;;  %v7138_v7 = vld [vmem:[#allocation7 + $0x4d0] ss:$0 sm:$0xff] }
0x2654   :  { %v7446_v60 = vpop.eup %7445 }
0x2655   :  { %v5490_v19 = vmul.f32 %v7446_v60, %v7436_v2  ;;  %v5990_v43 = vpop.xlane.xlu2 %5989  ;;  %6368 = vmatpush.msra.mxu3 %v6351_v0 }
0x2656   :  { %v5991_v47 = vsub.f32 %v5986_v63, %v5990_v43 }
0x2657   :  { %6823 = vmatmul.msk.f32.vlgmr.msra.gmra.mxu0 %vm488_vm3, %v5490_v19 }
0x2658   :  { %v5992_v55 = vmul.f32 1.442695, %v5991_v47 }
0x2659   :  { %v7448_v6 = vpop.eup %7447 }
0x265a   :  { %7449 = vpow2.f32 %v5992_v55  ;;  %v5922_v11 = vsel %vm488_vm3, %v7448_v6, 0.0 }
0x265b   :  { %5923 = vadd.xlane.f32.xlu1 %v5922_v11 }
0x265d   :  { %v7079_v14 = vpop.permute.xlu2 %7078 }
0x265e   :  { %v7080_v10 = vunpack.i.l.bf16 %v7079_v14  ;;  %v7081_v15 = vunpack.i.h.bf16 %v7079_v14 }
0x2660   :  { %v7450_v51 = vpop.eup %7449  ;;  %5654 = vmatpush.msra.mxu0 %v7080_v10 }
0x2661   :  { %v5994_v38 = vsel %vm488_vm3, %v7450_v51, 0.0 }
0x2662   :  { %5995 = vadd.xlane.f32.xlu0 %v5994_v38  ;;  %5655 = vmatpush.msra.mxu0 %v7081_v15 }
0x266b   :  { %7093 = vrot.lane.b32.xlu2 %v9418_v1, %s7616_s14 }
0x2676   :  { %7088 = vrot.lane.b32.xlu0 %v9418_v1, %s7615_s13 }
0x26bd   :  { %v5554_v2 = vpop.xlane.xlu0 %5553 }
0x26be   :  { %7451 = vrcp.f32 %v5554_v2  ;;  %v5700_v30 = vpop.xlane.xlu2 %5699 }
0x26bf   :  { %7453 = vrcp.f32 %v5700_v30 }
0x26c0   :  { %7455 = vrcp.f32 %v5628_v31 }
0x26c4   :  { %v7452_v53 = vpop.eup %7451 }
0x26c5   :  { %v7454_v3 = vpop.eup %7453  ;;  %v5556_v58 = vmul.f32 %v7452_v53, %v7438_v20  ;;  %v5850_v63 = vpop.xlane.xlu0 %5849 }
0x26c6   :  { %v5702_v40 = vmul.f32 %v7454_v3, %v7440_v42  ;;  %7457 = vrcp.f32 %v5850_v63  ;;  %v5784_v29 = vpop.xlane.xlu2 %5783  ;;  %v7456_v23 = vpop.eup %7455 }
0x26c7   :  { %6827 = vmatmul.msk.f32.vlgmr.msrb.gmra.mxu0 %vm488_vm3, %v5556_v58  ;;  %7459 = vrcp.f32 %v5784_v29  ;;  %v5630_v24 = vmul.f32 %v7456_v23, %v9400_v57  ;;  %v9475_v58 = vld [vmem:[#allocation7 + $0x520] ss:$0 sm:$0xff] }
0x26c8   :  { %5804 = vmatpush.msrb.mxu0 %v9410_v59  ;;  %6835 = vmatmul.msk.f32.vlgmr.msra.gmra.mxu2 %vm488_vm3, %v5702_v40 }
0x26ca   :  { %5805 = vmatpush.msrb.mxu0 %v9412_v13 }
0x26cc   :  { %v7458_v1 = vpop.eup %7457 }
0x26cd   :  { %v5852_v32 = vmul.f32 %v7458_v1, %v7442_v16  ;;  %v7460_v59 = vpop.eup %7459  ;;  %v6350_v16 = vld [vmem:[#allocation7 + $0x508] sm:$0xff] }
0x26ce   :  { %v7094_v37 = vpop.permute.xlu2 %7093  ;;  %v5924_v48 = vpop.xlane.xlu1 %5923  ;;  %v5786_v22 = vmul.f32 %v7460_v59, %v7444_v49  ;;  %v6349_v49 = vld [vmem:[#allocation7 + $0x500] sm:$0xff]  ;;  %6369 = vmatpush.msra.mxu3 %v6350_v16  ;;  %v7139_v16 = vld [vmem:[#allocation7 + $0x4d8] ss:$0 sm:$0xff] }
0x26cf   :  { %v7095_v61 = vunpack.i.l.bf16 %v7094_v37  ;;  %6831 = vmatmul.msk.f32.vlgmr.msra.gmra.mxu0 %vm488_vm3, %v5630_v24  ;;  %v7096_v8 = vunpack.i.h.bf16 %v7094_v37  ;;  %7461 = vrcp.f32 %v5924_v48 }
0x26d0   :  { %6843 = vmatmul.msk.f32.vlgmr.msrb.gmra.mxu2 %vm488_vm3, %v5852_v32  ;;  %6370 = vmatpush.msra.mxu3 %v6349_v49 }
0x26d1   :  { %5950 = vmatpush.msra.mxu0 %v7095_v61 }
0x26d3   :  { %5951 = vmatpush.msra.mxu0 %v7096_v8 }
0x26d4   :  { %v5511_v12 = vpop.f32.mrf.mxu0 }
0x26d5   :  { %v7462_v13 = vpop.eup %7461  ;;  %v5996_v57 = vpop.xlane.xlu0 %5995 }
0x26d6   :  { %v5926_v31 = vmul.f32 %v7462_v13, %v7448_v6  ;;  %7463 = vrcp.f32 %v5996_v57  ;;  %v6134_v13 = vld [vmem:[#allocation7 + $0x3d0] sm:$0xff]  ;;  %v6132_v57 = vld [vmem:[#allocation7 + $0x3c0] sm:$0xff] }
0x26d7   :  { %6839 = vmatmul.msk.f32.vlgmr.msrb.gmra.mxu0 %vm488_vm3, %v5786_v22  ;;  %v6135_v22 = vld [vmem:[#allocation7 + $0x3d8] sm:$0xff] }
0x26d8   :  { %6156 = vmatpush.msrb.mxu0 %v6135_v22 }
0x26da   :  { %6157 = vmatpush.msrb.mxu0 %v6134_v13 }
0x26dc   :  { %v7464_v17 = vpop.eup %7463 }
0x26dd   :  { %v5998_v25 = vmul.f32 %v7464_v17, %v7450_v51  ;;  %v7136_v51 = vld [vmem:[#allocation7 + $0x268] ss:$0 sm:$0xff] }
0x26df   :  { %6847 = vmatmul.msk.f32.vlgmr.msra.gmra.mxu0 %vm488_vm3, %v5926_v31  ;;  %v6133_v31 = vld [vmem:[#allocation7 + $0x3c8] sm:$0xff] }
0x26e0   :  { %6158 = vmatpush.msrb.mxu0 %v6133_v31 }
0x26e2   :  { %6159 = vmatpush.msrb.mxu0 %v6132_v57 }
0x26e8   :  { %v7089_v5 = vpop.permute.xlu0 %7088 }
0x26e9   :  { %v7090_v36 = vunpack.i.l.bf16 %v7089_v5  ;;  %v7091_v18 = vunpack.i.h.bf16 %v7089_v5 }
0x26eb   :  { %6022 = vmatpush.msra.mxu2 %v7090_v36 }
0x26ed   :  { %6023 = vmatpush.msra.mxu2 %v7091_v18 }
0x26ee   :  { %6851 = vmatmul.msk.f32.vlgmr.msra.gmra.mxu2 %vm488_vm3, %v5998_v25 }
0x2744   :  { %v5585_v50 = vpop.f32.mrf.mxu0 }
0x2745   :  { %5733 = vrot.lane.b32.xlu0 %v5585_v50, %s7605_s27  ;;  %v6175_v50 = vld [vmem:[#allocation7 + $0x418] sm:$0xff] }
0x274b   :  { %v5729_v27 = vpop.f32.mrf.mxu2 }
0x274c   :  { %5741 = vrot.lane.b32.xlu2 %v5729_v27, %s7619_s17  ;;  %v5657_v20 = vpop.f32.mrf.mxu0 }
0x274d   :  { %5737 = vrot.lane.b32.xlu0 %v5657_v20, %s7618_s2  ;;  %v6174_v20 = vld [vmem:[#allocation7 + $0x410] sm:$0xff] }
0x2753   :  { %v5881_v28 = vpop.f32.mrf.mxu2 }
0x2754   :  { %v5807_v45 = vpop.f32.mrf.mxu0 }
0x2755   :  { %6029 = vrot.lane.b32.xlu0 %v5881_v28, %s7605_s27 }
0x275c   :  { %v5953_v42 = vpop.f32.mrf.mxu0 }
0x275d   :  { %6033 = vrot.lane.b32.xlu1 %v5953_v42, %s7618_s2 }
0x2771   :  { %v6025_v35 = vpop.f32.mrf.mxu2 }
0x2772   :  { %6037 = vrot.lane.b32.xlu2 %v6025_v35, %s7619_s17  ;;  %v6173_v35 = vld [vmem:[#allocation7 + $0x408] sm:$0xff] }
0x27a6   :  { %v5742_v60 = vpop.permute.xlu2 %5741 }
0x27b7   :  { %v5734_v4 = vpop.permute.xlu0 %5733 }
0x27b8   :  { %v5744_v52 = vsel %vm456_vm15, %v5511_v12, %v5734_v4  ;;  %v6176_v12 = vld [vmem:[#allocation7 + $0x420] sm:$0xff] }
0x27b9   :  { %6193 = vmatpush.msrb.mxu1 %v6176_v12 }
0x27bb   :  { %6194 = vmatpush.msrb.mxu1 %v6175_v50 }
0x27bd   :  { %6195 = vmatpush.msrb.mxu1 %v6174_v20 }
0x27bf   :  { %v5738_v9 = vpop.permute.xlu0 %5737  ;;  %6196 = vmatpush.msrb.mxu1 %v6173_v35 }
0x27c0   :  { %v5745_v19 = vsel %vm488_vm3, %v5744_v52, %v5738_v9 }
0x27c1   :  { %v5746_v43 = vsel %vm858_vm4, %v5745_v19, %v5742_v60  ;;  %6197 = vmatpush.msrb.mxu1 %v6172_v62  ;;  %v7142_v62 = vld [vmem:[#allocation7 + $0x4e0] ss:$0 sm:$0xff] }
0x27c2   :  { %6852 = vmatmul.msk.f32.vlgmr.msrb.gmra.mxu3 %vm136_vm1, %v5746_v43 }
0x27c7   :  { %v6030_v47 = vpop.permute.xlu0 %6029 }
0x27c8   :  { %v6040_v55 = vsel %vm456_vm15, %v5807_v45, %v6030_v47 }
0x27cc   :  { %v6038_v11 = vpop.permute.xlu2 %6037 }
0x27cf   :  { %v6034_v6 = vpop.permute.xlu1 %6033 }
0x27d0   :  { %v6041_v14 = vsel %vm488_vm3, %v6040_v55, %v6034_v6 }
0x27d1   :  { %v6042_v10 = vsel %vm858_vm4, %v6041_v14, %v6038_v11 }
0x27d2   :  { %6853 = vmatmul.msk.f32.gmra.mxu3 %vm136_vm1, %v6042_v10 }
0x27da   :  { %6860 = vmatmul.msk.f32.vlgmr.msra.gmra.mxu3 %vm136_vm1, %v8888_v41 }
0x27e2   :  { %6861 = vmatmul.msk.f32.gmra.mxu3 %vm136_vm1, %v8899_v54 }
0x27ea   :  { %6862 = vmatmul.msk.f32.gmra.mxu3 %vm136_vm1, %v8967_v39 }
0x27f2   :  { %6863 = vmatmul.msk.f32.gmra.mxu3 %vm136_vm1, %v8977_v44 }
0x2845   :  { %v6072_v15 = vpop.f32.mrf.mxu3 }
0x2846   :  { %v6073_v38 = vadd.f32 %v7136_v51, %v6072_v15  ;;  %v6170_v15 = vld [vmem:[#allocation7 + $0x3f0] sm:$0xff] }
0x2848   :  { %v6078_v2 = vadd.f32 %v6073_v38, %v9320_v33  ;;  %v6169_v38 = vld [vmem:[#allocation7 + $0x3e8] sm:$0xff] }
0x284a   :  { %v6080_v30 = vsel %vm136_vm1, %v6078_v2, 0.0 }
0x284b   :  { %6081 = vadd.xlane.f32.xlu0 %v6080_v30 }
0x2855   :  { %v6075_v53 = vpop.f32.mrf.mxu3 }
0x2856   :  { %v6076_v3 = vadd.f32 %v7136_v51, %v6075_v53  ;;  %v6171_v51 = vld [vmem:[#allocation7 + $0x3f8] sm:$0xff] }
0x2857   :  { %6198 = vmatpush.msrb.mxu1 %v6171_v51 }
0x2858   :  { %v6079_v41 = vadd.f32 %v6076_v3, %v9342_v46 }
0x2859   :  { %6199 = vmatpush.msrb.mxu1 %v6170_v15 }
0x285a   :  { %v6083_v54 = vsel %vm136_vm1, %v6079_v41, 0.0 }
0x285b   :  { %6084 = vadd.xlane.f32.xlu2 %v6083_v54  ;;  %6200 = vmatpush.msrb.mxu1 %v6169_v38 }
0x285d   :  { %v6372_v39 = vpop.f32.mrf.mxu3 }
0x285e   :  { %v9478_v44 = vadd.f32 %v9475_v58, %v6372_v39 }
0x2865   :  { %v6375_v63 = vpop.f32.mrf.mxu3 }
0x2866   :  { %v9481_v40 = vadd.f32 %v9475_v58, %v6375_v63  ;;  %v7141_v63 = vld [vmem:[#allocation7 + $0x428] ss:$0 sm:$0xff] }
0x286d   :  { %v6378_v33 = vpop.f32.mrf.mxu3 }
0x286e   :  { %v9484_v29 = vadd.f32 %v9475_v58, %v6378_v33 }
0x28be   :  { %v6082_v23 = vpop.xlane.xlu0 %6081 }
0x28bf   :  { %v6086_v46 = vmul.f32 %v6082_v23, %v7678_v34 }
0x28c1   :  { %v6088_v1 = vsub.f32 %v6078_v2, %v6086_v46  ;;  %v7140_v2 = vld [vmem:[#allocation7 + $0x3e0] ss:$0 sm:$0xff] }
0x28c3   :  { %v6090_v24 = vmul.f32 %v6088_v1, %v6088_v1 }
0x28c5   :  { %v6092_v32 = vsel %vm136_vm1, %v6090_v24, 0.0 }
0x28c6   :  { %6093 = vadd.xlane.f32.xlu1 %v6092_v32 }
0x28ce   :  { %v6085_v37 = vpop.xlane.xlu2 %6084 }
0x28cf   :  { %v6087_v61 = vmul.f32 %v6085_v37, %v7678_v34 }
0x28d1   :  { %v6089_v8 = vsub.f32 %v6079_v41, %v6087_v61 }
0x28d3   :  { %v6091_v48 = vmul.f32 %v6089_v8, %v6089_v8 }
0x28d5   :  { %v6095_v59 = vsel %vm136_vm1, %v6091_v48, 0.0 }
0x28d6   :  { %6096 = vadd.xlane.f32.xlu0 %v6095_v59 }
0x2939   :  { %v6094_v5 = vpop.xlane.xlu1 %6093 }
0x293a   :  { %v6098_v17 = vmul.f32 %v6094_v5, %v7678_v34 }
0x293c   :  { %v6100_v36 = vadd.f32 1e-05, %v6098_v17 }
0x293e   :  { %7465 = vrsqrt.f32 %v6100_v36  ;;  %vm6108_vm4 = vweird.f32 %v6100_v36 }
0x2944   :  { %v7466_v18 = vpop.eup %7465 }
0x2945   :  { %v6103_v25 = vmul.f32 %v7466_v18, %v6100_v36  ;;  %vm6109_vm15 = vweird.f32 %v7466_v18 }
0x2946   :  { %vm6110_vm7 = vmor %vm6108_vm4, %vm6109_vm15 }
0x2947   :  { %v6104_v27 = vmul.f32 %v7466_v18, %v6103_v25 }
0x2949   :  { %v6105_v28 = vmul.f32 0.5, %v6104_v27  ;;  %v6097_v45 = vpop.xlane.xlu0 %6096 }
0x294a   :  { %v6099_v42 = vmul.f32 %v6097_v45, %v7678_v34 }
0x294b   :  { %v6106_v26 = vsub.f32 1.5, %v6105_v28 }
0x294c   :  { %v6101_v21 = vadd.f32 1e-05, %v6099_v42 }
0x294d   :  { %v6107_v56 = vmul.f32 %v7466_v18, %v6106_v26 }
0x294e   :  { %7467 = vrsqrt.f32 %v6101_v21  ;;  %vm6118_vm9 = vweird.f32 %v6101_v21 }
0x294f   :  { %v6111_v0 = vsel %vm6110_vm7, %v7466_v18, %v6107_v56 }
0x2950   :  { %v6122_v49 = vmul.f32 %v6111_v0, %v6088_v1  ;;  %v7143_v0 = vld [vmem:[#allocation7 + $0x4e8] ss:$0 sm:$0xff] }
0x2952   :  { %v6126_v4 = vmul.f32 %v7138_v7, %v6122_v49 }
0x2954   :  { %v7468_v52 = vpop.eup %7467  ;;  %v6130_v9 = vadd.f32 %v7139_v16, %v6126_v4 }
0x2955   :  { %v6113_v60 = vmul.f32 %v7468_v52, %v6101_v21  ;;  %vm6119_vm8 = vweird.f32 %v7468_v52 }
0x2956   :  { %6854 = vmatmul.msk.f32.vlgmr.msrb.gmra.mxu0 %vm136_vm1, %v6130_v9  ;;  %vm6120_vm10 = vmor %vm6118_vm9, %vm6119_vm8 }
0x2957   :  { %v6114_v19 = vmul.f32 %v7468_v52, %v6113_v60 }
0x2959   :  { %v6115_v43 = vmul.f32 0.5, %v6114_v19 }
0x295b   :  { %v6116_v47 = vsub.f32 1.5, %v6115_v43 }
0x295d   :  { %v6117_v55 = vmul.f32 %v7468_v52, %v6116_v47 }
0x295f   :  { %v6121_v6 = vsel %vm6120_vm10, %v7468_v52, %v6117_v55 }
0x2960   :  { %v6123_v11 = vmul.f32 %v6121_v6, %v6089_v8 }
0x2962   :  { %v6127_v14 = vmul.f32 %v7138_v7, %v6123_v11 }
0x2964   :  { %v6131_v10 = vadd.f32 %v7139_v16, %v6127_v14  ;;  %v6381_v14 = vpop.f32.mrf.mxu3 }
0x2965   :  { %v6382_v51 = vadd.f32 %v9475_v58, %v6381_v14  ;;  %v6418_v58 = vmul.f32 %v9484_v29, %v9484_v29 }
0x2966   :  { %6855 = vmatmul.msk.f32.gmra.mxu0 %vm136_vm1, %v6131_v10 }
0x2967   :  { %v6419_v38 = vmul.f32 %v6382_v51, %v6382_v51 }
0x29d3   :  { %v6161_v30 = vpop.f32.mrf.mxu0 }
0x29d4   :  { %v6162_v53 = vadd.f32 %v7140_v2, %v6161_v30 }
0x29d6   :  { %v6167_v3 = vmax.f32 %v6162_v53, 0.0 }
0x29d8   :  { %6856 = vmatmul.msk.f32.vlgmr.msrb.gmra.mxu1 %vm94_vm0, %v6167_v3 }
0x29e3   :  { %v6164_v41 = vpop.f32.mrf.mxu0 }
0x29e4   :  { %v6165_v54 = vadd.f32 %v7140_v2, %v6164_v41  ;;  %v6429_v2 = vsel %vm488_vm3, %v6419_v38, 0.0 }
0x29e6   :  { %v6168_v39 = vmax.f32 %v6165_v54, 0.0 }
0x29e8   :  { %6857 = vmatmul.msk.f32.gmra.mxu1 %vm94_vm0, %v6168_v39  ;;  %v6317_v39 = vld [vmem:[#allocation7 + $0x540] sm:$0xff] }
0x29e9   :  { %6338 = vmatpush.msrb.mxu2 %v6317_v39 }
0x2a55   :  { %v6202_v33 = vpop.f32.mrf.mxu1 }
0x2a56   :  { %v6203_v23 = vadd.f32 %v7141_v63, %v6202_v33  ;;  %v6315_v33 = vld [vmem:[#allocation7 + $0x530] sm:$0xff] }
0x2a58   :  { %v6208_v46 = vadd.f32 %v6203_v23, %v6130_v9  ;;  %v6314_v23 = vld [vmem:[#allocation7 + $0x528] sm:$0xff] }
0x2a5a   :  { %v6210_v1 = vsel %vm136_vm1, %v6208_v46, 0.0 }
0x2a5b   :  { %6211 = vadd.xlane.f32.xlu2 %v6210_v1 }
0x2a65   :  { %v6205_v24 = vpop.f32.mrf.mxu1 }
0x2a66   :  { %v6206_v32 = vadd.f32 %v7141_v63, %v6205_v24  ;;  %v6316_v63 = vld [vmem:[#allocation7 + $0x538] sm:$0xff] }
0x2a67   :  { %6339 = vmatpush.msrb.mxu2 %v6316_v63 }
0x2a68   :  { %v6209_v37 = vadd.f32 %v6206_v32, %v6131_v10  ;;  %v6416_v32 = vmul.f32 %v9478_v44, %v9478_v44 }
0x2a69   :  { %6340 = vmatpush.msrb.mxu2 %v6315_v33 }
0x2a6a   :  { %v6213_v61 = vsel %vm136_vm1, %v6209_v37, 0.0 }
0x2a6b   :  { %6214 = vadd.xlane.f32.xlu0 %v6213_v61  ;;  %6341 = vmatpush.msrb.mxu2 %v6314_v23 }
0x2ace   :  { %v6212_v8 = vpop.xlane.xlu2 %6211 }
0x2acf   :  { %v6216_v48 = vmul.f32 %v6212_v8, %v7678_v34 }
0x2ad1   :  { %v6218_v59 = vsub.f32 %v6208_v46, %v6216_v48  ;;  %v6426_v46 = vsel %vm488_vm3, %v6418_v58, 0.0  ;;  %v6420_v48 = vsel %vm488_vm3, %v6416_v32, 0.0 }
0x2ad3   :  { %v6220_v22 = vmul.f32 %v6218_v59, %v6218_v59 }
0x2ad5   :  { %v6222_v13 = vsel %vm136_vm1, %v6220_v22, 0.0 }
0x2ad6   :  { %6223 = vadd.xlane.f32.xlu2 %v6222_v13  ;;  %v6417_v13 = vmul.f32 %v9481_v40, %v9481_v40 }
0x2ade   :  { %v6215_v31 = vpop.xlane.xlu0 %6214 }
0x2adf   :  { %v6217_v57 = vmul.f32 %v6215_v31, %v7678_v34  ;;  %v6423_v31 = vsel %vm488_vm3, %v6417_v13, 0.0 }
0x2ae1   :  { %v6219_v5 = vsub.f32 %v6209_v37, %v6217_v57 }
0x2ae3   :  { %v6221_v17 = vmul.f32 %v6219_v5, %v6219_v5 }
0x2ae5   :  { %v6225_v36 = vsel %vm136_vm1, %v6221_v17, 0.0 }
0x2ae6   :  { %6226 = vadd.xlane.f32.xlu0 %v6225_v36 }
0x2b49   :  { %v6224_v18 = vpop.xlane.xlu2 %6223 }
0x2b4a   :  { %v6228_v25 = vmul.f32 %v6224_v18, %v7678_v34 }
0x2b4c   :  { %v6230_v12 = vadd.f32 1e-05, %v6228_v25 }
0x2b4e   :  { %7469 = vrsqrt.f32 %v6230_v12  ;;  %vm6238_vm11 = vweird.f32 %v6230_v12 }
0x2b54   :  { %v7470_v50 = vpop.eup %7469 }
0x2b55   :  { %v6233_v27 = vmul.f32 %v7470_v50, %v6230_v12  ;;  %vm6239_vm0 = vweird.f32 %v7470_v50 }
0x2b56   :  { %vm6240_vm12 = vmor %vm6238_vm11, %vm6239_vm0 }
0x2b57   :  { %v6234_v20 = vmul.f32 %v7470_v50, %v6233_v27 }
0x2b59   :  { %v6235_v28 = vmul.f32 0.5, %v6234_v20  ;;  %v6227_v45 = vpop.xlane.xlu0 %6226 }
0x2b5a   :  { %v6229_v42 = vmul.f32 %v6227_v45, %v7678_v34 }
0x2b5b   :  { %v6236_v35 = vsub.f32 1.5, %v6235_v28 }
0x2b5c   :  { %v6231_v26 = vadd.f32 1e-05, %v6229_v42 }
0x2b5d   :  { %v6237_v21 = vmul.f32 %v7470_v50, %v6236_v35 }
0x2b5e   :  { %7471 = vrsqrt.f32 %v6231_v26  ;;  %vm6248_vm14 = vweird.f32 %v6231_v26 }
0x2b5f   :  { %v6241_v56 = vsel %vm6240_vm12, %v7470_v50, %v6237_v21 }
0x2b60   :  { %v6252_v7 = vmul.f32 %v6241_v56, %v6218_v59 }
0x2b62   :  { %v6256_v16 = vmul.f32 %v7142_v62, %v6252_v7 }
0x2b64   :  { %v7472_v49 = vpop.eup %7471  ;;  %v6260_v4 = vadd.f32 %v7143_v0, %v6256_v16 }
0x2b65   :  { %v6243_v52 = vmul.f32 %v7472_v49, %v6231_v26  ;;  %vm6249_vm13 = vweird.f32 %v7472_v49 }
0x2b66   :  { %v6262_v9 = vsel %vm136_vm1, %v6260_v4, 0.0  ;;  %vm6250_vm2 = vmor %vm6248_vm14, %vm6249_vm13 }
0x2b67   :  { %v6244_v60 = vmul.f32 %v7472_v49, %v6243_v52  ;;  %6263 = vadd.xlane.f32.xlu2 %v6262_v9 }
0x2b69   :  { %v6245_v19 = vmul.f32 0.5, %v6244_v60 }
0x2b6b   :  { %v6246_v43 = vsub.f32 1.5, %v6245_v19 }
0x2b6d   :  { %v6247_v47 = vmul.f32 %v7472_v49, %v6246_v43  ;;  %v7144_v43 = vld [vmem:[#allocation7 + $0x4f0] ss:$0 sm:$0xff] }
0x2b6f   :  { %v6251_v55 = vsel %vm6250_vm2, %v7472_v49, %v6247_v47 }
0x2b70   :  { %v6253_v6 = vmul.f32 %v6251_v55, %v6219_v5 }
0x2b72   :  { %v6257_v11 = vmul.f32 %v7142_v62, %v6253_v6  ;;  %v7145_v6 = vld [vmem:[#allocation7 + $0x4f8] ss:$0 sm:$0xff] }
0x2b74   :  { %v6261_v10 = vadd.f32 %v7143_v0, %v6257_v11 }
0x2b76   :  { %v6265_v15 = vsel %vm136_vm1, %v6261_v10, 0.0 }
0x2b77   :  { %6266 = vadd.xlane.f32.xlu1 %v6265_v15 }
0x2b7f   :  { %6430 = vadd.xlane.f32.xlu1 %v6429_v2 }
0x2bda   :  { %v6264_v30 = vpop.xlane.xlu2 %6263 }
0x2bdb   :  { %v6268_v53 = vmul.f32 %v6264_v30, %v7678_v34 }
0x2bdd   :  { %v9509_v3 = vsub.f32 %v6260_v4, %v6268_v53 }
0x2bdf   :  { %v6272_v41 = vmul.f32 %v9509_v3, %v9509_v3 }
0x2be1   :  { %v6274_v54 = vsel %vm136_vm1, %v6272_v41, 0.0 }
0x2be2   :  { %6275 = vadd.xlane.f32.xlu0 %v6274_v54 }
0x2bea   :  { %v6267_v1 = vpop.xlane.xlu1 %6266  ;;  %6427 = vadd.xlane.f32.xlu0 %v6426_v46 }
0x2beb   :  { %v6269_v24 = vmul.f32 %v6267_v1, %v7678_v34 }
0x2bed   :  { %v9520_v37 = vsub.f32 %v6261_v10, %v6269_v24 }
0x2bef   :  { %v6273_v61 = vmul.f32 %v9520_v37, %v9520_v37 }
0x2bf1   :  { %v6277_v8 = vsel %vm136_vm1, %v6273_v61, 0.0 }
0x2bf2   :  { %v6431_v59 = vpop.xlane.xlu1 %6430  ;;  %6278 = vadd.xlane.f32.xlu2 %v6277_v8  ;;  %6421 = vadd.xlane.f32.xlu0 %v6420_v48 }
0x2bf3   :  { %v6435_v22 = vmax.f32 %v6431_v59, 1e-24 }
0x2bf5   :  { %7473 = vrsqrt.f32 %v6435_v22  ;;  %vm6472_vm6 = vweird.f32 %v6435_v22 }
0x2bfa   :  { %6424 = vadd.xlane.f32.xlu2 %v6423_v31 }
0x2bfb   :  { %v7474_v57 = vpop.eup %7473 }
0x2bfc   :  { %v6467_v5 = vmul.f32 %v7474_v57, %v6435_v22  ;;  %vm6473_vm5 = vweird.f32 %v7474_v57 }
0x2bfd   :  { %vm6474_vm15 = vmor %vm6472_vm6, %vm6473_vm5 }
0x2bfe   :  { %v6468_v17 = vmul.f32 %v7474_v57, %v6467_v5 }
0x2c00   :  { %v6469_v36 = vmul.f32 0.5, %v6468_v17 }
0x2c02   :  { %v6470_v18 = vsub.f32 1.5, %v6469_v36 }
0x2c04   :  { %v6471_v25 = vmul.f32 %v7474_v57, %v6470_v18  ;;  %v7146_v18 = vld [vmem:[#allocation7 + $0x548] ss:$0 sm:$0xff] }
0x2c06   :  { %v6475_v12 = vsel %vm6474_vm15, %v7474_v57, %v6471_v25 }
0x2c07   :  { %v6479_v50 = vmul.f32 %v6475_v12, %v6382_v51 }
0x2c09   :  { %6867 = vmatpush.xpose.msk.msra.mxu2 %vm488_vm3, %v6479_v50 }
0x2c55   :  { %v6276_v27 = vpop.xlane.xlu0 %6275 }
0x2c56   :  { %v6280_v20 = vmul.f32 %v6276_v27, %v7678_v34 }
0x2c58   :  { %v6282_v28 = vadd.f32 1e-05, %v6280_v20 }
0x2c5a   :  { %7475 = vrsqrt.f32 %v6282_v28  ;;  %vm6290_vm7 = vweird.f32 %v6282_v28 }
0x2c5d   :  { %v6428_v45 = vpop.xlane.xlu0 %6427 }
0x2c5e   :  { %v6434_v42 = vmax.f32 %v6428_v45, 1e-24 }
0x2c60   :  { %v7476_v35 = vpop.eup %7475  ;;  %7477 = vrsqrt.f32 %v6434_v42  ;;  %vm6462_vm10 = vweird.f32 %v6434_v42 }
0x2c61   :  { %v6285_v26 = vmul.f32 %v7476_v35, %v6282_v28  ;;  %vm6291_vm4 = vweird.f32 %v7476_v35 }
0x2c62   :  { %vm6292_vm8 = vmor %vm6290_vm7, %vm6291_vm4 }
0x2c63   :  { %v6286_v21 = vmul.f32 %v7476_v35, %v6285_v26 }
0x2c65   :  { %v6287_v62 = vmul.f32 0.5, %v6286_v21  ;;  %v6422_v56 = vpop.xlane.xlu0 %6421  ;;  %v6279_v7 = vpop.xlane.xlu2 %6278 }
0x2c66   :  { %v7478_v0 = vpop.eup %7477  ;;  %v9531_v16 = vmax.f32 %v6422_v56, 1e-24  ;;  %v6281_v49 = vmul.f32 %v6279_v7, %v7678_v34 }
0x2c67   :  { %v6288_v4 = vsub.f32 1.5, %v6287_v62  ;;  %v6457_v52 = vmul.f32 %v7478_v0, %v6434_v42  ;;  %vm6463_vm9 = vweird.f32 %v7478_v0 }
0x2c68   :  { %7479 = vrsqrt.f32 %v9531_v16  ;;  %v6283_v9 = vadd.f32 1e-05, %v6281_v49  ;;  %vm6464_vm0 = vmor %vm6462_vm10, %vm6463_vm9  ;;  %vm6442_vm15 = vweird.f32 %v9531_v16 }
0x2c69   :  { %v6289_v60 = vmul.f32 %v7476_v35, %v6288_v4  ;;  %v6458_v19 = vmul.f32 %v7478_v0, %v6457_v52 }
0x2c6a   :  { %7481 = vrsqrt.f32 %v6283_v9  ;;  %vm6300_vm12 = vweird.f32 %v6283_v9 }
0x2c6b   :  { %v6293_v47 = vsel %vm6292_vm8, %v7476_v35, %v6289_v60  ;;  %v6459_v55 = vmul.f32 0.5, %v6458_v19 }
0x2c6c   :  { %v6304_v11 = vmul.f32 %v6293_v47, %v9509_v3 }
0x2c6d   :  { %v6460_v14 = vsub.f32 1.5, %v6459_v55  ;;  %v6425_v34 = vpop.xlane.xlu2 %6424 }
0x2c6e   :  { %v7480_v10 = vpop.eup %7479  ;;  %v6308_v51 = vmul.f32 %v7144_v43, %v6304_v11  ;;  %v6433_v15 = vmax.f32 %v6425_v34, 1e-24 }
0x2c6f   :  { %v6461_v38 = vmul.f32 %v7478_v0, %v6460_v14  ;;  %v6437_v2 = vmul.f32 %v7480_v10, %v9531_v16  ;;  %vm6443_vm2 = vweird.f32 %v7480_v10 }
0x2c70   :  { %v7482_v30 = vpop.eup %7481  ;;  %v6312_v53 = vadd.f32 %v7145_v6, %v6308_v51  ;;  %7483 = vrsqrt.f32 %v6433_v15  ;;  %vm6452_vm5 = vweird.f32 %v6433_v15  ;;  %vm6444_vm4 = vmor %vm6442_vm15, %vm6443_vm2 }
0x2c71   :  { %v6465_v41 = vsel %vm6464_vm0, %v7478_v0, %v6461_v38  ;;  %v6295_v54 = vmul.f32 %v7482_v30, %v6283_v9  ;;  %v6438_v39 = vmul.f32 %v7480_v10, %v6437_v2  ;;  %vm6301_vm11 = vweird.f32 %v7482_v30 }
0x2c72   :  { %6858 = vmatmul.msk.f32.vlgmr.msrb.gmra.mxu2 %vm136_vm1, %v6312_v53  ;;  %v6478_v3 = vmul.f32 %v6465_v41, %v9484_v29  ;;  %vm6302_vm13 = vmor %vm6300_vm12, %vm6301_vm11 }
0x2c73   :  { %v6296_v58 = vmul.f32 %v7482_v30, %v6295_v54  ;;  %v6439_v23 = vmul.f32 0.5, %v6438_v39 }
0x2c74   :  { %6868 = vmatpush.xpose.msk.msra.mxu2 %vm488_vm3, %v6478_v3 }
0x2c75   :  { %v6297_v63 = vmul.f32 0.5, %v6296_v58  ;;  %v6440_v61 = vsub.f32 1.5, %v6439_v23 }
0x2c76   :  { %v7484_v33 = vpop.eup %7483 }
0x2c77   :  { %v6298_v46 = vsub.f32 1.5, %v6297_v63  ;;  %v6447_v1 = vmul.f32 %v7484_v33, %v6433_v15  ;;  %vm6453_vm14 = vweird.f32 %v7484_v33  ;;  %v6441_v13 = vmul.f32 %v7480_v10, %v6440_v61 }
0x2c78   :  { %vm6454_vm6 = vmor %vm6452_vm5, %vm6453_vm14 }
0x2c79   :  { %v6299_v24 = vmul.f32 %v7482_v30, %v6298_v46  ;;  %v6448_v32 = vmul.f32 %v7484_v33, %v6447_v1  ;;  %v6445_v36 = vsel %vm6444_vm4, %v7480_v10, %v6441_v13 }
0x2c7b   :  { %v6303_v8 = vsel %vm6302_vm13, %v7482_v30, %v6299_v24  ;;  %v6449_v48 = vmul.f32 0.5, %v6448_v32 }
0x2c7c   :  { %v6305_v59 = vmul.f32 %v6303_v8, %v9520_v37  ;;  %v6476_v37 = vmul.f32 %v6445_v36, %v9478_v44 }
0x2c7d   :  { %v6450_v29 = vsub.f32 1.5, %v6449_v48 }
0x2c7e   :  { %v6309_v22 = vmul.f32 %v7144_v43, %v6305_v59 }
0x2c7f   :  { %v6451_v31 = vmul.f32 %v7484_v33, %v6450_v29 }
0x2c80   :  { %v6313_v57 = vadd.f32 %v7145_v6, %v6309_v22 }
0x2c81   :  { %v6455_v5 = vsel %vm6454_vm6, %v7484_v33, %v6451_v31 }
0x2c82   :  { %v6477_v17 = vmul.f32 %v6455_v5, %v9481_v40  ;;  %6859 = vmatmul.msk.f32.gmra.mxu2 %vm136_vm1, %v6313_v57 }
0x2c84   :  { %6864 = vmatpush.xpose.msk.msra.mxu0 %vm488_vm3, %v6477_v17 }
0x2c88   :  { %6865 = vmatpush.xpose.msk.msra.mxu0 %vm488_vm3, %v6476_v37 }
0x2cf5   :  { %v6343_v25 = vpop.f32.mrf.mxu2 }
0x2cf6   :  { %v6344_v12 = vadd.f32 %v7146_v18, %v6343_v25 }
0x2cf8   :  { %v6384_v50 = vmul.f32 %v6344_v12, %v6344_v12 }
0x2cfa   :  { %v6386_v27 = vsel %vm488_vm3, %v6384_v50, 0.0 }
0x2cfb   :  { %6387 = vadd.xlane.f32.xlu2 %v6386_v27 }
0x2d05   :  { %v6346_v20 = vpop.f32.mrf.mxu2 }
0x2d06   :  { %v6347_v28 = vadd.f32 %v7146_v18, %v6346_v20 }
0x2d08   :  { %v6385_v45 = vmul.f32 %v6347_v28, %v6347_v28 }
0x2d0a   :  { %v6389_v40 = vsel %vm488_vm3, %v6385_v45, 0.0 }
0x2d0b   :  { %6390 = vadd.xlane.f32.xlu1 %v6389_v40 }
0x2d6e   :  { %v6388_v42 = vpop.xlane.xlu2 %6387 }
0x2d6f   :  { %v6392_v35 = vmax.f32 %v6388_v42, 1e-24 }
0x2d71   :  { %7485 = vrsqrt.f32 %v6392_v35  ;;  %vm6400_vm7 = vweird.f32 %v6392_v35 }
0x2d77   :  { %v7486_v26 = vpop.eup %7485 }
0x2d78   :  { %v6395_v44 = vmul.f32 %v7486_v26, %v6392_v35  ;;  %vm6401_vm1 = vweird.f32 %v7486_v26 }
0x2d79   :  { %vm6402_vm8 = vmor %vm6400_vm7, %vm6401_vm1 }
0x2d7a   :  { %v6396_v21 = vmul.f32 %v7486_v26, %v6395_v44 }
0x2d7c   :  { %v6397_v62 = vmul.f32 0.5, %v6396_v21 }
0x2d7e   :  { %v6398_v56 = vsub.f32 1.5, %v6397_v62  ;;  %v6391_v7 = vpop.xlane.xlu1 %6390 }
0x2d7f   :  { %v6393_v0 = vmax.f32 %v6391_v7, 1e-24 }
0x2d80   :  { %v6399_v16 = vmul.f32 %v7486_v26, %v6398_v56 }
0x2d81   :  { %7487 = vrsqrt.f32 %v6393_v0  ;;  %vm6410_vm10 = vweird.f32 %v6393_v0 }
0x2d82   :  { %v6403_v49 = vsel %vm6402_vm8, %v7486_v26, %v6399_v16 }
0x2d83   :  { %v6414_v4 = vmul.f32 %v6403_v49, %v6344_v12 }
0x2d85   :  { %6866 = vmatmul.msk.f32.vlgmr.msra.gmra.mxu0 %vm488_vm3, %v6414_v4 }
0x2d87   :  { %v7488_v52 = vpop.eup %7487 }
0x2d88   :  { %v6405_v9 = vmul.f32 %v7488_v52, %v6393_v0  ;;  %vm6411_vm9 = vweird.f32 %v7488_v52 }
0x2d89   :  { %vm6412_vm0 = vmor %vm6410_vm10, %vm6411_vm9 }
0x2d8a   :  { %v6406_v60 = vmul.f32 %v7488_v52, %v6405_v9 }
0x2d8c   :  { %v6407_v19 = vmul.f32 0.5, %v6406_v60 }
0x2d8e   :  { %v6408_v43 = vsub.f32 1.5, %v6407_v19 }
0x2d90   :  { %v6409_v47 = vmul.f32 %v7488_v52, %v6408_v43 }
0x2d92   :  { %v6413_v55 = vsel %vm6412_vm0, %v7488_v52, %v6409_v47 }
0x2d93   :  { %v6415_v6 = vmul.f32 %v6413_v55, %v6347_v28 }
0x2d95   :  { %6869 = vmatmul.msk.f32.vlgmr.msra.gmra.mxu2 %vm488_vm3, %v6415_v6 }
0x2e02   :  { %v6506_v11 = vpop.f32.mrf.mxu0 }
0x2e03   :  { %6509 = vst.msk [vmem:[#allocation8] sm:$0xff] %vm488_vm3, %v6506_v11 }
0x2e18   :  { %v6536_v14 = vpop.f32.mrf.mxu2 }
0x2e19   :  { %6539 = vst.msk [vmem:[#allocation8 + $0x8] sm:$0xff] %vm488_vm3, %v6536_v14 }
0x2e1a   :  { %6552 = dma.vmem_to_hbm [thread:$0]  %s6545_s20, 256, %s6547_s23, [#allocation4], %s7604_s26, %s7604_s26, %s7605_s27  }
0x2e1b   :  { %7601 = dma.done.wait [#allocation4], 256  }
0x2e1c   :  { %7602 = vsyncadd [#allocation4], 4294967040 }
0x2e1d   :  { %6557 = vsyncpa [#allocation3], 1 }
0x2e1e   :  { %6558 = vsyncpa [#allocation6], 1 }
0x2e1f   :  { %6559 = vsyncpa [#allocation4], 1 }

</bundles_post_ra>
